<compile_context>
chip_gen: v6e
topology: v6e:2x2x1
jax: 0.10.0
libtpu: 0.0.40
codegen_flags: <defaults>
</compile_context>

<pallas_src>
import functools
import math

import numpy as np
import jax
import jax.numpy as jnp
from jax import lax
from jax.experimental import pallas as pl
from jax.experimental.pallas import tpu as pltpu

# ---------------- small, module-consistent configuration ----------------
X_SHAPE = 4           # search feature map side (was 14)
Z_SHAPE = 2           # template feature map side (was 7)
PATCH = 2
IN_CH = 5             # in_channels == out_channels
COND_CH = 32          # condition_channels (was 512)
HIDDEN = 32           # hidden_size (was 512)
NUM_HEADS = 4         # (was 16)
MLP_RATIO = 4.0
FUSION_DEPTH = 1
DEPTH = 2             # (was 28)

X_PATCHES = (X_SHAPE // PATCH) ** 2     # 4
Z_PATCHES = (Z_SHAPE // PATCH) ** 2     # 1
HEAD_DIM = HIDDEN // NUM_HEADS          # 8
MLP_HIDDEN = int(HIDDEN * MLP_RATIO)    # 128
OUT_DIM = PATCH * PATCH * IN_CH         # 20

# Canonical flattening order for weights passed to the fused kernel.
EMBED_KEYS = ('bbox_w', 'bbox_b', 'xemb_w', 'xemb_b', 'zemb_w', 'zemb_b',
              'x_pos_t', 'z_pos_t')
CROSS_KEYS = ('g1q', 'b1q', 'g1kv', 'b1kv', 'wqh', 'wkh', 'wvh', 'pwh', 'pb',
              'g2', 'b2', 'w1', 'mb1', 'w2', 'mb2')
BLOCK_KEYS = ('adaw', 'adab', 'wqh', 'wkh', 'wvh', 'bqh', 'bkh', 'bvh',
              'pwh', 'pb', 'f1w', 'f1b', 'f2w', 'f2b')
FINAL_KEYS = ('adaw', 'adab', 'lw', 'lb')


# ---------------- sin-cos positional embedding (same math as reference) ----------------
def get_1d_sincos_pos_embed_from_grid(embed_dim, pos):
    assert embed_dim % 2 == 0
    omega = np.arange(embed_dim // 2, dtype=np.float64)
    omega /= embed_dim / 2.0
    omega = 1.0 / 10000 ** omega
    pos = pos.reshape(-1)
    out = np.einsum('m,d->md', pos, omega)
    return np.concatenate([np.sin(out), np.cos(out)], axis=1)


def get_2d_sincos_pos_embed_from_grid(embed_dim, grid):
    assert embed_dim % 2 == 0
    emb_h = get_1d_sincos_pos_embed_from_grid(embed_dim // 2, grid[0])
    emb_w = get_1d_sincos_pos_embed_from_grid(embed_dim // 2, grid[1])
    return np.concatenate([emb_h, emb_w], axis=1)


def get_2d_sincos_pos_embed(embed_dim, grid_size):
    grid_h = np.arange(grid_size, dtype=np.float32)
    grid_w = np.arange(grid_size, dtype=np.float32)
    grid = np.meshgrid(grid_w, grid_h)
    grid = np.stack(grid, axis=0).reshape([2, 1, grid_size, grid_size])
    return get_2d_sincos_pos_embed_from_grid(embed_dim, grid)


# ---------------- in-kernel helpers (all f32 elementwise: safe on v5e) ----------------
def _layernorm(x, eps):
    mu = jnp.mean(x, axis=-1, keepdims=True)
    var = jnp.mean(jnp.square(x - mu), axis=-1, keepdims=True)
    return (x - mu) * lax.rsqrt(var + eps)


def _gelu_tanh(x):
    # TODO(synk): CrossAttentionBlock's Mlp uses exact (erf) GELU in PyTorch; the tanh
    # approximation is used in-kernel since erf has no reliable Mosaic lowering.
    # (DiT blocks use GELU(approximate='tanh') so they match exactly.)
    c = math.sqrt(2.0 / math.pi)
    return 0.5 * x * (1.0 + jnp.tanh(c * (x + 0.044715 * x * x * x)))


def _silu(x):
    return x * jax.nn.sigmoid(x)


def _mha_heads(q_rows, k_rows, v_rows, wqh_ref, wkh_ref, wvh_ref, pwh_ref,
               num_heads, bqh_ref=None, bkh_ref=None, bvh_ref=None):
    """Multi-head attention with per-head weight stacks.

    q_rows: (Lq, C), k_rows/v_rows: (Lk, C).
    wqh/wkh/wvh refs: (H, C, hd); pwh ref: (H, hd, C); biases: (H, 1, hd).
    The attention scale is already folded into wqh (and bqh).
    Returns (Lq, C) = sum_h softmax(q_h k_h^T) v_h @ Wp_h   (proj bias added by caller).
    """
    acc = None
    for h in range(num_heads):
        qs = jnp.dot(q_rows, wqh_ref[h], preferred_element_type=jnp.float32)
        if bqh_ref is not None:
            qs = qs + bqh_ref[h]
        ks = jnp.dot(k_rows, wkh_ref[h], preferred_element_type=jnp.float32)
        if bkh_ref is not None:
            ks = ks + bkh_ref[h]
        vs = jnp.dot(v_rows, wvh_ref[h], preferred_element_type=jnp.float32)
        if bvh_ref is not None:
            vs = vs + bvh_ref[h]
        s = lax.dot_general(qs, ks, (((1,), (1,)), ((), ())),
                            preferred_element_type=jnp.float32)
        s = s - jnp.max(s, axis=-1, keepdims=True)
        p = jnp.exp(s)
        p = p * pl.reciprocal(jnp.sum(p, axis=-1, keepdims=True), approx=True)
        o = jnp.dot(p, vs, preferred_element_type=jnp.float32)
        contrib = jnp.dot(o, pwh_ref[h], preferred_element_type=jnp.float32)
        acc = contrib if acc is None else acc + contrib
    return acc


# ---------------- the single fused kernel ----------------
def _fused_dit_kernel(*refs, fusion_depth, depth, n, px, pz, num_heads):
    it = iter(refs)
    tp_ref = next(it)      # (n*px, IN_CH*P*P)
    xp_ref = next(it)      # (n*px, COND_CH*P*P)
    zp_ref = next(it)      # (n*pz, COND_CH*P*P)
    t_ref = next(it)       # (n*px, C)   timestep embedding, pre-broadcast per token
    emb = {k: next(it) for k in EMBED_KEYS}
    cross = [{k: next(it) for k in CROSS_KEYS} for _ in range(fusion_depth)]
    blocks = [{k: next(it) for k in BLOCK_KEYS} for _ in range(depth)]
    fin = {k: next(it) for k in FINAL_KEYS}
    o_ref = next(it)       # (n*px, OUT_DIM)
    kv_scr = next(it)      # VMEM (pz+px, C)
    att_scr = next(it)     # VMEM (n*px, C)

    f32 = jnp.float32

    # ---- patch embedders + positional embeddings (whole flattened batch) ----
    tgt = (jnp.dot(tp_ref[...], emb['bbox_w'][...], preferred_element_type=f32)
           + emb['bbox_b'][...] + emb['x_pos_t'][...])                 # (n*px, C)
    xe = (jnp.dot(xp_ref[...], emb['xemb_w'][...], preferred_element_type=f32)
          + emb['xemb_b'][...] + emb['x_pos_t'][...])                  # (n*px, C)
    ze = (jnp.dot(zp_ref[...], emb['zemb_w'][...], preferred_element_type=f32)
          + emb['zemb_b'][...] + emb['z_pos_t'][...])                  # (n*pz, C)

    t_rows = t_ref[...]
    ze_ln = _layernorm(ze, 1e-5)

    # ---- cross-attention fusion block(s): x = CrossBlock(x, cat(z, x)) + t ----
    xf = xe
    for l in cross:
        ln_x = _layernorm(xf, 1e-5)
        qn = ln_x * l['g1q'][...] + l['b1q'][...]
        xkvn = ln_x * l['g1kv'][...] + l['b1kv'][...]
        zn = ze_ln * l['g1kv'][...] + l['b1kv'][...]
        pb = l['pb'][...]
        for b in range(n):
            # assemble per-batch kv = [z_b ; x_b] rows in VMEM scratch (no concat op)
            kv_scr[0:pz, :] = zn[b * pz:(b + 1) * pz, :]
            kv_scr[pz:pz + px, :] = xkvn[b * px:(b + 1) * px, :]
            kv_b = kv_scr[...]
            q_b = qn[b * px:(b + 1) * px, :]
            att_b = _mha_heads(q_b, kv_b, kv_b,
                               l['wqh'], l['wkh'], l['wvh'], l['pwh'], num_heads)
            att_scr[b * px:(b + 1) * px, :] = att_b + pb
        x1 = xf + att_scr[...]
        xn2 = _layernorm(x1, 1e-5) * l['g2'][...] + l['b2'][...]
        hmlp = _gelu_tanh(jnp.dot(xn2, l['w1'][...], preferred_element_type=f32)
                          + l['mb1'][...])
        y = jnp.dot(hmlp, l['w2'][...], preferred_element_type=f32) + l['mb2'][...]
        xf = x1 + y + t_rows

    # ---- DiT blocks with adaLN conditioning on c = xf ----
    c = xf
    sc = _silu(c)                                   # hoisted: shared by all blocks + final
    x = tgt
    for blk in blocks:
        adaw = blk['adaw']                          # (6, C, C) ref
        adab = blk['adab']                          # (6, 1, C) ref
        mods = [jnp.dot(sc, adaw[k], preferred_element_type=f32) + adab[k]
                for k in range(6)]
        shift_msa, scale_msa, gate_msa, shift_mlp, scale_mlp, gate_mlp = mods

        xm = _layernorm(x, 1e-6) * (1.0 + scale_msa) + shift_msa
        pb = blk['pb'][...]
        for b in range(n):
            xm_b = xm[b * px:(b + 1) * px, :]
            att_b = _mha_heads(xm_b, xm_b, xm_b,
                               blk['wqh'], blk['wkh'], blk['wvh'], blk['pwh'],
                               num_heads,
                               bqh_ref=blk['bqh'], bkh_ref=blk['bkh'],
                               bvh_ref=blk['bvh'])
            att_scr[b * px:(b + 1) * px, :] = att_b + pb
        x = x + gate_msa * att_scr[...]

        xm2 = _layernorm(x, 1e-6) * (1.0 + scale_mlp) + shift_mlp
        hmlp = _gelu_tanh(jnp.dot(xm2, blk['f1w'][...], preferred_element_type=f32)
                          + blk['f1b'][...])
        y = jnp.dot(hmlp, blk['f2w'][...], preferred_element_type=f32) + blk['f2b'][...]
        x = x + gate_mlp * y

    # ---- final adaLN layer ----
    shift = jnp.dot(sc, fin['adaw'][0], preferred_element_type=f32) + fin['adab'][0]
    scl = jnp.dot(sc, fin['adaw'][1], preferred_element_type=f32) + fin['adab'][1]
    xm = _layernorm(x, 1e-6) * (1.0 + scl) + shift
    o_ref[...] = jnp.dot(xm, fin['lw'][...], preferred_element_type=f32) + fin['lb'][...]


# ---------------- deterministic parameter construction ----------------
def _init_linear(key, fan_in, fan_out, bias=True):
    kw, kb = jax.random.split(key)
    w = jax.random.normal(kw, (fan_in, fan_out), jnp.float32) * (1.0 / math.sqrt(fan_in))
    if bias:
        b = jax.random.normal(kb, (1, fan_out), jnp.float32) * 0.02
        return w, b
    return w


def _split_out_heads(w):
    """(C_in, H*hd) -> (H, C_in, hd): per-head output columns stacked on a leading axis."""
    cin, cout = w.shape
    hd = cout // NUM_HEADS
    return jnp.transpose(w.reshape(cin, NUM_HEADS, hd), (1, 0, 2))


def _split_in_heads(w):
    """(H*hd, C_out) -> (H, hd, C_out): per-head input rows stacked on a leading axis."""
    cin, cout = w.shape
    hd = cin // NUM_HEADS
    return w.reshape(NUM_HEADS, hd, cout)


def make_params(key):
    ki = iter(jax.random.split(key, 128))
    scale = HEAD_DIM ** -0.5
    p = {}
    p['bbox_w'], p['bbox_b'] = _init_linear(next(ki), IN_CH * PATCH * PATCH, HIDDEN)
    p['xemb_w'], p['xemb_b'] = _init_linear(next(ki), COND_CH * PATCH * PATCH, HIDDEN)
    p['zemb_w'], p['zemb_b'] = _init_linear(next(ki), COND_CH * PATCH * PATCH, HIDDEN)
    p['x_pos'] = jnp.asarray(get_2d_sincos_pos_embed(HIDDEN, X_SHAPE // PATCH), jnp.float32)
    p['z_pos'] = jnp.asarray(get_2d_sincos_pos_embed(HIDDEN, Z_SHAPE // PATCH), jnp.float32)

    layers = []
    for _ in range(FUSION_DEPTH):
        l = {}
        l['g1q'] = jnp.ones((1, HIDDEN), jnp.float32)
        l['b1q'] = jnp.zeros((1, HIDDEN), jnp.float32)
        l['g1kv'] = jnp.ones((1, HIDDEN), jnp.float32)
        l['b1kv'] = jnp.zeros((1, HIDDEN), jnp.float32)
        wq = _init_linear(next(ki), HIDDEN, HIDDEN, bias=False)
        wk = _init_linear(next(ki), HIDDEN, HIDDEN, bias=False)
        wv = _init_linear(next(ki), HIDDEN, HIDDEN, bias=False)
        l['wqh'] = _split_out_heads(wq * scale)     # attention scale folded into Wq
        l['wkh'] = _split_out_heads(wk)
        l['wvh'] = _split_out_heads(wv)
        pw, l['pb'] = _init_linear(next(ki), HIDDEN, HIDDEN)
        l['pwh'] = _split_in_heads(pw)
        l['g2'] = jnp.ones((1, HIDDEN), jnp.float32)
        l['b2'] = jnp.zeros((1, HIDDEN), jnp.float32)
        l['w1'], l['mb1'] = _init_linear(next(ki), HIDDEN, MLP_HIDDEN)
        l['w2'], l['mb2'] = _init_linear(next(ki), MLP_HIDDEN, HIDDEN)
        layers.append(l)
    p['cross_layers'] = layers

    blocks = []
    for _ in range(DEPTH):
        # NOTE: the PyTorch module zero-inits adaLN / final linear (making DiT blocks
        # identity); here we use deterministic nonzero init so the kernels do real work.
        b_ = {}
        aw, ab = _init_linear(next(ki), HIDDEN, 6 * HIDDEN)
        b_['adaw'] = jnp.transpose(aw.reshape(HIDDEN, 6, HIDDEN), (1, 0, 2))   # (6, C, C)
        b_['adab'] = ab.reshape(6, 1, HIDDEN)                                  # (6, 1, C)
        qkvw, qkvb = _init_linear(next(ki), HIDDEN, 3 * HIDDEN)
        wq = qkvw[:, 0:HIDDEN] * scale
        bq = qkvb[:, 0:HIDDEN] * scale             # scale folded into q weight + bias
        wk = qkvw[:, HIDDEN:2 * HIDDEN]
        bk = qkvb[:, HIDDEN:2 * HIDDEN]
        wv = qkvw[:, 2 * HIDDEN:3 * HIDDEN]
        bv = qkvb[:, 2 * HIDDEN:3 * HIDDEN]
        b_['wqh'] = _split_out_heads(wq)
        b_['wkh'] = _split_out_heads(wk)
        b_['wvh'] = _split_out_heads(wv)
        b_['bqh'] = bq.reshape(NUM_HEADS, 1, HEAD_DIM)
        b_['bkh'] = bk.reshape(NUM_HEADS, 1, HEAD_DIM)
        b_['bvh'] = bv.reshape(NUM_HEADS, 1, HEAD_DIM)
        pw, b_['pb'] = _init_linear(next(ki), HIDDEN, HIDDEN)
        b_['pwh'] = _split_in_heads(pw)
        b_['f1w'], b_['f1b'] = _init_linear(next(ki), HIDDEN, MLP_HIDDEN)
        b_['f2w'], b_['f2b'] = _init_linear(next(ki), MLP_HIDDEN, HIDDEN)
        blocks.append(b_)
    p['blocks'] = blocks

    fl = {}
    aw, ab = _init_linear(next(ki), HIDDEN, 2 * HIDDEN)
    fl['adaw'] = jnp.transpose(aw.reshape(HIDDEN, 2, HIDDEN), (1, 0, 2))       # (2, C, C)
    fl['adab'] = ab.reshape(2, 1, HIDDEN)
    fl['lw'], fl['lb'] = _init_linear(next(ki), HIDDEN, OUT_DIM)
    p['final'] = fl
    return p


# ---------------- glue: patchify / unpatchify ----------------
def patchify(tokens, side, patch):
    """(N, side*side, C) row-major -> (N, (side/p)^2, C*p*p), flatten order (c, kh, kw)."""
    n, _, c = tokens.shape
    g = side // patch
    x = tokens.reshape(n, side, side, c)
    x = x.reshape(n, g, patch, g, patch, c)
    x = x.transpose(0, 1, 3, 5, 2, 4)              # (n, gh, gw, c, p, p)
    return x.reshape(n, g * g, c * patch * patch)


def unpatchify(x, patch, c_out):
    n, p_cnt, _ = x.shape
    h = int(round(math.sqrt(p_cnt)))
    x = x.reshape(n, h, h, patch, patch, c_out)
    x = jnp.einsum('nhwpqc->nchpwq', x)
    return x.reshape(n, c_out, h * patch, h * patch)


# ---------------- full DiT forward (one pallas_call) ----------------
def dit_forward(params, z, x, targets, t):
    n = x.shape[0]

    tp = patchify(targets, X_SHAPE, PATCH).reshape(n * X_PATCHES, IN_CH * PATCH * PATCH)
    xp = patchify(x, X_SHAPE, PATCH).reshape(n * X_PATCHES, COND_CH * PATCH * PATCH)
    zp = patchify(z, Z_SHAPE, PATCH).reshape(n * Z_PATCHES, COND_CH * PATCH * PATCH)
    # timestep embedding broadcast to every token row of its batch element
    t_rows = jnp.repeat(t.reshape(n, HIDDEN), X_PATCHES, axis=0)

    emb_consts = {
        'bbox_w': params['bbox_w'], 'bbox_b': params['bbox_b'],
        'xemb_w': params['xemb_w'], 'xemb_b': params['xemb_b'],
        'zemb_w': params['zemb_w'], 'zemb_b': params['zemb_b'],
        'x_pos_t': jnp.tile(params['x_pos'], (n, 1)),
        'z_pos_t': jnp.tile(params['z_pos'], (n, 1)),
    }

    flat_inputs = [tp, xp, zp, t_rows]
    flat_inputs += [emb_consts[k] for k in EMBED_KEYS]
    for l in params['cross_layers']:
        flat_inputs += [l[k] for k in CROSS_KEYS]
    for b_ in params['blocks']:
        flat_inputs += [b_[k] for k in BLOCK_KEYS]
    flat_inputs += [params['final'][k] for k in FINAL_KEYS]

    kern = functools.partial(_fused_dit_kernel,
                             fusion_depth=FUSION_DEPTH, depth=DEPTH,
                             n=n, px=X_PATCHES, pz=Z_PATCHES, num_heads=NUM_HEADS)

    out = pl.pallas_call(
        kern,
        out_shape=jax.ShapeDtypeStruct((n * X_PATCHES, OUT_DIM), jnp.float32),
        scratch_shapes=[
            pltpu.VMEM((Z_PATCHES + X_PATCHES, HIDDEN), jnp.float32),   # per-batch kv rows
            pltpu.VMEM((n * X_PATCHES, HIDDEN), jnp.float32),           # attention output rows
        ],
    )(*flat_inputs)

    out = out.reshape(n, X_PATCHES, OUT_DIM)
    imgs = unpatchify(out, PATCH, IN_CH)                         # (n, C_out, H, W)
    flat = imgs.reshape(n, IN_CH, -1).transpose(0, 2, 1)         # (n, H*W, C_out)
    bbox = jax.nn.sigmoid(flat[:, :, :4]).reshape(n, X_SHAPE, X_SHAPE, 4)
    cls = jax.nn.sigmoid(flat[:, :, 4:5]).reshape(n, X_SHAPE, X_SHAPE, 1).transpose(0, 3, 1, 2)
    return {'class_score': cls, 'bbox': bbox}


# ---------------- main ----------------
if __name__ == "__main__":
    key = jax.random.PRNGKey(0)
    kp, kz, kx, kt, ktt = jax.random.split(key, 5)
    params = make_params(kp)

    N = 2
    z = jax.random.normal(kz, (N, Z_SHAPE * Z_SHAPE, COND_CH), jnp.float32)
    x = jax.random.normal(kx, (N, X_SHAPE * X_SHAPE, COND_CH), jnp.float32)
    targets = jax.random.normal(ktt, (N, X_SHAPE * X_SHAPE, IN_CH), jnp.float32)
    # diffusion timestep embedding: (N, 1, hidden) so the PyTorch `+ t` broadcast is well-defined
    t = jax.random.normal(kt, (N, 1, HIDDEN), jnp.float32)

    out = jax.jit(dit_forward)(params, z, x, targets, t)
    jax.block_until_ready(out)

    assert out['bbox'].shape == (N, X_SHAPE, X_SHAPE, 4)
    assert out['class_score'].shape == (N, 1, X_SHAPE, X_SHAPE)
    assert bool(jnp.all(jnp.isfinite(out['bbox']))) and bool(jnp.all(jnp.isfinite(out['class_score'])))
    print("KERNEL_OK")
</pallas_src>

<mosaic_0001>
module attributes {stable_mosaic.version = 11 : i64} {
  func.func @_fused_dit_kernel(%arg0: memref<8x20xf32, #tpu.memory_space<vmem>>, %arg1: memref<8x128xf32, #tpu.memory_space<vmem>>, %arg2: memref<2x128xf32, #tpu.memory_space<vmem>>, %arg3: memref<8x32xf32, #tpu.memory_space<vmem>>, %arg4: memref<20x32xf32, #tpu.memory_space<vmem>>, %arg5: memref<1x32xf32, #tpu.memory_space<vmem>>, %arg6: memref<128x32xf32, #tpu.memory_space<vmem>>, %arg7: memref<1x32xf32, #tpu.memory_space<vmem>>, %arg8: memref<128x32xf32, #tpu.memory_space<vmem>>, %arg9: memref<1x32xf32, #tpu.memory_space<vmem>>, %arg10: memref<8x32xf32, #tpu.memory_space<vmem>>, %arg11: memref<2x32xf32, #tpu.memory_space<vmem>>, %arg12: memref<1x32xf32, #tpu.memory_space<vmem>>, %arg13: memref<1x32xf32, #tpu.memory_space<vmem>>, %arg14: memref<1x32xf32, #tpu.memory_space<vmem>>, %arg15: memref<1x32xf32, #tpu.memory_space<vmem>>, %arg16: memref<4x32x8xf32, #tpu.memory_space<vmem>>, %arg17: memref<4x32x8xf32, #tpu.memory_space<vmem>>, %arg18: memref<4x32x8xf32, #tpu.memory_space<vmem>>, %arg19: memref<4x8x32xf32, #tpu.memory_space<vmem>>, %arg20: memref<1x32xf32, #tpu.memory_space<vmem>>, %arg21: memref<1x32xf32, #tpu.memory_space<vmem>>, %arg22: memref<1x32xf32, #tpu.memory_space<vmem>>, %arg23: memref<32x128xf32, #tpu.memory_space<vmem>>, %arg24: memref<1x128xf32, #tpu.memory_space<vmem>>, %arg25: memref<128x32xf32, #tpu.memory_space<vmem>>, %arg26: memref<1x32xf32, #tpu.memory_space<vmem>>, %arg27: memref<6x32x32xf32, #tpu.memory_space<vmem>>, %arg28: memref<6x1x32xf32, #tpu.memory_space<vmem>>, %arg29: memref<4x32x8xf32, #tpu.memory_space<vmem>>, %arg30: memref<4x32x8xf32, #tpu.memory_space<vmem>>, %arg31: memref<4x32x8xf32, #tpu.memory_space<vmem>>, %arg32: memref<4x1x8xf32, #tpu.memory_space<vmem>>, %arg33: memref<4x1x8xf32, #tpu.memory_space<vmem>>, %arg34: memref<4x1x8xf32, #tpu.memory_space<vmem>>, %arg35: memref<4x8x32xf32, #tpu.memory_space<vmem>>, %arg36: memref<1x32xf32, #tpu.memory_space<vmem>>, %arg37: memref<32x128xf32, #tpu.memory_space<vmem>>, %arg38: memref<1x128xf32, #tpu.memory_space<vmem>>, %arg39: memref<128x32xf32, #tpu.memory_space<vmem>>, %arg40: memref<1x32xf32, #tpu.memory_space<vmem>>, %arg41: memref<6x32x32xf32, #tpu.memory_space<vmem>>, %arg42: memref<6x1x32xf32, #tpu.memory_space<vmem>>, %arg43: memref<4x32x8xf32, #tpu.memory_space<vmem>>, %arg44: memref<4x32x8xf32, #tpu.memory_space<vmem>>, %arg45: memref<4x32x8xf32, #tpu.memory_space<vmem>>, %arg46: memref<4x1x8xf32, #tpu.memory_space<vmem>>, %arg47: memref<4x1x8xf32, #tpu.memory_space<vmem>>, %arg48: memref<4x1x8xf32, #tpu.memory_space<vmem>>, %arg49: memref<4x8x32xf32, #tpu.memory_space<vmem>>, %arg50: memref<1x32xf32, #tpu.memory_space<vmem>>, %arg51: memref<32x128xf32, #tpu.memory_space<vmem>>, %arg52: memref<1x128xf32, #tpu.memory_space<vmem>>, %arg53: memref<128x32xf32, #tpu.memory_space<vmem>>, %arg54: memref<1x32xf32, #tpu.memory_space<vmem>>, %arg55: memref<2x32x32xf32, #tpu.memory_space<vmem>>, %arg56: memref<2x1x32xf32, #tpu.memory_space<vmem>>, %arg57: memref<32x20xf32, #tpu.memory_space<vmem>>, %arg58: memref<1x20xf32, #tpu.memory_space<vmem>>, %arg59: memref<8x20xf32, #tpu.memory_space<vmem>>, %arg60: memref<5x32xf32, #tpu.memory_space<vmem>>, %arg61: memref<8x32xf32, #tpu.memory_space<vmem>>) attributes {dimension_semantics = [], scalar_prefetch = 0 : i64, scratch_operands = 2 : i64, tpu.core_type = #tpu.core_type<tc>} {
    %c0 = arith.constant 0 : index
    %c0_0 = arith.constant 0 : index
    %0 = vector.load %arg0[%c0, %c0_0] : memref<8x20xf32, #tpu.memory_space<vmem>>, vector<8x20xf32>
    %c0_1 = arith.constant 0 : index
    %c0_2 = arith.constant 0 : index
    %1 = vector.load %arg4[%c0_1, %c0_2] : memref<20x32xf32, #tpu.memory_space<vmem>>, vector<20x32xf32>
    %cst = arith.constant dense<0.000000e+00> : vector<8x32xf32>
    %2 = tpu.matmul %0, %1, %cst {dimension_numbers = #tpu.dot_dimension_numbers<[1], [0], [0], [1], [0, 0, 1, 1], [], []>} : vector<8x20xf32>, vector<20x32xf32>, vector<8x32xf32> -> vector<8x32xf32>
    %c0_3 = arith.constant 0 : index
    %c0_4 = arith.constant 0 : index
    %3 = vector.load %arg5[%c0_3, %c0_4] : memref<1x32xf32, #tpu.memory_space<vmem>>, vector<1x32xf32>
    %4 = vector.broadcast %3 : vector<1x32xf32> to vector<8x32xf32>
    %5 = arith.addf %2, %4 : vector<8x32xf32>
    %c0_5 = arith.constant 0 : index
    %c0_6 = arith.constant 0 : index
    %6 = vector.load %arg10[%c0_5, %c0_6] : memref<8x32xf32, #tpu.memory_space<vmem>>, vector<8x32xf32>
    %7 = arith.addf %5, %6 : vector<8x32xf32>
    %c0_7 = arith.constant 0 : index
    %c0_8 = arith.constant 0 : index
    %8 = vector.load %arg1[%c0_7, %c0_8] : memref<8x128xf32, #tpu.memory_space<vmem>>, vector<8x128xf32>
    %c0_9 = arith.constant 0 : index
    %c0_10 = arith.constant 0 : index
    %9 = vector.load %arg6[%c0_9, %c0_10] : memref<128x32xf32, #tpu.memory_space<vmem>>, vector<128x32xf32>
    %cst_11 = arith.constant dense<0.000000e+00> : vector<8x32xf32>
    %10 = tpu.matmul %8, %9, %cst_11 {dimension_numbers = #tpu.dot_dimension_numbers<[1], [0], [0], [1], [0, 0, 1, 1], [], []>} : vector<8x128xf32>, vector<128x32xf32>, vector<8x32xf32> -> vector<8x32xf32>
    %c0_12 = arith.constant 0 : index
    %c0_13 = arith.constant 0 : index
    %11 = vector.load %arg7[%c0_12, %c0_13] : memref<1x32xf32, #tpu.memory_space<vmem>>, vector<1x32xf32>
    %12 = vector.broadcast %11 : vector<1x32xf32> to vector<8x32xf32>
    %13 = arith.addf %10, %12 : vector<8x32xf32>
    %c0_14 = arith.constant 0 : index
    %c0_15 = arith.constant 0 : index
    %14 = vector.load %arg10[%c0_14, %c0_15] : memref<8x32xf32, #tpu.memory_space<vmem>>, vector<8x32xf32>
    %15 = arith.addf %13, %14 : vector<8x32xf32>
    %c0_16 = arith.constant 0 : index
    %c0_17 = arith.constant 0 : index
    %16 = vector.load %arg2[%c0_16, %c0_17] : memref<2x128xf32, #tpu.memory_space<vmem>>, vector<2x128xf32>
    %c0_18 = arith.constant 0 : index
    %c0_19 = arith.constant 0 : index
    %17 = vector.load %arg8[%c0_18, %c0_19] : memref<128x32xf32, #tpu.memory_space<vmem>>, vector<128x32xf32>
    %cst_20 = arith.constant dense<0.000000e+00> : vector<2x32xf32>
    %18 = tpu.matmul %16, %17, %cst_20 {dimension_numbers = #tpu.dot_dimension_numbers<[1], [0], [0], [1], [0, 0, 1, 1], [], []>} : vector<2x128xf32>, vector<128x32xf32>, vector<2x32xf32> -> vector<2x32xf32>
    %c0_21 = arith.constant 0 : index
    %c0_22 = arith.constant 0 : index
    %19 = vector.load %arg9[%c0_21, %c0_22] : memref<1x32xf32, #tpu.memory_space<vmem>>, vector<1x32xf32>
    %20 = vector.broadcast %19 : vector<1x32xf32> to vector<2x32xf32>
    %21 = arith.addf %18, %20 : vector<2x32xf32>
    %c0_23 = arith.constant 0 : index
    %c0_24 = arith.constant 0 : index
    %22 = vector.load %arg11[%c0_23, %c0_24] : memref<2x32xf32, #tpu.memory_space<vmem>>, vector<2x32xf32>
    %23 = arith.addf %21, %22 : vector<2x32xf32>
    %c0_25 = arith.constant 0 : index
    %c0_26 = arith.constant 0 : index
    %24 = vector.load %arg3[%c0_25, %c0_26] : memref<8x32xf32, #tpu.memory_space<vmem>>, vector<8x32xf32>
    %cst_27 = arith.constant dense<0.000000e+00> : vector<2xf32>
    %25 = vector.multi_reduction <add>, %23, %cst_27 [1] : vector<2x32xf32> to vector<2xf32>
    %26 = vector.shape_cast %25 : vector<2xf32> to vector<2x1xf32>
    %cst_28 = arith.constant 3.200000e+01 : f32
    %27 = vector.broadcast %cst_28 : f32 to vector<2x1xf32>
    %28 = arith.divf %26, %27 : vector<2x1xf32>
    %29 = vector.broadcast %28 : vector<2x1xf32> to vector<2x32xf32>
    %30 = arith.subf %23, %29 : vector<2x32xf32>
    %31 = arith.mulf %30, %30 : vector<2x32xf32>
    %cst_29 = arith.constant dense<0.000000e+00> : vector<2xf32>
    %32 = vector.multi_reduction <add>, %31, %cst_29 [1] : vector<2x32xf32> to vector<2xf32>
    %33 = vector.shape_cast %32 : vector<2xf32> to vector<2x1xf32>
    %cst_30 = arith.constant 3.200000e+01 : f32
    %34 = vector.broadcast %cst_30 : f32 to vector<2x1xf32>
    %35 = arith.divf %33, %34 : vector<2x1xf32>
    %36 = vector.broadcast %28 : vector<2x1xf32> to vector<2x32xf32>
    %37 = arith.subf %23, %36 : vector<2x32xf32>
    %cst_31 = arith.constant 9.99999974E-6 : f32
    %38 = vector.broadcast %cst_31 : f32 to vector<2x1xf32>
    %39 = arith.addf %35, %38 : vector<2x1xf32>
    %40 = math.rsqrt %39 : vector<2x1xf32>
    %41 = vector.broadcast %40 : vector<2x1xf32> to vector<2x32xf32>
    %42 = arith.mulf %37, %41 : vector<2x32xf32>
    %cst_32 = arith.constant dense<0.000000e+00> : vector<8xf32>
    %43 = vector.multi_reduction <add>, %15, %cst_32 [1] : vector<8x32xf32> to vector<8xf32>
    %44 = vector.shape_cast %43 : vector<8xf32> to vector<8x1xf32>
    %cst_33 = arith.constant 3.200000e+01 : f32
    %45 = vector.broadcast %cst_33 : f32 to vector<8x1xf32>
    %46 = arith.divf %44, %45 : vector<8x1xf32>
    %47 = vector.broadcast %46 : vector<8x1xf32> to vector<8x32xf32>
    %48 = arith.subf %15, %47 : vector<8x32xf32>
    %49 = arith.mulf %48, %48 : vector<8x32xf32>
    %cst_34 = arith.constant dense<0.000000e+00> : vector<8xf32>
    %50 = vector.multi_reduction <add>, %49, %cst_34 [1] : vector<8x32xf32> to vector<8xf32>
    %51 = vector.shape_cast %50 : vector<8xf32> to vector<8x1xf32>
    %cst_35 = arith.constant 3.200000e+01 : f32
    %52 = vector.broadcast %cst_35 : f32 to vector<8x1xf32>
    %53 = arith.divf %51, %52 : vector<8x1xf32>
    %54 = vector.broadcast %46 : vector<8x1xf32> to vector<8x32xf32>
    %55 = arith.subf %15, %54 : vector<8x32xf32>
    %cst_36 = arith.constant 9.99999974E-6 : f32
    %56 = vector.broadcast %cst_36 : f32 to vector<8x1xf32>
    %57 = arith.addf %53, %56 : vector<8x1xf32>
    %58 = math.rsqrt %57 : vector<8x1xf32>
    %59 = vector.broadcast %58 : vector<8x1xf32> to vector<8x32xf32>
    %60 = arith.mulf %55, %59 : vector<8x32xf32>
    %c0_37 = arith.constant 0 : index
    %c0_38 = arith.constant 0 : index
    %61 = vector.load %arg12[%c0_37, %c0_38] : memref<1x32xf32, #tpu.memory_space<vmem>>, vector<1x32xf32>
    %62 = vector.broadcast %61 : vector<1x32xf32> to vector<8x32xf32>
    %63 = arith.mulf %60, %62 : vector<8x32xf32>
    %c0_39 = arith.constant 0 : index
    %c0_40 = arith.constant 0 : index
    %64 = vector.load %arg13[%c0_39, %c0_40] : memref<1x32xf32, #tpu.memory_space<vmem>>, vector<1x32xf32>
    %65 = vector.broadcast %64 : vector<1x32xf32> to vector<8x32xf32>
    %66 = arith.addf %63, %65 : vector<8x32xf32>
    %c0_41 = arith.constant 0 : index
    %c0_42 = arith.constant 0 : index
    %67 = vector.load %arg14[%c0_41, %c0_42] : memref<1x32xf32, #tpu.memory_space<vmem>>, vector<1x32xf32>
    %68 = vector.broadcast %67 : vector<1x32xf32> to vector<8x32xf32>
    %69 = arith.mulf %60, %68 : vector<8x32xf32>
    %c0_43 = arith.constant 0 : index
    %c0_44 = arith.constant 0 : index
    %70 = vector.load %arg15[%c0_43, %c0_44] : memref<1x32xf32, #tpu.memory_space<vmem>>, vector<1x32xf32>
    %71 = vector.broadcast %70 : vector<1x32xf32> to vector<8x32xf32>
    %72 = arith.addf %69, %71 : vector<8x32xf32>
    %c0_45 = arith.constant 0 : index
    %c0_46 = arith.constant 0 : index
    %73 = vector.load %arg14[%c0_45, %c0_46] : memref<1x32xf32, #tpu.memory_space<vmem>>, vector<1x32xf32>
    %74 = vector.broadcast %73 : vector<1x32xf32> to vector<2x32xf32>
    %75 = arith.mulf %42, %74 : vector<2x32xf32>
    %c0_47 = arith.constant 0 : index
    %c0_48 = arith.constant 0 : index
    %76 = vector.load %arg15[%c0_47, %c0_48] : memref<1x32xf32, #tpu.memory_space<vmem>>, vector<1x32xf32>
    %77 = vector.broadcast %76 : vector<1x32xf32> to vector<2x32xf32>
    %78 = arith.addf %75, %77 : vector<2x32xf32>
    %c0_49 = arith.constant 0 : index
    %c0_50 = arith.constant 0 : index
    %79 = vector.load %arg20[%c0_49, %c0_50] : memref<1x32xf32, #tpu.memory_space<vmem>>, vector<1x32xf32>
    %80 = vector.extract_strided_slice %78 {offsets = [0, 0], sizes = [1, 32], strides = [1, 1]} : vector<2x32xf32> to vector<1x32xf32>
    %c0_51 = arith.constant 0 : index
    %c0_52 = arith.constant 0 : index
    %81 = vector.load %arg60[%c0_51, %c0_52] : memref<5x32xf32, #tpu.memory_space<vmem>>, vector<1x32xf32>
    tpu.vector_store %arg60[%c0_51, %c0_52], %80 {strides = array<i32>} : memref<5x32xf32, #tpu.memory_space<vmem>>, vector<1x32xf32>,
    %82 = vector.extract_strided_slice %72 {offsets = [0, 0], sizes = [4, 32], strides = [1, 1]} : vector<8x32xf32> to vector<4x32xf32>
    %c1 = arith.constant 1 : index
    %c0_53 = arith.constant 0 : index
    %83 = vector.load %arg60[%c1, %c0_53] : memref<5x32xf32, #tpu.memory_space<vmem>>, vector<4x32xf32>
    tpu.vector_store %arg60[%c1, %c0_53], %82 {strides = array<i32>} : memref<5x32xf32, #tpu.memory_space<vmem>>, vector<4x32xf32>,
    %c0_54 = arith.constant 0 : index
    %c0_55 = arith.constant 0 : index
    %84 = vector.load %arg60[%c0_54, %c0_55] : memref<5x32xf32, #tpu.memory_space<vmem>>, vector<5x32xf32>
    %85 = vector.extract_strided_slice %66 {offsets = [0, 0], sizes = [4, 32], strides = [1, 1]} : vector<8x32xf32> to vector<4x32xf32>
    %c0_56 = arith.constant 0 : index
    %c0_57 = arith.constant 0 : index
    %c0_58 = arith.constant 0 : index
    %86 = vector.load %arg16[%c0_56, %c0_57, %c0_58] : memref<4x32x8xf32, #tpu.memory_space<vmem>>, vector<1x32x8xf32>
    %87 = vector.shape_cast %86 : vector<1x32x8xf32> to vector<32x8xf32>
    %cst_59 = arith.constant dense<0.000000e+00> : vector<4x8xf32>
    %88 = tpu.matmul %85, %87, %cst_59 {dimension_numbers = #tpu.dot_dimension_numbers<[1], [0], [0], [1], [0, 0, 1, 1], [], []>} : vector<4x32xf32>, vector<32x8xf32>, vector<4x8xf32> -> vector<4x8xf32>
    %c0_60 = arith.constant 0 : index
    %c0_61 = arith.constant 0 : index
    %c0_62 = arith.constant 0 : index
    %89 = vector.load %arg17[%c0_60, %c0_61, %c0_62] : memref<4x32x8xf32, #tpu.memory_space<vmem>>, vector<1x32x8xf32>
    %90 = vector.shape_cast %89 : vector<1x32x8xf32> to vector<32x8xf32>
    %cst_63 = arith.constant dense<0.000000e+00> : vector<5x8xf32>
    %91 = tpu.matmul %84, %90, %cst_63 {dimension_numbers = #tpu.dot_dimension_numbers<[1], [0], [0], [1], [0, 0, 1, 1], [], []>} : vector<5x32xf32>, vector<32x8xf32>, vector<5x8xf32> -> vector<5x8xf32>
    %c0_64 = arith.constant 0 : index
    %c0_65 = arith.constant 0 : index
    %c0_66 = arith.constant 0 : index
    %92 = vector.load %arg18[%c0_64, %c0_65, %c0_66] : memref<4x32x8xf32, #tpu.memory_space<vmem>>, vector<1x32x8xf32>
    %93 = vector.shape_cast %92 : vector<1x32x8xf32> to vector<32x8xf32>
    %cst_67 = arith.constant dense<0.000000e+00> : vector<5x8xf32>
    %94 = tpu.matmul %84, %93, %cst_67 {dimension_numbers = #tpu.dot_dimension_numbers<[1], [0], [0], [1], [0, 0, 1, 1], [], []>} : vector<5x32xf32>, vector<32x8xf32>, vector<5x8xf32> -> vector<5x8xf32>
    %cst_68 = arith.constant dense<0.000000e+00> : vector<4x5xf32>
    %95 = tpu.matmul %88, %91, %cst_68 {dimension_numbers = #tpu.dot_dimension_numbers<[1], [1], [0], [0], [0, 0, 1, 0], [], []>} : vector<4x8xf32>, vector<5x8xf32>, vector<4x5xf32> -> vector<4x5xf32>
    %cst_69 = arith.constant dense<0xFF800000> : vector<4xf32>
    %96 = vector.multi_reduction <maximumf>, %95, %cst_69 [1] : vector<4x5xf32> to vector<4xf32>
    %97 = vector.shape_cast %96 : vector<4xf32> to vector<4x1xf32>
    %98 = vector.broadcast %97 : vector<4x1xf32> to vector<4x5xf32>
    %99 = arith.subf %95, %98 : vector<4x5xf32>
    %100 = math.exp %99 : vector<4x5xf32>
    %cst_70 = arith.constant dense<0.000000e+00> : vector<4xf32>
    %101 = vector.multi_reduction <add>, %100, %cst_70 [1] : vector<4x5xf32> to vector<4xf32>
    %102 = vector.shape_cast %101 : vector<4xf32> to vector<4x1xf32>
    %103 = tpu.reciprocal %102 {approx = true} : vector<4x1xf32> -> vector<4x1xf32>
    %104 = vector.broadcast %103 : vector<4x1xf32> to vector<4x5xf32>
    %105 = arith.mulf %100, %104 : vector<4x5xf32>
    %cst_71 = arith.constant dense<0.000000e+00> : vector<4x8xf32>
    %106 = tpu.matmul %105, %94, %cst_71 {dimension_numbers = #tpu.dot_dimension_numbers<[1], [0], [0], [1], [0, 0, 1, 1], [], []>} : vector<4x5xf32>, vector<5x8xf32>, vector<4x8xf32> -> vector<4x8xf32>
    %c0_72 = arith.constant 0 : index
    %c0_73 = arith.constant 0 : index
    %c0_74 = arith.constant 0 : index
    %107 = vector.load %arg19[%c0_72, %c0_73, %c0_74] : memref<4x8x32xf32, #tpu.memory_space<vmem>>, vector<1x8x32xf32>
    %108 = vector.shape_cast %107 : vector<1x8x32xf32> to vector<8x32xf32>
    %cst_75 = arith.constant dense<0.000000e+00> : vector<4x32xf32>
    %109 = tpu.matmul %106, %108, %cst_75 {dimension_numbers = #tpu.dot_dimension_numbers<[1], [0], [0], [1], [0, 0, 1, 1], [], []>} : vector<4x8xf32>, vector<8x32xf32>, vector<4x32xf32> -> vector<4x32xf32>
    %c1_76 = arith.constant 1 : index
    %c0_77 = arith.constant 0 : index
    %c0_78 = arith.constant 0 : index
    %110 = vector.load %arg16[%c1_76, %c0_77, %c0_78] : memref<4x32x8xf32, #tpu.memory_space<vmem>>, vector<1x32x8xf32>
    %111 = vector.shape_cast %110 : vector<1x32x8xf32> to vector<32x8xf32>
    %cst_79 = arith.constant dense<0.000000e+00> : vector<4x8xf32>
    %112 = tpu.matmul %85, %111, %cst_79 {dimension_numbers = #tpu.dot_dimension_numbers<[1], [0], [0], [1], [0, 0, 1, 1], [], []>} : vector<4x32xf32>, vector<32x8xf32>, vector<4x8xf32> -> vector<4x8xf32>
    %c1_80 = arith.constant 1 : index
    %c0_81 = arith.constant 0 : index
    %c0_82 = arith.constant 0 : index
    %113 = vector.load %arg17[%c1_80, %c0_81, %c0_82] : memref<4x32x8xf32, #tpu.memory_space<vmem>>, vector<1x32x8xf32>
    %114 = vector.shape_cast %113 : vector<1x32x8xf32> to vector<32x8xf32>
    %cst_83 = arith.constant dense<0.000000e+00> : vector<5x8xf32>
    %115 = tpu.matmul %84, %114, %cst_83 {dimension_numbers = #tpu.dot_dimension_numbers<[1], [0], [0], [1], [0, 0, 1, 1], [], []>} : vector<5x32xf32>, vector<32x8xf32>, vector<5x8xf32> -> vector<5x8xf32>
    %c1_84 = arith.constant 1 : index
    %c0_85 = arith.constant 0 : index
    %c0_86 = arith.constant 0 : index
    %116 = vector.load %arg18[%c1_84, %c0_85, %c0_86] : memref<4x32x8xf32, #tpu.memory_space<vmem>>, vector<1x32x8xf32>
    %117 = vector.shape_cast %116 : vector<1x32x8xf32> to vector<32x8xf32>
    %cst_87 = arith.constant dense<0.000000e+00> : vector<5x8xf32>
    %118 = tpu.matmul %84, %117, %cst_87 {dimension_numbers = #tpu.dot_dimension_numbers<[1], [0], [0], [1], [0, 0, 1, 1], [], []>} : vector<5x32xf32>, vector<32x8xf32>, vector<5x8xf32> -> vector<5x8xf32>
    %cst_88 = arith.constant dense<0.000000e+00> : vector<4x5xf32>
    %119 = tpu.matmul %112, %115, %cst_88 {dimension_numbers = #tpu.dot_dimension_numbers<[1], [1], [0], [0], [0, 0, 1, 0], [], []>} : vector<4x8xf32>, vector<5x8xf32>, vector<4x5xf32> -> vector<4x5xf32>
    %cst_89 = arith.constant dense<0xFF800000> : vector<4xf32>
    %120 = vector.multi_reduction <maximumf>, %119, %cst_89 [1] : vector<4x5xf32> to vector<4xf32>
    %121 = vector.shape_cast %120 : vector<4xf32> to vector<4x1xf32>
    %122 = vector.broadcast %121 : vector<4x1xf32> to vector<4x5xf32>
    %123 = arith.subf %119, %122 : vector<4x5xf32>
    %124 = math.exp %123 : vector<4x5xf32>
    %cst_90 = arith.constant dense<0.000000e+00> : vector<4xf32>
    %125 = vector.multi_reduction <add>, %124, %cst_90 [1] : vector<4x5xf32> to vector<4xf32>
    %126 = vector.shape_cast %125 : vector<4xf32> to vector<4x1xf32>
    %127 = tpu.reciprocal %126 {approx = true} : vector<4x1xf32> -> vector<4x1xf32>
    %128 = vector.broadcast %127 : vector<4x1xf32> to vector<4x5xf32>
    %129 = arith.mulf %124, %128 : vector<4x5xf32>
    %cst_91 = arith.constant dense<0.000000e+00> : vector<4x8xf32>
    %130 = tpu.matmul %129, %118, %cst_91 {dimension_numbers = #tpu.dot_dimension_numbers<[1], [0], [0], [1], [0, 0, 1, 1], [], []>} : vector<4x5xf32>, vector<5x8xf32>, vector<4x8xf32> -> vector<4x8xf32>
    %c1_92 = arith.constant 1 : index
    %c0_93 = arith.constant 0 : index
    %c0_94 = arith.constant 0 : index
    %131 = vector.load %arg19[%c1_92, %c0_93, %c0_94] : memref<4x8x32xf32, #tpu.memory_space<vmem>>, vector<1x8x32xf32>
    %132 = vector.shape_cast %131 : vector<1x8x32xf32> to vector<8x32xf32>
    %cst_95 = arith.constant dense<0.000000e+00> : vector<4x32xf32>
    %133 = tpu.matmul %130, %132, %cst_95 {dimension_numbers = #tpu.dot_dimension_numbers<[1], [0], [0], [1], [0, 0, 1, 1], [], []>} : vector<4x8xf32>, vector<8x32xf32>, vector<4x32xf32> -> vector<4x32xf32>
    %134 = arith.addf %109, %133 : vector<4x32xf32>
    %c2 = arith.constant 2 : index
    %c0_96 = arith.constant 0 : index
    %c0_97 = arith.constant 0 : index
    %135 = vector.load %arg16[%c2, %c0_96, %c0_97] : memref<4x32x8xf32, #tpu.memory_space<vmem>>, vector<1x32x8xf32>
    %136 = vector.shape_cast %135 : vector<1x32x8xf32> to vector<32x8xf32>
    %cst_98 = arith.constant dense<0.000000e+00> : vector<4x8xf32>
    %137 = tpu.matmul %85, %136, %cst_98 {dimension_numbers = #tpu.dot_dimension_numbers<[1], [0], [0], [1], [0, 0, 1, 1], [], []>} : vector<4x32xf32>, vector<32x8xf32>, vector<4x8xf32> -> vector<4x8xf32>
    %c2_99 = arith.constant 2 : index
    %c0_100 = arith.constant 0 : index
    %c0_101 = arith.constant 0 : index
    %138 = vector.load %arg17[%c2_99, %c0_100, %c0_101] : memref<4x32x8xf32, #tpu.memory_space<vmem>>, vector<1x32x8xf32>
    %139 = vector.shape_cast %138 : vector<1x32x8xf32> to vector<32x8xf32>
    %cst_102 = arith.constant dense<0.000000e+00> : vector<5x8xf32>
    %140 = tpu.matmul %84, %139, %cst_102 {dimension_numbers = #tpu.dot_dimension_numbers<[1], [0], [0], [1], [0, 0, 1, 1], [], []>} : vector<5x32xf32>, vector<32x8xf32>, vector<5x8xf32> -> vector<5x8xf32>
    %c2_103 = arith.constant 2 : index
    %c0_104 = arith.constant 0 : index
    %c0_105 = arith.constant 0 : index
    %141 = vector.load %arg18[%c2_103, %c0_104, %c0_105] : memref<4x32x8xf32, #tpu.memory_space<vmem>>, vector<1x32x8xf32>
    %142 = vector.shape_cast %141 : vector<1x32x8xf32> to vector<32x8xf32>
    %cst_106 = arith.constant dense<0.000000e+00> : vector<5x8xf32>
    %143 = tpu.matmul %84, %142, %cst_106 {dimension_numbers = #tpu.dot_dimension_numbers<[1], [0], [0], [1], [0, 0, 1, 1], [], []>} : vector<5x32xf32>, vector<32x8xf32>, vector<5x8xf32> -> vector<5x8xf32>
    %cst_107 = arith.constant dense<0.000000e+00> : vector<4x5xf32>
    %144 = tpu.matmul %137, %140, %cst_107 {dimension_numbers = #tpu.dot_dimension_numbers<[1], [1], [0], [0], [0, 0, 1, 0], [], []>} : vector<4x8xf32>, vector<5x8xf32>, vector<4x5xf32> -> vector<4x5xf32>
    %cst_108 = arith.constant dense<0xFF800000> : vector<4xf32>
    %145 = vector.multi_reduction <maximumf>, %144, %cst_108 [1] : vector<4x5xf32> to vector<4xf32>
    %146 = vector.shape_cast %145 : vector<4xf32> to vector<4x1xf32>
    %147 = vector.broadcast %146 : vector<4x1xf32> to vector<4x5xf32>
    %148 = arith.subf %144, %147 : vector<4x5xf32>
    %149 = math.exp %148 : vector<4x5xf32>
    %cst_109 = arith.constant dense<0.000000e+00> : vector<4xf32>
    %150 = vector.multi_reduction <add>, %149, %cst_109 [1] : vector<4x5xf32> to vector<4xf32>
    %151 = vector.shape_cast %150 : vector<4xf32> to vector<4x1xf32>
    %152 = tpu.reciprocal %151 {approx = true} : vector<4x1xf32> -> vector<4x1xf32>
    %153 = vector.broadcast %152 : vector<4x1xf32> to vector<4x5xf32>
    %154 = arith.mulf %149, %153 : vector<4x5xf32>
    %cst_110 = arith.constant dense<0.000000e+00> : vector<4x8xf32>
    %155 = tpu.matmul %154, %143, %cst_110 {dimension_numbers = #tpu.dot_dimension_numbers<[1], [0], [0], [1], [0, 0, 1, 1], [], []>} : vector<4x5xf32>, vector<5x8xf32>, vector<4x8xf32> -> vector<4x8xf32>
    %c2_111 = arith.constant 2 : index
    %c0_112 = arith.constant 0 : index
    %c0_113 = arith.constant 0 : index
    %156 = vector.load %arg19[%c2_111, %c0_112, %c0_113] : memref<4x8x32xf32, #tpu.memory_space<vmem>>, vector<1x8x32xf32>
    %157 = vector.shape_cast %156 : vector<1x8x32xf32> to vector<8x32xf32>
    %cst_114 = arith.constant dense<0.000000e+00> : vector<4x32xf32>
    %158 = tpu.matmul %155, %157, %cst_114 {dimension_numbers = #tpu.dot_dimension_numbers<[1], [0], [0], [1], [0, 0, 1, 1], [], []>} : vector<4x8xf32>, vector<8x32xf32>, vector<4x32xf32> -> vector<4x32xf32>
    %159 = arith.addf %134, %158 : vector<4x32xf32>
    %c3 = arith.constant 3 : index
    %c0_115 = arith.constant 0 : index
    %c0_116 = arith.constant 0 : index
    %160 = vector.load %arg16[%c3, %c0_115, %c0_116] : memref<4x32x8xf32, #tpu.memory_space<vmem>>, vector<1x32x8xf32>
    %161 = vector.shape_cast %160 : vector<1x32x8xf32> to vector<32x8xf32>
    %cst_117 = arith.constant dense<0.000000e+00> : vector<4x8xf32>
    %162 = tpu.matmul %85, %161, %cst_117 {dimension_numbers = #tpu.dot_dimension_numbers<[1], [0], [0], [1], [0, 0, 1, 1], [], []>} : vector<4x32xf32>, vector<32x8xf32>, vector<4x8xf32> -> vector<4x8xf32>
    %c3_118 = arith.constant 3 : index
    %c0_119 = arith.constant 0 : index
    %c0_120 = arith.constant 0 : index
    %163 = vector.load %arg17[%c3_118, %c0_119, %c0_120] : memref<4x32x8xf32, #tpu.memory_space<vmem>>, vector<1x32x8xf32>
    %164 = vector.shape_cast %163 : vector<1x32x8xf32> to vector<32x8xf32>
    %cst_121 = arith.constant dense<0.000000e+00> : vector<5x8xf32>
    %165 = tpu.matmul %84, %164, %cst_121 {dimension_numbers = #tpu.dot_dimension_numbers<[1], [0], [0], [1], [0, 0, 1, 1], [], []>} : vector<5x32xf32>, vector<32x8xf32>, vector<5x8xf32> -> vector<5x8xf32>
    %c3_122 = arith.constant 3 : index
    %c0_123 = arith.constant 0 : index
    %c0_124 = arith.constant 0 : index
    %166 = vector.load %arg18[%c3_122, %c0_123, %c0_124] : memref<4x32x8xf32, #tpu.memory_space<vmem>>, vector<1x32x8xf32>
    %167 = vector.shape_cast %166 : vector<1x32x8xf32> to vector<32x8xf32>
    %cst_125 = arith.constant dense<0.000000e+00> : vector<5x8xf32>
    %168 = tpu.matmul %84, %167, %cst_125 {dimension_numbers = #tpu.dot_dimension_numbers<[1], [0], [0], [1], [0, 0, 1, 1], [], []>} : vector<5x32xf32>, vector<32x8xf32>, vector<5x8xf32> -> vector<5x8xf32>
    %cst_126 = arith.constant dense<0.000000e+00> : vector<4x5xf32>
    %169 = tpu.matmul %162, %165, %cst_126 {dimension_numbers = #tpu.dot_dimension_numbers<[1], [1], [0], [0], [0, 0, 1, 0], [], []>} : vector<4x8xf32>, vector<5x8xf32>, vector<4x5xf32> -> vector<4x5xf32>
    %cst_127 = arith.constant dense<0xFF800000> : vector<4xf32>
    %170 = vector.multi_reduction <maximumf>, %169, %cst_127 [1] : vector<4x5xf32> to vector<4xf32>
    %171 = vector.shape_cast %170 : vector<4xf32> to vector<4x1xf32>
    %172 = vector.broadcast %171 : vector<4x1xf32> to vector<4x5xf32>
    %173 = arith.subf %169, %172 : vector<4x5xf32>
    %174 = math.exp %173 : vector<4x5xf32>
    %cst_128 = arith.constant dense<0.000000e+00> : vector<4xf32>
    %175 = vector.multi_reduction <add>, %174, %cst_128 [1] : vector<4x5xf32> to vector<4xf32>
    %176 = vector.shape_cast %175 : vector<4xf32> to vector<4x1xf32>
    %177 = tpu.reciprocal %176 {approx = true} : vector<4x1xf32> -> vector<4x1xf32>
    %178 = vector.broadcast %177 : vector<4x1xf32> to vector<4x5xf32>
    %179 = arith.mulf %174, %178 : vector<4x5xf32>
    %cst_129 = arith.constant dense<0.000000e+00> : vector<4x8xf32>
    %180 = tpu.matmul %179, %168, %cst_129 {dimension_numbers = #tpu.dot_dimension_numbers<[1], [0], [0], [1], [0, 0, 1, 1], [], []>} : vector<4x5xf32>, vector<5x8xf32>, vector<4x8xf32> -> vector<4x8xf32>
    %c3_130 = arith.constant 3 : index
    %c0_131 = arith.constant 0 : index
    %c0_132 = arith.constant 0 : index
    %181 = vector.load %arg19[%c3_130, %c0_131, %c0_132] : memref<4x8x32xf32, #tpu.memory_space<vmem>>, vector<1x8x32xf32>
    %182 = vector.shape_cast %181 : vector<1x8x32xf32> to vector<8x32xf32>
    %cst_133 = arith.constant dense<0.000000e+00> : vector<4x32xf32>
    %183 = tpu.matmul %180, %182, %cst_133 {dimension_numbers = #tpu.dot_dimension_numbers<[1], [0], [0], [1], [0, 0, 1, 1], [], []>} : vector<4x8xf32>, vector<8x32xf32>, vector<4x32xf32> -> vector<4x32xf32>
    %184 = arith.addf %159, %183 : vector<4x32xf32>
    %185 = vector.broadcast %79 : vector<1x32xf32> to vector<4x32xf32>
    %186 = arith.addf %184, %185 : vector<4x32xf32>
    %c0_134 = arith.constant 0 : index
    %c0_135 = arith.constant 0 : index
    %187 = vector.load %arg61[%c0_134, %c0_135] : memref<8x32xf32, #tpu.memory_space<vmem>>, vector<4x32xf32>
    tpu.vector_store %arg61[%c0_134, %c0_135], %186 {strides = array<i32>} : memref<8x32xf32, #tpu.memory_space<vmem>>, vector<4x32xf32>,
    %188 = vector.extract_strided_slice %78 {offsets = [1, 0], sizes = [1, 32], strides = [1, 1]} : vector<2x32xf32> to vector<1x32xf32>
    %c0_136 = arith.constant 0 : index
    %c0_137 = arith.constant 0 : index
    %189 = vector.load %arg60[%c0_136, %c0_137] : memref<5x32xf32, #tpu.memory_space<vmem>>, vector<1x32xf32>
    tpu.vector_store %arg60[%c0_136, %c0_137], %188 {strides = array<i32>} : memref<5x32xf32, #tpu.memory_space<vmem>>, vector<1x32xf32>,
    %190 = vector.extract_strided_slice %72 {offsets = [4, 0], sizes = [4, 32], strides = [1, 1]} : vector<8x32xf32> to vector<4x32xf32>
    %c1_138 = arith.constant 1 : index
    %c0_139 = arith.constant 0 : index
    %191 = vector.load %arg60[%c1_138, %c0_139] : memref<5x32xf32, #tpu.memory_space<vmem>>, vector<4x32xf32>
    tpu.vector_store %arg60[%c1_138, %c0_139], %190 {strides = array<i32>} : memref<5x32xf32, #tpu.memory_space<vmem>>, vector<4x32xf32>,
    %c0_140 = arith.constant 0 : index
    %c0_141 = arith.constant 0 : index
    %192 = vector.load %arg60[%c0_140, %c0_141] : memref<5x32xf32, #tpu.memory_space<vmem>>, vector<5x32xf32>
    %193 = vector.extract_strided_slice %66 {offsets = [4, 0], sizes = [4, 32], strides = [1, 1]} : vector<8x32xf32> to vector<4x32xf32>
    %c0_142 = arith.constant 0 : index
    %c0_143 = arith.constant 0 : index
    %c0_144 = arith.constant 0 : index
    %194 = vector.load %arg16[%c0_142, %c0_143, %c0_144] : memref<4x32x8xf32, #tpu.memory_space<vmem>>, vector<1x32x8xf32>
    %195 = vector.shape_cast %194 : vector<1x32x8xf32> to vector<32x8xf32>
    %cst_145 = arith.constant dense<0.000000e+00> : vector<4x8xf32>
    %196 = tpu.matmul %193, %195, %cst_145 {dimension_numbers = #tpu.dot_dimension_numbers<[1], [0], [0], [1], [0, 0, 1, 1], [], []>} : vector<4x32xf32>, vector<32x8xf32>, vector<4x8xf32> -> vector<4x8xf32>
    %c0_146 = arith.constant 0 : index
    %c0_147 = arith.constant 0 : index
    %c0_148 = arith.constant 0 : index
    %197 = vector.load %arg17[%c0_146, %c0_147, %c0_148] : memref<4x32x8xf32, #tpu.memory_space<vmem>>, vector<1x32x8xf32>
    %198 = vector.shape_cast %197 : vector<1x32x8xf32> to vector<32x8xf32>
    %cst_149 = arith.constant dense<0.000000e+00> : vector<5x8xf32>
    %199 = tpu.matmul %192, %198, %cst_149 {dimension_numbers = #tpu.dot_dimension_numbers<[1], [0], [0], [1], [0, 0, 1, 1], [], []>} : vector<5x32xf32>, vector<32x8xf32>, vector<5x8xf32> -> vector<5x8xf32>
    %c0_150 = arith.constant 0 : index
    %c0_151 = arith.constant 0 : index
    %c0_152 = arith.constant 0 : index
    %200 = vector.load %arg18[%c0_150, %c0_151, %c0_152] : memref<4x32x8xf32, #tpu.memory_space<vmem>>, vector<1x32x8xf32>
    %201 = vector.shape_cast %200 : vector<1x32x8xf32> to vector<32x8xf32>
    %cst_153 = arith.constant dense<0.000000e+00> : vector<5x8xf32>
    %202 = tpu.matmul %192, %201, %cst_153 {dimension_numbers = #tpu.dot_dimension_numbers<[1], [0], [0], [1], [0, 0, 1, 1], [], []>} : vector<5x32xf32>, vector<32x8xf32>, vector<5x8xf32> -> vector<5x8xf32>
    %cst_154 = arith.constant dense<0.000000e+00> : vector<4x5xf32>
    %203 = tpu.matmul %196, %199, %cst_154 {dimension_numbers = #tpu.dot_dimension_numbers<[1], [1], [0], [0], [0, 0, 1, 0], [], []>} : vector<4x8xf32>, vector<5x8xf32>, vector<4x5xf32> -> vector<4x5xf32>
    %cst_155 = arith.constant dense<0xFF800000> : vector<4xf32>
    %204 = vector.multi_reduction <maximumf>, %203, %cst_155 [1] : vector<4x5xf32> to vector<4xf32>
    %205 = vector.shape_cast %204 : vector<4xf32> to vector<4x1xf32>
    %206 = vector.broadcast %205 : vector<4x1xf32> to vector<4x5xf32>
    %207 = arith.subf %203, %206 : vector<4x5xf32>
    %208 = math.exp %207 : vector<4x5xf32>
    %cst_156 = arith.constant dense<0.000000e+00> : vector<4xf32>
    %209 = vector.multi_reduction <add>, %208, %cst_156 [1] : vector<4x5xf32> to vector<4xf32>
    %210 = vector.shape_cast %209 : vector<4xf32> to vector<4x1xf32>
    %211 = tpu.reciprocal %210 {approx = true} : vector<4x1xf32> -> vector<4x1xf32>
    %212 = vector.broadcast %211 : vector<4x1xf32> to vector<4x5xf32>
    %213 = arith.mulf %208, %212 : vector<4x5xf32>
    %cst_157 = arith.constant dense<0.000000e+00> : vector<4x8xf32>
    %214 = tpu.matmul %213, %202, %cst_157 {dimension_numbers = #tpu.dot_dimension_numbers<[1], [0], [0], [1], [0, 0, 1, 1], [], []>} : vector<4x5xf32>, vector<5x8xf32>, vector<4x8xf32> -> vector<4x8xf32>
    %c0_158 = arith.constant 0 : index
    %c0_159 = arith.constant 0 : index
    %c0_160 = arith.constant 0 : index
    %215 = vector.load %arg19[%c0_158, %c0_159, %c0_160] : memref<4x8x32xf32, #tpu.memory_space<vmem>>, vector<1x8x32xf32>
    %216 = vector.shape_cast %215 : vector<1x8x32xf32> to vector<8x32xf32>
    %cst_161 = arith.constant dense<0.000000e+00> : vector<4x32xf32>
    %217 = tpu.matmul %214, %216, %cst_161 {dimension_numbers = #tpu.dot_dimension_numbers<[1], [0], [0], [1], [0, 0, 1, 1], [], []>} : vector<4x8xf32>, vector<8x32xf32>, vector<4x32xf32> -> vector<4x32xf32>
    %c1_162 = arith.constant 1 : index
    %c0_163 = arith.constant 0 : index
    %c0_164 = arith.constant 0 : index
    %218 = vector.load %arg16[%c1_162, %c0_163, %c0_164] : memref<4x32x8xf32, #tpu.memory_space<vmem>>, vector<1x32x8xf32>
    %219 = vector.shape_cast %218 : vector<1x32x8xf32> to vector<32x8xf32>
    %cst_165 = arith.constant dense<0.000000e+00> : vector<4x8xf32>
    %220 = tpu.matmul %193, %219, %cst_165 {dimension_numbers = #tpu.dot_dimension_numbers<[1], [0], [0], [1], [0, 0, 1, 1], [], []>} : vector<4x32xf32>, vector<32x8xf32>, vector<4x8xf32> -> vector<4x8xf32>
    %c1_166 = arith.constant 1 : index
    %c0_167 = arith.constant 0 : index
    %c0_168 = arith.constant 0 : index
    %221 = vector.load %arg17[%c1_166, %c0_167, %c0_168] : memref<4x32x8xf32, #tpu.memory_space<vmem>>, vector<1x32x8xf32>
    %222 = vector.shape_cast %221 : vector<1x32x8xf32> to vector<32x8xf32>
    %cst_169 = arith.constant dense<0.000000e+00> : vector<5x8xf32>
    %223 = tpu.matmul %192, %222, %cst_169 {dimension_numbers = #tpu.dot_dimension_numbers<[1], [0], [0], [1], [0, 0, 1, 1], [], []>} : vector<5x32xf32>, vector<32x8xf32>, vector<5x8xf32> -> vector<5x8xf32>
    %c1_170 = arith.constant 1 : index
    %c0_171 = arith.constant 0 : index
    %c0_172 = arith.constant 0 : index
    %224 = vector.load %arg18[%c1_170, %c0_171, %c0_172] : memref<4x32x8xf32, #tpu.memory_space<vmem>>, vector<1x32x8xf32>
    %225 = vector.shape_cast %224 : vector<1x32x8xf32> to vector<32x8xf32>
    %cst_173 = arith.constant dense<0.000000e+00> : vector<5x8xf32>
    %226 = tpu.matmul %192, %225, %cst_173 {dimension_numbers = #tpu.dot_dimension_numbers<[1], [0], [0], [1], [0, 0, 1, 1], [], []>} : vector<5x32xf32>, vector<32x8xf32>, vector<5x8xf32> -> vector<5x8xf32>
    %cst_174 = arith.constant dense<0.000000e+00> : vector<4x5xf32>
    %227 = tpu.matmul %220, %223, %cst_174 {dimension_numbers = #tpu.dot_dimension_numbers<[1], [1], [0], [0], [0, 0, 1, 0], [], []>} : vector<4x8xf32>, vector<5x8xf32>, vector<4x5xf32> -> vector<4x5xf32>
    %cst_175 = arith.constant dense<0xFF800000> : vector<4xf32>
    %228 = vector.multi_reduction <maximumf>, %227, %cst_175 [1] : vector<4x5xf32> to vector<4xf32>
    %229 = vector.shape_cast %228 : vector<4xf32> to vector<4x1xf32>
    %230 = vector.broadcast %229 : vector<4x1xf32> to vector<4x5xf32>
    %231 = arith.subf %227, %230 : vector<4x5xf32>
    %232 = math.exp %231 : vector<4x5xf32>
    %cst_176 = arith.constant dense<0.000000e+00> : vector<4xf32>
    %233 = vector.multi_reduction <add>, %232, %cst_176 [1] : vector<4x5xf32> to vector<4xf32>
    %234 = vector.shape_cast %233 : vector<4xf32> to vector<4x1xf32>
    %235 = tpu.reciprocal %234 {approx = true} : vector<4x1xf32> -> vector<4x1xf32>
    %236 = vector.broadcast %235 : vector<4x1xf32> to vector<4x5xf32>
    %237 = arith.mulf %232, %236 : vector<4x5xf32>
    %cst_177 = arith.constant dense<0.000000e+00> : vector<4x8xf32>
    %238 = tpu.matmul %237, %226, %cst_177 {dimension_numbers = #tpu.dot_dimension_numbers<[1], [0], [0], [1], [0, 0, 1, 1], [], []>} : vector<4x5xf32>, vector<5x8xf32>, vector<4x8xf32> -> vector<4x8xf32>
    %c1_178 = arith.constant 1 : index
    %c0_179 = arith.constant 0 : index
    %c0_180 = arith.constant 0 : index
    %239 = vector.load %arg19[%c1_178, %c0_179, %c0_180] : memref<4x8x32xf32, #tpu.memory_space<vmem>>, vector<1x8x32xf32>
    %240 = vector.shape_cast %239 : vector<1x8x32xf32> to vector<8x32xf32>
    %cst_181 = arith.constant dense<0.000000e+00> : vector<4x32xf32>
    %241 = tpu.matmul %238, %240, %cst_181 {dimension_numbers = #tpu.dot_dimension_numbers<[1], [0], [0], [1], [0, 0, 1, 1], [], []>} : vector<4x8xf32>, vector<8x32xf32>, vector<4x32xf32> -> vector<4x32xf32>
    %242 = arith.addf %217, %241 : vector<4x32xf32>
    %c2_182 = arith.constant 2 : index
    %c0_183 = arith.constant 0 : index
    %c0_184 = arith.constant 0 : index
    %243 = vector.load %arg16[%c2_182, %c0_183, %c0_184] : memref<4x32x8xf32, #tpu.memory_space<vmem>>, vector<1x32x8xf32>
    %244 = vector.shape_cast %243 : vector<1x32x8xf32> to vector<32x8xf32>
    %cst_185 = arith.constant dense<0.000000e+00> : vector<4x8xf32>
    %245 = tpu.matmul %193, %244, %cst_185 {dimension_numbers = #tpu.dot_dimension_numbers<[1], [0], [0], [1], [0, 0, 1, 1], [], []>} : vector<4x32xf32>, vector<32x8xf32>, vector<4x8xf32> -> vector<4x8xf32>
    %c2_186 = arith.constant 2 : index
    %c0_187 = arith.constant 0 : index
    %c0_188 = arith.constant 0 : index
    %246 = vector.load %arg17[%c2_186, %c0_187, %c0_188] : memref<4x32x8xf32, #tpu.memory_space<vmem>>, vector<1x32x8xf32>
    %247 = vector.shape_cast %246 : vector<1x32x8xf32> to vector<32x8xf32>
    %cst_189 = arith.constant dense<0.000000e+00> : vector<5x8xf32>
    %248 = tpu.matmul %192, %247, %cst_189 {dimension_numbers = #tpu.dot_dimension_numbers<[1], [0], [0], [1], [0, 0, 1, 1], [], []>} : vector<5x32xf32>, vector<32x8xf32>, vector<5x8xf32> -> vector<5x8xf32>
    %c2_190 = arith.constant 2 : index
    %c0_191 = arith.constant 0 : index
    %c0_192 = arith.constant 0 : index
    %249 = vector.load %arg18[%c2_190, %c0_191, %c0_192] : memref<4x32x8xf32, #tpu.memory_space<vmem>>, vector<1x32x8xf32>
    %250 = vector.shape_cast %249 : vector<1x32x8xf32> to vector<32x8xf32>
    %cst_193 = arith.constant dense<0.000000e+00> : vector<5x8xf32>
    %251 = tpu.matmul %192, %250, %cst_193 {dimension_numbers = #tpu.dot_dimension_numbers<[1], [0], [0], [1], [0, 0, 1, 1], [], []>} : vector<5x32xf32>, vector<32x8xf32>, vector<5x8xf32> -> vector<5x8xf32>
    %cst_194 = arith.constant dense<0.000000e+00> : vector<4x5xf32>
    %252 = tpu.matmul %245, %248, %cst_194 {dimension_numbers = #tpu.dot_dimension_numbers<[1], [1], [0], [0], [0, 0, 1, 0], [], []>} : vector<4x8xf32>, vector<5x8xf32>, vector<4x5xf32> -> vector<4x5xf32>
    %cst_195 = arith.constant dense<0xFF800000> : vector<4xf32>
    %253 = vector.multi_reduction <maximumf>, %252, %cst_195 [1] : vector<4x5xf32> to vector<4xf32>
    %254 = vector.shape_cast %253 : vector<4xf32> to vector<4x1xf32>
    %255 = vector.broadcast %254 : vector<4x1xf32> to vector<4x5xf32>
    %256 = arith.subf %252, %255 : vector<4x5xf32>
    %257 = math.exp %256 : vector<4x5xf32>
    %cst_196 = arith.constant dense<0.000000e+00> : vector<4xf32>
    %258 = vector.multi_reduction <add>, %257, %cst_196 [1] : vector<4x5xf32> to vector<4xf32>
    %259 = vector.shape_cast %258 : vector<4xf32> to vector<4x1xf32>
    %260 = tpu.reciprocal %259 {approx = true} : vector<4x1xf32> -> vector<4x1xf32>
    %261 = vector.broadcast %260 : vector<4x1xf32> to vector<4x5xf32>
    %262 = arith.mulf %257, %261 : vector<4x5xf32>
    %cst_197 = arith.constant dense<0.000000e+00> : vector<4x8xf32>
    %263 = tpu.matmul %262, %251, %cst_197 {dimension_numbers = #tpu.dot_dimension_numbers<[1], [0], [0], [1], [0, 0, 1, 1], [], []>} : vector<4x5xf32>, vector<5x8xf32>, vector<4x8xf32> -> vector<4x8xf32>
    %c2_198 = arith.constant 2 : index
    %c0_199 = arith.constant 0 : index
    %c0_200 = arith.constant 0 : index
    %264 = vector.load %arg19[%c2_198, %c0_199, %c0_200] : memref<4x8x32xf32, #tpu.memory_space<vmem>>, vector<1x8x32xf32>
    %265 = vector.shape_cast %264 : vector<1x8x32xf32> to vector<8x32xf32>
    %cst_201 = arith.constant dense<0.000000e+00> : vector<4x32xf32>
    %266 = tpu.matmul %263, %265, %cst_201 {dimension_numbers = #tpu.dot_dimension_numbers<[1], [0], [0], [1], [0, 0, 1, 1], [], []>} : vector<4x8xf32>, vector<8x32xf32>, vector<4x32xf32> -> vector<4x32xf32>
    %267 = arith.addf %242, %266 : vector<4x32xf32>
    %c3_202 = arith.constant 3 : index
    %c0_203 = arith.constant 0 : index
    %c0_204 = arith.constant 0 : index
    %268 = vector.load %arg16[%c3_202, %c0_203, %c0_204] : memref<4x32x8xf32, #tpu.memory_space<vmem>>, vector<1x32x8xf32>
    %269 = vector.shape_cast %268 : vector<1x32x8xf32> to vector<32x8xf32>
    %cst_205 = arith.constant dense<0.000000e+00> : vector<4x8xf32>
    %270 = tpu.matmul %193, %269, %cst_205 {dimension_numbers = #tpu.dot_dimension_numbers<[1], [0], [0], [1], [0, 0, 1, 1], [], []>} : vector<4x32xf32>, vector<32x8xf32>, vector<4x8xf32> -> vector<4x8xf32>
    %c3_206 = arith.constant 3 : index
    %c0_207 = arith.constant 0 : index
    %c0_208 = arith.constant 0 : index
    %271 = vector.load %arg17[%c3_206, %c0_207, %c0_208] : memref<4x32x8xf32, #tpu.memory_space<vmem>>, vector<1x32x8xf32>
    %272 = vector.shape_cast %271 : vector<1x32x8xf32> to vector<32x8xf32>
    %cst_209 = arith.constant dense<0.000000e+00> : vector<5x8xf32>
    %273 = tpu.matmul %192, %272, %cst_209 {dimension_numbers = #tpu.dot_dimension_numbers<[1], [0], [0], [1], [0, 0, 1, 1], [], []>} : vector<5x32xf32>, vector<32x8xf32>, vector<5x8xf32> -> vector<5x8xf32>
    %c3_210 = arith.constant 3 : index
    %c0_211 = arith.constant 0 : index
    %c0_212 = arith.constant 0 : index
    %274 = vector.load %arg18[%c3_210, %c0_211, %c0_212] : memref<4x32x8xf32, #tpu.memory_space<vmem>>, vector<1x32x8xf32>
    %275 = vector.shape_cast %274 : vector<1x32x8xf32> to vector<32x8xf32>
    %cst_213 = arith.constant dense<0.000000e+00> : vector<5x8xf32>
    %276 = tpu.matmul %192, %275, %cst_213 {dimension_numbers = #tpu.dot_dimension_numbers<[1], [0], [0], [1], [0, 0, 1, 1], [], []>} : vector<5x32xf32>, vector<32x8xf32>, vector<5x8xf32> -> vector<5x8xf32>
    %cst_214 = arith.constant dense<0.000000e+00> : vector<4x5xf32>
    %277 = tpu.matmul %270, %273, %cst_214 {dimension_numbers = #tpu.dot_dimension_numbers<[1], [1], [0], [0], [0, 0, 1, 0], [], []>} : vector<4x8xf32>, vector<5x8xf32>, vector<4x5xf32> -> vector<4x5xf32>
    %cst_215 = arith.constant dense<0xFF800000> : vector<4xf32>
    %278 = vector.multi_reduction <maximumf>, %277, %cst_215 [1] : vector<4x5xf32> to vector<4xf32>
    %279 = vector.shape_cast %278 : vector<4xf32> to vector<4x1xf32>
    %280 = vector.broadcast %279 : vector<4x1xf32> to vector<4x5xf32>
    %281 = arith.subf %277, %280 : vector<4x5xf32>
    %282 = math.exp %281 : vector<4x5xf32>
    %cst_216 = arith.constant dense<0.000000e+00> : vector<4xf32>
    %283 = vector.multi_reduction <add>, %282, %cst_216 [1] : vector<4x5xf32> to vector<4xf32>
    %284 = vector.shape_cast %283 : vector<4xf32> to vector<4x1xf32>
    %285 = tpu.reciprocal %284 {approx = true} : vector<4x1xf32> -> vector<4x1xf32>
    %286 = vector.broadcast %285 : vector<4x1xf32> to vector<4x5xf32>
    %287 = arith.mulf %282, %286 : vector<4x5xf32>
    %cst_217 = arith.constant dense<0.000000e+00> : vector<4x8xf32>
    %288 = tpu.matmul %287, %276, %cst_217 {dimension_numbers = #tpu.dot_dimension_numbers<[1], [0], [0], [1], [0, 0, 1, 1], [], []>} : vector<4x5xf32>, vector<5x8xf32>, vector<4x8xf32> -> vector<4x8xf32>
    %c3_218 = arith.constant 3 : index
    %c0_219 = arith.constant 0 : index
    %c0_220 = arith.constant 0 : index
    %289 = vector.load %arg19[%c3_218, %c0_219, %c0_220] : memref<4x8x32xf32, #tpu.memory_space<vmem>>, vector<1x8x32xf32>
    %290 = vector.shape_cast %289 : vector<1x8x32xf32> to vector<8x32xf32>
    %cst_221 = arith.constant dense<0.000000e+00> : vector<4x32xf32>
    %291 = tpu.matmul %288, %290, %cst_221 {dimension_numbers = #tpu.dot_dimension_numbers<[1], [0], [0], [1], [0, 0, 1, 1], [], []>} : vector<4x8xf32>, vector<8x32xf32>, vector<4x32xf32> -> vector<4x32xf32>
    %292 = arith.addf %267, %291 : vector<4x32xf32>
    %293 = vector.broadcast %79 : vector<1x32xf32> to vector<4x32xf32>
    %294 = arith.addf %292, %293 : vector<4x32xf32>
    %c4 = arith.constant 4 : index
    %c0_222 = arith.constant 0 : index
    %295 = vector.load %arg61[%c4, %c0_222] : memref<8x32xf32, #tpu.memory_space<vmem>>, vector<4x32xf32>
    tpu.vector_store %arg61[%c4, %c0_222], %294 {strides = array<i32>} : memref<8x32xf32, #tpu.memory_space<vmem>>, vector<4x32xf32>,
    %c0_223 = arith.constant 0 : index
    %c0_224 = arith.constant 0 : index
    %296 = vector.load %arg61[%c0_223, %c0_224] : memref<8x32xf32, #tpu.memory_space<vmem>>, vector<8x32xf32>
    %297 = arith.addf %15, %296 : vector<8x32xf32>
    %cst_225 = arith.constant dense<0.000000e+00> : vector<8xf32>
    %298 = vector.multi_reduction <add>, %297, %cst_225 [1] : vector<8x32xf32> to vector<8xf32>
    %299 = vector.shape_cast %298 : vector<8xf32> to vector<8x1xf32>
    %cst_226 = arith.constant 3.200000e+01 : f32
    %300 = vector.broadcast %cst_226 : f32 to vector<8x1xf32>
    %301 = arith.divf %299, %300 : vector<8x1xf32>
    %302 = vector.broadcast %301 : vector<8x1xf32> to vector<8x32xf32>
    %303 = arith.subf %297, %302 : vector<8x32xf32>
    %304 = arith.mulf %303, %303 : vector<8x32xf32>
    %cst_227 = arith.constant dense<0.000000e+00> : vector<8xf32>
    %305 = vector.multi_reduction <add>, %304, %cst_227 [1] : vector<8x32xf32> to vector<8xf32>
    %306 = vector.shape_cast %305 : vector<8xf32> to vector<8x1xf32>
    %cst_228 = arith.constant 3.200000e+01 : f32
    %307 = vector.broadcast %cst_228 : f32 to vector<8x1xf32>
    %308 = arith.divf %306, %307 : vector<8x1xf32>
    %309 = vector.broadcast %301 : vector<8x1xf32> to vector<8x32xf32>
    %310 = arith.subf %297, %309 : vector<8x32xf32>
    %cst_229 = arith.constant 9.99999974E-6 : f32
    %311 = vector.broadcast %cst_229 : f32 to vector<8x1xf32>
    %312 = arith.addf %308, %311 : vector<8x1xf32>
    %313 = math.rsqrt %312 : vector<8x1xf32>
    %314 = vector.broadcast %313 : vector<8x1xf32> to vector<8x32xf32>
    %315 = arith.mulf %310, %314 : vector<8x32xf32>
    %c0_230 = arith.constant 0 : index
    %c0_231 = arith.constant 0 : index
    %316 = vector.load %arg21[%c0_230, %c0_231] : memref<1x32xf32, #tpu.memory_space<vmem>>, vector<1x32xf32>
    %317 = vector.broadcast %316 : vector<1x32xf32> to vector<8x32xf32>
    %318 = arith.mulf %315, %317 : vector<8x32xf32>
    %c0_232 = arith.constant 0 : index
    %c0_233 = arith.constant 0 : index
    %319 = vector.load %arg22[%c0_232, %c0_233] : memref<1x32xf32, #tpu.memory_space<vmem>>, vector<1x32xf32>
    %320 = vector.broadcast %319 : vector<1x32xf32> to vector<8x32xf32>
    %321 = arith.addf %318, %320 : vector<8x32xf32>
    %c0_234 = arith.constant 0 : index
    %c0_235 = arith.constant 0 : index
    %322 = vector.load %arg23[%c0_234, %c0_235] : memref<32x128xf32, #tpu.memory_space<vmem>>, vector<32x128xf32>
    %cst_236 = arith.constant dense<0.000000e+00> : vector<8x128xf32>
    %323 = tpu.matmul %321, %322, %cst_236 {dimension_numbers = #tpu.dot_dimension_numbers<[1], [0], [0], [1], [0, 0, 1, 1], [], []>} : vector<8x32xf32>, vector<32x128xf32>, vector<8x128xf32> -> vector<8x128xf32>
    %c0_237 = arith.constant 0 : index
    %c0_238 = arith.constant 0 : index
    %324 = vector.load %arg24[%c0_237, %c0_238] : memref<1x128xf32, #tpu.memory_space<vmem>>, vector<1x128xf32>
    %325 = vector.broadcast %324 : vector<1x128xf32> to vector<8x128xf32>
    %326 = arith.addf %323, %325 : vector<8x128xf32>
    %cst_239 = arith.constant 5.000000e-01 : f32
    %327 = vector.broadcast %cst_239 : f32 to vector<8x128xf32>
    %328 = arith.mulf %327, %326 : vector<8x128xf32>
    %cst_240 = arith.constant 4.471500e-02 : f32
    %329 = vector.broadcast %cst_240 : f32 to vector<8x128xf32>
    %330 = arith.mulf %329, %326 : vector<8x128xf32>
    %331 = arith.mulf %330, %326 : vector<8x128xf32>
    %332 = arith.mulf %331, %326 : vector<8x128xf32>
    %333 = arith.addf %326, %332 : vector<8x128xf32>
    %cst_241 = arith.constant 0.797884583 : f32
    %334 = vector.broadcast %cst_241 : f32 to vector<8x128xf32>
    %335 = arith.mulf %334, %333 : vector<8x128xf32>
    %336 = math.tanh %335 : vector<8x128xf32>
    %cst_242 = arith.constant 1.000000e+00 : f32
    %337 = vector.broadcast %cst_242 : f32 to vector<8x128xf32>
    %338 = arith.addf %337, %336 : vector<8x128xf32>
    %339 = arith.mulf %328, %338 : vector<8x128xf32>
    %c0_243 = arith.constant 0 : index
    %c0_244 = arith.constant 0 : index
    %340 = vector.load %arg25[%c0_243, %c0_244] : memref<128x32xf32, #tpu.memory_space<vmem>>, vector<128x32xf32>
    %cst_245 = arith.constant dense<0.000000e+00> : vector<8x32xf32>
    %341 = tpu.matmul %339, %340, %cst_245 {dimension_numbers = #tpu.dot_dimension_numbers<[1], [0], [0], [1], [0, 0, 1, 1], [], []>} : vector<8x128xf32>, vector<128x32xf32>, vector<8x32xf32> -> vector<8x32xf32>
    %c0_246 = arith.constant 0 : index
    %c0_247 = arith.constant 0 : index
    %342 = vector.load %arg26[%c0_246, %c0_247] : memref<1x32xf32, #tpu.memory_space<vmem>>, vector<1x32xf32>
    %343 = vector.broadcast %342 : vector<1x32xf32> to vector<8x32xf32>
    %344 = arith.addf %341, %343 : vector<8x32xf32>
    %345 = arith.addf %297, %344 : vector<8x32xf32>
    %346 = arith.addf %345, %24 : vector<8x32xf32>
    %347 = arith.negf %346 : vector<8x32xf32>
    %348 = math.exp %347 : vector<8x32xf32>
    %cst_248 = arith.constant 1.000000e+00 : f32
    %349 = vector.broadcast %cst_248 : f32 to vector<8x32xf32>
    %350 = arith.addf %349, %348 : vector<8x32xf32>
    %351 = arith.divf %349, %350 : vector<8x32xf32>
    %352 = arith.mulf %346, %351 : vector<8x32xf32>
    %c0_249 = arith.constant 0 : index
    %c0_250 = arith.constant 0 : index
    %c0_251 = arith.constant 0 : index
    %353 = vector.load %arg27[%c0_249, %c0_250, %c0_251] : memref<6x32x32xf32, #tpu.memory_space<vmem>>, vector<1x32x32xf32>
    %354 = vector.shape_cast %353 : vector<1x32x32xf32> to vector<32x32xf32>
    %cst_252 = arith.constant dense<0.000000e+00> : vector<8x32xf32>
    %355 = tpu.matmul %352, %354, %cst_252 {dimension_numbers = #tpu.dot_dimension_numbers<[1], [0], [0], [1], [0, 0, 1, 1], [], []>} : vector<8x32xf32>, vector<32x32xf32>, vector<8x32xf32> -> vector<8x32xf32>
    %c0_253 = arith.constant 0 : index
    %c0_254 = arith.constant 0 : index
    %c0_255 = arith.constant 0 : index
    %356 = vector.load %arg28[%c0_253, %c0_254, %c0_255] : memref<6x1x32xf32, #tpu.memory_space<vmem>>, vector<1x1x32xf32>
    %357 = vector.shape_cast %356 : vector<1x1x32xf32> to vector<1x32xf32>
    %358 = vector.broadcast %357 : vector<1x32xf32> to vector<8x32xf32>
    %359 = arith.addf %355, %358 : vector<8x32xf32>
    %c1_256 = arith.constant 1 : index
    %c0_257 = arith.constant 0 : index
    %c0_258 = arith.constant 0 : index
    %360 = vector.load %arg27[%c1_256, %c0_257, %c0_258] : memref<6x32x32xf32, #tpu.memory_space<vmem>>, vector<1x32x32xf32>
    %361 = vector.shape_cast %360 : vector<1x32x32xf32> to vector<32x32xf32>
    %cst_259 = arith.constant dense<0.000000e+00> : vector<8x32xf32>
    %362 = tpu.matmul %352, %361, %cst_259 {dimension_numbers = #tpu.dot_dimension_numbers<[1], [0], [0], [1], [0, 0, 1, 1], [], []>} : vector<8x32xf32>, vector<32x32xf32>, vector<8x32xf32> -> vector<8x32xf32>
    %c1_260 = arith.constant 1 : index
    %c0_261 = arith.constant 0 : index
    %c0_262 = arith.constant 0 : index
    %363 = vector.load %arg28[%c1_260, %c0_261, %c0_262] : memref<6x1x32xf32, #tpu.memory_space<vmem>>, vector<1x1x32xf32>
    %364 = vector.shape_cast %363 : vector<1x1x32xf32> to vector<1x32xf32>
    %365 = vector.broadcast %364 : vector<1x32xf32> to vector<8x32xf32>
    %366 = arith.addf %362, %365 : vector<8x32xf32>
    %c2_263 = arith.constant 2 : index
    %c0_264 = arith.constant 0 : index
    %c0_265 = arith.constant 0 : index
    %367 = vector.load %arg27[%c2_263, %c0_264, %c0_265] : memref<6x32x32xf32, #tpu.memory_space<vmem>>, vector<1x32x32xf32>
    %368 = vector.shape_cast %367 : vector<1x32x32xf32> to vector<32x32xf32>
    %cst_266 = arith.constant dense<0.000000e+00> : vector<8x32xf32>
    %369 = tpu.matmul %352, %368, %cst_266 {dimension_numbers = #tpu.dot_dimension_numbers<[1], [0], [0], [1], [0, 0, 1, 1], [], []>} : vector<8x32xf32>, vector<32x32xf32>, vector<8x32xf32> -> vector<8x32xf32>
    %c2_267 = arith.constant 2 : index
    %c0_268 = arith.constant 0 : index
    %c0_269 = arith.constant 0 : index
    %370 = vector.load %arg28[%c2_267, %c0_268, %c0_269] : memref<6x1x32xf32, #tpu.memory_space<vmem>>, vector<1x1x32xf32>
    %371 = vector.shape_cast %370 : vector<1x1x32xf32> to vector<1x32xf32>
    %372 = vector.broadcast %371 : vector<1x32xf32> to vector<8x32xf32>
    %373 = arith.addf %369, %372 : vector<8x32xf32>
    %c3_270 = arith.constant 3 : index
    %c0_271 = arith.constant 0 : index
    %c0_272 = arith.constant 0 : index
    %374 = vector.load %arg27[%c3_270, %c0_271, %c0_272] : memref<6x32x32xf32, #tpu.memory_space<vmem>>, vector<1x32x32xf32>
    %375 = vector.shape_cast %374 : vector<1x32x32xf32> to vector<32x32xf32>
    %cst_273 = arith.constant dense<0.000000e+00> : vector<8x32xf32>
    %376 = tpu.matmul %352, %375, %cst_273 {dimension_numbers = #tpu.dot_dimension_numbers<[1], [0], [0], [1], [0, 0, 1, 1], [], []>} : vector<8x32xf32>, vector<32x32xf32>, vector<8x32xf32> -> vector<8x32xf32>
    %c3_274 = arith.constant 3 : index
    %c0_275 = arith.constant 0 : index
    %c0_276 = arith.constant 0 : index
    %377 = vector.load %arg28[%c3_274, %c0_275, %c0_276] : memref<6x1x32xf32, #tpu.memory_space<vmem>>, vector<1x1x32xf32>
    %378 = vector.shape_cast %377 : vector<1x1x32xf32> to vector<1x32xf32>
    %379 = vector.broadcast %378 : vector<1x32xf32> to vector<8x32xf32>
    %380 = arith.addf %376, %379 : vector<8x32xf32>
    %c4_277 = arith.constant 4 : index
    %c0_278 = arith.constant 0 : index
    %c0_279 = arith.constant 0 : index
    %381 = vector.load %arg27[%c4_277, %c0_278, %c0_279] : memref<6x32x32xf32, #tpu.memory_space<vmem>>, vector<1x32x32xf32>
    %382 = vector.shape_cast %381 : vector<1x32x32xf32> to vector<32x32xf32>
    %cst_280 = arith.constant dense<0.000000e+00> : vector<8x32xf32>
    %383 = tpu.matmul %352, %382, %cst_280 {dimension_numbers = #tpu.dot_dimension_numbers<[1], [0], [0], [1], [0, 0, 1, 1], [], []>} : vector<8x32xf32>, vector<32x32xf32>, vector<8x32xf32> -> vector<8x32xf32>
    %c4_281 = arith.constant 4 : index
    %c0_282 = arith.constant 0 : index
    %c0_283 = arith.constant 0 : index
    %384 = vector.load %arg28[%c4_281, %c0_282, %c0_283] : memref<6x1x32xf32, #tpu.memory_space<vmem>>, vector<1x1x32xf32>
    %385 = vector.shape_cast %384 : vector<1x1x32xf32> to vector<1x32xf32>
    %386 = vector.broadcast %385 : vector<1x32xf32> to vector<8x32xf32>
    %387 = arith.addf %383, %386 : vector<8x32xf32>
    %c5 = arith.constant 5 : index
    %c0_284 = arith.constant 0 : index
    %c0_285 = arith.constant 0 : index
    %388 = vector.load %arg27[%c5, %c0_284, %c0_285] : memref<6x32x32xf32, #tpu.memory_space<vmem>>, vector<1x32x32xf32>
    %389 = vector.shape_cast %388 : vector<1x32x32xf32> to vector<32x32xf32>
    %cst_286 = arith.constant dense<0.000000e+00> : vector<8x32xf32>
    %390 = tpu.matmul %352, %389, %cst_286 {dimension_numbers = #tpu.dot_dimension_numbers<[1], [0], [0], [1], [0, 0, 1, 1], [], []>} : vector<8x32xf32>, vector<32x32xf32>, vector<8x32xf32> -> vector<8x32xf32>
    %c5_287 = arith.constant 5 : index
    %c0_288 = arith.constant 0 : index
    %c0_289 = arith.constant 0 : index
    %391 = vector.load %arg28[%c5_287, %c0_288, %c0_289] : memref<6x1x32xf32, #tpu.memory_space<vmem>>, vector<1x1x32xf32>
    %392 = vector.shape_cast %391 : vector<1x1x32xf32> to vector<1x32xf32>
    %393 = vector.broadcast %392 : vector<1x32xf32> to vector<8x32xf32>
    %394 = arith.addf %390, %393 : vector<8x32xf32>
    %cst_290 = arith.constant dense<0.000000e+00> : vector<8xf32>
    %395 = vector.multi_reduction <add>, %7, %cst_290 [1] : vector<8x32xf32> to vector<8xf32>
    %396 = vector.shape_cast %395 : vector<8xf32> to vector<8x1xf32>
    %cst_291 = arith.constant 3.200000e+01 : f32
    %397 = vector.broadcast %cst_291 : f32 to vector<8x1xf32>
    %398 = arith.divf %396, %397 : vector<8x1xf32>
    %399 = vector.broadcast %398 : vector<8x1xf32> to vector<8x32xf32>
    %400 = arith.subf %7, %399 : vector<8x32xf32>
    %401 = arith.mulf %400, %400 : vector<8x32xf32>
    %cst_292 = arith.constant dense<0.000000e+00> : vector<8xf32>
    %402 = vector.multi_reduction <add>, %401, %cst_292 [1] : vector<8x32xf32> to vector<8xf32>
    %403 = vector.shape_cast %402 : vector<8xf32> to vector<8x1xf32>
    %cst_293 = arith.constant 3.200000e+01 : f32
    %404 = vector.broadcast %cst_293 : f32 to vector<8x1xf32>
    %405 = arith.divf %403, %404 : vector<8x1xf32>
    %406 = vector.broadcast %398 : vector<8x1xf32> to vector<8x32xf32>
    %407 = arith.subf %7, %406 : vector<8x32xf32>
    %cst_294 = arith.constant 9.99999997E-7 : f32
    %408 = vector.broadcast %cst_294 : f32 to vector<8x1xf32>
    %409 = arith.addf %405, %408 : vector<8x1xf32>
    %410 = math.rsqrt %409 : vector<8x1xf32>
    %411 = vector.broadcast %410 : vector<8x1xf32> to vector<8x32xf32>
    %412 = arith.mulf %407, %411 : vector<8x32xf32>
    %cst_295 = arith.constant 1.000000e+00 : f32
    %413 = vector.broadcast %cst_295 : f32 to vector<8x32xf32>
    %414 = arith.addf %413, %366 : vector<8x32xf32>
    %415 = arith.mulf %412, %414 : vector<8x32xf32>
    %416 = arith.addf %415, %359 : vector<8x32xf32>
    %c0_296 = arith.constant 0 : index
    %c0_297 = arith.constant 0 : index
    %417 = vector.load %arg36[%c0_296, %c0_297] : memref<1x32xf32, #tpu.memory_space<vmem>>, vector<1x32xf32>
    %418 = vector.extract_strided_slice %416 {offsets = [0, 0], sizes = [4, 32], strides = [1, 1]} : vector<8x32xf32> to vector<4x32xf32>
    %c0_298 = arith.constant 0 : index
    %c0_299 = arith.constant 0 : index
    %c0_300 = arith.constant 0 : index
    %419 = vector.load %arg29[%c0_298, %c0_299, %c0_300] : memref<4x32x8xf32, #tpu.memory_space<vmem>>, vector<1x32x8xf32>
    %420 = vector.shape_cast %419 : vector<1x32x8xf32> to vector<32x8xf32>
    %cst_301 = arith.constant dense<0.000000e+00> : vector<4x8xf32>
    %421 = tpu.matmul %418, %420, %cst_301 {dimension_numbers = #tpu.dot_dimension_numbers<[1], [0], [0], [1], [0, 0, 1, 1], [], []>} : vector<4x32xf32>, vector<32x8xf32>, vector<4x8xf32> -> vector<4x8xf32>
    %c0_302 = arith.constant 0 : index
    %c0_303 = arith.constant 0 : index
    %c0_304 = arith.constant 0 : index
    %422 = vector.load %arg32[%c0_302, %c0_303, %c0_304] : memref<4x1x8xf32, #tpu.memory_space<vmem>>, vector<1x1x8xf32>
    %423 = vector.shape_cast %422 : vector<1x1x8xf32> to vector<1x8xf32>
    %424 = vector.broadcast %423 : vector<1x8xf32> to vector<4x8xf32>
    %425 = arith.addf %421, %424 : vector<4x8xf32>
    %c0_305 = arith.constant 0 : index
    %c0_306 = arith.constant 0 : index
    %c0_307 = arith.constant 0 : index
    %426 = vector.load %arg30[%c0_305, %c0_306, %c0_307] : memref<4x32x8xf32, #tpu.memory_space<vmem>>, vector<1x32x8xf32>
    %427 = vector.shape_cast %426 : vector<1x32x8xf32> to vector<32x8xf32>
    %cst_308 = arith.constant dense<0.000000e+00> : vector<4x8xf32>
    %428 = tpu.matmul %418, %427, %cst_308 {dimension_numbers = #tpu.dot_dimension_numbers<[1], [0], [0], [1], [0, 0, 1, 1], [], []>} : vector<4x32xf32>, vector<32x8xf32>, vector<4x8xf32> -> vector<4x8xf32>
    %c0_309 = arith.constant 0 : index
    %c0_310 = arith.constant 0 : index
    %c0_311 = arith.constant 0 : index
    %429 = vector.load %arg33[%c0_309, %c0_310, %c0_311] : memref<4x1x8xf32, #tpu.memory_space<vmem>>, vector<1x1x8xf32>
    %430 = vector.shape_cast %429 : vector<1x1x8xf32> to vector<1x8xf32>
    %431 = vector.broadcast %430 : vector<1x8xf32> to vector<4x8xf32>
    %432 = arith.addf %428, %431 : vector<4x8xf32>
    %c0_312 = arith.constant 0 : index
    %c0_313 = arith.constant 0 : index
    %c0_314 = arith.constant 0 : index
    %433 = vector.load %arg31[%c0_312, %c0_313, %c0_314] : memref<4x32x8xf32, #tpu.memory_space<vmem>>, vector<1x32x8xf32>
    %434 = vector.shape_cast %433 : vector<1x32x8xf32> to vector<32x8xf32>
    %cst_315 = arith.constant dense<0.000000e+00> : vector<4x8xf32>
    %435 = tpu.matmul %418, %434, %cst_315 {dimension_numbers = #tpu.dot_dimension_numbers<[1], [0], [0], [1], [0, 0, 1, 1], [], []>} : vector<4x32xf32>, vector<32x8xf32>, vector<4x8xf32> -> vector<4x8xf32>
    %c0_316 = arith.constant 0 : index
    %c0_317 = arith.constant 0 : index
    %c0_318 = arith.constant 0 : index
    %436 = vector.load %arg34[%c0_316, %c0_317, %c0_318] : memref<4x1x8xf32, #tpu.memory_space<vmem>>, vector<1x1x8xf32>
    %437 = vector.shape_cast %436 : vector<1x1x8xf32> to vector<1x8xf32>
    %438 = vector.broadcast %437 : vector<1x8xf32> to vector<4x8xf32>
    %439 = arith.addf %435, %438 : vector<4x8xf32>
    %cst_319 = arith.constant dense<0.000000e+00> : vector<4x4xf32>
    %440 = tpu.matmul %425, %432, %cst_319 {dimension_numbers = #tpu.dot_dimension_numbers<[1], [1], [0], [0], [0, 0, 1, 0], [], []>} : vector<4x8xf32>, vector<4x8xf32>, vector<4x4xf32> -> vector<4x4xf32>
    %cst_320 = arith.constant dense<0xFF800000> : vector<4xf32>
    %441 = vector.multi_reduction <maximumf>, %440, %cst_320 [1] : vector<4x4xf32> to vector<4xf32>
    %442 = vector.shape_cast %441 : vector<4xf32> to vector<4x1xf32>
    %443 = vector.broadcast %442 : vector<4x1xf32> to vector<4x4xf32>
    %444 = arith.subf %440, %443 : vector<4x4xf32>
    %445 = math.exp %444 : vector<4x4xf32>
    %cst_321 = arith.constant dense<0.000000e+00> : vector<4xf32>
    %446 = vector.multi_reduction <add>, %445, %cst_321 [1] : vector<4x4xf32> to vector<4xf32>
    %447 = vector.shape_cast %446 : vector<4xf32> to vector<4x1xf32>
    %448 = tpu.reciprocal %447 {approx = true} : vector<4x1xf32> -> vector<4x1xf32>
    %449 = vector.broadcast %448 : vector<4x1xf32> to vector<4x4xf32>
    %450 = arith.mulf %445, %449 : vector<4x4xf32>
    %cst_322 = arith.constant dense<0.000000e+00> : vector<4x8xf32>
    %451 = tpu.matmul %450, %439, %cst_322 {dimension_numbers = #tpu.dot_dimension_numbers<[1], [0], [0], [1], [0, 0, 1, 1], [], []>} : vector<4x4xf32>, vector<4x8xf32>, vector<4x8xf32> -> vector<4x8xf32>
    %c0_323 = arith.constant 0 : index
    %c0_324 = arith.constant 0 : index
    %c0_325 = arith.constant 0 : index
    %452 = vector.load %arg35[%c0_323, %c0_324, %c0_325] : memref<4x8x32xf32, #tpu.memory_space<vmem>>, vector<1x8x32xf32>
    %453 = vector.shape_cast %452 : vector<1x8x32xf32> to vector<8x32xf32>
    %cst_326 = arith.constant dense<0.000000e+00> : vector<4x32xf32>
    %454 = tpu.matmul %451, %453, %cst_326 {dimension_numbers = #tpu.dot_dimension_numbers<[1], [0], [0], [1], [0, 0, 1, 1], [], []>} : vector<4x8xf32>, vector<8x32xf32>, vector<4x32xf32> -> vector<4x32xf32>
    %c1_327 = arith.constant 1 : index
    %c0_328 = arith.constant 0 : index
    %c0_329 = arith.constant 0 : index
    %455 = vector.load %arg29[%c1_327, %c0_328, %c0_329] : memref<4x32x8xf32, #tpu.memory_space<vmem>>, vector<1x32x8xf32>
    %456 = vector.shape_cast %455 : vector<1x32x8xf32> to vector<32x8xf32>
    %cst_330 = arith.constant dense<0.000000e+00> : vector<4x8xf32>
    %457 = tpu.matmul %418, %456, %cst_330 {dimension_numbers = #tpu.dot_dimension_numbers<[1], [0], [0], [1], [0, 0, 1, 1], [], []>} : vector<4x32xf32>, vector<32x8xf32>, vector<4x8xf32> -> vector<4x8xf32>
    %c1_331 = arith.constant 1 : index
    %c0_332 = arith.constant 0 : index
    %c0_333 = arith.constant 0 : index
    %458 = vector.load %arg32[%c1_331, %c0_332, %c0_333] : memref<4x1x8xf32, #tpu.memory_space<vmem>>, vector<1x1x8xf32>
    %459 = vector.shape_cast %458 : vector<1x1x8xf32> to vector<1x8xf32>
    %460 = vector.broadcast %459 : vector<1x8xf32> to vector<4x8xf32>
    %461 = arith.addf %457, %460 : vector<4x8xf32>
    %c1_334 = arith.constant 1 : index
    %c0_335 = arith.constant 0 : index
    %c0_336 = arith.constant 0 : index
    %462 = vector.load %arg30[%c1_334, %c0_335, %c0_336] : memref<4x32x8xf32, #tpu.memory_space<vmem>>, vector<1x32x8xf32>
    %463 = vector.shape_cast %462 : vector<1x32x8xf32> to vector<32x8xf32>
    %cst_337 = arith.constant dense<0.000000e+00> : vector<4x8xf32>
    %464 = tpu.matmul %418, %463, %cst_337 {dimension_numbers = #tpu.dot_dimension_numbers<[1], [0], [0], [1], [0, 0, 1, 1], [], []>} : vector<4x32xf32>, vector<32x8xf32>, vector<4x8xf32> -> vector<4x8xf32>
    %c1_338 = arith.constant 1 : index
    %c0_339 = arith.constant 0 : index
    %c0_340 = arith.constant 0 : index
    %465 = vector.load %arg33[%c1_338, %c0_339, %c0_340] : memref<4x1x8xf32, #tpu.memory_space<vmem>>, vector<1x1x8xf32>
    %466 = vector.shape_cast %465 : vector<1x1x8xf32> to vector<1x8xf32>
    %467 = vector.broadcast %466 : vector<1x8xf32> to vector<4x8xf32>
    %468 = arith.addf %464, %467 : vector<4x8xf32>
    %c1_341 = arith.constant 1 : index
    %c0_342 = arith.constant 0 : index
    %c0_343 = arith.constant 0 : index
    %469 = vector.load %arg31[%c1_341, %c0_342, %c0_343] : memref<4x32x8xf32, #tpu.memory_space<vmem>>, vector<1x32x8xf32>
    %470 = vector.shape_cast %469 : vector<1x32x8xf32> to vector<32x8xf32>
    %cst_344 = arith.constant dense<0.000000e+00> : vector<4x8xf32>
    %471 = tpu.matmul %418, %470, %cst_344 {dimension_numbers = #tpu.dot_dimension_numbers<[1], [0], [0], [1], [0, 0, 1, 1], [], []>} : vector<4x32xf32>, vector<32x8xf32>, vector<4x8xf32> -> vector<4x8xf32>
    %c1_345 = arith.constant 1 : index
    %c0_346 = arith.constant 0 : index
    %c0_347 = arith.constant 0 : index
    %472 = vector.load %arg34[%c1_345, %c0_346, %c0_347] : memref<4x1x8xf32, #tpu.memory_space<vmem>>, vector<1x1x8xf32>
    %473 = vector.shape_cast %472 : vector<1x1x8xf32> to vector<1x8xf32>
    %474 = vector.broadcast %473 : vector<1x8xf32> to vector<4x8xf32>
    %475 = arith.addf %471, %474 : vector<4x8xf32>
    %cst_348 = arith.constant dense<0.000000e+00> : vector<4x4xf32>
    %476 = tpu.matmul %461, %468, %cst_348 {dimension_numbers = #tpu.dot_dimension_numbers<[1], [1], [0], [0], [0, 0, 1, 0], [], []>} : vector<4x8xf32>, vector<4x8xf32>, vector<4x4xf32> -> vector<4x4xf32>
    %cst_349 = arith.constant dense<0xFF800000> : vector<4xf32>
    %477 = vector.multi_reduction <maximumf>, %476, %cst_349 [1] : vector<4x4xf32> to vector<4xf32>
    %478 = vector.shape_cast %477 : vector<4xf32> to vector<4x1xf32>
    %479 = vector.broadcast %478 : vector<4x1xf32> to vector<4x4xf32>
    %480 = arith.subf %476, %479 : vector<4x4xf32>
    %481 = math.exp %480 : vector<4x4xf32>
    %cst_350 = arith.constant dense<0.000000e+00> : vector<4xf32>
    %482 = vector.multi_reduction <add>, %481, %cst_350 [1] : vector<4x4xf32> to vector<4xf32>
    %483 = vector.shape_cast %482 : vector<4xf32> to vector<4x1xf32>
    %484 = tpu.reciprocal %483 {approx = true} : vector<4x1xf32> -> vector<4x1xf32>
    %485 = vector.broadcast %484 : vector<4x1xf32> to vector<4x4xf32>
    %486 = arith.mulf %481, %485 : vector<4x4xf32>
    %cst_351 = arith.constant dense<0.000000e+00> : vector<4x8xf32>
    %487 = tpu.matmul %486, %475, %cst_351 {dimension_numbers = #tpu.dot_dimension_numbers<[1], [0], [0], [1], [0, 0, 1, 1], [], []>} : vector<4x4xf32>, vector<4x8xf32>, vector<4x8xf32> -> vector<4x8xf32>
    %c1_352 = arith.constant 1 : index
    %c0_353 = arith.constant 0 : index
    %c0_354 = arith.constant 0 : index
    %488 = vector.load %arg35[%c1_352, %c0_353, %c0_354] : memref<4x8x32xf32, #tpu.memory_space<vmem>>, vector<1x8x32xf32>
    %489 = vector.shape_cast %488 : vector<1x8x32xf32> to vector<8x32xf32>
    %cst_355 = arith.constant dense<0.000000e+00> : vector<4x32xf32>
    %490 = tpu.matmul %487, %489, %cst_355 {dimension_numbers = #tpu.dot_dimension_numbers<[1], [0], [0], [1], [0, 0, 1, 1], [], []>} : vector<4x8xf32>, vector<8x32xf32>, vector<4x32xf32> -> vector<4x32xf32>
    %491 = arith.addf %454, %490 : vector<4x32xf32>
    %c2_356 = arith.constant 2 : index
    %c0_357 = arith.constant 0 : index
    %c0_358 = arith.constant 0 : index
    %492 = vector.load %arg29[%c2_356, %c0_357, %c0_358] : memref<4x32x8xf32, #tpu.memory_space<vmem>>, vector<1x32x8xf32>
    %493 = vector.shape_cast %492 : vector<1x32x8xf32> to vector<32x8xf32>
    %cst_359 = arith.constant dense<0.000000e+00> : vector<4x8xf32>
    %494 = tpu.matmul %418, %493, %cst_359 {dimension_numbers = #tpu.dot_dimension_numbers<[1], [0], [0], [1], [0, 0, 1, 1], [], []>} : vector<4x32xf32>, vector<32x8xf32>, vector<4x8xf32> -> vector<4x8xf32>
    %c2_360 = arith.constant 2 : index
    %c0_361 = arith.constant 0 : index
    %c0_362 = arith.constant 0 : index
    %495 = vector.load %arg32[%c2_360, %c0_361, %c0_362] : memref<4x1x8xf32, #tpu.memory_space<vmem>>, vector<1x1x8xf32>
    %496 = vector.shape_cast %495 : vector<1x1x8xf32> to vector<1x8xf32>
    %497 = vector.broadcast %496 : vector<1x8xf32> to vector<4x8xf32>
    %498 = arith.addf %494, %497 : vector<4x8xf32>
    %c2_363 = arith.constant 2 : index
    %c0_364 = arith.constant 0 : index
    %c0_365 = arith.constant 0 : index
    %499 = vector.load %arg30[%c2_363, %c0_364, %c0_365] : memref<4x32x8xf32, #tpu.memory_space<vmem>>, vector<1x32x8xf32>
    %500 = vector.shape_cast %499 : vector<1x32x8xf32> to vector<32x8xf32>
    %cst_366 = arith.constant dense<0.000000e+00> : vector<4x8xf32>
    %501 = tpu.matmul %418, %500, %cst_366 {dimension_numbers = #tpu.dot_dimension_numbers<[1], [0], [0], [1], [0, 0, 1, 1], [], []>} : vector<4x32xf32>, vector<32x8xf32>, vector<4x8xf32> -> vector<4x8xf32>
    %c2_367 = arith.constant 2 : index
    %c0_368 = arith.constant 0 : index
    %c0_369 = arith.constant 0 : index
    %502 = vector.load %arg33[%c2_367, %c0_368, %c0_369] : memref<4x1x8xf32, #tpu.memory_space<vmem>>, vector<1x1x8xf32>
    %503 = vector.shape_cast %502 : vector<1x1x8xf32> to vector<1x8xf32>
    %504 = vector.broadcast %503 : vector<1x8xf32> to vector<4x8xf32>
    %505 = arith.addf %501, %504 : vector<4x8xf32>
    %c2_370 = arith.constant 2 : index
    %c0_371 = arith.constant 0 : index
    %c0_372 = arith.constant 0 : index
    %506 = vector.load %arg31[%c2_370, %c0_371, %c0_372] : memref<4x32x8xf32, #tpu.memory_space<vmem>>, vector<1x32x8xf32>
    %507 = vector.shape_cast %506 : vector<1x32x8xf32> to vector<32x8xf32>
    %cst_373 = arith.constant dense<0.000000e+00> : vector<4x8xf32>
    %508 = tpu.matmul %418, %507, %cst_373 {dimension_numbers = #tpu.dot_dimension_numbers<[1], [0], [0], [1], [0, 0, 1, 1], [], []>} : vector<4x32xf32>, vector<32x8xf32>, vector<4x8xf32> -> vector<4x8xf32>
    %c2_374 = arith.constant 2 : index
    %c0_375 = arith.constant 0 : index
    %c0_376 = arith.constant 0 : index
    %509 = vector.load %arg34[%c2_374, %c0_375, %c0_376] : memref<4x1x8xf32, #tpu.memory_space<vmem>>, vector<1x1x8xf32>
    %510 = vector.shape_cast %509 : vector<1x1x8xf32> to vector<1x8xf32>
    %511 = vector.broadcast %510 : vector<1x8xf32> to vector<4x8xf32>
    %512 = arith.addf %508, %511 : vector<4x8xf32>
    %cst_377 = arith.constant dense<0.000000e+00> : vector<4x4xf32>
    %513 = tpu.matmul %498, %505, %cst_377 {dimension_numbers = #tpu.dot_dimension_numbers<[1], [1], [0], [0], [0, 0, 1, 0], [], []>} : vector<4x8xf32>, vector<4x8xf32>, vector<4x4xf32> -> vector<4x4xf32>
    %cst_378 = arith.constant dense<0xFF800000> : vector<4xf32>
    %514 = vector.multi_reduction <maximumf>, %513, %cst_378 [1] : vector<4x4xf32> to vector<4xf32>
    %515 = vector.shape_cast %514 : vector<4xf32> to vector<4x1xf32>
    %516 = vector.broadcast %515 : vector<4x1xf32> to vector<4x4xf32>
    %517 = arith.subf %513, %516 : vector<4x4xf32>
    %518 = math.exp %517 : vector<4x4xf32>
    %cst_379 = arith.constant dense<0.000000e+00> : vector<4xf32>
    %519 = vector.multi_reduction <add>, %518, %cst_379 [1] : vector<4x4xf32> to vector<4xf32>
    %520 = vector.shape_cast %519 : vector<4xf32> to vector<4x1xf32>
    %521 = tpu.reciprocal %520 {approx = true} : vector<4x1xf32> -> vector<4x1xf32>
    %522 = vector.broadcast %521 : vector<4x1xf32> to vector<4x4xf32>
    %523 = arith.mulf %518, %522 : vector<4x4xf32>
    %cst_380 = arith.constant dense<0.000000e+00> : vector<4x8xf32>
    %524 = tpu.matmul %523, %512, %cst_380 {dimension_numbers = #tpu.dot_dimension_numbers<[1], [0], [0], [1], [0, 0, 1, 1], [], []>} : vector<4x4xf32>, vector<4x8xf32>, vector<4x8xf32> -> vector<4x8xf32>
    %c2_381 = arith.constant 2 : index
    %c0_382 = arith.constant 0 : index
    %c0_383 = arith.constant 0 : index
    %525 = vector.load %arg35[%c2_381, %c0_382, %c0_383] : memref<4x8x32xf32, #tpu.memory_space<vmem>>, vector<1x8x32xf32>
    %526 = vector.shape_cast %525 : vector<1x8x32xf32> to vector<8x32xf32>
    %cst_384 = arith.constant dense<0.000000e+00> : vector<4x32xf32>
    %527 = tpu.matmul %524, %526, %cst_384 {dimension_numbers = #tpu.dot_dimension_numbers<[1], [0], [0], [1], [0, 0, 1, 1], [], []>} : vector<4x8xf32>, vector<8x32xf32>, vector<4x32xf32> -> vector<4x32xf32>
    %528 = arith.addf %491, %527 : vector<4x32xf32>
    %c3_385 = arith.constant 3 : index
    %c0_386 = arith.constant 0 : index
    %c0_387 = arith.constant 0 : index
    %529 = vector.load %arg29[%c3_385, %c0_386, %c0_387] : memref<4x32x8xf32, #tpu.memory_space<vmem>>, vector<1x32x8xf32>
    %530 = vector.shape_cast %529 : vector<1x32x8xf32> to vector<32x8xf32>
    %cst_388 = arith.constant dense<0.000000e+00> : vector<4x8xf32>
    %531 = tpu.matmul %418, %530, %cst_388 {dimension_numbers = #tpu.dot_dimension_numbers<[1], [0], [0], [1], [0, 0, 1, 1], [], []>} : vector<4x32xf32>, vector<32x8xf32>, vector<4x8xf32> -> vector<4x8xf32>
    %c3_389 = arith.constant 3 : index
    %c0_390 = arith.constant 0 : index
    %c0_391 = arith.constant 0 : index
    %532 = vector.load %arg32[%c3_389, %c0_390, %c0_391] : memref<4x1x8xf32, #tpu.memory_space<vmem>>, vector<1x1x8xf32>
    %533 = vector.shape_cast %532 : vector<1x1x8xf32> to vector<1x8xf32>
    %534 = vector.broadcast %533 : vector<1x8xf32> to vector<4x8xf32>
    %535 = arith.addf %531, %534 : vector<4x8xf32>
    %c3_392 = arith.constant 3 : index
    %c0_393 = arith.constant 0 : index
    %c0_394 = arith.constant 0 : index
    %536 = vector.load %arg30[%c3_392, %c0_393, %c0_394] : memref<4x32x8xf32, #tpu.memory_space<vmem>>, vector<1x32x8xf32>
    %537 = vector.shape_cast %536 : vector<1x32x8xf32> to vector<32x8xf32>
    %cst_395 = arith.constant dense<0.000000e+00> : vector<4x8xf32>
    %538 = tpu.matmul %418, %537, %cst_395 {dimension_numbers = #tpu.dot_dimension_numbers<[1], [0], [0], [1], [0, 0, 1, 1], [], []>} : vector<4x32xf32>, vector<32x8xf32>, vector<4x8xf32> -> vector<4x8xf32>
    %c3_396 = arith.constant 3 : index
    %c0_397 = arith.constant 0 : index
    %c0_398 = arith.constant 0 : index
    %539 = vector.load %arg33[%c3_396, %c0_397, %c0_398] : memref<4x1x8xf32, #tpu.memory_space<vmem>>, vector<1x1x8xf32>
    %540 = vector.shape_cast %539 : vector<1x1x8xf32> to vector<1x8xf32>
    %541 = vector.broadcast %540 : vector<1x8xf32> to vector<4x8xf32>
    %542 = arith.addf %538, %541 : vector<4x8xf32>
    %c3_399 = arith.constant 3 : index
    %c0_400 = arith.constant 0 : index
    %c0_401 = arith.constant 0 : index
    %543 = vector.load %arg31[%c3_399, %c0_400, %c0_401] : memref<4x32x8xf32, #tpu.memory_space<vmem>>, vector<1x32x8xf32>
    %544 = vector.shape_cast %543 : vector<1x32x8xf32> to vector<32x8xf32>
    %cst_402 = arith.constant dense<0.000000e+00> : vector<4x8xf32>
    %545 = tpu.matmul %418, %544, %cst_402 {dimension_numbers = #tpu.dot_dimension_numbers<[1], [0], [0], [1], [0, 0, 1, 1], [], []>} : vector<4x32xf32>, vector<32x8xf32>, vector<4x8xf32> -> vector<4x8xf32>
    %c3_403 = arith.constant 3 : index
    %c0_404 = arith.constant 0 : index
    %c0_405 = arith.constant 0 : index
    %546 = vector.load %arg34[%c3_403, %c0_404, %c0_405] : memref<4x1x8xf32, #tpu.memory_space<vmem>>, vector<1x1x8xf32>
    %547 = vector.shape_cast %546 : vector<1x1x8xf32> to vector<1x8xf32>
    %548 = vector.broadcast %547 : vector<1x8xf32> to vector<4x8xf32>
    %549 = arith.addf %545, %548 : vector<4x8xf32>
    %cst_406 = arith.constant dense<0.000000e+00> : vector<4x4xf32>
    %550 = tpu.matmul %535, %542, %cst_406 {dimension_numbers = #tpu.dot_dimension_numbers<[1], [1], [0], [0], [0, 0, 1, 0], [], []>} : vector<4x8xf32>, vector<4x8xf32>, vector<4x4xf32> -> vector<4x4xf32>
    %cst_407 = arith.constant dense<0xFF800000> : vector<4xf32>
    %551 = vector.multi_reduction <maximumf>, %550, %cst_407 [1] : vector<4x4xf32> to vector<4xf32>
    %552 = vector.shape_cast %551 : vector<4xf32> to vector<4x1xf32>
    %553 = vector.broadcast %552 : vector<4x1xf32> to vector<4x4xf32>
    %554 = arith.subf %550, %553 : vector<4x4xf32>
    %555 = math.exp %554 : vector<4x4xf32>
    %cst_408 = arith.constant dense<0.000000e+00> : vector<4xf32>
    %556 = vector.multi_reduction <add>, %555, %cst_408 [1] : vector<4x4xf32> to vector<4xf32>
    %557 = vector.shape_cast %556 : vector<4xf32> to vector<4x1xf32>
    %558 = tpu.reciprocal %557 {approx = true} : vector<4x1xf32> -> vector<4x1xf32>
    %559 = vector.broadcast %558 : vector<4x1xf32> to vector<4x4xf32>
    %560 = arith.mulf %555, %559 : vector<4x4xf32>
    %cst_409 = arith.constant dense<0.000000e+00> : vector<4x8xf32>
    %561 = tpu.matmul %560, %549, %cst_409 {dimension_numbers = #tpu.dot_dimension_numbers<[1], [0], [0], [1], [0, 0, 1, 1], [], []>} : vector<4x4xf32>, vector<4x8xf32>, vector<4x8xf32> -> vector<4x8xf32>
    %c3_410 = arith.constant 3 : index
    %c0_411 = arith.constant 0 : index
    %c0_412 = arith.constant 0 : index
    %562 = vector.load %arg35[%c3_410, %c0_411, %c0_412] : memref<4x8x32xf32, #tpu.memory_space<vmem>>, vector<1x8x32xf32>
    %563 = vector.shape_cast %562 : vector<1x8x32xf32> to vector<8x32xf32>
    %cst_413 = arith.constant dense<0.000000e+00> : vector<4x32xf32>
    %564 = tpu.matmul %561, %563, %cst_413 {dimension_numbers = #tpu.dot_dimension_numbers<[1], [0], [0], [1], [0, 0, 1, 1], [], []>} : vector<4x8xf32>, vector<8x32xf32>, vector<4x32xf32> -> vector<4x32xf32>
    %565 = arith.addf %528, %564 : vector<4x32xf32>
    %566 = vector.broadcast %417 : vector<1x32xf32> to vector<4x32xf32>
    %567 = arith.addf %565, %566 : vector<4x32xf32>
    %c0_414 = arith.constant 0 : index
    %c0_415 = arith.constant 0 : index
    %568 = vector.load %arg61[%c0_414, %c0_415] : memref<8x32xf32, #tpu.memory_space<vmem>>, vector<4x32xf32>
    tpu.vector_store %arg61[%c0_414, %c0_415], %567 {strides = array<i32>} : memref<8x32xf32, #tpu.memory_space<vmem>>, vector<4x32xf32>,
    %569 = vector.extract_strided_slice %416 {offsets = [4, 0], sizes = [4, 32], strides = [1, 1]} : vector<8x32xf32> to vector<4x32xf32>
    %c0_416 = arith.constant 0 : index
    %c0_417 = arith.constant 0 : index
    %c0_418 = arith.constant 0 : index
    %570 = vector.load %arg29[%c0_416, %c0_417, %c0_418] : memref<4x32x8xf32, #tpu.memory_space<vmem>>, vector<1x32x8xf32>
    %571 = vector.shape_cast %570 : vector<1x32x8xf32> to vector<32x8xf32>
    %cst_419 = arith.constant dense<0.000000e+00> : vector<4x8xf32>
    %572 = tpu.matmul %569, %571, %cst_419 {dimension_numbers = #tpu.dot_dimension_numbers<[1], [0], [0], [1], [0, 0, 1, 1], [], []>} : vector<4x32xf32>, vector<32x8xf32>, vector<4x8xf32> -> vector<4x8xf32>
    %c0_420 = arith.constant 0 : index
    %c0_421 = arith.constant 0 : index
    %c0_422 = arith.constant 0 : index
    %573 = vector.load %arg32[%c0_420, %c0_421, %c0_422] : memref<4x1x8xf32, #tpu.memory_space<vmem>>, vector<1x1x8xf32>
    %574 = vector.shape_cast %573 : vector<1x1x8xf32> to vector<1x8xf32>
    %575 = vector.broadcast %574 : vector<1x8xf32> to vector<4x8xf32>
    %576 = arith.addf %572, %575 : vector<4x8xf32>
    %c0_423 = arith.constant 0 : index
    %c0_424 = arith.constant 0 : index
    %c0_425 = arith.constant 0 : index
    %577 = vector.load %arg30[%c0_423, %c0_424, %c0_425] : memref<4x32x8xf32, #tpu.memory_space<vmem>>, vector<1x32x8xf32>
    %578 = vector.shape_cast %577 : vector<1x32x8xf32> to vector<32x8xf32>
    %cst_426 = arith.constant dense<0.000000e+00> : vector<4x8xf32>
    %579 = tpu.matmul %569, %578, %cst_426 {dimension_numbers = #tpu.dot_dimension_numbers<[1], [0], [0], [1], [0, 0, 1, 1], [], []>} : vector<4x32xf32>, vector<32x8xf32>, vector<4x8xf32> -> vector<4x8xf32>
    %c0_427 = arith.constant 0 : index
    %c0_428 = arith.constant 0 : index
    %c0_429 = arith.constant 0 : index
    %580 = vector.load %arg33[%c0_427, %c0_428, %c0_429] : memref<4x1x8xf32, #tpu.memory_space<vmem>>, vector<1x1x8xf32>
    %581 = vector.shape_cast %580 : vector<1x1x8xf32> to vector<1x8xf32>
    %582 = vector.broadcast %581 : vector<1x8xf32> to vector<4x8xf32>
    %583 = arith.addf %579, %582 : vector<4x8xf32>
    %c0_430 = arith.constant 0 : index
    %c0_431 = arith.constant 0 : index
    %c0_432 = arith.constant 0 : index
    %584 = vector.load %arg31[%c0_430, %c0_431, %c0_432] : memref<4x32x8xf32, #tpu.memory_space<vmem>>, vector<1x32x8xf32>
    %585 = vector.shape_cast %584 : vector<1x32x8xf32> to vector<32x8xf32>
    %cst_433 = arith.constant dense<0.000000e+00> : vector<4x8xf32>
    %586 = tpu.matmul %569, %585, %cst_433 {dimension_numbers = #tpu.dot_dimension_numbers<[1], [0], [0], [1], [0, 0, 1, 1], [], []>} : vector<4x32xf32>, vector<32x8xf32>, vector<4x8xf32> -> vector<4x8xf32>
    %c0_434 = arith.constant 0 : index
    %c0_435 = arith.constant 0 : index
    %c0_436 = arith.constant 0 : index
    %587 = vector.load %arg34[%c0_434, %c0_435, %c0_436] : memref<4x1x8xf32, #tpu.memory_space<vmem>>, vector<1x1x8xf32>
    %588 = vector.shape_cast %587 : vector<1x1x8xf32> to vector<1x8xf32>
    %589 = vector.broadcast %588 : vector<1x8xf32> to vector<4x8xf32>
    %590 = arith.addf %586, %589 : vector<4x8xf32>
    %cst_437 = arith.constant dense<0.000000e+00> : vector<4x4xf32>
    %591 = tpu.matmul %576, %583, %cst_437 {dimension_numbers = #tpu.dot_dimension_numbers<[1], [1], [0], [0], [0, 0, 1, 0], [], []>} : vector<4x8xf32>, vector<4x8xf32>, vector<4x4xf32> -> vector<4x4xf32>
    %cst_438 = arith.constant dense<0xFF800000> : vector<4xf32>
    %592 = vector.multi_reduction <maximumf>, %591, %cst_438 [1] : vector<4x4xf32> to vector<4xf32>
    %593 = vector.shape_cast %592 : vector<4xf32> to vector<4x1xf32>
    %594 = vector.broadcast %593 : vector<4x1xf32> to vector<4x4xf32>
    %595 = arith.subf %591, %594 : vector<4x4xf32>
    %596 = math.exp %595 : vector<4x4xf32>
    %cst_439 = arith.constant dense<0.000000e+00> : vector<4xf32>
    %597 = vector.multi_reduction <add>, %596, %cst_439 [1] : vector<4x4xf32> to vector<4xf32>
    %598 = vector.shape_cast %597 : vector<4xf32> to vector<4x1xf32>
    %599 = tpu.reciprocal %598 {approx = true} : vector<4x1xf32> -> vector<4x1xf32>
    %600 = vector.broadcast %599 : vector<4x1xf32> to vector<4x4xf32>
    %601 = arith.mulf %596, %600 : vector<4x4xf32>
    %cst_440 = arith.constant dense<0.000000e+00> : vector<4x8xf32>
    %602 = tpu.matmul %601, %590, %cst_440 {dimension_numbers = #tpu.dot_dimension_numbers<[1], [0], [0], [1], [0, 0, 1, 1], [], []>} : vector<4x4xf32>, vector<4x8xf32>, vector<4x8xf32> -> vector<4x8xf32>
    %c0_441 = arith.constant 0 : index
    %c0_442 = arith.constant 0 : index
    %c0_443 = arith.constant 0 : index
    %603 = vector.load %arg35[%c0_441, %c0_442, %c0_443] : memref<4x8x32xf32, #tpu.memory_space<vmem>>, vector<1x8x32xf32>
    %604 = vector.shape_cast %603 : vector<1x8x32xf32> to vector<8x32xf32>
    %cst_444 = arith.constant dense<0.000000e+00> : vector<4x32xf32>
    %605 = tpu.matmul %602, %604, %cst_444 {dimension_numbers = #tpu.dot_dimension_numbers<[1], [0], [0], [1], [0, 0, 1, 1], [], []>} : vector<4x8xf32>, vector<8x32xf32>, vector<4x32xf32> -> vector<4x32xf32>
    %c1_445 = arith.constant 1 : index
    %c0_446 = arith.constant 0 : index
    %c0_447 = arith.constant 0 : index
    %606 = vector.load %arg29[%c1_445, %c0_446, %c0_447] : memref<4x32x8xf32, #tpu.memory_space<vmem>>, vector<1x32x8xf32>
    %607 = vector.shape_cast %606 : vector<1x32x8xf32> to vector<32x8xf32>
    %cst_448 = arith.constant dense<0.000000e+00> : vector<4x8xf32>
    %608 = tpu.matmul %569, %607, %cst_448 {dimension_numbers = #tpu.dot_dimension_numbers<[1], [0], [0], [1], [0, 0, 1, 1], [], []>} : vector<4x32xf32>, vector<32x8xf32>, vector<4x8xf32> -> vector<4x8xf32>
    %c1_449 = arith.constant 1 : index
    %c0_450 = arith.constant 0 : index
    %c0_451 = arith.constant 0 : index
    %609 = vector.load %arg32[%c1_449, %c0_450, %c0_451] : memref<4x1x8xf32, #tpu.memory_space<vmem>>, vector<1x1x8xf32>
    %610 = vector.shape_cast %609 : vector<1x1x8xf32> to vector<1x8xf32>
    %611 = vector.broadcast %610 : vector<1x8xf32> to vector<4x8xf32>
    %612 = arith.addf %608, %611 : vector<4x8xf32>
    %c1_452 = arith.constant 1 : index
    %c0_453 = arith.constant 0 : index
    %c0_454 = arith.constant 0 : index
    %613 = vector.load %arg30[%c1_452, %c0_453, %c0_454] : memref<4x32x8xf32, #tpu.memory_space<vmem>>, vector<1x32x8xf32>
    %614 = vector.shape_cast %613 : vector<1x32x8xf32> to vector<32x8xf32>
    %cst_455 = arith.constant dense<0.000000e+00> : vector<4x8xf32>
    %615 = tpu.matmul %569, %614, %cst_455 {dimension_numbers = #tpu.dot_dimension_numbers<[1], [0], [0], [1], [0, 0, 1, 1], [], []>} : vector<4x32xf32>, vector<32x8xf32>, vector<4x8xf32> -> vector<4x8xf32>
    %c1_456 = arith.constant 1 : index
    %c0_457 = arith.constant 0 : index
    %c0_458 = arith.constant 0 : index
    %616 = vector.load %arg33[%c1_456, %c0_457, %c0_458] : memref<4x1x8xf32, #tpu.memory_space<vmem>>, vector<1x1x8xf32>
    %617 = vector.shape_cast %616 : vector<1x1x8xf32> to vector<1x8xf32>
    %618 = vector.broadcast %617 : vector<1x8xf32> to vector<4x8xf32>
    %619 = arith.addf %615, %618 : vector<4x8xf32>
    %c1_459 = arith.constant 1 : index
    %c0_460 = arith.constant 0 : index
    %c0_461 = arith.constant 0 : index
    %620 = vector.load %arg31[%c1_459, %c0_460, %c0_461] : memref<4x32x8xf32, #tpu.memory_space<vmem>>, vector<1x32x8xf32>
    %621 = vector.shape_cast %620 : vector<1x32x8xf32> to vector<32x8xf32>
    %cst_462 = arith.constant dense<0.000000e+00> : vector<4x8xf32>
    %622 = tpu.matmul %569, %621, %cst_462 {dimension_numbers = #tpu.dot_dimension_numbers<[1], [0], [0], [1], [0, 0, 1, 1], [], []>} : vector<4x32xf32>, vector<32x8xf32>, vector<4x8xf32> -> vector<4x8xf32>
    %c1_463 = arith.constant 1 : index
    %c0_464 = arith.constant 0 : index
    %c0_465 = arith.constant 0 : index
    %623 = vector.load %arg34[%c1_463, %c0_464, %c0_465] : memref<4x1x8xf32, #tpu.memory_space<vmem>>, vector<1x1x8xf32>
    %624 = vector.shape_cast %623 : vector<1x1x8xf32> to vector<1x8xf32>
    %625 = vector.broadcast %624 : vector<1x8xf32> to vector<4x8xf32>
    %626 = arith.addf %622, %625 : vector<4x8xf32>
    %cst_466 = arith.constant dense<0.000000e+00> : vector<4x4xf32>
    %627 = tpu.matmul %612, %619, %cst_466 {dimension_numbers = #tpu.dot_dimension_numbers<[1], [1], [0], [0], [0, 0, 1, 0], [], []>} : vector<4x8xf32>, vector<4x8xf32>, vector<4x4xf32> -> vector<4x4xf32>
    %cst_467 = arith.constant dense<0xFF800000> : vector<4xf32>
    %628 = vector.multi_reduction <maximumf>, %627, %cst_467 [1] : vector<4x4xf32> to vector<4xf32>
    %629 = vector.shape_cast %628 : vector<4xf32> to vector<4x1xf32>
    %630 = vector.broadcast %629 : vector<4x1xf32> to vector<4x4xf32>
    %631 = arith.subf %627, %630 : vector<4x4xf32>
    %632 = math.exp %631 : vector<4x4xf32>
    %cst_468 = arith.constant dense<0.000000e+00> : vector<4xf32>
    %633 = vector.multi_reduction <add>, %632, %cst_468 [1] : vector<4x4xf32> to vector<4xf32>
    %634 = vector.shape_cast %633 : vector<4xf32> to vector<4x1xf32>
    %635 = tpu.reciprocal %634 {approx = true} : vector<4x1xf32> -> vector<4x1xf32>
    %636 = vector.broadcast %635 : vector<4x1xf32> to vector<4x4xf32>
    %637 = arith.mulf %632, %636 : vector<4x4xf32>
    %cst_469 = arith.constant dense<0.000000e+00> : vector<4x8xf32>
    %638 = tpu.matmul %637, %626, %cst_469 {dimension_numbers = #tpu.dot_dimension_numbers<[1], [0], [0], [1], [0, 0, 1, 1], [], []>} : vector<4x4xf32>, vector<4x8xf32>, vector<4x8xf32> -> vector<4x8xf32>
    %c1_470 = arith.constant 1 : index
    %c0_471 = arith.constant 0 : index
    %c0_472 = arith.constant 0 : index
    %639 = vector.load %arg35[%c1_470, %c0_471, %c0_472] : memref<4x8x32xf32, #tpu.memory_space<vmem>>, vector<1x8x32xf32>
    %640 = vector.shape_cast %639 : vector<1x8x32xf32> to vector<8x32xf32>
    %cst_473 = arith.constant dense<0.000000e+00> : vector<4x32xf32>
    %641 = tpu.matmul %638, %640, %cst_473 {dimension_numbers = #tpu.dot_dimension_numbers<[1], [0], [0], [1], [0, 0, 1, 1], [], []>} : vector<4x8xf32>, vector<8x32xf32>, vector<4x32xf32> -> vector<4x32xf32>
    %642 = arith.addf %605, %641 : vector<4x32xf32>
    %c2_474 = arith.constant 2 : index
    %c0_475 = arith.constant 0 : index
    %c0_476 = arith.constant 0 : index
    %643 = vector.load %arg29[%c2_474, %c0_475, %c0_476] : memref<4x32x8xf32, #tpu.memory_space<vmem>>, vector<1x32x8xf32>
    %644 = vector.shape_cast %643 : vector<1x32x8xf32> to vector<32x8xf32>
    %cst_477 = arith.constant dense<0.000000e+00> : vector<4x8xf32>
    %645 = tpu.matmul %569, %644, %cst_477 {dimension_numbers = #tpu.dot_dimension_numbers<[1], [0], [0], [1], [0, 0, 1, 1], [], []>} : vector<4x32xf32>, vector<32x8xf32>, vector<4x8xf32> -> vector<4x8xf32>
    %c2_478 = arith.constant 2 : index
    %c0_479 = arith.constant 0 : index
    %c0_480 = arith.constant 0 : index
    %646 = vector.load %arg32[%c2_478, %c0_479, %c0_480] : memref<4x1x8xf32, #tpu.memory_space<vmem>>, vector<1x1x8xf32>
    %647 = vector.shape_cast %646 : vector<1x1x8xf32> to vector<1x8xf32>
    %648 = vector.broadcast %647 : vector<1x8xf32> to vector<4x8xf32>
    %649 = arith.addf %645, %648 : vector<4x8xf32>
    %c2_481 = arith.constant 2 : index
    %c0_482 = arith.constant 0 : index
    %c0_483 = arith.constant 0 : index
    %650 = vector.load %arg30[%c2_481, %c0_482, %c0_483] : memref<4x32x8xf32, #tpu.memory_space<vmem>>, vector<1x32x8xf32>
    %651 = vector.shape_cast %650 : vector<1x32x8xf32> to vector<32x8xf32>
    %cst_484 = arith.constant dense<0.000000e+00> : vector<4x8xf32>
    %652 = tpu.matmul %569, %651, %cst_484 {dimension_numbers = #tpu.dot_dimension_numbers<[1], [0], [0], [1], [0, 0, 1, 1], [], []>} : vector<4x32xf32>, vector<32x8xf32>, vector<4x8xf32> -> vector<4x8xf32>
    %c2_485 = arith.constant 2 : index
    %c0_486 = arith.constant 0 : index
    %c0_487 = arith.constant 0 : index
    %653 = vector.load %arg33[%c2_485, %c0_486, %c0_487] : memref<4x1x8xf32, #tpu.memory_space<vmem>>, vector<1x1x8xf32>
    %654 = vector.shape_cast %653 : vector<1x1x8xf32> to vector<1x8xf32>
    %655 = vector.broadcast %654 : vector<1x8xf32> to vector<4x8xf32>
    %656 = arith.addf %652, %655 : vector<4x8xf32>
    %c2_488 = arith.constant 2 : index
    %c0_489 = arith.constant 0 : index
    %c0_490 = arith.constant 0 : index
    %657 = vector.load %arg31[%c2_488, %c0_489, %c0_490] : memref<4x32x8xf32, #tpu.memory_space<vmem>>, vector<1x32x8xf32>
    %658 = vector.shape_cast %657 : vector<1x32x8xf32> to vector<32x8xf32>
    %cst_491 = arith.constant dense<0.000000e+00> : vector<4x8xf32>
    %659 = tpu.matmul %569, %658, %cst_491 {dimension_numbers = #tpu.dot_dimension_numbers<[1], [0], [0], [1], [0, 0, 1, 1], [], []>} : vector<4x32xf32>, vector<32x8xf32>, vector<4x8xf32> -> vector<4x8xf32>
    %c2_492 = arith.constant 2 : index
    %c0_493 = arith.constant 0 : index
    %c0_494 = arith.constant 0 : index
    %660 = vector.load %arg34[%c2_492, %c0_493, %c0_494] : memref<4x1x8xf32, #tpu.memory_space<vmem>>, vector<1x1x8xf32>
    %661 = vector.shape_cast %660 : vector<1x1x8xf32> to vector<1x8xf32>
    %662 = vector.broadcast %661 : vector<1x8xf32> to vector<4x8xf32>
    %663 = arith.addf %659, %662 : vector<4x8xf32>
    %cst_495 = arith.constant dense<0.000000e+00> : vector<4x4xf32>
    %664 = tpu.matmul %649, %656, %cst_495 {dimension_numbers = #tpu.dot_dimension_numbers<[1], [1], [0], [0], [0, 0, 1, 0], [], []>} : vector<4x8xf32>, vector<4x8xf32>, vector<4x4xf32> -> vector<4x4xf32>
    %cst_496 = arith.constant dense<0xFF800000> : vector<4xf32>
    %665 = vector.multi_reduction <maximumf>, %664, %cst_496 [1] : vector<4x4xf32> to vector<4xf32>
    %666 = vector.shape_cast %665 : vector<4xf32> to vector<4x1xf32>
    %667 = vector.broadcast %666 : vector<4x1xf32> to vector<4x4xf32>
    %668 = arith.subf %664, %667 : vector<4x4xf32>
    %669 = math.exp %668 : vector<4x4xf32>
    %cst_497 = arith.constant dense<0.000000e+00> : vector<4xf32>
    %670 = vector.multi_reduction <add>, %669, %cst_497 [1] : vector<4x4xf32> to vector<4xf32>
    %671 = vector.shape_cast %670 : vector<4xf32> to vector<4x1xf32>
    %672 = tpu.reciprocal %671 {approx = true} : vector<4x1xf32> -> vector<4x1xf32>
    %673 = vector.broadcast %672 : vector<4x1xf32> to vector<4x4xf32>
    %674 = arith.mulf %669, %673 : vector<4x4xf32>
    %cst_498 = arith.constant dense<0.000000e+00> : vector<4x8xf32>
    %675 = tpu.matmul %674, %663, %cst_498 {dimension_numbers = #tpu.dot_dimension_numbers<[1], [0], [0], [1], [0, 0, 1, 1], [], []>} : vector<4x4xf32>, vector<4x8xf32>, vector<4x8xf32> -> vector<4x8xf32>
    %c2_499 = arith.constant 2 : index
    %c0_500 = arith.constant 0 : index
    %c0_501 = arith.constant 0 : index
    %676 = vector.load %arg35[%c2_499, %c0_500, %c0_501] : memref<4x8x32xf32, #tpu.memory_space<vmem>>, vector<1x8x32xf32>
    %677 = vector.shape_cast %676 : vector<1x8x32xf32> to vector<8x32xf32>
    %cst_502 = arith.constant dense<0.000000e+00> : vector<4x32xf32>
    %678 = tpu.matmul %675, %677, %cst_502 {dimension_numbers = #tpu.dot_dimension_numbers<[1], [0], [0], [1], [0, 0, 1, 1], [], []>} : vector<4x8xf32>, vector<8x32xf32>, vector<4x32xf32> -> vector<4x32xf32>
    %679 = arith.addf %642, %678 : vector<4x32xf32>
    %c3_503 = arith.constant 3 : index
    %c0_504 = arith.constant 0 : index
    %c0_505 = arith.constant 0 : index
    %680 = vector.load %arg29[%c3_503, %c0_504, %c0_505] : memref<4x32x8xf32, #tpu.memory_space<vmem>>, vector<1x32x8xf32>
    %681 = vector.shape_cast %680 : vector<1x32x8xf32> to vector<32x8xf32>
    %cst_506 = arith.constant dense<0.000000e+00> : vector<4x8xf32>
    %682 = tpu.matmul %569, %681, %cst_506 {dimension_numbers = #tpu.dot_dimension_numbers<[1], [0], [0], [1], [0, 0, 1, 1], [], []>} : vector<4x32xf32>, vector<32x8xf32>, vector<4x8xf32> -> vector<4x8xf32>
    %c3_507 = arith.constant 3 : index
    %c0_508 = arith.constant 0 : index
    %c0_509 = arith.constant 0 : index
    %683 = vector.load %arg32[%c3_507, %c0_508, %c0_509] : memref<4x1x8xf32, #tpu.memory_space<vmem>>, vector<1x1x8xf32>
    %684 = vector.shape_cast %683 : vector<1x1x8xf32> to vector<1x8xf32>
    %685 = vector.broadcast %684 : vector<1x8xf32> to vector<4x8xf32>
    %686 = arith.addf %682, %685 : vector<4x8xf32>
    %c3_510 = arith.constant 3 : index
    %c0_511 = arith.constant 0 : index
    %c0_512 = arith.constant 0 : index
    %687 = vector.load %arg30[%c3_510, %c0_511, %c0_512] : memref<4x32x8xf32, #tpu.memory_space<vmem>>, vector<1x32x8xf32>
    %688 = vector.shape_cast %687 : vector<1x32x8xf32> to vector<32x8xf32>
    %cst_513 = arith.constant dense<0.000000e+00> : vector<4x8xf32>
    %689 = tpu.matmul %569, %688, %cst_513 {dimension_numbers = #tpu.dot_dimension_numbers<[1], [0], [0], [1], [0, 0, 1, 1], [], []>} : vector<4x32xf32>, vector<32x8xf32>, vector<4x8xf32> -> vector<4x8xf32>
    %c3_514 = arith.constant 3 : index
    %c0_515 = arith.constant 0 : index
    %c0_516 = arith.constant 0 : index
    %690 = vector.load %arg33[%c3_514, %c0_515, %c0_516] : memref<4x1x8xf32, #tpu.memory_space<vmem>>, vector<1x1x8xf32>
    %691 = vector.shape_cast %690 : vector<1x1x8xf32> to vector<1x8xf32>
    %692 = vector.broadcast %691 : vector<1x8xf32> to vector<4x8xf32>
    %693 = arith.addf %689, %692 : vector<4x8xf32>
    %c3_517 = arith.constant 3 : index
    %c0_518 = arith.constant 0 : index
    %c0_519 = arith.constant 0 : index
    %694 = vector.load %arg31[%c3_517, %c0_518, %c0_519] : memref<4x32x8xf32, #tpu.memory_space<vmem>>, vector<1x32x8xf32>
    %695 = vector.shape_cast %694 : vector<1x32x8xf32> to vector<32x8xf32>
    %cst_520 = arith.constant dense<0.000000e+00> : vector<4x8xf32>
    %696 = tpu.matmul %569, %695, %cst_520 {dimension_numbers = #tpu.dot_dimension_numbers<[1], [0], [0], [1], [0, 0, 1, 1], [], []>} : vector<4x32xf32>, vector<32x8xf32>, vector<4x8xf32> -> vector<4x8xf32>
    %c3_521 = arith.constant 3 : index
    %c0_522 = arith.constant 0 : index
    %c0_523 = arith.constant 0 : index
    %697 = vector.load %arg34[%c3_521, %c0_522, %c0_523] : memref<4x1x8xf32, #tpu.memory_space<vmem>>, vector<1x1x8xf32>
    %698 = vector.shape_cast %697 : vector<1x1x8xf32> to vector<1x8xf32>
    %699 = vector.broadcast %698 : vector<1x8xf32> to vector<4x8xf32>
    %700 = arith.addf %696, %699 : vector<4x8xf32>
    %cst_524 = arith.constant dense<0.000000e+00> : vector<4x4xf32>
    %701 = tpu.matmul %686, %693, %cst_524 {dimension_numbers = #tpu.dot_dimension_numbers<[1], [1], [0], [0], [0, 0, 1, 0], [], []>} : vector<4x8xf32>, vector<4x8xf32>, vector<4x4xf32> -> vector<4x4xf32>
    %cst_525 = arith.constant dense<0xFF800000> : vector<4xf32>
    %702 = vector.multi_reduction <maximumf>, %701, %cst_525 [1] : vector<4x4xf32> to vector<4xf32>
    %703 = vector.shape_cast %702 : vector<4xf32> to vector<4x1xf32>
    %704 = vector.broadcast %703 : vector<4x1xf32> to vector<4x4xf32>
    %705 = arith.subf %701, %704 : vector<4x4xf32>
    %706 = math.exp %705 : vector<4x4xf32>
    %cst_526 = arith.constant dense<0.000000e+00> : vector<4xf32>
    %707 = vector.multi_reduction <add>, %706, %cst_526 [1] : vector<4x4xf32> to vector<4xf32>
    %708 = vector.shape_cast %707 : vector<4xf32> to vector<4x1xf32>
    %709 = tpu.reciprocal %708 {approx = true} : vector<4x1xf32> -> vector<4x1xf32>
    %710 = vector.broadcast %709 : vector<4x1xf32> to vector<4x4xf32>
    %711 = arith.mulf %706, %710 : vector<4x4xf32>
    %cst_527 = arith.constant dense<0.000000e+00> : vector<4x8xf32>
    %712 = tpu.matmul %711, %700, %cst_527 {dimension_numbers = #tpu.dot_dimension_numbers<[1], [0], [0], [1], [0, 0, 1, 1], [], []>} : vector<4x4xf32>, vector<4x8xf32>, vector<4x8xf32> -> vector<4x8xf32>
    %c3_528 = arith.constant 3 : index
    %c0_529 = arith.constant 0 : index
    %c0_530 = arith.constant 0 : index
    %713 = vector.load %arg35[%c3_528, %c0_529, %c0_530] : memref<4x8x32xf32, #tpu.memory_space<vmem>>, vector<1x8x32xf32>
    %714 = vector.shape_cast %713 : vector<1x8x32xf32> to vector<8x32xf32>
    %cst_531 = arith.constant dense<0.000000e+00> : vector<4x32xf32>
    %715 = tpu.matmul %712, %714, %cst_531 {dimension_numbers = #tpu.dot_dimension_numbers<[1], [0], [0], [1], [0, 0, 1, 1], [], []>} : vector<4x8xf32>, vector<8x32xf32>, vector<4x32xf32> -> vector<4x32xf32>
    %716 = arith.addf %679, %715 : vector<4x32xf32>
    %717 = vector.broadcast %417 : vector<1x32xf32> to vector<4x32xf32>
    %718 = arith.addf %716, %717 : vector<4x32xf32>
    %c4_532 = arith.constant 4 : index
    %c0_533 = arith.constant 0 : index
    %719 = vector.load %arg61[%c4_532, %c0_533] : memref<8x32xf32, #tpu.memory_space<vmem>>, vector<4x32xf32>
    tpu.vector_store %arg61[%c4_532, %c0_533], %718 {strides = array<i32>} : memref<8x32xf32, #tpu.memory_space<vmem>>, vector<4x32xf32>,
    %c0_534 = arith.constant 0 : index
    %c0_535 = arith.constant 0 : index
    %720 = vector.load %arg61[%c0_534, %c0_535] : memref<8x32xf32, #tpu.memory_space<vmem>>, vector<8x32xf32>
    %721 = arith.mulf %373, %720 : vector<8x32xf32>
    %722 = arith.addf %7, %721 : vector<8x32xf32>
    %cst_536 = arith.constant dense<0.000000e+00> : vector<8xf32>
    %723 = vector.multi_reduction <add>, %722, %cst_536 [1] : vector<8x32xf32> to vector<8xf32>
    %724 = vector.shape_cast %723 : vector<8xf32> to vector<8x1xf32>
    %cst_537 = arith.constant 3.200000e+01 : f32
    %725 = vector.broadcast %cst_537 : f32 to vector<8x1xf32>
    %726 = arith.divf %724, %725 : vector<8x1xf32>
    %727 = vector.broadcast %726 : vector<8x1xf32> to vector<8x32xf32>
    %728 = arith.subf %722, %727 : vector<8x32xf32>
    %729 = arith.mulf %728, %728 : vector<8x32xf32>
    %cst_538 = arith.constant dense<0.000000e+00> : vector<8xf32>
    %730 = vector.multi_reduction <add>, %729, %cst_538 [1] : vector<8x32xf32> to vector<8xf32>
    %731 = vector.shape_cast %730 : vector<8xf32> to vector<8x1xf32>
    %cst_539 = arith.constant 3.200000e+01 : f32
    %732 = vector.broadcast %cst_539 : f32 to vector<8x1xf32>
    %733 = arith.divf %731, %732 : vector<8x1xf32>
    %734 = vector.broadcast %726 : vector<8x1xf32> to vector<8x32xf32>
    %735 = arith.subf %722, %734 : vector<8x32xf32>
    %cst_540 = arith.constant 9.99999997E-7 : f32
    %736 = vector.broadcast %cst_540 : f32 to vector<8x1xf32>
    %737 = arith.addf %733, %736 : vector<8x1xf32>
    %738 = math.rsqrt %737 : vector<8x1xf32>
    %739 = vector.broadcast %738 : vector<8x1xf32> to vector<8x32xf32>
    %740 = arith.mulf %735, %739 : vector<8x32xf32>
    %cst_541 = arith.constant 1.000000e+00 : f32
    %741 = vector.broadcast %cst_541 : f32 to vector<8x32xf32>
    %742 = arith.addf %741, %387 : vector<8x32xf32>
    %743 = arith.mulf %740, %742 : vector<8x32xf32>
    %744 = arith.addf %743, %380 : vector<8x32xf32>
    %c0_542 = arith.constant 0 : index
    %c0_543 = arith.constant 0 : index
    %745 = vector.load %arg37[%c0_542, %c0_543] : memref<32x128xf32, #tpu.memory_space<vmem>>, vector<32x128xf32>
    %cst_544 = arith.constant dense<0.000000e+00> : vector<8x128xf32>
    %746 = tpu.matmul %744, %745, %cst_544 {dimension_numbers = #tpu.dot_dimension_numbers<[1], [0], [0], [1], [0, 0, 1, 1], [], []>} : vector<8x32xf32>, vector<32x128xf32>, vector<8x128xf32> -> vector<8x128xf32>
    %c0_545 = arith.constant 0 : index
    %c0_546 = arith.constant 0 : index
    %747 = vector.load %arg38[%c0_545, %c0_546] : memref<1x128xf32, #tpu.memory_space<vmem>>, vector<1x128xf32>
    %748 = vector.broadcast %747 : vector<1x128xf32> to vector<8x128xf32>
    %749 = arith.addf %746, %748 : vector<8x128xf32>
    %cst_547 = arith.constant 5.000000e-01 : f32
    %750 = vector.broadcast %cst_547 : f32 to vector<8x128xf32>
    %751 = arith.mulf %750, %749 : vector<8x128xf32>
    %cst_548 = arith.constant 4.471500e-02 : f32
    %752 = vector.broadcast %cst_548 : f32 to vector<8x128xf32>
    %753 = arith.mulf %752, %749 : vector<8x128xf32>
    %754 = arith.mulf %753, %749 : vector<8x128xf32>
    %755 = arith.mulf %754, %749 : vector<8x128xf32>
    %756 = arith.addf %749, %755 : vector<8x128xf32>
    %cst_549 = arith.constant 0.797884583 : f32
    %757 = vector.broadcast %cst_549 : f32 to vector<8x128xf32>
    %758 = arith.mulf %757, %756 : vector<8x128xf32>
    %759 = math.tanh %758 : vector<8x128xf32>
    %cst_550 = arith.constant 1.000000e+00 : f32
    %760 = vector.broadcast %cst_550 : f32 to vector<8x128xf32>
    %761 = arith.addf %760, %759 : vector<8x128xf32>
    %762 = arith.mulf %751, %761 : vector<8x128xf32>
    %c0_551 = arith.constant 0 : index
    %c0_552 = arith.constant 0 : index
    %763 = vector.load %arg39[%c0_551, %c0_552] : memref<128x32xf32, #tpu.memory_space<vmem>>, vector<128x32xf32>
    %cst_553 = arith.constant dense<0.000000e+00> : vector<8x32xf32>
    %764 = tpu.matmul %762, %763, %cst_553 {dimension_numbers = #tpu.dot_dimension_numbers<[1], [0], [0], [1], [0, 0, 1, 1], [], []>} : vector<8x128xf32>, vector<128x32xf32>, vector<8x32xf32> -> vector<8x32xf32>
    %c0_554 = arith.constant 0 : index
    %c0_555 = arith.constant 0 : index
    %765 = vector.load %arg40[%c0_554, %c0_555] : memref<1x32xf32, #tpu.memory_space<vmem>>, vector<1x32xf32>
    %766 = vector.broadcast %765 : vector<1x32xf32> to vector<8x32xf32>
    %767 = arith.addf %764, %766 : vector<8x32xf32>
    %768 = arith.mulf %394, %767 : vector<8x32xf32>
    %769 = arith.addf %722, %768 : vector<8x32xf32>
    %c0_556 = arith.constant 0 : index
    %c0_557 = arith.constant 0 : index
    %c0_558 = arith.constant 0 : index
    %770 = vector.load %arg41[%c0_556, %c0_557, %c0_558] : memref<6x32x32xf32, #tpu.memory_space<vmem>>, vector<1x32x32xf32>
    %771 = vector.shape_cast %770 : vector<1x32x32xf32> to vector<32x32xf32>
    %cst_559 = arith.constant dense<0.000000e+00> : vector<8x32xf32>
    %772 = tpu.matmul %352, %771, %cst_559 {dimension_numbers = #tpu.dot_dimension_numbers<[1], [0], [0], [1], [0, 0, 1, 1], [], []>} : vector<8x32xf32>, vector<32x32xf32>, vector<8x32xf32> -> vector<8x32xf32>
    %c0_560 = arith.constant 0 : index
    %c0_561 = arith.constant 0 : index
    %c0_562 = arith.constant 0 : index
    %773 = vector.load %arg42[%c0_560, %c0_561, %c0_562] : memref<6x1x32xf32, #tpu.memory_space<vmem>>, vector<1x1x32xf32>
    %774 = vector.shape_cast %773 : vector<1x1x32xf32> to vector<1x32xf32>
    %775 = vector.broadcast %774 : vector<1x32xf32> to vector<8x32xf32>
    %776 = arith.addf %772, %775 : vector<8x32xf32>
    %c1_563 = arith.constant 1 : index
    %c0_564 = arith.constant 0 : index
    %c0_565 = arith.constant 0 : index
    %777 = vector.load %arg41[%c1_563, %c0_564, %c0_565] : memref<6x32x32xf32, #tpu.memory_space<vmem>>, vector<1x32x32xf32>
    %778 = vector.shape_cast %777 : vector<1x32x32xf32> to vector<32x32xf32>
    %cst_566 = arith.constant dense<0.000000e+00> : vector<8x32xf32>
    %779 = tpu.matmul %352, %778, %cst_566 {dimension_numbers = #tpu.dot_dimension_numbers<[1], [0], [0], [1], [0, 0, 1, 1], [], []>} : vector<8x32xf32>, vector<32x32xf32>, vector<8x32xf32> -> vector<8x32xf32>
    %c1_567 = arith.constant 1 : index
    %c0_568 = arith.constant 0 : index
    %c0_569 = arith.constant 0 : index
    %780 = vector.load %arg42[%c1_567, %c0_568, %c0_569] : memref<6x1x32xf32, #tpu.memory_space<vmem>>, vector<1x1x32xf32>
    %781 = vector.shape_cast %780 : vector<1x1x32xf32> to vector<1x32xf32>
    %782 = vector.broadcast %781 : vector<1x32xf32> to vector<8x32xf32>
    %783 = arith.addf %779, %782 : vector<8x32xf32>
    %c2_570 = arith.constant 2 : index
    %c0_571 = arith.constant 0 : index
    %c0_572 = arith.constant 0 : index
    %784 = vector.load %arg41[%c2_570, %c0_571, %c0_572] : memref<6x32x32xf32, #tpu.memory_space<vmem>>, vector<1x32x32xf32>
    %785 = vector.shape_cast %784 : vector<1x32x32xf32> to vector<32x32xf32>
    %cst_573 = arith.constant dense<0.000000e+00> : vector<8x32xf32>
    %786 = tpu.matmul %352, %785, %cst_573 {dimension_numbers = #tpu.dot_dimension_numbers<[1], [0], [0], [1], [0, 0, 1, 1], [], []>} : vector<8x32xf32>, vector<32x32xf32>, vector<8x32xf32> -> vector<8x32xf32>
    %c2_574 = arith.constant 2 : index
    %c0_575 = arith.constant 0 : index
    %c0_576 = arith.constant 0 : index
    %787 = vector.load %arg42[%c2_574, %c0_575, %c0_576] : memref<6x1x32xf32, #tpu.memory_space<vmem>>, vector<1x1x32xf32>
    %788 = vector.shape_cast %787 : vector<1x1x32xf32> to vector<1x32xf32>
    %789 = vector.broadcast %788 : vector<1x32xf32> to vector<8x32xf32>
    %790 = arith.addf %786, %789 : vector<8x32xf32>
    %c3_577 = arith.constant 3 : index
    %c0_578 = arith.constant 0 : index
    %c0_579 = arith.constant 0 : index
    %791 = vector.load %arg41[%c3_577, %c0_578, %c0_579] : memref<6x32x32xf32, #tpu.memory_space<vmem>>, vector<1x32x32xf32>
    %792 = vector.shape_cast %791 : vector<1x32x32xf32> to vector<32x32xf32>
    %cst_580 = arith.constant dense<0.000000e+00> : vector<8x32xf32>
    %793 = tpu.matmul %352, %792, %cst_580 {dimension_numbers = #tpu.dot_dimension_numbers<[1], [0], [0], [1], [0, 0, 1, 1], [], []>} : vector<8x32xf32>, vector<32x32xf32>, vector<8x32xf32> -> vector<8x32xf32>
    %c3_581 = arith.constant 3 : index
    %c0_582 = arith.constant 0 : index
    %c0_583 = arith.constant 0 : index
    %794 = vector.load %arg42[%c3_581, %c0_582, %c0_583] : memref<6x1x32xf32, #tpu.memory_space<vmem>>, vector<1x1x32xf32>
    %795 = vector.shape_cast %794 : vector<1x1x32xf32> to vector<1x32xf32>
    %796 = vector.broadcast %795 : vector<1x32xf32> to vector<8x32xf32>
    %797 = arith.addf %793, %796 : vector<8x32xf32>
    %c4_584 = arith.constant 4 : index
    %c0_585 = arith.constant 0 : index
    %c0_586 = arith.constant 0 : index
    %798 = vector.load %arg41[%c4_584, %c0_585, %c0_586] : memref<6x32x32xf32, #tpu.memory_space<vmem>>, vector<1x32x32xf32>
    %799 = vector.shape_cast %798 : vector<1x32x32xf32> to vector<32x32xf32>
    %cst_587 = arith.constant dense<0.000000e+00> : vector<8x32xf32>
    %800 = tpu.matmul %352, %799, %cst_587 {dimension_numbers = #tpu.dot_dimension_numbers<[1], [0], [0], [1], [0, 0, 1, 1], [], []>} : vector<8x32xf32>, vector<32x32xf32>, vector<8x32xf32> -> vector<8x32xf32>
    %c4_588 = arith.constant 4 : index
    %c0_589 = arith.constant 0 : index
    %c0_590 = arith.constant 0 : index
    %801 = vector.load %arg42[%c4_588, %c0_589, %c0_590] : memref<6x1x32xf32, #tpu.memory_space<vmem>>, vector<1x1x32xf32>
    %802 = vector.shape_cast %801 : vector<1x1x32xf32> to vector<1x32xf32>
    %803 = vector.broadcast %802 : vector<1x32xf32> to vector<8x32xf32>
    %804 = arith.addf %800, %803 : vector<8x32xf32>
    %c5_591 = arith.constant 5 : index
    %c0_592 = arith.constant 0 : index
    %c0_593 = arith.constant 0 : index
    %805 = vector.load %arg41[%c5_591, %c0_592, %c0_593] : memref<6x32x32xf32, #tpu.memory_space<vmem>>, vector<1x32x32xf32>
    %806 = vector.shape_cast %805 : vector<1x32x32xf32> to vector<32x32xf32>
    %cst_594 = arith.constant dense<0.000000e+00> : vector<8x32xf32>
    %807 = tpu.matmul %352, %806, %cst_594 {dimension_numbers = #tpu.dot_dimension_numbers<[1], [0], [0], [1], [0, 0, 1, 1], [], []>} : vector<8x32xf32>, vector<32x32xf32>, vector<8x32xf32> -> vector<8x32xf32>
    %c5_595 = arith.constant 5 : index
    %c0_596 = arith.constant 0 : index
    %c0_597 = arith.constant 0 : index
    %808 = vector.load %arg42[%c5_595, %c0_596, %c0_597] : memref<6x1x32xf32, #tpu.memory_space<vmem>>, vector<1x1x32xf32>
    %809 = vector.shape_cast %808 : vector<1x1x32xf32> to vector<1x32xf32>
    %810 = vector.broadcast %809 : vector<1x32xf32> to vector<8x32xf32>
    %811 = arith.addf %807, %810 : vector<8x32xf32>
    %cst_598 = arith.constant dense<0.000000e+00> : vector<8xf32>
    %812 = vector.multi_reduction <add>, %769, %cst_598 [1] : vector<8x32xf32> to vector<8xf32>
    %813 = vector.shape_cast %812 : vector<8xf32> to vector<8x1xf32>
    %cst_599 = arith.constant 3.200000e+01 : f32
    %814 = vector.broadcast %cst_599 : f32 to vector<8x1xf32>
    %815 = arith.divf %813, %814 : vector<8x1xf32>
    %816 = vector.broadcast %815 : vector<8x1xf32> to vector<8x32xf32>
    %817 = arith.subf %769, %816 : vector<8x32xf32>
    %818 = arith.mulf %817, %817 : vector<8x32xf32>
    %cst_600 = arith.constant dense<0.000000e+00> : vector<8xf32>
    %819 = vector.multi_reduction <add>, %818, %cst_600 [1] : vector<8x32xf32> to vector<8xf32>
    %820 = vector.shape_cast %819 : vector<8xf32> to vector<8x1xf32>
    %cst_601 = arith.constant 3.200000e+01 : f32
    %821 = vector.broadcast %cst_601 : f32 to vector<8x1xf32>
    %822 = arith.divf %820, %821 : vector<8x1xf32>
    %823 = vector.broadcast %815 : vector<8x1xf32> to vector<8x32xf32>
    %824 = arith.subf %769, %823 : vector<8x32xf32>
    %cst_602 = arith.constant 9.99999997E-7 : f32
    %825 = vector.broadcast %cst_602 : f32 to vector<8x1xf32>
    %826 = arith.addf %822, %825 : vector<8x1xf32>
    %827 = math.rsqrt %826 : vector<8x1xf32>
    %828 = vector.broadcast %827 : vector<8x1xf32> to vector<8x32xf32>
    %829 = arith.mulf %824, %828 : vector<8x32xf32>
    %cst_603 = arith.constant 1.000000e+00 : f32
    %830 = vector.broadcast %cst_603 : f32 to vector<8x32xf32>
    %831 = arith.addf %830, %783 : vector<8x32xf32>
    %832 = arith.mulf %829, %831 : vector<8x32xf32>
    %833 = arith.addf %832, %776 : vector<8x32xf32>
    %c0_604 = arith.constant 0 : index
    %c0_605 = arith.constant 0 : index
    %834 = vector.load %arg50[%c0_604, %c0_605] : memref<1x32xf32, #tpu.memory_space<vmem>>, vector<1x32xf32>
    %835 = vector.extract_strided_slice %833 {offsets = [0, 0], sizes = [4, 32], strides = [1, 1]} : vector<8x32xf32> to vector<4x32xf32>
    %c0_606 = arith.constant 0 : index
    %c0_607 = arith.constant 0 : index
    %c0_608 = arith.constant 0 : index
    %836 = vector.load %arg43[%c0_606, %c0_607, %c0_608] : memref<4x32x8xf32, #tpu.memory_space<vmem>>, vector<1x32x8xf32>
    %837 = vector.shape_cast %836 : vector<1x32x8xf32> to vector<32x8xf32>
    %cst_609 = arith.constant dense<0.000000e+00> : vector<4x8xf32>
    %838 = tpu.matmul %835, %837, %cst_609 {dimension_numbers = #tpu.dot_dimension_numbers<[1], [0], [0], [1], [0, 0, 1, 1], [], []>} : vector<4x32xf32>, vector<32x8xf32>, vector<4x8xf32> -> vector<4x8xf32>
    %c0_610 = arith.constant 0 : index
    %c0_611 = arith.constant 0 : index
    %c0_612 = arith.constant 0 : index
    %839 = vector.load %arg46[%c0_610, %c0_611, %c0_612] : memref<4x1x8xf32, #tpu.memory_space<vmem>>, vector<1x1x8xf32>
    %840 = vector.shape_cast %839 : vector<1x1x8xf32> to vector<1x8xf32>
    %841 = vector.broadcast %840 : vector<1x8xf32> to vector<4x8xf32>
    %842 = arith.addf %838, %841 : vector<4x8xf32>
    %c0_613 = arith.constant 0 : index
    %c0_614 = arith.constant 0 : index
    %c0_615 = arith.constant 0 : index
    %843 = vector.load %arg44[%c0_613, %c0_614, %c0_615] : memref<4x32x8xf32, #tpu.memory_space<vmem>>, vector<1x32x8xf32>
    %844 = vector.shape_cast %843 : vector<1x32x8xf32> to vector<32x8xf32>
    %cst_616 = arith.constant dense<0.000000e+00> : vector<4x8xf32>
    %845 = tpu.matmul %835, %844, %cst_616 {dimension_numbers = #tpu.dot_dimension_numbers<[1], [0], [0], [1], [0, 0, 1, 1], [], []>} : vector<4x32xf32>, vector<32x8xf32>, vector<4x8xf32> -> vector<4x8xf32>
    %c0_617 = arith.constant 0 : index
    %c0_618 = arith.constant 0 : index
    %c0_619 = arith.constant 0 : index
    %846 = vector.load %arg47[%c0_617, %c0_618, %c0_619] : memref<4x1x8xf32, #tpu.memory_space<vmem>>, vector<1x1x8xf32>
    %847 = vector.shape_cast %846 : vector<1x1x8xf32> to vector<1x8xf32>
    %848 = vector.broadcast %847 : vector<1x8xf32> to vector<4x8xf32>
    %849 = arith.addf %845, %848 : vector<4x8xf32>
    %c0_620 = arith.constant 0 : index
    %c0_621 = arith.constant 0 : index
    %c0_622 = arith.constant 0 : index
    %850 = vector.load %arg45[%c0_620, %c0_621, %c0_622] : memref<4x32x8xf32, #tpu.memory_space<vmem>>, vector<1x32x8xf32>
    %851 = vector.shape_cast %850 : vector<1x32x8xf32> to vector<32x8xf32>
    %cst_623 = arith.constant dense<0.000000e+00> : vector<4x8xf32>
    %852 = tpu.matmul %835, %851, %cst_623 {dimension_numbers = #tpu.dot_dimension_numbers<[1], [0], [0], [1], [0, 0, 1, 1], [], []>} : vector<4x32xf32>, vector<32x8xf32>, vector<4x8xf32> -> vector<4x8xf32>
    %c0_624 = arith.constant 0 : index
    %c0_625 = arith.constant 0 : index
    %c0_626 = arith.constant 0 : index
    %853 = vector.load %arg48[%c0_624, %c0_625, %c0_626] : memref<4x1x8xf32, #tpu.memory_space<vmem>>, vector<1x1x8xf32>
    %854 = vector.shape_cast %853 : vector<1x1x8xf32> to vector<1x8xf32>
    %855 = vector.broadcast %854 : vector<1x8xf32> to vector<4x8xf32>
    %856 = arith.addf %852, %855 : vector<4x8xf32>
    %cst_627 = arith.constant dense<0.000000e+00> : vector<4x4xf32>
    %857 = tpu.matmul %842, %849, %cst_627 {dimension_numbers = #tpu.dot_dimension_numbers<[1], [1], [0], [0], [0, 0, 1, 0], [], []>} : vector<4x8xf32>, vector<4x8xf32>, vector<4x4xf32> -> vector<4x4xf32>
    %cst_628 = arith.constant dense<0xFF800000> : vector<4xf32>
    %858 = vector.multi_reduction <maximumf>, %857, %cst_628 [1] : vector<4x4xf32> to vector<4xf32>
    %859 = vector.shape_cast %858 : vector<4xf32> to vector<4x1xf32>
    %860 = vector.broadcast %859 : vector<4x1xf32> to vector<4x4xf32>
    %861 = arith.subf %857, %860 : vector<4x4xf32>
    %862 = math.exp %861 : vector<4x4xf32>
    %cst_629 = arith.constant dense<0.000000e+00> : vector<4xf32>
    %863 = vector.multi_reduction <add>, %862, %cst_629 [1] : vector<4x4xf32> to vector<4xf32>
    %864 = vector.shape_cast %863 : vector<4xf32> to vector<4x1xf32>
    %865 = tpu.reciprocal %864 {approx = true} : vector<4x1xf32> -> vector<4x1xf32>
    %866 = vector.broadcast %865 : vector<4x1xf32> to vector<4x4xf32>
    %867 = arith.mulf %862, %866 : vector<4x4xf32>
    %cst_630 = arith.constant dense<0.000000e+00> : vector<4x8xf32>
    %868 = tpu.matmul %867, %856, %cst_630 {dimension_numbers = #tpu.dot_dimension_numbers<[1], [0], [0], [1], [0, 0, 1, 1], [], []>} : vector<4x4xf32>, vector<4x8xf32>, vector<4x8xf32> -> vector<4x8xf32>
    %c0_631 = arith.constant 0 : index
    %c0_632 = arith.constant 0 : index
    %c0_633 = arith.constant 0 : index
    %869 = vector.load %arg49[%c0_631, %c0_632, %c0_633] : memref<4x8x32xf32, #tpu.memory_space<vmem>>, vector<1x8x32xf32>
    %870 = vector.shape_cast %869 : vector<1x8x32xf32> to vector<8x32xf32>
    %cst_634 = arith.constant dense<0.000000e+00> : vector<4x32xf32>
    %871 = tpu.matmul %868, %870, %cst_634 {dimension_numbers = #tpu.dot_dimension_numbers<[1], [0], [0], [1], [0, 0, 1, 1], [], []>} : vector<4x8xf32>, vector<8x32xf32>, vector<4x32xf32> -> vector<4x32xf32>
    %c1_635 = arith.constant 1 : index
    %c0_636 = arith.constant 0 : index
    %c0_637 = arith.constant 0 : index
    %872 = vector.load %arg43[%c1_635, %c0_636, %c0_637] : memref<4x32x8xf32, #tpu.memory_space<vmem>>, vector<1x32x8xf32>
    %873 = vector.shape_cast %872 : vector<1x32x8xf32> to vector<32x8xf32>
    %cst_638 = arith.constant dense<0.000000e+00> : vector<4x8xf32>
    %874 = tpu.matmul %835, %873, %cst_638 {dimension_numbers = #tpu.dot_dimension_numbers<[1], [0], [0], [1], [0, 0, 1, 1], [], []>} : vector<4x32xf32>, vector<32x8xf32>, vector<4x8xf32> -> vector<4x8xf32>
    %c1_639 = arith.constant 1 : index
    %c0_640 = arith.constant 0 : index
    %c0_641 = arith.constant 0 : index
    %875 = vector.load %arg46[%c1_639, %c0_640, %c0_641] : memref<4x1x8xf32, #tpu.memory_space<vmem>>, vector<1x1x8xf32>
    %876 = vector.shape_cast %875 : vector<1x1x8xf32> to vector<1x8xf32>
    %877 = vector.broadcast %876 : vector<1x8xf32> to vector<4x8xf32>
    %878 = arith.addf %874, %877 : vector<4x8xf32>
    %c1_642 = arith.constant 1 : index
    %c0_643 = arith.constant 0 : index
    %c0_644 = arith.constant 0 : index
    %879 = vector.load %arg44[%c1_642, %c0_643, %c0_644] : memref<4x32x8xf32, #tpu.memory_space<vmem>>, vector<1x32x8xf32>
    %880 = vector.shape_cast %879 : vector<1x32x8xf32> to vector<32x8xf32>
    %cst_645 = arith.constant dense<0.000000e+00> : vector<4x8xf32>
    %881 = tpu.matmul %835, %880, %cst_645 {dimension_numbers = #tpu.dot_dimension_numbers<[1], [0], [0], [1], [0, 0, 1, 1], [], []>} : vector<4x32xf32>, vector<32x8xf32>, vector<4x8xf32> -> vector<4x8xf32>
    %c1_646 = arith.constant 1 : index
    %c0_647 = arith.constant 0 : index
    %c0_648 = arith.constant 0 : index
    %882 = vector.load %arg47[%c1_646, %c0_647, %c0_648] : memref<4x1x8xf32, #tpu.memory_space<vmem>>, vector<1x1x8xf32>
    %883 = vector.shape_cast %882 : vector<1x1x8xf32> to vector<1x8xf32>
    %884 = vector.broadcast %883 : vector<1x8xf32> to vector<4x8xf32>
    %885 = arith.addf %881, %884 : vector<4x8xf32>
    %c1_649 = arith.constant 1 : index
    %c0_650 = arith.constant 0 : index
    %c0_651 = arith.constant 0 : index
    %886 = vector.load %arg45[%c1_649, %c0_650, %c0_651] : memref<4x32x8xf32, #tpu.memory_space<vmem>>, vector<1x32x8xf32>
    %887 = vector.shape_cast %886 : vector<1x32x8xf32> to vector<32x8xf32>
    %cst_652 = arith.constant dense<0.000000e+00> : vector<4x8xf32>
    %888 = tpu.matmul %835, %887, %cst_652 {dimension_numbers = #tpu.dot_dimension_numbers<[1], [0], [0], [1], [0, 0, 1, 1], [], []>} : vector<4x32xf32>, vector<32x8xf32>, vector<4x8xf32> -> vector<4x8xf32>
    %c1_653 = arith.constant 1 : index
    %c0_654 = arith.constant 0 : index
    %c0_655 = arith.constant 0 : index
    %889 = vector.load %arg48[%c1_653, %c0_654, %c0_655] : memref<4x1x8xf32, #tpu.memory_space<vmem>>, vector<1x1x8xf32>
    %890 = vector.shape_cast %889 : vector<1x1x8xf32> to vector<1x8xf32>
    %891 = vector.broadcast %890 : vector<1x8xf32> to vector<4x8xf32>
    %892 = arith.addf %888, %891 : vector<4x8xf32>
    %cst_656 = arith.constant dense<0.000000e+00> : vector<4x4xf32>
    %893 = tpu.matmul %878, %885, %cst_656 {dimension_numbers = #tpu.dot_dimension_numbers<[1], [1], [0], [0], [0, 0, 1, 0], [], []>} : vector<4x8xf32>, vector<4x8xf32>, vector<4x4xf32> -> vector<4x4xf32>
    %cst_657 = arith.constant dense<0xFF800000> : vector<4xf32>
    %894 = vector.multi_reduction <maximumf>, %893, %cst_657 [1] : vector<4x4xf32> to vector<4xf32>
    %895 = vector.shape_cast %894 : vector<4xf32> to vector<4x1xf32>
    %896 = vector.broadcast %895 : vector<4x1xf32> to vector<4x4xf32>
    %897 = arith.subf %893, %896 : vector<4x4xf32>
    %898 = math.exp %897 : vector<4x4xf32>
    %cst_658 = arith.constant dense<0.000000e+00> : vector<4xf32>
    %899 = vector.multi_reduction <add>, %898, %cst_658 [1] : vector<4x4xf32> to vector<4xf32>
    %900 = vector.shape_cast %899 : vector<4xf32> to vector<4x1xf32>
    %901 = tpu.reciprocal %900 {approx = true} : vector<4x1xf32> -> vector<4x1xf32>
    %902 = vector.broadcast %901 : vector<4x1xf32> to vector<4x4xf32>
    %903 = arith.mulf %898, %902 : vector<4x4xf32>
    %cst_659 = arith.constant dense<0.000000e+00> : vector<4x8xf32>
    %904 = tpu.matmul %903, %892, %cst_659 {dimension_numbers = #tpu.dot_dimension_numbers<[1], [0], [0], [1], [0, 0, 1, 1], [], []>} : vector<4x4xf32>, vector<4x8xf32>, vector<4x8xf32> -> vector<4x8xf32>
    %c1_660 = arith.constant 1 : index
    %c0_661 = arith.constant 0 : index
    %c0_662 = arith.constant 0 : index
    %905 = vector.load %arg49[%c1_660, %c0_661, %c0_662] : memref<4x8x32xf32, #tpu.memory_space<vmem>>, vector<1x8x32xf32>
    %906 = vector.shape_cast %905 : vector<1x8x32xf32> to vector<8x32xf32>
    %cst_663 = arith.constant dense<0.000000e+00> : vector<4x32xf32>
    %907 = tpu.matmul %904, %906, %cst_663 {dimension_numbers = #tpu.dot_dimension_numbers<[1], [0], [0], [1], [0, 0, 1, 1], [], []>} : vector<4x8xf32>, vector<8x32xf32>, vector<4x32xf32> -> vector<4x32xf32>
    %908 = arith.addf %871, %907 : vector<4x32xf32>
    %c2_664 = arith.constant 2 : index
    %c0_665 = arith.constant 0 : index
    %c0_666 = arith.constant 0 : index
    %909 = vector.load %arg43[%c2_664, %c0_665, %c0_666] : memref<4x32x8xf32, #tpu.memory_space<vmem>>, vector<1x32x8xf32>
    %910 = vector.shape_cast %909 : vector<1x32x8xf32> to vector<32x8xf32>
    %cst_667 = arith.constant dense<0.000000e+00> : vector<4x8xf32>
    %911 = tpu.matmul %835, %910, %cst_667 {dimension_numbers = #tpu.dot_dimension_numbers<[1], [0], [0], [1], [0, 0, 1, 1], [], []>} : vector<4x32xf32>, vector<32x8xf32>, vector<4x8xf32> -> vector<4x8xf32>
    %c2_668 = arith.constant 2 : index
    %c0_669 = arith.constant 0 : index
    %c0_670 = arith.constant 0 : index
    %912 = vector.load %arg46[%c2_668, %c0_669, %c0_670] : memref<4x1x8xf32, #tpu.memory_space<vmem>>, vector<1x1x8xf32>
    %913 = vector.shape_cast %912 : vector<1x1x8xf32> to vector<1x8xf32>
    %914 = vector.broadcast %913 : vector<1x8xf32> to vector<4x8xf32>
    %915 = arith.addf %911, %914 : vector<4x8xf32>
    %c2_671 = arith.constant 2 : index
    %c0_672 = arith.constant 0 : index
    %c0_673 = arith.constant 0 : index
    %916 = vector.load %arg44[%c2_671, %c0_672, %c0_673] : memref<4x32x8xf32, #tpu.memory_space<vmem>>, vector<1x32x8xf32>
    %917 = vector.shape_cast %916 : vector<1x32x8xf32> to vector<32x8xf32>
    %cst_674 = arith.constant dense<0.000000e+00> : vector<4x8xf32>
    %918 = tpu.matmul %835, %917, %cst_674 {dimension_numbers = #tpu.dot_dimension_numbers<[1], [0], [0], [1], [0, 0, 1, 1], [], []>} : vector<4x32xf32>, vector<32x8xf32>, vector<4x8xf32> -> vector<4x8xf32>
    %c2_675 = arith.constant 2 : index
    %c0_676 = arith.constant 0 : index
    %c0_677 = arith.constant 0 : index
    %919 = vector.load %arg47[%c2_675, %c0_676, %c0_677] : memref<4x1x8xf32, #tpu.memory_space<vmem>>, vector<1x1x8xf32>
    %920 = vector.shape_cast %919 : vector<1x1x8xf32> to vector<1x8xf32>
    %921 = vector.broadcast %920 : vector<1x8xf32> to vector<4x8xf32>
    %922 = arith.addf %918, %921 : vector<4x8xf32>
    %c2_678 = arith.constant 2 : index
    %c0_679 = arith.constant 0 : index
    %c0_680 = arith.constant 0 : index
    %923 = vector.load %arg45[%c2_678, %c0_679, %c0_680] : memref<4x32x8xf32, #tpu.memory_space<vmem>>, vector<1x32x8xf32>
    %924 = vector.shape_cast %923 : vector<1x32x8xf32> to vector<32x8xf32>
    %cst_681 = arith.constant dense<0.000000e+00> : vector<4x8xf32>
    %925 = tpu.matmul %835, %924, %cst_681 {dimension_numbers = #tpu.dot_dimension_numbers<[1], [0], [0], [1], [0, 0, 1, 1], [], []>} : vector<4x32xf32>, vector<32x8xf32>, vector<4x8xf32> -> vector<4x8xf32>
    %c2_682 = arith.constant 2 : index
    %c0_683 = arith.constant 0 : index
    %c0_684 = arith.constant 0 : index
    %926 = vector.load %arg48[%c2_682, %c0_683, %c0_684] : memref<4x1x8xf32, #tpu.memory_space<vmem>>, vector<1x1x8xf32>
    %927 = vector.shape_cast %926 : vector<1x1x8xf32> to vector<1x8xf32>
    %928 = vector.broadcast %927 : vector<1x8xf32> to vector<4x8xf32>
    %929 = arith.addf %925, %928 : vector<4x8xf32>
    %cst_685 = arith.constant dense<0.000000e+00> : vector<4x4xf32>
    %930 = tpu.matmul %915, %922, %cst_685 {dimension_numbers = #tpu.dot_dimension_numbers<[1], [1], [0], [0], [0, 0, 1, 0], [], []>} : vector<4x8xf32>, vector<4x8xf32>, vector<4x4xf32> -> vector<4x4xf32>
    %cst_686 = arith.constant dense<0xFF800000> : vector<4xf32>
    %931 = vector.multi_reduction <maximumf>, %930, %cst_686 [1] : vector<4x4xf32> to vector<4xf32>
    %932 = vector.shape_cast %931 : vector<4xf32> to vector<4x1xf32>
    %933 = vector.broadcast %932 : vector<4x1xf32> to vector<4x4xf32>
    %934 = arith.subf %930, %933 : vector<4x4xf32>
    %935 = math.exp %934 : vector<4x4xf32>
    %cst_687 = arith.constant dense<0.000000e+00> : vector<4xf32>
    %936 = vector.multi_reduction <add>, %935, %cst_687 [1] : vector<4x4xf32> to vector<4xf32>
    %937 = vector.shape_cast %936 : vector<4xf32> to vector<4x1xf32>
    %938 = tpu.reciprocal %937 {approx = true} : vector<4x1xf32> -> vector<4x1xf32>
    %939 = vector.broadcast %938 : vector<4x1xf32> to vector<4x4xf32>
    %940 = arith.mulf %935, %939 : vector<4x4xf32>
    %cst_688 = arith.constant dense<0.000000e+00> : vector<4x8xf32>
    %941 = tpu.matmul %940, %929, %cst_688 {dimension_numbers = #tpu.dot_dimension_numbers<[1], [0], [0], [1], [0, 0, 1, 1], [], []>} : vector<4x4xf32>, vector<4x8xf32>, vector<4x8xf32> -> vector<4x8xf32>
    %c2_689 = arith.constant 2 : index
    %c0_690 = arith.constant 0 : index
    %c0_691 = arith.constant 0 : index
    %942 = vector.load %arg49[%c2_689, %c0_690, %c0_691] : memref<4x8x32xf32, #tpu.memory_space<vmem>>, vector<1x8x32xf32>
    %943 = vector.shape_cast %942 : vector<1x8x32xf32> to vector<8x32xf32>
    %cst_692 = arith.constant dense<0.000000e+00> : vector<4x32xf32>
    %944 = tpu.matmul %941, %943, %cst_692 {dimension_numbers = #tpu.dot_dimension_numbers<[1], [0], [0], [1], [0, 0, 1, 1], [], []>} : vector<4x8xf32>, vector<8x32xf32>, vector<4x32xf32> -> vector<4x32xf32>
    %945 = arith.addf %908, %944 : vector<4x32xf32>
    %c3_693 = arith.constant 3 : index
    %c0_694 = arith.constant 0 : index
    %c0_695 = arith.constant 0 : index
    %946 = vector.load %arg43[%c3_693, %c0_694, %c0_695] : memref<4x32x8xf32, #tpu.memory_space<vmem>>, vector<1x32x8xf32>
    %947 = vector.shape_cast %946 : vector<1x32x8xf32> to vector<32x8xf32>
    %cst_696 = arith.constant dense<0.000000e+00> : vector<4x8xf32>
    %948 = tpu.matmul %835, %947, %cst_696 {dimension_numbers = #tpu.dot_dimension_numbers<[1], [0], [0], [1], [0, 0, 1, 1], [], []>} : vector<4x32xf32>, vector<32x8xf32>, vector<4x8xf32> -> vector<4x8xf32>
    %c3_697 = arith.constant 3 : index
    %c0_698 = arith.constant 0 : index
    %c0_699 = arith.constant 0 : index
    %949 = vector.load %arg46[%c3_697, %c0_698, %c0_699] : memref<4x1x8xf32, #tpu.memory_space<vmem>>, vector<1x1x8xf32>
    %950 = vector.shape_cast %949 : vector<1x1x8xf32> to vector<1x8xf32>
    %951 = vector.broadcast %950 : vector<1x8xf32> to vector<4x8xf32>
    %952 = arith.addf %948, %951 : vector<4x8xf32>
    %c3_700 = arith.constant 3 : index
    %c0_701 = arith.constant 0 : index
    %c0_702 = arith.constant 0 : index
    %953 = vector.load %arg44[%c3_700, %c0_701, %c0_702] : memref<4x32x8xf32, #tpu.memory_space<vmem>>, vector<1x32x8xf32>
    %954 = vector.shape_cast %953 : vector<1x32x8xf32> to vector<32x8xf32>
    %cst_703 = arith.constant dense<0.000000e+00> : vector<4x8xf32>
    %955 = tpu.matmul %835, %954, %cst_703 {dimension_numbers = #tpu.dot_dimension_numbers<[1], [0], [0], [1], [0, 0, 1, 1], [], []>} : vector<4x32xf32>, vector<32x8xf32>, vector<4x8xf32> -> vector<4x8xf32>
    %c3_704 = arith.constant 3 : index
    %c0_705 = arith.constant 0 : index
    %c0_706 = arith.constant 0 : index
    %956 = vector.load %arg47[%c3_704, %c0_705, %c0_706] : memref<4x1x8xf32, #tpu.memory_space<vmem>>, vector<1x1x8xf32>
    %957 = vector.shape_cast %956 : vector<1x1x8xf32> to vector<1x8xf32>
    %958 = vector.broadcast %957 : vector<1x8xf32> to vector<4x8xf32>
    %959 = arith.addf %955, %958 : vector<4x8xf32>
    %c3_707 = arith.constant 3 : index
    %c0_708 = arith.constant 0 : index
    %c0_709 = arith.constant 0 : index
    %960 = vector.load %arg45[%c3_707, %c0_708, %c0_709] : memref<4x32x8xf32, #tpu.memory_space<vmem>>, vector<1x32x8xf32>
    %961 = vector.shape_cast %960 : vector<1x32x8xf32> to vector<32x8xf32>
    %cst_710 = arith.constant dense<0.000000e+00> : vector<4x8xf32>
    %962 = tpu.matmul %835, %961, %cst_710 {dimension_numbers = #tpu.dot_dimension_numbers<[1], [0], [0], [1], [0, 0, 1, 1], [], []>} : vector<4x32xf32>, vector<32x8xf32>, vector<4x8xf32> -> vector<4x8xf32>
    %c3_711 = arith.constant 3 : index
    %c0_712 = arith.constant 0 : index
    %c0_713 = arith.constant 0 : index
    %963 = vector.load %arg48[%c3_711, %c0_712, %c0_713] : memref<4x1x8xf32, #tpu.memory_space<vmem>>, vector<1x1x8xf32>
    %964 = vector.shape_cast %963 : vector<1x1x8xf32> to vector<1x8xf32>
    %965 = vector.broadcast %964 : vector<1x8xf32> to vector<4x8xf32>
    %966 = arith.addf %962, %965 : vector<4x8xf32>
    %cst_714 = arith.constant dense<0.000000e+00> : vector<4x4xf32>
    %967 = tpu.matmul %952, %959, %cst_714 {dimension_numbers = #tpu.dot_dimension_numbers<[1], [1], [0], [0], [0, 0, 1, 0], [], []>} : vector<4x8xf32>, vector<4x8xf32>, vector<4x4xf32> -> vector<4x4xf32>
    %cst_715 = arith.constant dense<0xFF800000> : vector<4xf32>
    %968 = vector.multi_reduction <maximumf>, %967, %cst_715 [1] : vector<4x4xf32> to vector<4xf32>
    %969 = vector.shape_cast %968 : vector<4xf32> to vector<4x1xf32>
    %970 = vector.broadcast %969 : vector<4x1xf32> to vector<4x4xf32>
    %971 = arith.subf %967, %970 : vector<4x4xf32>
    %972 = math.exp %971 : vector<4x4xf32>
    %cst_716 = arith.constant dense<0.000000e+00> : vector<4xf32>
    %973 = vector.multi_reduction <add>, %972, %cst_716 [1] : vector<4x4xf32> to vector<4xf32>
    %974 = vector.shape_cast %973 : vector<4xf32> to vector<4x1xf32>
    %975 = tpu.reciprocal %974 {approx = true} : vector<4x1xf32> -> vector<4x1xf32>
    %976 = vector.broadcast %975 : vector<4x1xf32> to vector<4x4xf32>
    %977 = arith.mulf %972, %976 : vector<4x4xf32>
    %cst_717 = arith.constant dense<0.000000e+00> : vector<4x8xf32>
    %978 = tpu.matmul %977, %966, %cst_717 {dimension_numbers = #tpu.dot_dimension_numbers<[1], [0], [0], [1], [0, 0, 1, 1], [], []>} : vector<4x4xf32>, vector<4x8xf32>, vector<4x8xf32> -> vector<4x8xf32>
    %c3_718 = arith.constant 3 : index
    %c0_719 = arith.constant 0 : index
    %c0_720 = arith.constant 0 : index
    %979 = vector.load %arg49[%c3_718, %c0_719, %c0_720] : memref<4x8x32xf32, #tpu.memory_space<vmem>>, vector<1x8x32xf32>
    %980 = vector.shape_cast %979 : vector<1x8x32xf32> to vector<8x32xf32>
    %cst_721 = arith.constant dense<0.000000e+00> : vector<4x32xf32>
    %981 = tpu.matmul %978, %980, %cst_721 {dimension_numbers = #tpu.dot_dimension_numbers<[1], [0], [0], [1], [0, 0, 1, 1], [], []>} : vector<4x8xf32>, vector<8x32xf32>, vector<4x32xf32> -> vector<4x32xf32>
    %982 = arith.addf %945, %981 : vector<4x32xf32>
    %983 = vector.broadcast %834 : vector<1x32xf32> to vector<4x32xf32>
    %984 = arith.addf %982, %983 : vector<4x32xf32>
    %c0_722 = arith.constant 0 : index
    %c0_723 = arith.constant 0 : index
    %985 = vector.load %arg61[%c0_722, %c0_723] : memref<8x32xf32, #tpu.memory_space<vmem>>, vector<4x32xf32>
    tpu.vector_store %arg61[%c0_722, %c0_723], %984 {strides = array<i32>} : memref<8x32xf32, #tpu.memory_space<vmem>>, vector<4x32xf32>,
    %986 = vector.extract_strided_slice %833 {offsets = [4, 0], sizes = [4, 32], strides = [1, 1]} : vector<8x32xf32> to vector<4x32xf32>
    %c0_724 = arith.constant 0 : index
    %c0_725 = arith.constant 0 : index
    %c0_726 = arith.constant 0 : index
    %987 = vector.load %arg43[%c0_724, %c0_725, %c0_726] : memref<4x32x8xf32, #tpu.memory_space<vmem>>, vector<1x32x8xf32>
    %988 = vector.shape_cast %987 : vector<1x32x8xf32> to vector<32x8xf32>
    %cst_727 = arith.constant dense<0.000000e+00> : vector<4x8xf32>
    %989 = tpu.matmul %986, %988, %cst_727 {dimension_numbers = #tpu.dot_dimension_numbers<[1], [0], [0], [1], [0, 0, 1, 1], [], []>} : vector<4x32xf32>, vector<32x8xf32>, vector<4x8xf32> -> vector<4x8xf32>
    %c0_728 = arith.constant 0 : index
    %c0_729 = arith.constant 0 : index
    %c0_730 = arith.constant 0 : index
    %990 = vector.load %arg46[%c0_728, %c0_729, %c0_730] : memref<4x1x8xf32, #tpu.memory_space<vmem>>, vector<1x1x8xf32>
    %991 = vector.shape_cast %990 : vector<1x1x8xf32> to vector<1x8xf32>
    %992 = vector.broadcast %991 : vector<1x8xf32> to vector<4x8xf32>
    %993 = arith.addf %989, %992 : vector<4x8xf32>
    %c0_731 = arith.constant 0 : index
    %c0_732 = arith.constant 0 : index
    %c0_733 = arith.constant 0 : index
    %994 = vector.load %arg44[%c0_731, %c0_732, %c0_733] : memref<4x32x8xf32, #tpu.memory_space<vmem>>, vector<1x32x8xf32>
    %995 = vector.shape_cast %994 : vector<1x32x8xf32> to vector<32x8xf32>
    %cst_734 = arith.constant dense<0.000000e+00> : vector<4x8xf32>
    %996 = tpu.matmul %986, %995, %cst_734 {dimension_numbers = #tpu.dot_dimension_numbers<[1], [0], [0], [1], [0, 0, 1, 1], [], []>} : vector<4x32xf32>, vector<32x8xf32>, vector<4x8xf32> -> vector<4x8xf32>
    %c0_735 = arith.constant 0 : index
    %c0_736 = arith.constant 0 : index
    %c0_737 = arith.constant 0 : index
    %997 = vector.load %arg47[%c0_735, %c0_736, %c0_737] : memref<4x1x8xf32, #tpu.memory_space<vmem>>, vector<1x1x8xf32>
    %998 = vector.shape_cast %997 : vector<1x1x8xf32> to vector<1x8xf32>
    %999 = vector.broadcast %998 : vector<1x8xf32> to vector<4x8xf32>
    %1000 = arith.addf %996, %999 : vector<4x8xf32>
    %c0_738 = arith.constant 0 : index
    %c0_739 = arith.constant 0 : index
    %c0_740 = arith.constant 0 : index
    %1001 = vector.load %arg45[%c0_738, %c0_739, %c0_740] : memref<4x32x8xf32, #tpu.memory_space<vmem>>, vector<1x32x8xf32>
    %1002 = vector.shape_cast %1001 : vector<1x32x8xf32> to vector<32x8xf32>
    %cst_741 = arith.constant dense<0.000000e+00> : vector<4x8xf32>
    %1003 = tpu.matmul %986, %1002, %cst_741 {dimension_numbers = #tpu.dot_dimension_numbers<[1], [0], [0], [1], [0, 0, 1, 1], [], []>} : vector<4x32xf32>, vector<32x8xf32>, vector<4x8xf32> -> vector<4x8xf32>
    %c0_742 = arith.constant 0 : index
    %c0_743 = arith.constant 0 : index
    %c0_744 = arith.constant 0 : index
    %1004 = vector.load %arg48[%c0_742, %c0_743, %c0_744] : memref<4x1x8xf32, #tpu.memory_space<vmem>>, vector<1x1x8xf32>
    %1005 = vector.shape_cast %1004 : vector<1x1x8xf32> to vector<1x8xf32>
    %1006 = vector.broadcast %1005 : vector<1x8xf32> to vector<4x8xf32>
    %1007 = arith.addf %1003, %1006 : vector<4x8xf32>
    %cst_745 = arith.constant dense<0.000000e+00> : vector<4x4xf32>
    %1008 = tpu.matmul %993, %1000, %cst_745 {dimension_numbers = #tpu.dot_dimension_numbers<[1], [1], [0], [0], [0, 0, 1, 0], [], []>} : vector<4x8xf32>, vector<4x8xf32>, vector<4x4xf32> -> vector<4x4xf32>
    %cst_746 = arith.constant dense<0xFF800000> : vector<4xf32>
    %1009 = vector.multi_reduction <maximumf>, %1008, %cst_746 [1] : vector<4x4xf32> to vector<4xf32>
    %1010 = vector.shape_cast %1009 : vector<4xf32> to vector<4x1xf32>
    %1011 = vector.broadcast %1010 : vector<4x1xf32> to vector<4x4xf32>
    %1012 = arith.subf %1008, %1011 : vector<4x4xf32>
    %1013 = math.exp %1012 : vector<4x4xf32>
    %cst_747 = arith.constant dense<0.000000e+00> : vector<4xf32>
    %1014 = vector.multi_reduction <add>, %1013, %cst_747 [1] : vector<4x4xf32> to vector<4xf32>
    %1015 = vector.shape_cast %1014 : vector<4xf32> to vector<4x1xf32>
    %1016 = tpu.reciprocal %1015 {approx = true} : vector<4x1xf32> -> vector<4x1xf32>
    %1017 = vector.broadcast %1016 : vector<4x1xf32> to vector<4x4xf32>
    %1018 = arith.mulf %1013, %1017 : vector<4x4xf32>
    %cst_748 = arith.constant dense<0.000000e+00> : vector<4x8xf32>
    %1019 = tpu.matmul %1018, %1007, %cst_748 {dimension_numbers = #tpu.dot_dimension_numbers<[1], [0], [0], [1], [0, 0, 1, 1], [], []>} : vector<4x4xf32>, vector<4x8xf32>, vector<4x8xf32> -> vector<4x8xf32>
    %c0_749 = arith.constant 0 : index
    %c0_750 = arith.constant 0 : index
    %c0_751 = arith.constant 0 : index
    %1020 = vector.load %arg49[%c0_749, %c0_750, %c0_751] : memref<4x8x32xf32, #tpu.memory_space<vmem>>, vector<1x8x32xf32>
    %1021 = vector.shape_cast %1020 : vector<1x8x32xf32> to vector<8x32xf32>
    %cst_752 = arith.constant dense<0.000000e+00> : vector<4x32xf32>
    %1022 = tpu.matmul %1019, %1021, %cst_752 {dimension_numbers = #tpu.dot_dimension_numbers<[1], [0], [0], [1], [0, 0, 1, 1], [], []>} : vector<4x8xf32>, vector<8x32xf32>, vector<4x32xf32> -> vector<4x32xf32>
    %c1_753 = arith.constant 1 : index
    %c0_754 = arith.constant 0 : index
    %c0_755 = arith.constant 0 : index
    %1023 = vector.load %arg43[%c1_753, %c0_754, %c0_755] : memref<4x32x8xf32, #tpu.memory_space<vmem>>, vector<1x32x8xf32>
    %1024 = vector.shape_cast %1023 : vector<1x32x8xf32> to vector<32x8xf32>
    %cst_756 = arith.constant dense<0.000000e+00> : vector<4x8xf32>
    %1025 = tpu.matmul %986, %1024, %cst_756 {dimension_numbers = #tpu.dot_dimension_numbers<[1], [0], [0], [1], [0, 0, 1, 1], [], []>} : vector<4x32xf32>, vector<32x8xf32>, vector<4x8xf32> -> vector<4x8xf32>
    %c1_757 = arith.constant 1 : index
    %c0_758 = arith.constant 0 : index
    %c0_759 = arith.constant 0 : index
    %1026 = vector.load %arg46[%c1_757, %c0_758, %c0_759] : memref<4x1x8xf32, #tpu.memory_space<vmem>>, vector<1x1x8xf32>
    %1027 = vector.shape_cast %1026 : vector<1x1x8xf32> to vector<1x8xf32>
    %1028 = vector.broadcast %1027 : vector<1x8xf32> to vector<4x8xf32>
    %1029 = arith.addf %1025, %1028 : vector<4x8xf32>
    %c1_760 = arith.constant 1 : index
    %c0_761 = arith.constant 0 : index
    %c0_762 = arith.constant 0 : index
    %1030 = vector.load %arg44[%c1_760, %c0_761, %c0_762] : memref<4x32x8xf32, #tpu.memory_space<vmem>>, vector<1x32x8xf32>
    %1031 = vector.shape_cast %1030 : vector<1x32x8xf32> to vector<32x8xf32>
    %cst_763 = arith.constant dense<0.000000e+00> : vector<4x8xf32>
    %1032 = tpu.matmul %986, %1031, %cst_763 {dimension_numbers = #tpu.dot_dimension_numbers<[1], [0], [0], [1], [0, 0, 1, 1], [], []>} : vector<4x32xf32>, vector<32x8xf32>, vector<4x8xf32> -> vector<4x8xf32>
    %c1_764 = arith.constant 1 : index
    %c0_765 = arith.constant 0 : index
    %c0_766 = arith.constant 0 : index
    %1033 = vector.load %arg47[%c1_764, %c0_765, %c0_766] : memref<4x1x8xf32, #tpu.memory_space<vmem>>, vector<1x1x8xf32>
    %1034 = vector.shape_cast %1033 : vector<1x1x8xf32> to vector<1x8xf32>
    %1035 = vector.broadcast %1034 : vector<1x8xf32> to vector<4x8xf32>
    %1036 = arith.addf %1032, %1035 : vector<4x8xf32>
    %c1_767 = arith.constant 1 : index
    %c0_768 = arith.constant 0 : index
    %c0_769 = arith.constant 0 : index
    %1037 = vector.load %arg45[%c1_767, %c0_768, %c0_769] : memref<4x32x8xf32, #tpu.memory_space<vmem>>, vector<1x32x8xf32>
    %1038 = vector.shape_cast %1037 : vector<1x32x8xf32> to vector<32x8xf32>
    %cst_770 = arith.constant dense<0.000000e+00> : vector<4x8xf32>
    %1039 = tpu.matmul %986, %1038, %cst_770 {dimension_numbers = #tpu.dot_dimension_numbers<[1], [0], [0], [1], [0, 0, 1, 1], [], []>} : vector<4x32xf32>, vector<32x8xf32>, vector<4x8xf32> -> vector<4x8xf32>
    %c1_771 = arith.constant 1 : index
    %c0_772 = arith.constant 0 : index
    %c0_773 = arith.constant 0 : index
    %1040 = vector.load %arg48[%c1_771, %c0_772, %c0_773] : memref<4x1x8xf32, #tpu.memory_space<vmem>>, vector<1x1x8xf32>
    %1041 = vector.shape_cast %1040 : vector<1x1x8xf32> to vector<1x8xf32>
    %1042 = vector.broadcast %1041 : vector<1x8xf32> to vector<4x8xf32>
    %1043 = arith.addf %1039, %1042 : vector<4x8xf32>
    %cst_774 = arith.constant dense<0.000000e+00> : vector<4x4xf32>
    %1044 = tpu.matmul %1029, %1036, %cst_774 {dimension_numbers = #tpu.dot_dimension_numbers<[1], [1], [0], [0], [0, 0, 1, 0], [], []>} : vector<4x8xf32>, vector<4x8xf32>, vector<4x4xf32> -> vector<4x4xf32>
    %cst_775 = arith.constant dense<0xFF800000> : vector<4xf32>
    %1045 = vector.multi_reduction <maximumf>, %1044, %cst_775 [1] : vector<4x4xf32> to vector<4xf32>
    %1046 = vector.shape_cast %1045 : vector<4xf32> to vector<4x1xf32>
    %1047 = vector.broadcast %1046 : vector<4x1xf32> to vector<4x4xf32>
    %1048 = arith.subf %1044, %1047 : vector<4x4xf32>
    %1049 = math.exp %1048 : vector<4x4xf32>
    %cst_776 = arith.constant dense<0.000000e+00> : vector<4xf32>
    %1050 = vector.multi_reduction <add>, %1049, %cst_776 [1] : vector<4x4xf32> to vector<4xf32>
    %1051 = vector.shape_cast %1050 : vector<4xf32> to vector<4x1xf32>
    %1052 = tpu.reciprocal %1051 {approx = true} : vector<4x1xf32> -> vector<4x1xf32>
    %1053 = vector.broadcast %1052 : vector<4x1xf32> to vector<4x4xf32>
    %1054 = arith.mulf %1049, %1053 : vector<4x4xf32>
    %cst_777 = arith.constant dense<0.000000e+00> : vector<4x8xf32>
    %1055 = tpu.matmul %1054, %1043, %cst_777 {dimension_numbers = #tpu.dot_dimension_numbers<[1], [0], [0], [1], [0, 0, 1, 1], [], []>} : vector<4x4xf32>, vector<4x8xf32>, vector<4x8xf32> -> vector<4x8xf32>
    %c1_778 = arith.constant 1 : index
    %c0_779 = arith.constant 0 : index
    %c0_780 = arith.constant 0 : index
    %1056 = vector.load %arg49[%c1_778, %c0_779, %c0_780] : memref<4x8x32xf32, #tpu.memory_space<vmem>>, vector<1x8x32xf32>
    %1057 = vector.shape_cast %1056 : vector<1x8x32xf32> to vector<8x32xf32>
    %cst_781 = arith.constant dense<0.000000e+00> : vector<4x32xf32>
    %1058 = tpu.matmul %1055, %1057, %cst_781 {dimension_numbers = #tpu.dot_dimension_numbers<[1], [0], [0], [1], [0, 0, 1, 1], [], []>} : vector<4x8xf32>, vector<8x32xf32>, vector<4x32xf32> -> vector<4x32xf32>
    %1059 = arith.addf %1022, %1058 : vector<4x32xf32>
    %c2_782 = arith.constant 2 : index
    %c0_783 = arith.constant 0 : index
    %c0_784 = arith.constant 0 : index
    %1060 = vector.load %arg43[%c2_782, %c0_783, %c0_784] : memref<4x32x8xf32, #tpu.memory_space<vmem>>, vector<1x32x8xf32>
    %1061 = vector.shape_cast %1060 : vector<1x32x8xf32> to vector<32x8xf32>
    %cst_785 = arith.constant dense<0.000000e+00> : vector<4x8xf32>
    %1062 = tpu.matmul %986, %1061, %cst_785 {dimension_numbers = #tpu.dot_dimension_numbers<[1], [0], [0], [1], [0, 0, 1, 1], [], []>} : vector<4x32xf32>, vector<32x8xf32>, vector<4x8xf32> -> vector<4x8xf32>
    %c2_786 = arith.constant 2 : index
    %c0_787 = arith.constant 0 : index
    %c0_788 = arith.constant 0 : index
    %1063 = vector.load %arg46[%c2_786, %c0_787, %c0_788] : memref<4x1x8xf32, #tpu.memory_space<vmem>>, vector<1x1x8xf32>
    %1064 = vector.shape_cast %1063 : vector<1x1x8xf32> to vector<1x8xf32>
    %1065 = vector.broadcast %1064 : vector<1x8xf32> to vector<4x8xf32>
    %1066 = arith.addf %1062, %1065 : vector<4x8xf32>
    %c2_789 = arith.constant 2 : index
    %c0_790 = arith.constant 0 : index
    %c0_791 = arith.constant 0 : index
    %1067 = vector.load %arg44[%c2_789, %c0_790, %c0_791] : memref<4x32x8xf32, #tpu.memory_space<vmem>>, vector<1x32x8xf32>
    %1068 = vector.shape_cast %1067 : vector<1x32x8xf32> to vector<32x8xf32>
    %cst_792 = arith.constant dense<0.000000e+00> : vector<4x8xf32>
    %1069 = tpu.matmul %986, %1068, %cst_792 {dimension_numbers = #tpu.dot_dimension_numbers<[1], [0], [0], [1], [0, 0, 1, 1], [], []>} : vector<4x32xf32>, vector<32x8xf32>, vector<4x8xf32> -> vector<4x8xf32>
    %c2_793 = arith.constant 2 : index
    %c0_794 = arith.constant 0 : index
    %c0_795 = arith.constant 0 : index
    %1070 = vector.load %arg47[%c2_793, %c0_794, %c0_795] : memref<4x1x8xf32, #tpu.memory_space<vmem>>, vector<1x1x8xf32>
    %1071 = vector.shape_cast %1070 : vector<1x1x8xf32> to vector<1x8xf32>
    %1072 = vector.broadcast %1071 : vector<1x8xf32> to vector<4x8xf32>
    %1073 = arith.addf %1069, %1072 : vector<4x8xf32>
    %c2_796 = arith.constant 2 : index
    %c0_797 = arith.constant 0 : index
    %c0_798 = arith.constant 0 : index
    %1074 = vector.load %arg45[%c2_796, %c0_797, %c0_798] : memref<4x32x8xf32, #tpu.memory_space<vmem>>, vector<1x32x8xf32>
    %1075 = vector.shape_cast %1074 : vector<1x32x8xf32> to vector<32x8xf32>
    %cst_799 = arith.constant dense<0.000000e+00> : vector<4x8xf32>
    %1076 = tpu.matmul %986, %1075, %cst_799 {dimension_numbers = #tpu.dot_dimension_numbers<[1], [0], [0], [1], [0, 0, 1, 1], [], []>} : vector<4x32xf32>, vector<32x8xf32>, vector<4x8xf32> -> vector<4x8xf32>
    %c2_800 = arith.constant 2 : index
    %c0_801 = arith.constant 0 : index
    %c0_802 = arith.constant 0 : index
    %1077 = vector.load %arg48[%c2_800, %c0_801, %c0_802] : memref<4x1x8xf32, #tpu.memory_space<vmem>>, vector<1x1x8xf32>
    %1078 = vector.shape_cast %1077 : vector<1x1x8xf32> to vector<1x8xf32>
    %1079 = vector.broadcast %1078 : vector<1x8xf32> to vector<4x8xf32>
    %1080 = arith.addf %1076, %1079 : vector<4x8xf32>
    %cst_803 = arith.constant dense<0.000000e+00> : vector<4x4xf32>
    %1081 = tpu.matmul %1066, %1073, %cst_803 {dimension_numbers = #tpu.dot_dimension_numbers<[1], [1], [0], [0], [0, 0, 1, 0], [], []>} : vector<4x8xf32>, vector<4x8xf32>, vector<4x4xf32> -> vector<4x4xf32>
    %cst_804 = arith.constant dense<0xFF800000> : vector<4xf32>
    %1082 = vector.multi_reduction <maximumf>, %1081, %cst_804 [1] : vector<4x4xf32> to vector<4xf32>
    %1083 = vector.shape_cast %1082 : vector<4xf32> to vector<4x1xf32>
    %1084 = vector.broadcast %1083 : vector<4x1xf32> to vector<4x4xf32>
    %1085 = arith.subf %1081, %1084 : vector<4x4xf32>
    %1086 = math.exp %1085 : vector<4x4xf32>
    %cst_805 = arith.constant dense<0.000000e+00> : vector<4xf32>
    %1087 = vector.multi_reduction <add>, %1086, %cst_805 [1] : vector<4x4xf32> to vector<4xf32>
    %1088 = vector.shape_cast %1087 : vector<4xf32> to vector<4x1xf32>
    %1089 = tpu.reciprocal %1088 {approx = true} : vector<4x1xf32> -> vector<4x1xf32>
    %1090 = vector.broadcast %1089 : vector<4x1xf32> to vector<4x4xf32>
    %1091 = arith.mulf %1086, %1090 : vector<4x4xf32>
    %cst_806 = arith.constant dense<0.000000e+00> : vector<4x8xf32>
    %1092 = tpu.matmul %1091, %1080, %cst_806 {dimension_numbers = #tpu.dot_dimension_numbers<[1], [0], [0], [1], [0, 0, 1, 1], [], []>} : vector<4x4xf32>, vector<4x8xf32>, vector<4x8xf32> -> vector<4x8xf32>
    %c2_807 = arith.constant 2 : index
    %c0_808 = arith.constant 0 : index
    %c0_809 = arith.constant 0 : index
    %1093 = vector.load %arg49[%c2_807, %c0_808, %c0_809] : memref<4x8x32xf32, #tpu.memory_space<vmem>>, vector<1x8x32xf32>
    %1094 = vector.shape_cast %1093 : vector<1x8x32xf32> to vector<8x32xf32>
    %cst_810 = arith.constant dense<0.000000e+00> : vector<4x32xf32>
    %1095 = tpu.matmul %1092, %1094, %cst_810 {dimension_numbers = #tpu.dot_dimension_numbers<[1], [0], [0], [1], [0, 0, 1, 1], [], []>} : vector<4x8xf32>, vector<8x32xf32>, vector<4x32xf32> -> vector<4x32xf32>
    %1096 = arith.addf %1059, %1095 : vector<4x32xf32>
    %c3_811 = arith.constant 3 : index
    %c0_812 = arith.constant 0 : index
    %c0_813 = arith.constant 0 : index
    %1097 = vector.load %arg43[%c3_811, %c0_812, %c0_813] : memref<4x32x8xf32, #tpu.memory_space<vmem>>, vector<1x32x8xf32>
    %1098 = vector.shape_cast %1097 : vector<1x32x8xf32> to vector<32x8xf32>
    %cst_814 = arith.constant dense<0.000000e+00> : vector<4x8xf32>
    %1099 = tpu.matmul %986, %1098, %cst_814 {dimension_numbers = #tpu.dot_dimension_numbers<[1], [0], [0], [1], [0, 0, 1, 1], [], []>} : vector<4x32xf32>, vector<32x8xf32>, vector<4x8xf32> -> vector<4x8xf32>
    %c3_815 = arith.constant 3 : index
    %c0_816 = arith.constant 0 : index
    %c0_817 = arith.constant 0 : index
    %1100 = vector.load %arg46[%c3_815, %c0_816, %c0_817] : memref<4x1x8xf32, #tpu.memory_space<vmem>>, vector<1x1x8xf32>
    %1101 = vector.shape_cast %1100 : vector<1x1x8xf32> to vector<1x8xf32>
    %1102 = vector.broadcast %1101 : vector<1x8xf32> to vector<4x8xf32>
    %1103 = arith.addf %1099, %1102 : vector<4x8xf32>
    %c3_818 = arith.constant 3 : index
    %c0_819 = arith.constant 0 : index
    %c0_820 = arith.constant 0 : index
    %1104 = vector.load %arg44[%c3_818, %c0_819, %c0_820] : memref<4x32x8xf32, #tpu.memory_space<vmem>>, vector<1x32x8xf32>
    %1105 = vector.shape_cast %1104 : vector<1x32x8xf32> to vector<32x8xf32>
    %cst_821 = arith.constant dense<0.000000e+00> : vector<4x8xf32>
    %1106 = tpu.matmul %986, %1105, %cst_821 {dimension_numbers = #tpu.dot_dimension_numbers<[1], [0], [0], [1], [0, 0, 1, 1], [], []>} : vector<4x32xf32>, vector<32x8xf32>, vector<4x8xf32> -> vector<4x8xf32>
    %c3_822 = arith.constant 3 : index
    %c0_823 = arith.constant 0 : index
    %c0_824 = arith.constant 0 : index
    %1107 = vector.load %arg47[%c3_822, %c0_823, %c0_824] : memref<4x1x8xf32, #tpu.memory_space<vmem>>, vector<1x1x8xf32>
    %1108 = vector.shape_cast %1107 : vector<1x1x8xf32> to vector<1x8xf32>
    %1109 = vector.broadcast %1108 : vector<1x8xf32> to vector<4x8xf32>
    %1110 = arith.addf %1106, %1109 : vector<4x8xf32>
    %c3_825 = arith.constant 3 : index
    %c0_826 = arith.constant 0 : index
    %c0_827 = arith.constant 0 : index
    %1111 = vector.load %arg45[%c3_825, %c0_826, %c0_827] : memref<4x32x8xf32, #tpu.memory_space<vmem>>, vector<1x32x8xf32>
    %1112 = vector.shape_cast %1111 : vector<1x32x8xf32> to vector<32x8xf32>
    %cst_828 = arith.constant dense<0.000000e+00> : vector<4x8xf32>
    %1113 = tpu.matmul %986, %1112, %cst_828 {dimension_numbers = #tpu.dot_dimension_numbers<[1], [0], [0], [1], [0, 0, 1, 1], [], []>} : vector<4x32xf32>, vector<32x8xf32>, vector<4x8xf32> -> vector<4x8xf32>
    %c3_829 = arith.constant 3 : index
    %c0_830 = arith.constant 0 : index
    %c0_831 = arith.constant 0 : index
    %1114 = vector.load %arg48[%c3_829, %c0_830, %c0_831] : memref<4x1x8xf32, #tpu.memory_space<vmem>>, vector<1x1x8xf32>
    %1115 = vector.shape_cast %1114 : vector<1x1x8xf32> to vector<1x8xf32>
    %1116 = vector.broadcast %1115 : vector<1x8xf32> to vector<4x8xf32>
    %1117 = arith.addf %1113, %1116 : vector<4x8xf32>
    %cst_832 = arith.constant dense<0.000000e+00> : vector<4x4xf32>
    %1118 = tpu.matmul %1103, %1110, %cst_832 {dimension_numbers = #tpu.dot_dimension_numbers<[1], [1], [0], [0], [0, 0, 1, 0], [], []>} : vector<4x8xf32>, vector<4x8xf32>, vector<4x4xf32> -> vector<4x4xf32>
    %cst_833 = arith.constant dense<0xFF800000> : vector<4xf32>
    %1119 = vector.multi_reduction <maximumf>, %1118, %cst_833 [1] : vector<4x4xf32> to vector<4xf32>
    %1120 = vector.shape_cast %1119 : vector<4xf32> to vector<4x1xf32>
    %1121 = vector.broadcast %1120 : vector<4x1xf32> to vector<4x4xf32>
    %1122 = arith.subf %1118, %1121 : vector<4x4xf32>
    %1123 = math.exp %1122 : vector<4x4xf32>
    %cst_834 = arith.constant dense<0.000000e+00> : vector<4xf32>
    %1124 = vector.multi_reduction <add>, %1123, %cst_834 [1] : vector<4x4xf32> to vector<4xf32>
    %1125 = vector.shape_cast %1124 : vector<4xf32> to vector<4x1xf32>
    %1126 = tpu.reciprocal %1125 {approx = true} : vector<4x1xf32> -> vector<4x1xf32>
    %1127 = vector.broadcast %1126 : vector<4x1xf32> to vector<4x4xf32>
    %1128 = arith.mulf %1123, %1127 : vector<4x4xf32>
    %cst_835 = arith.constant dense<0.000000e+00> : vector<4x8xf32>
    %1129 = tpu.matmul %1128, %1117, %cst_835 {dimension_numbers = #tpu.dot_dimension_numbers<[1], [0], [0], [1], [0, 0, 1, 1], [], []>} : vector<4x4xf32>, vector<4x8xf32>, vector<4x8xf32> -> vector<4x8xf32>
    %c3_836 = arith.constant 3 : index
    %c0_837 = arith.constant 0 : index
    %c0_838 = arith.constant 0 : index
    %1130 = vector.load %arg49[%c3_836, %c0_837, %c0_838] : memref<4x8x32xf32, #tpu.memory_space<vmem>>, vector<1x8x32xf32>
    %1131 = vector.shape_cast %1130 : vector<1x8x32xf32> to vector<8x32xf32>
    %cst_839 = arith.constant dense<0.000000e+00> : vector<4x32xf32>
    %1132 = tpu.matmul %1129, %1131, %cst_839 {dimension_numbers = #tpu.dot_dimension_numbers<[1], [0], [0], [1], [0, 0, 1, 1], [], []>} : vector<4x8xf32>, vector<8x32xf32>, vector<4x32xf32> -> vector<4x32xf32>
    %1133 = arith.addf %1096, %1132 : vector<4x32xf32>
    %1134 = vector.broadcast %834 : vector<1x32xf32> to vector<4x32xf32>
    %1135 = arith.addf %1133, %1134 : vector<4x32xf32>
    %c4_840 = arith.constant 4 : index
    %c0_841 = arith.constant 0 : index
    %1136 = vector.load %arg61[%c4_840, %c0_841] : memref<8x32xf32, #tpu.memory_space<vmem>>, vector<4x32xf32>
    tpu.vector_store %arg61[%c4_840, %c0_841], %1135 {strides = array<i32>} : memref<8x32xf32, #tpu.memory_space<vmem>>, vector<4x32xf32>,
    %c0_842 = arith.constant 0 : index
    %c0_843 = arith.constant 0 : index
    %1137 = vector.load %arg61[%c0_842, %c0_843] : memref<8x32xf32, #tpu.memory_space<vmem>>, vector<8x32xf32>
    %1138 = arith.mulf %790, %1137 : vector<8x32xf32>
    %1139 = arith.addf %769, %1138 : vector<8x32xf32>
    %cst_844 = arith.constant dense<0.000000e+00> : vector<8xf32>
    %1140 = vector.multi_reduction <add>, %1139, %cst_844 [1] : vector<8x32xf32> to vector<8xf32>
    %1141 = vector.shape_cast %1140 : vector<8xf32> to vector<8x1xf32>
    %cst_845 = arith.constant 3.200000e+01 : f32
    %1142 = vector.broadcast %cst_845 : f32 to vector<8x1xf32>
    %1143 = arith.divf %1141, %1142 : vector<8x1xf32>
    %1144 = vector.broadcast %1143 : vector<8x1xf32> to vector<8x32xf32>
    %1145 = arith.subf %1139, %1144 : vector<8x32xf32>
    %1146 = arith.mulf %1145, %1145 : vector<8x32xf32>
    %cst_846 = arith.constant dense<0.000000e+00> : vector<8xf32>
    %1147 = vector.multi_reduction <add>, %1146, %cst_846 [1] : vector<8x32xf32> to vector<8xf32>
    %1148 = vector.shape_cast %1147 : vector<8xf32> to vector<8x1xf32>
    %cst_847 = arith.constant 3.200000e+01 : f32
    %1149 = vector.broadcast %cst_847 : f32 to vector<8x1xf32>
    %1150 = arith.divf %1148, %1149 : vector<8x1xf32>
    %1151 = vector.broadcast %1143 : vector<8x1xf32> to vector<8x32xf32>
    %1152 = arith.subf %1139, %1151 : vector<8x32xf32>
    %cst_848 = arith.constant 9.99999997E-7 : f32
    %1153 = vector.broadcast %cst_848 : f32 to vector<8x1xf32>
    %1154 = arith.addf %1150, %1153 : vector<8x1xf32>
    %1155 = math.rsqrt %1154 : vector<8x1xf32>
    %1156 = vector.broadcast %1155 : vector<8x1xf32> to vector<8x32xf32>
    %1157 = arith.mulf %1152, %1156 : vector<8x32xf32>
    %cst_849 = arith.constant 1.000000e+00 : f32
    %1158 = vector.broadcast %cst_849 : f32 to vector<8x32xf32>
    %1159 = arith.addf %1158, %804 : vector<8x32xf32>
    %1160 = arith.mulf %1157, %1159 : vector<8x32xf32>
    %1161 = arith.addf %1160, %797 : vector<8x32xf32>
    %c0_850 = arith.constant 0 : index
    %c0_851 = arith.constant 0 : index
    %1162 = vector.load %arg51[%c0_850, %c0_851] : memref<32x128xf32, #tpu.memory_space<vmem>>, vector<32x128xf32>
    %cst_852 = arith.constant dense<0.000000e+00> : vector<8x128xf32>
    %1163 = tpu.matmul %1161, %1162, %cst_852 {dimension_numbers = #tpu.dot_dimension_numbers<[1], [0], [0], [1], [0, 0, 1, 1], [], []>} : vector<8x32xf32>, vector<32x128xf32>, vector<8x128xf32> -> vector<8x128xf32>
    %c0_853 = arith.constant 0 : index
    %c0_854 = arith.constant 0 : index
    %1164 = vector.load %arg52[%c0_853, %c0_854] : memref<1x128xf32, #tpu.memory_space<vmem>>, vector<1x128xf32>
    %1165 = vector.broadcast %1164 : vector<1x128xf32> to vector<8x128xf32>
    %1166 = arith.addf %1163, %1165 : vector<8x128xf32>
    %cst_855 = arith.constant 5.000000e-01 : f32
    %1167 = vector.broadcast %cst_855 : f32 to vector<8x128xf32>
    %1168 = arith.mulf %1167, %1166 : vector<8x128xf32>
    %cst_856 = arith.constant 4.471500e-02 : f32
    %1169 = vector.broadcast %cst_856 : f32 to vector<8x128xf32>
    %1170 = arith.mulf %1169, %1166 : vector<8x128xf32>
    %1171 = arith.mulf %1170, %1166 : vector<8x128xf32>
    %1172 = arith.mulf %1171, %1166 : vector<8x128xf32>
    %1173 = arith.addf %1166, %1172 : vector<8x128xf32>
    %cst_857 = arith.constant 0.797884583 : f32
    %1174 = vector.broadcast %cst_857 : f32 to vector<8x128xf32>
    %1175 = arith.mulf %1174, %1173 : vector<8x128xf32>
    %1176 = math.tanh %1175 : vector<8x128xf32>
    %cst_858 = arith.constant 1.000000e+00 : f32
    %1177 = vector.broadcast %cst_858 : f32 to vector<8x128xf32>
    %1178 = arith.addf %1177, %1176 : vector<8x128xf32>
    %1179 = arith.mulf %1168, %1178 : vector<8x128xf32>
    %c0_859 = arith.constant 0 : index
    %c0_860 = arith.constant 0 : index
    %1180 = vector.load %arg53[%c0_859, %c0_860] : memref<128x32xf32, #tpu.memory_space<vmem>>, vector<128x32xf32>
    %cst_861 = arith.constant dense<0.000000e+00> : vector<8x32xf32>
    %1181 = tpu.matmul %1179, %1180, %cst_861 {dimension_numbers = #tpu.dot_dimension_numbers<[1], [0], [0], [1], [0, 0, 1, 1], [], []>} : vector<8x128xf32>, vector<128x32xf32>, vector<8x32xf32> -> vector<8x32xf32>
    %c0_862 = arith.constant 0 : index
    %c0_863 = arith.constant 0 : index
    %1182 = vector.load %arg54[%c0_862, %c0_863] : memref<1x32xf32, #tpu.memory_space<vmem>>, vector<1x32xf32>
    %1183 = vector.broadcast %1182 : vector<1x32xf32> to vector<8x32xf32>
    %1184 = arith.addf %1181, %1183 : vector<8x32xf32>
    %1185 = arith.mulf %811, %1184 : vector<8x32xf32>
    %1186 = arith.addf %1139, %1185 : vector<8x32xf32>
    %c0_864 = arith.constant 0 : index
    %c0_865 = arith.constant 0 : index
    %c0_866 = arith.constant 0 : index
    %1187 = vector.load %arg55[%c0_864, %c0_865, %c0_866] : memref<2x32x32xf32, #tpu.memory_space<vmem>>, vector<1x32x32xf32>
    %1188 = vector.shape_cast %1187 : vector<1x32x32xf32> to vector<32x32xf32>
    %cst_867 = arith.constant dense<0.000000e+00> : vector<8x32xf32>
    %1189 = tpu.matmul %352, %1188, %cst_867 {dimension_numbers = #tpu.dot_dimension_numbers<[1], [0], [0], [1], [0, 0, 1, 1], [], []>} : vector<8x32xf32>, vector<32x32xf32>, vector<8x32xf32> -> vector<8x32xf32>
    %c0_868 = arith.constant 0 : index
    %c0_869 = arith.constant 0 : index
    %c0_870 = arith.constant 0 : index
    %1190 = vector.load %arg56[%c0_868, %c0_869, %c0_870] : memref<2x1x32xf32, #tpu.memory_space<vmem>>, vector<1x1x32xf32>
    %1191 = vector.shape_cast %1190 : vector<1x1x32xf32> to vector<1x32xf32>
    %1192 = vector.broadcast %1191 : vector<1x32xf32> to vector<8x32xf32>
    %1193 = arith.addf %1189, %1192 : vector<8x32xf32>
    %c1_871 = arith.constant 1 : index
    %c0_872 = arith.constant 0 : index
    %c0_873 = arith.constant 0 : index
    %1194 = vector.load %arg55[%c1_871, %c0_872, %c0_873] : memref<2x32x32xf32, #tpu.memory_space<vmem>>, vector<1x32x32xf32>
    %1195 = vector.shape_cast %1194 : vector<1x32x32xf32> to vector<32x32xf32>
    %cst_874 = arith.constant dense<0.000000e+00> : vector<8x32xf32>
    %1196 = tpu.matmul %352, %1195, %cst_874 {dimension_numbers = #tpu.dot_dimension_numbers<[1], [0], [0], [1], [0, 0, 1, 1], [], []>} : vector<8x32xf32>, vector<32x32xf32>, vector<8x32xf32> -> vector<8x32xf32>
    %c1_875 = arith.constant 1 : index
    %c0_876 = arith.constant 0 : index
    %c0_877 = arith.constant 0 : index
    %1197 = vector.load %arg56[%c1_875, %c0_876, %c0_877] : memref<2x1x32xf32, #tpu.memory_space<vmem>>, vector<1x1x32xf32>
    %1198 = vector.shape_cast %1197 : vector<1x1x32xf32> to vector<1x32xf32>
    %1199 = vector.broadcast %1198 : vector<1x32xf32> to vector<8x32xf32>
    %1200 = arith.addf %1196, %1199 : vector<8x32xf32>
    %cst_878 = arith.constant dense<0.000000e+00> : vector<8xf32>
    %1201 = vector.multi_reduction <add>, %1186, %cst_878 [1] : vector<8x32xf32> to vector<8xf32>
    %1202 = vector.shape_cast %1201 : vector<8xf32> to vector<8x1xf32>
    %cst_879 = arith.constant 3.200000e+01 : f32
    %1203 = vector.broadcast %cst_879 : f32 to vector<8x1xf32>
    %1204 = arith.divf %1202, %1203 : vector<8x1xf32>
    %1205 = vector.broadcast %1204 : vector<8x1xf32> to vector<8x32xf32>
    %1206 = arith.subf %1186, %1205 : vector<8x32xf32>
    %1207 = arith.mulf %1206, %1206 : vector<8x32xf32>
    %cst_880 = arith.constant dense<0.000000e+00> : vector<8xf32>
    %1208 = vector.multi_reduction <add>, %1207, %cst_880 [1] : vector<8x32xf32> to vector<8xf32>
    %1209 = vector.shape_cast %1208 : vector<8xf32> to vector<8x1xf32>
    %cst_881 = arith.constant 3.200000e+01 : f32
    %1210 = vector.broadcast %cst_881 : f32 to vector<8x1xf32>
    %1211 = arith.divf %1209, %1210 : vector<8x1xf32>
    %1212 = vector.broadcast %1204 : vector<8x1xf32> to vector<8x32xf32>
    %1213 = arith.subf %1186, %1212 : vector<8x32xf32>
    %cst_882 = arith.constant 9.99999997E-7 : f32
    %1214 = vector.broadcast %cst_882 : f32 to vector<8x1xf32>
    %1215 = arith.addf %1211, %1214 : vector<8x1xf32>
    %1216 = math.rsqrt %1215 : vector<8x1xf32>
    %1217 = vector.broadcast %1216 : vector<8x1xf32> to vector<8x32xf32>
    %1218 = arith.mulf %1213, %1217 : vector<8x32xf32>
    %cst_883 = arith.constant 1.000000e+00 : f32
    %1219 = vector.broadcast %cst_883 : f32 to vector<8x32xf32>
    %1220 = arith.addf %1219, %1200 : vector<8x32xf32>
    %1221 = arith.mulf %1218, %1220 : vector<8x32xf32>
    %1222 = arith.addf %1221, %1193 : vector<8x32xf32>
    %c0_884 = arith.constant 0 : index
    %c0_885 = arith.constant 0 : index
    %1223 = vector.load %arg57[%c0_884, %c0_885] : memref<32x20xf32, #tpu.memory_space<vmem>>, vector<32x20xf32>
    %cst_886 = arith.constant dense<0.000000e+00> : vector<8x20xf32>
    %1224 = tpu.matmul %1222, %1223, %cst_886 {dimension_numbers = #tpu.dot_dimension_numbers<[1], [0], [0], [1], [0, 0, 1, 1], [], []>} : vector<8x32xf32>, vector<32x20xf32>, vector<8x20xf32> -> vector<8x20xf32>
    %c0_887 = arith.constant 0 : index
    %c0_888 = arith.constant 0 : index
    %1225 = vector.load %arg58[%c0_887, %c0_888] : memref<1x20xf32, #tpu.memory_space<vmem>>, vector<1x20xf32>
    %1226 = vector.broadcast %1225 : vector<1x20xf32> to vector<8x20xf32>
    %1227 = arith.addf %1224, %1226 : vector<8x20xf32>
    %c0_889 = arith.constant 0 : index
    %c0_890 = arith.constant 0 : index
    %1228 = vector.load %arg59[%c0_889, %c0_890] : memref<8x20xf32, #tpu.memory_space<vmem>>, vector<8x20xf32>
    tpu.vector_store %arg59[%c0_889, %c0_890], %1227 {strides = array<i32>} : memref<8x20xf32, #tpu.memory_space<vmem>>, vector<8x20xf32>,
    return
  }
}

</mosaic_0001>

<bundles_post_ra>
// kernel: dit_forward.1
= control target key start
LH: loop header
LB: loop body
LE: loop exit
PB: predicated region body
PF: predicated region fallthrough
CT: control target
= control target key end

     0   :  { %s17301_s6 = smov 1   ;;  %s17302_s10 = smov 2   ;;  %s20130_s0 = inlined_call_operand.smem [shape: u32[60], index: -1, kind: input, shape index: {}] }
   0x1   :  { %s17376_s5 = sld [smem:[%s20130_s0]]   ;;  %s17303_s14 = smov 3  }
   0x2   :  { %s17381_s9 = sld [smem:[%s20130_s0 + %s17301_s6]]   ;;  %s17304_s18 = smov 4  }
   0x3   :  { %s17386_s13 = sld [smem:[%s20130_s0 + %s17302_s10]]   ;;  %s17305_s22 = smov 5  }
   0x4   :  { %s17391_s17 = sld [smem:[%s20130_s0 + %s17303_s14]]   ;;  %s17306_s26 = smov 6  }
   0x5   :  { %s17396_s21 = sld [smem:[%s20130_s0 + %s17304_s18]]   ;;  %s17307_s30 = smov 7  }
   0x6   :  { %s17401_s25 = sld [smem:[%s20130_s0 + %s17305_s22]]   ;;  %s17308_s4 = smov 8  }
   0x7   :  { %s17406_s29 = sld [smem:[%s20130_s0 + %s17306_s26]]   ;;  %s17309_s10 = smov 9  }
   0x8   :  { %s17411_s3 = sld [smem:[%s20130_s0 + %s17307_s30]]   ;;  %s17310_s15 = smov 10  }
   0x9   :  { %s17416_s8 = sld [smem:[%s20130_s0 + %s17308_s4]]   ;;  %s17311_s20 = smov 11  }
   0xa   :  { %20197 = sst [smem:[#allocation18_spill]] %s17391_s17  ;;  %s17312_s26 = smov 12  }
   0xb   :  { %s17421_s14 = sld [smem:[%s20130_s0 + %s17309_s10]]   ;;  %s17313_s1 = smov 13  }
   0xc   :  { %s17426_s19 = sld [smem:[%s20130_s0 + %s17310_s15]]   ;;  %s17314_s7 = smov 14  }
   0xd   :  { %s17431_s24 = sld [smem:[%s20130_s0 + %s17311_s20]]   ;;  %s17315_s15 = smov 15  }
   0xe   :  { %s17436_s30 = sld [smem:[%s20130_s0 + %s17312_s26]]   ;;  %s17316_s22 = smov 16  }
   0xf   :  { %s17441_s6 = sld [smem:[%s20130_s0 + %s17313_s1]]   ;;  %s17317_s28 = smov 17  }
  0x10   :  { %s17446_s12 = sld [smem:[%s20130_s0 + %s17314_s7]]   ;;  %s17318_s7 = smov 18  }
  0x11   :  { %20198 = sst [smem:[#allocation19_spill]] %s17421_s14 }
  0x12   :  { %s17451_s20 = sld [smem:[%s20130_s0 + %s17315_s15]]   ;;  %s17319_s15 = smov 19  }
  0x13   :  { %20199 = sst [smem:[#allocation20_spill]] %s17431_s24 }
  0x14   :  { %20200 = sst [smem:[#allocation21_spill]] %s17436_s30 }
  0x15   :  { %20201 = sst [smem:[#allocation22_spill]] %s17441_s6 }
  0x16   :  { %20202 = sst [smem:[#allocation23_spill]] %s17446_s12 }
  0x17   :  { %s17456_s27 = sld [smem:[%s20130_s0 + %s17316_s22]]   ;;  %s17320_s22 = smov 20  }
  0x18   :  { %20203 = sst [smem:[#allocation24_spill]] %s17451_s20 }
  0x19   :  { %s17461_s4 = sld [smem:[%s20130_s0 + %s17317_s28]]   ;;  %s17321_s28 = smov 21  }
  0x1a   :  { %s17466_s17 = sld [smem:[%s20130_s0 + %s17318_s7]]   ;;  %s17322_s7 = smov 22  }
  0x1b   :  { %s17471_s6 = sld [smem:[%s20130_s0 + %s17319_s15]]   ;;  %s17323_s15 = smov 23  }
  0x1c   :  { %s17476_s30 = sld [smem:[%s20130_s0 + %s17320_s22]]   ;;  %s17324_s22 = smov 24  }
  0x1d   :  { %20204 = sst [smem:[#allocation25_spill]] %s17456_s27 }
  0x1e   :  { %s17481_s20 = sld [smem:[%s20130_s0 + %s17321_s28]]   ;;  %s17325_s28 = smov 25  }
  0x1f   :  { %20205 = sst [smem:[#allocation26_spill]] %s17461_s4 }
  0x20   :  { %20206 = sst [smem:[#allocation27_spill]] %s17466_s17 }
  0x21   :  { %20207 = sst [smem:[#allocation28_spill]] %s17471_s6 }
  0x22   :  { %20208 = sst [smem:[#allocation29_spill]] %s17476_s30 }
  0x23   :  { %s17486_s17 = sld [smem:[%s20130_s0 + %s17322_s7]]   ;;  %s17326_s7 = smov 26  }
  0x24   :  { %20209 = sst [smem:[#allocation30_spill]] %s17481_s20 }
  0x25   :  { %s17491_s6 = sld [smem:[%s20130_s0 + %s17323_s15]]   ;;  %s17327_s15 = smov 27  }
  0x26   :  { %s17496_s30 = sld [smem:[%s20130_s0 + %s17324_s22]]   ;;  %s17328_s22 = smov 28  }
  0x27   :  { %s17501_s20 = sld [smem:[%s20130_s0 + %s17325_s28]]   ;;  %s17329_s28 = smov 29  }
  0x29   :  { %20210 = sst [smem:[#allocation31_spill]] %s17486_s17 }
  0x2a   :  { %s17506_s17 = sld [smem:[%s20130_s0 + %s17326_s7]]   ;;  %s17330_s7 = smov 30  }
  0x2b   :  { %20211 = sst [smem:[#allocation32_spill]] %s17491_s6 }
  0x2c   :  { %20212 = sst [smem:[#allocation33_spill]] %s17496_s30 }
  0x2d   :  { %20213 = sst [smem:[#allocation34_spill]] %s17501_s20 }
  0x2e   :  { %s17511_s6 = sld [smem:[%s20130_s0 + %s17327_s15]]   ;;  %s17331_s15 = smov 31  }
  0x2f   :  { %s17516_s30 = sld [smem:[%s20130_s0 + %s17328_s22]]   ;;  %s17332_s22 = smov 32  }
  0x30   :  { %20214 = sst [smem:[#allocation35_spill]] %s17506_s17 }
  0x31   :  { %s17521_s20 = sld [smem:[%s20130_s0 + %s17329_s28]]   ;;  %s17333_s28 = smov 33  }
  0x32   :  { %s17526_s17 = sld [smem:[%s20130_s0 + %s17330_s7]]   ;;  %s17334_s7 = smov 34  }
  0x34   :  { %20215 = sst [smem:[#allocation36_spill]] %s17511_s6 }
  0x35   :  { %20216 = sst [smem:[#allocation37_spill]] %s17516_s30 }
  0x36   :  { %s17531_s6 = sld [smem:[%s20130_s0 + %s17331_s15]]   ;;  %s17335_s15 = smov 35  }
  0x37   :  { %20217 = sst [smem:[#allocation38_spill]] %s17521_s20 }
  0x38   :  { %20218 = sst [smem:[#allocation39_spill]] %s17526_s17 }
  0x39   :  { %s17536_s30 = sld [smem:[%s20130_s0 + %s17332_s22]]   ;;  %s17336_s22 = smov 36  }
  0x3a   :  { %s17541_s20 = sld [smem:[%s20130_s0 + %s17333_s28]]   ;;  %s17337_s28 = smov 37  }
  0x3b   :  { %s17546_s17 = sld [smem:[%s20130_s0 + %s17334_s7]]   ;;  %s17338_s7 = smov 38  }
  0x3c   :  { %20219 = sst [smem:[#allocation40_spill]] %s17531_s6 }
  0x3d   :  { %s17551_s6 = sld [smem:[%s20130_s0 + %s17335_s15]]   ;;  %s17339_s15 = smov 39  }
  0x3f   :  { %20220 = sst [smem:[#allocation41_spill]] %s17536_s30 }
  0x40   :  { %20221 = sst [smem:[#allocation42_spill]] %s17541_s20 }
  0x41   :  { %20222 = sst [smem:[#allocation43_spill]] %s17546_s17 }
  0x42   :  { %s17556_s30 = sld [smem:[%s20130_s0 + %s17336_s22]]   ;;  %s17340_s22 = smov 40  }
  0x43   :  { %20223 = sst [smem:[#allocation44_spill]] %s17551_s6 }
  0x44   :  { %s17561_s20 = sld [smem:[%s20130_s0 + %s17337_s28]]   ;;  %s17341_s28 = smov 41  }
  0x45   :  { %s17566_s17 = sld [smem:[%s20130_s0 + %s17338_s7]]   ;;  %s17342_s7 = smov 42  }
  0x46   :  { %s17571_s6 = sld [smem:[%s20130_s0 + %s17339_s15]]   ;;  %s17343_s15 = smov 43  }
  0x47   :  { %s17586_s12 = sld [smem:[%s20130_s0 + %s17342_s7]]   ;;  %s17346_s7 = smov 46  }
  0x48   :  { %20224 = sst [smem:[#allocation45_spill]] %s17556_s30 }
  0x49   :  { %s17576_s30 = sld [smem:[%s20130_s0 + %s17340_s22]]   ;;  %s17344_s22 = smov 44  }
  0x4a   :  { %20225 = sst [smem:[#allocation46_spill]] %s17561_s20 }
  0x4b   :  { %s17581_s20 = sld [smem:[%s20130_s0 + %s17341_s28]]   ;;  %s17345_s28 = smov 45  }
  0x4c   :  { %20226 = sst [smem:[#allocation47_spill]] %s17571_s6 }
  0x4d   :  { %20228 = sst [smem:[#allocation49_spill]] %s17586_s12 }
  0x4e   :  { %s17591_s6 = sld [smem:[%s20130_s0 + %s17343_s15]]   ;;  %s17347_s15 = smov 47  }
  0x4f   :  { %s17596_s4 = sld [smem:[%s20130_s0 + %s17344_s22]]   ;;  %s17348_s22 = smov 48  }
  0x50   :  { %s17606_s12 = sld [smem:[%s20130_s0 + %s17346_s7]]   ;;  %s17350_s7 = smov 50  }
  0x51   :  { %20227 = sst [smem:[#allocation48_spill]] %s17581_s20 }
  0x52   :  { %s17601_s20 = sld [smem:[%s20130_s0 + %s17345_s28]]   ;;  %s17349_s28 = smov 49  }
  0x54   :  { %20229 = sst [smem:[#allocation50_spill]] %s17591_s6 }
  0x55   :  { %20230 = sst [smem:[#allocation51_spill]] %s17596_s4 }
  0x56   :  { %20232 = sst [smem:[#allocation53_spill]] %s17606_s12 }
  0x57   :  { %s17611_s6 = sld [smem:[%s20130_s0 + %s17347_s15]]   ;;  %s17351_s15 = smov 51  }
  0x58   :  { %20231 = sst [smem:[#allocation52_spill]] %s17601_s20 }
  0x59   :  { %s17616_s4 = sld [smem:[%s20130_s0 + %s17348_s22]]   ;;  %s17352_s22 = smov 52  }
  0x5a   :  { %s17621_s20 = sld [smem:[%s20130_s0 + %s17349_s28]]   ;;  %s17353_s28 = smov 53  }
  0x5b   :  { %s17626_s12 = sld [smem:[%s20130_s0 + %s17350_s7]]   ;;  %s17354_s7 = smov 54  }
  0x5c   :  { %s17646_s27 = sld [smem:[%s20130_s0 + %s17354_s7]]   ;;  %s17358_s7 = smov 58  }
  0x5d   :  { %20233 = sst [smem:[#allocation54_spill]] %s17611_s6 }
  0x5e   :  { %s17631_s6 = sld [smem:[%s20130_s0 + %s17351_s15]]   ;;  %s17355_s15 = smov 55  }
  0x5f   :  { %20234 = sst [smem:[#allocation55_spill]] %s17616_s4 }
  0x60   :  { %20235 = sst [smem:[#allocation56_spill]] %s17621_s20 }
  0x61   :  { %s17636_s4 = sld [smem:[%s20130_s0 + %s17352_s22]]   ;;  %s17356_s22 = smov 56  }
  0x62   :  { %s17641_s20 = sld [smem:[%s20130_s0 + %s17353_s28]]   ;;  %s17357_s28 = smov 57  }
  0x63   :  { %s17656_s24 = sld [smem:[%s20130_s0 + %s17356_s22]]  }
  0x64   :  { %20236 = sst [smem:[#allocation57_spill]] %s17631_s6 }
  0x65   :  { %s17651_s6 = sld [smem:[%s20130_s0 + %s17355_s15]]   ;;  %s17359_s15 = smov 59  }
  0x66   :  { %s17666_s14 = sld [smem:[%s20130_s0 + %s17358_s7]]  }
  0x68   :  { %20237 = sst [smem:[#allocation58_spill]] %s17641_s20 }
  0x69   :  { %s17661_s20 = sld [smem:[%s20130_s0 + %s17357_s28]]  }
  0x6b   :  { %20238 = sst [smem:[#allocation59_spill]] %s17651_s6 }
  0x6c   :  { %s17671_s6 = sld [smem:[%s20130_s0 + %s17359_s15]]  }
  0x6d   :  { %124 = vsyncpa [#allocation5], 0 }
  0x6e   :  { %125 = vsyncpa [#allocation7], 0 }
  0x6f   :  { %126 = vsyncpa [#allocation10], 0 }
  0x70   :  { %127 = vsyncpa [#allocation13], 0  ;;  %s17360_s22 = smov [#allocation6]   ;;  %s17361_s26 = smov [#allocation9]  }
  0x71   :  { %s222_s23 = sshll.u32 %s17360_s22, 4  ;;  %s262_s28 = sshll.u32 %s17361_s26, 4  ;;  %s223_s23 = int_to_ptr.vmem [resolvable:$true] %s222_s23  ;;  %s263_s28 = int_to_ptr.vmem [resolvable:$true] %s262_s28 }
  0x72   :  { %s17181_s1 = scalar_lea.vmem %s223_s23, 16  ;;  %s17185_s2 = scalar_lea.vmem %s223_s23, 32 }
  0x73   :  { %p17182_p0 = scmp.ne.s32.totalorder %s223_s23, %s17181_s1  ;;  %p17186_p1 = scmp.lt.s32.totalorder %s223_s23, %s223_s23 }
  0x74   :  { %p17187_p2 = scmp.lt.s32.totalorder %s17185_s2, %s17181_s1 }
  0x76   :  { %p17188_p3 = por %p17187_p2, %p17186_p1 }
  0x78   :  { %p17189_p4 = pnand %p17188_p3, %p17182_p0 }
  0x7a   :  { %17192 = shalt.err (!%p17189_p4)
}
  0x7b   :  { %225 = dma.hbm_to_vmem [thread:$0]  %s17576_s30, 16, %s223_s23, [#allocation7]  }
  0x7c   :  { %s17201_s0 = scalar_lea.vmem %s263_s28, 16  ;;  %s17205_s7 = scalar_lea.vmem %s263_s28, 32 }
  0x7d   :  { %p17202_p5 = scmp.ne.s32.totalorder %s263_s28, %s17201_s0  ;;  %p17206_p6 = scmp.lt.s32.totalorder %s263_s28, %s263_s28 }
  0x7e   :  { %p17207_p7 = scmp.lt.s32.totalorder %s17205_s7, %s17201_s0 }
  0x80   :  { %p17208_p8 = por %p17207_p7, %p17206_p6 }
  0x82   :  { %p17209_p9 = pnand %p17208_p8, %p17202_p5 }
  0x84   :  { %17212 = shalt.err (!%p17209_p9)
}
  0x85   :  { %265 = dma.hbm_to_vmem [thread:$0]  %s17636_s4, 16, %s263_s28, [#allocation10]  }
  0x86   :  { %s17362_s10 = smov [#allocation4]   ;;  %s17363_s15 = smov [#allocation8]  }
  0x87   :  { %s210_s11 = sshll.u32 %s17362_s10, 4  ;;  %s250_s16 = sshll.u32 %s17363_s15, 4  ;;  %s211_s11 = int_to_ptr.vmem [resolvable:$true] %s210_s11  ;;  %s251_s16 = int_to_ptr.vmem [resolvable:$true] %s250_s16 }
  0x88   :  { %s17221_s18 = scalar_lea.vmem %s211_s11, 16  ;;  %s17225_s22 = scalar_lea.vmem %s211_s11, 32 }
  0x89   :  { %p17222_p10 = scmp.ne.s32.totalorder %s211_s11, %s17221_s18  ;;  %p17226_p11 = scmp.lt.s32.totalorder %s211_s11, %s211_s11 }
  0x8a   :  { %p17227_p12 = scmp.lt.s32.totalorder %s17225_s22, %s17221_s18 }
  0x8c   :  { %p17228_p13 = por %p17227_p12, %p17226_p11 }
  0x8e   :  { %p17229_p0 = pnand %p17228_p13, %p17222_p10 }
  0x90   :  { %17232 = shalt.err (!%p17229_p0)
}
  0x91   :  { %213 = dma.hbm_to_vmem [thread:$0]  %s17566_s17, 16, %s211_s11, [#allocation5]  }
  0x92   :  { %s17241_s30 = scalar_lea.vmem %s251_s16, 16  ;;  %s17245_s23 = scalar_lea.vmem %s251_s16, 32 }
  0x93   :  { %p17242_p1 = scmp.ne.s32.totalorder %s251_s16, %s17241_s30  ;;  %p17246_p2 = scmp.lt.s32.totalorder %s251_s16, %s251_s16 }
  0x94   :  { %p17247_p3 = scmp.lt.s32.totalorder %s17245_s23, %s17241_s30 }
  0x96   :  { %p17248_p4 = por %p17247_p3, %p17246_p2 }
  0x98   :  { %p17249_p5 = pnand %p17248_p4, %p17242_p1 }
  0x9a   :  { %17252 = shalt.err (!%p17249_p5)
}
  0x9b   :  { %253 = dma.hbm_to_vmem [thread:$0]  %s17626_s12, 16, %s251_s16, [#allocation7]  }
  0x9c   :  { %s17364_s4 = smov [#allocation11]   ;;  %s17365_s28 = smov [#allocation12]  }
  0x9d   :  { %s274_s26 = sshll.u32 %s17364_s4, 4  ;;  %s290_s1 = sshll.u32 %s17365_s28, 4  ;;  %s275_s26 = int_to_ptr.vmem [resolvable:$true] %s274_s26  ;;  %s291_s1 = int_to_ptr.vmem [resolvable:$true] %s290_s1 }
  0x9e   :  { %s17261_s2 = scalar_lea.vmem %s275_s26, 16  ;;  %s17265_s0 = scalar_lea.vmem %s275_s26, 32 }
  0x9f   :  { %p17262_p6 = scmp.ne.s32.totalorder %s275_s26, %s17261_s2  ;;  %p17266_p7 = scmp.lt.s32.totalorder %s275_s26, %s275_s26 }
  0xa0   :  { %p17267_p8 = scmp.lt.s32.totalorder %s17265_s0, %s17261_s2 }
  0xa2   :  { %p17268_p9 = por %p17267_p8, %p17266_p7 }
  0xa4   :  { %p17269_p10 = pnand %p17268_p9, %p17262_p6 }
  0xa6   :  { %17272 = shalt.err (!%p17269_p10)
}
  0xa7   :  { %277 = dma.hbm_to_vmem [thread:$0]  %s17646_s27, 16, %s275_s26, [#allocation10]  }
  0xa8   :  { %s17281_s17 = scalar_lea.vmem %s291_s1, 16  ;;  %s17285_s7 = scalar_lea.vmem %s291_s1, 32 }
  0xa9   :  { %p17282_p11 = scmp.ne.s32.totalorder %s291_s1, %s17281_s17  ;;  %p17286_p12 = scmp.lt.s32.totalorder %s291_s1, %s291_s1 }
  0xaa   :  { %p17287_p13 = scmp.lt.s32.totalorder %s17285_s7, %s17281_s17 }
  0xac   :  { %p17288_p0 = por %p17287_p13, %p17286_p12 }
  0xae   :  { %p17289_p1 = pnand %p17288_p0, %p17282_p11 }
  0xb0   :  { %17292 = shalt.err (!%p17289_p1)
}
  0xb1   :  { %293 = dma.hbm_to_vmem [thread:$0]  %s17666_s14, 16, %s291_s1, [#allocation13]  }
  0xb2   :  { %17293 = dma.done.wait [#allocation5], 16  }
  0xb3   :  { %17294 = vsyncadd [#allocation5], 4294967280 }
  0xb4   :  { %17295 = dma.done.wait [#allocation7], 32  }
  0xb5   :  { %17296 = vsyncadd [#allocation7], 4294967264 }
  0xb6   :  { %17297 = dma.done.wait [#allocation10], 32  }
  0xb7   :  { %17298 = vsyncadd [#allocation10], 4294967264 }
  0xb8   :  { %17299 = dma.done.wait [#allocation13], 16  }
  0xb9   :  { %17300 = vsyncadd [#allocation13], 4294967280  ;;  %v17366_v0 = vmov 0.0   ;;  %vm17367_vm0 = vmmov 0   ;;  %vm327_vm1 = vcmask 1043456   ;;  %v314_v2 = vld [vmem:[%s17396_s21 + $0x8] sm:$0xff] }
  0xba   :  { %15450 = vmatprep.subr.mxu0 %v17366_v0  ;;  %15456 = vmatprep.mubr.msk.f32.mxu0 %vm17367_vm0, %v17366_v0  ;;  %v315_v1 = vld [vmem:[%s17396_s21 + $0x10] sm:$0xf]  ;;  %v419_v3 = vld [vmem:[%s17406_s29 + $0x78] sm:$0xff]  ;;  %v313_v4 = vld [vmem:[%s17396_s21] sm:$0xff]  ;;  %vm323_vm2 = vcmask 162816   ;;  %vm595_vm3 = vcmask 254976  }
  0xbb   :  { %15459 = vmatprep.subr.mxu1 %v17366_v0  ;;  %15491 = vmatprep.mubr.msk.f32.mxu1 %vm17367_vm0, %v17366_v0  ;;  %v418_v5 = vld [vmem:[%s17406_s29 + $0x70] sm:$0xff]  ;;  %v312_v6 = vld [vmem:[%s17376_s5] sm:$0xff]  ;;  %v514_v7 = vld [vmem:[%s17416_s8 + $0x78] sm:$0xff]  ;;  %s20239_s5 = sld [smem:[#allocation19_spill]]  ;;  %vm610_vm4 = vcmask 261120   ;;  %vm659_vm5 = vcmask 253952  }
  0xbc   :  { %15451 = vmatpush3.msk.msra.mxu0 %vm327_vm1, %v315_v1  ;;  %15460 = vmatpush3.msra.mxu1 %v419_v3  ;;  %v417_v8 = vld [vmem:[%s17406_s29 + $0x68] sm:$0xff]  ;;  %v513_v9 = vld [vmem:[%s17416_s8 + $0x70] sm:$0xff]  ;;  %v416_v10 = vld [vmem:[%s17406_s29 + $0x60] sm:$0xff]  ;;  %s20244_s21 = sld [smem:[#allocation26_spill]]  ;;  %vm661_vm6 = vcmask 257024   ;;  %vm2532_vm7 = vcmask 254977  }
  0xbd   :  { %15452 = vmatprep.subr.mxu0 %v17366_v0  ;;  %15461 = vmatprep.subr.mxu1 %v17366_v0  ;;  %v512_v11 = vld [vmem:[%s17416_s8 + $0x68] sm:$0xff]  ;;  %v415_v12 = vld [vmem:[%s17406_s29 + $0x58] sm:$0xff]  ;;  %v511_v13 = vld [vmem:[%s17416_s8 + $0x60] sm:$0xff]  ;;  %s20249_s14 = sld [smem:[#allocation27_spill]]  ;;  %vm2534_vm8 = vcmask 261124   ;;  %vm892_vm9 = vcmask 64512  }
  0xbe   :  { %15453 = vmatpush3.msra.mxu0 %v314_v2  ;;  %15462 = vmatpush3.msra.mxu1 %v418_v5  ;;  %v414_v14 = vld [vmem:[%s17406_s29 + $0x50] sm:$0xff]  ;;  %v510_v15 = vld [vmem:[%s17416_s8 + $0x58] sm:$0xff]  ;;  %v413_v16 = vld [vmem:[%s17406_s29 + $0x48] sm:$0xff]  ;;  %vm985_vm10 = vcmask 1044480   ;;  %vm969_vm11 = vcmask 35840   ;;  %vm981_vm12 = vcmask 39936  }
  0xbf   :  { %15454 = vmatprep.subr.mxu0 %v17366_v0  ;;  %15463 = vmatprep.subr.mxu1 %v17366_v0  ;;  %v509_v17 = vld [vmem:[%s17416_s8 + $0x50] sm:$0xff]  ;;  %v412_v18 = vld [vmem:[%s17406_s29 + $0x40] sm:$0xff]  ;;  %v508_v19 = vld [vmem:[%s17416_s8 + $0x48] sm:$0xff]  ;;  %s20253_s12 = sld [smem:[#allocation29_spill]]  ;;  %vm5447_vm13 = vcmask 27648   ;;  %vm5459_vm14 = vcmask 31744  }
  0xc0   :  { %15455 = vmatpush3.msra.mxu0 %v313_v4  ;;  %15464 = vmatpush3.msra.mxu1 %v417_v8  ;;  %v411_v20 = vld [vmem:[%s17406_s29 + $0x38] sm:$0xff]  ;;  %v507_v21 = vld [vmem:[%s17416_s8 + $0x40] sm:$0xff]  ;;  %v410_v22 = vld [vmem:[%s17406_s29 + $0x30] sm:$0xff]  ;;  %s20257_s27 = sld [smem:[#allocation32_spill]] }
  0xc1   :  { %15457 = vmatmul.mubr.msk.f32.vlgmr.msra.gmra.mxu0 %vm323_vm2, %v312_v6  ;;  %15494 = vmatprep.subr.mxu0 %v17366_v0  ;;  %v506_v23 = vld [vmem:[%s17416_s8 + $0x38] sm:$0xff]  ;;  %v409_v24 = vld [vmem:[%s17406_s29 + $0x28] sm:$0xff]  ;;  %v505_v25 = vld [vmem:[%s17416_s8 + $0x30] sm:$0xff]  ;;  %s20259_s10 = sld [smem:[#allocation30_spill]] }
  0xc2   :  { %15495 = vmatpush3.msra.mxu0 %v514_v7  ;;  %15465 = vmatprep.subr.mxu1 %v17366_v0  ;;  %v408_v26 = vld [vmem:[%s17406_s29 + $0x20] sm:$0xff]  ;;  %v504_v27 = vld [vmem:[%s17416_s8 + $0x28] sm:$0xff]  ;;  %v407_v28 = vld [vmem:[%s17406_s29 + $0x18] sm:$0xff]  ;;  %s20260_s11 = sld [smem:[#allocation31_spill]] }
  0xc3   :  { %15496 = vmatprep.subr.mxu0 %v17366_v0  ;;  %15466 = vmatpush3.msra.mxu1 %v416_v10  ;;  %v503_v29 = vld [vmem:[%s17416_s8 + $0x20] sm:$0xff]  ;;  %v406_v30 = vld [vmem:[%s17406_s29 + $0x10] sm:$0xff]  ;;  %v502_v31 = vld [vmem:[%s17416_s8 + $0x18] sm:$0xff]  ;;  %s20261_s15 = sld [smem:[#allocation34_spill]] }
  0xc4   :  { %15497 = vmatpush3.msra.mxu0 %v513_v9  ;;  %15467 = vmatprep.subr.mxu1 %v17366_v0  ;;  %v405_v32 = vld [vmem:[%s17406_s29 + $0x8] sm:$0xff]  ;;  %v501_v33 = vld [vmem:[%s17416_s8 + $0x10] sm:$0xff]  ;;  %v404_v34 = vld [vmem:[%s17406_s29] sm:$0xff]  ;;  %s20246_s29 = sld [smem:[#allocation24_spill]] }
  0xc5   :  { %15498 = vmatprep.subr.mxu0 %v17366_v0  ;;  %15468 = vmatpush3.msra.mxu1 %v415_v12  ;;  %v500_v35 = vld [vmem:[%s17416_s8 + $0x8] sm:$0xff]  ;;  %v403_v36 = vld [vmem:[%s17381_s9] sm:$0xff]  ;;  %s20240_s9 = sld [smem:[#allocation20_spill]]  ;;  %v17800_v9 = vld [vmem:[%s20244_s21 + $0x18] sm:$0xff] }
  0xc6   :  { %15499 = vmatpush3.msra.mxu0 %v512_v11  ;;  %15469 = vmatprep.subr.mxu1 %v17366_v0  ;;  %v499_v37 = vld [vmem:[%s17416_s8] sm:$0xff]  ;;  %v17805_v10 = vld [vmem:[%s20244_s21 + $0x10] sm:$0xff]  ;;  %v17810_v11 = vld [vmem:[%s20244_s21 + $0x8] sm:$0xff]  ;;  %s20248_s8 = sld [smem:[#allocation22_spill]] }
  0xc7   :  { %15500 = vmatprep.subr.mxu0 %v17366_v0  ;;  %15470 = vmatpush3.msra.mxu1 %v414_v14  ;;  %v498_v38 = vld [vmem:[%s17386_s13] sm:$0x3]  ;;  %s20243_s13 = sld [smem:[#allocation25_spill]] }
  0xc8   :  { %15501 = vmatpush3.msra.mxu0 %v511_v13  ;;  %15471 = vmatprep.subr.mxu1 %v17366_v0  ;;  %v14148_v39 = vld [vmem:[%s17401_s25] ss:$0 sm:$0xff]  ;;  %s20245_s25 = sld [smem:[#allocation23_spill]] }
  0xc9   :  { %15502 = vmatprep.subr.mxu0 %v17366_v0  ;;  %15472 = vmatpush3.msra.mxu1 %v413_v16  ;;  %v401_v41 = vld [vmem:[%s17426_s19] sm:$0xff]  ;;  %s20250_s19 = sld [smem:[#allocation28_spill]] }
  0xca   :  { %15503 = vmatpush3.msra.mxu0 %v510_v15  ;;  %15473 = vmatprep.subr.mxu1 %v17366_v0  ;;  %v14151_v45 = vld [vmem:[%s17411_s3] ss:$0 sm:$0xff]  ;;  %s20247_s3 = sld [smem:[#allocation21_spill]] }
  0xcb   :  { %15504 = vmatprep.subr.mxu0 %v17366_v0  ;;  %15474 = vmatpush3.msra.mxu1 %v412_v18  ;;  %v14152_v47 = vld [vmem:[%s20239_s5] ss:$0 sm:$0xff]  ;;  %s20262_s16 = sld [smem:[#allocation33_spill]] }
  0xcc   :  { %15505 = vmatpush3.msra.mxu0 %v509_v17  ;;  %15475 = vmatprep.subr.mxu1 %v17366_v0  ;;  %v592_v51 = vld [vmem:[%s20240_s9] sm:$0x3]  ;;  %s20263_s18 = sld [smem:[#allocation36_spill]] }
  0xcd   :  { %15506 = vmatprep.subr.mxu0 %v17366_v0  ;;  %15476 = vmatpush3.msra.mxu1 %v411_v20  ;;  %v17780_v5 = vld [vmem:[%s20243_s13 + $0x18] sm:$0xff]  ;;  %v17785_v6 = vld [vmem:[%s20243_s13 + $0x10] sm:$0xff]  ;;  %v17790_v7 = vld [vmem:[%s20243_s13 + $0x8] sm:$0xff]  ;;  %s20264_s22 = sld [smem:[#allocation35_spill]] }
  0xce   :  { %15507 = vmatpush3.msra.mxu0 %v508_v19  ;;  %15477 = vmatprep.subr.mxu1 %v17366_v0  ;;  %v17795_v8 = vld [vmem:[%s20243_s13] sm:$0xff]  ;;  %s20265_s30 = sld [smem:[#allocation18_spill]] }
  0xcf   :  { %15508 = vmatprep.subr.mxu0 %v17366_v0  ;;  %15478 = vmatpush3.msra.mxu1 %v410_v22  ;;  %v17815_v12 = vld [vmem:[%s20244_s21] sm:$0xff]  ;;  %s20267_s23 = sld [smem:[#allocation38_spill]] }
  0xd0   :  { %15509 = vmatpush3.msra.mxu0 %v507_v21  ;;  %15479 = vmatprep.subr.mxu1 %v17366_v0  ;;  %v14155_v20 = vld [vmem:[%s20245_s25] ss:$0 sm:$0xff]  ;;  %s20268_s4 = sld [smem:[#allocation39_spill]] }
  0xd1   :  { %15510 = vmatprep.subr.mxu0 %v17366_v0  ;;  %15480 = vmatpush3.msra.mxu1 %v409_v24  ;;  %v14156_v22 = vld [vmem:[%s20246_s29] ss:$0 sm:$0xff]  ;;  %s20269_s26 = sld [smem:[#allocation37_spill]] }
  0xd2   :  { %15511 = vmatpush3.msra.mxu0 %v506_v23  ;;  %15481 = vmatprep.subr.mxu1 %v17366_v0  ;;  %s20270_s28 = sld [smem:[#allocation40_spill]] }
  0xd3   :  { %15512 = vmatprep.subr.mxu0 %v17366_v0  ;;  %15482 = vmatpush3.msra.mxu1 %v408_v26  ;;  %s20273_s1 = sld [smem:[#allocation42_spill]] }
  0xd4   :  { %15513 = vmatpush3.msra.mxu0 %v505_v25  ;;  %15483 = vmatprep.subr.mxu1 %v17366_v0  ;;  %v14153_v25 = vld [vmem:[%s20247_s3] ss:$0 sm:$0xff]  ;;  %s20274_s2 = sld [smem:[#allocation41_spill]] }
  0xd5   :  { %15514 = vmatprep.subr.mxu0 %v17366_v0  ;;  %15484 = vmatpush3.msra.mxu1 %v407_v28  ;;  %v14154_v28 = vld [vmem:[%s20248_s8] ss:$0 sm:$0xff]  ;;  %s20276_s0 = sld [smem:[#allocation43_spill]] }
  0xd6   :  { %15515 = vmatpush3.msra.mxu0 %v504_v27  ;;  %15485 = vmatprep.subr.mxu1 %v17366_v0  ;;  %s20278_s17 = sld [smem:[#allocation44_spill]] }
  0xd7   :  { %15516 = vmatprep.subr.mxu0 %v17366_v0  ;;  %15486 = vmatpush3.msra.mxu1 %v406_v30  ;;  %s20293_s7 = sld [smem:[#allocation45_spill]] }
  0xd8   :  { %15517 = vmatpush3.msra.mxu0 %v503_v29  ;;  %15487 = vmatprep.subr.mxu1 %v17366_v0  ;;  %s20308_s5 = sld [smem:[#allocation46_spill]] }
  0xd9   :  { %15518 = vmatprep.subr.mxu0 %v17366_v0  ;;  %15488 = vmatpush3.msra.mxu1 %v405_v32  ;;  %s20311_s9 = sld [smem:[#allocation47_spill]] }
  0xda   :  { %15519 = vmatpush3.msra.mxu0 %v502_v31  ;;  %15526 = vmatprep.mubr.msk.f32.mxu0 %vm17367_vm0, %v17366_v0  ;;  %s20321_s25 = sld [smem:[#allocation51_spill]] }
  0xdb   :  { %15520 = vmatprep.subr.mxu0 %v17366_v0  ;;  %15489 = vmatprep.subr.mxu1 %v17366_v0  ;;  %s20324_s29 = sld [smem:[#allocation49_spill]] }
  0xdc   :  { %15521 = vmatpush3.msra.mxu0 %v501_v33  ;;  %15490 = vmatpush3.msra.mxu1 %v404_v34  ;;  %v17826_v33 = vld [vmem:[%s20249_s14 + $0x18] sm:$0xff]  ;;  %v17832_v34 = vld [vmem:[%s20249_s14 + $0x10] sm:$0xff]  ;;  %s20325_s3 = sld [smem:[#allocation52_spill]] }
  0xdd   :  { %15522 = vmatprep.subr.mxu0 %v17366_v0  ;;  %15492 = vmatmul.mubr.f32.vlgmr.msra.gmra.mxu1 %v403_v36  ;;  %v17844_v36 = vld [vmem:[%s20249_s14] sm:$0xff]  ;;  %s20326_s8 = sld [smem:[#allocation54_spill]] }
  0xde   :  { %15523 = vmatpush3.msra.mxu0 %v500_v35  ;;  %15529 = vmatprep.subr.mxu1 %v17366_v0  ;;  %v17839_v35 = vld [vmem:[%s20249_s14 + $0x8] sm:$0xff] }
  0xdf   :  { %15524 = vmatprep.subr.mxu0 %v17366_v0  ;;  %15537 = vmatprep.mubr.msk.f32.mxu1 %vm17367_vm0, %v17366_v0 }
  0xe0   :  { %15525 = vmatpush3.msra.mxu0 %v499_v37  ;;  %15530 = vmatpush3.msra.mxu1 %v17780_v5 }
  0xe1   :  { %15527 = vmatmul.mubr.f32.vlgmr.msra.gmra.mxu0 %v498_v38  ;;  %15540 = vmatprep.subr.mxu0 %v17366_v0 }
  0xe2   :  { %15548 = vmatprep.mubr.msk.f32.mxu0 %vm17367_vm0, %v17366_v0  ;;  %15531 = vmatprep.subr.mxu1 %v17366_v0 }
  0xe3   :  { %15532 = vmatpush3.msra.mxu1 %v17785_v6  ;;  %15541 = vmatpush3.msra.mxu0 %v17800_v9 }
  0xe4   :  { %15533 = vmatprep.subr.mxu1 %v17366_v0  ;;  %15542 = vmatprep.subr.mxu0 %v17366_v0 }
  0xe5   :  { %15534 = vmatpush3.msra.mxu1 %v17790_v7  ;;  %15543 = vmatpush3.msra.mxu0 %v17805_v10 }
  0xe6   :  { %15535 = vmatprep.subr.mxu1 %v17366_v0  ;;  %15544 = vmatprep.subr.mxu0 %v17366_v0 }
  0xe7   :  { %15536 = vmatpush3.msra.mxu1 %v17795_v8  ;;  %15545 = vmatpush3.msra.mxu0 %v17810_v11 }
  0xe8   :  { %15551 = vmatprep.subr.mxu1 %v17366_v0  ;;  %15546 = vmatprep.subr.mxu0 %v17366_v0 }
  0xe9   :  { %15547 = vmatpush3.msra.mxu0 %v17815_v12 }
  0xea   :  { %15562 = vmatprep.subr.mxu0 %v17366_v0 }
 0x181   :  { %v397_v40 = vpop.f32.mrf.mxu0 }
 0x182   :  { %v398_v42 = vadd.f32 %v14148_v39, %v397_v40 }
 0x183   :  { %v15458_v43 = vpop.f32.mrf.mxu0 }
 0x184   :  { %v17768_v44 = vadd.f32 %v401_v41, %v398_v42 }
 0x186   :  { %20241 = vst [vmem:[#allocation60_spill] sm:$0xff] %v17768_v44 }
 0x19d   :  { %v493_v46 = vpop.f32.mrf.mxu1 }
 0x19e   :  { %v494_v48 = vadd.f32 %v14151_v45, %v493_v46  ;;  %v17864_v45 = vld [vmem:[%s20243_s13 + $0x38] sm:$0xff]  ;;  %v17869_v46 = vld [vmem:[%s20243_s13 + $0x30] sm:$0xff] }
 0x19f   :  { %v15493_v49 = vpop.f32.mrf.mxu1 }
 0x1a0   :  { %v17773_v54 = vadd.f32 %v494_v48, %v401_v41  ;;  %v17881_v48 = vld [vmem:[%s20243_s13 + $0x20] sm:$0xff]  ;;  %v17886_v49 = vld [vmem:[%s20249_s14 + $0x38] sm:$0xff] }
 0x1a1   :  { %v588_v50 = vpop.f32.mrf.mxu0 }
 0x1a2   :  { %v589_v52 = vadd.f32 %v14152_v47, %v588_v50  ;;  %20242 = vst [vmem:[#allocation61_spill] sm:$0xff] %v17773_v54  ;;  %v611_v57 = vsel %vm610_vm4, %v17773_v54, 0.0  ;;  %v17876_v47 = vld [vmem:[%s20243_s13 + $0x28] sm:$0xff]  ;;  %v17893_v50 = vld [vmem:[%s20249_s14 + $0x30] sm:$0xff] }
 0x1a3   :  { %v15528_v53 = vpop.f32.mrf.mxu0 }
 0x1a4   :  { %v593_v55 = vadd.f32 %v592_v51, %v589_v52  ;;  %v17900_v51 = vld [vmem:[%s20249_s14 + $0x28] sm:$0xff]  ;;  %v17905_v52 = vld [vmem:[%s20249_s14 + $0x20] sm:$0xff] }
 0x1a6   :  { %v596_v56 = vsel %vm595_vm3, %v593_v55, 0.0 }
 0x1a7   :  { %597 = vadd.xlane.f32.xlu0 %v596_v56 }
 0x1ab   :  { %612 = vadd.xlane.f32.xlu0 %v611_v57 }
 0x230   :  { %v598_v58 = vpop.xlane.xlu0 %597 }
 0x231   :  { %v600_v59 = vmul.f32 0.03125, %v598_v58 }
 0x233   :  { %v601_v60 = vsub.f32 %v593_v55, %v600_v59 }
 0x234   :  { %v613_v61 = vpop.xlane.xlu0 %612 }
 0x235   :  { %v614_v62 = vmul.f32 0.03125, %v613_v61  ;;  %v602_v63 = vmul.f32 %v601_v60, %v601_v60 }
 0x237   :  { %v615_v1 = vsub.f32 %v17773_v54, %v614_v62  ;;  %v603_v2 = vsel %vm595_vm3, %v602_v63, 0.0 }
 0x238   :  { %604 = vadd.xlane.f32.xlu1 %v603_v2 }
 0x239   :  { %v616_v3 = vmul.f32 %v615_v1, %v615_v1 }
 0x23b   :  { %v617_v4 = vsel %vm610_vm4, %v616_v3, 0.0 }
 0x23c   :  { %618 = vadd.xlane.f32.xlu1 %v617_v4 }
 0x2c1   :  { %v605_v13 = vpop.xlane.xlu1 %604 }
 0x2c2   :  { %v606_v14 = vmul.f32 0.03125, %v605_v13 }
 0x2c4   :  { %v607_v15 = vadd.f32 1e-05, %v606_v14  ;;  %v17918_v14 = vld [vmem:[%s20244_s21 + $0x38] sm:$0xff] }
 0x2c5   :  { %v619_v16 = vpop.xlane.xlu1 %618 }
 0x2c6   :  { %17051 = vrsqrt.f32 %v607_v15  ;;  %v620_v17 = vmul.f32 0.03125, %v619_v16  ;;  %v17922_v15 = vld [vmem:[%s20244_s21 + $0x30] sm:$0xff]  ;;  %v17929_v16 = vld [vmem:[%s20244_s21 + $0x28] sm:$0xff] }
 0x2c8   :  { %v621_v18 = vadd.f32 1e-05, %v620_v17  ;;  %v17934_v17 = vld [vmem:[%s20244_s21 + $0x20] sm:$0xff] }
 0x2ca   :  { %17053 = vrsqrt.f32 %v621_v18 }
 0x2d3   :  { %v17052_v19 = vpop.eup %17051 }
 0x2d4   :  { %v609_v21 = vmul.f32 %v17052_v19, %v601_v60 }
 0x2d6   :  { %v656_v23 = vmul.f32 %v14155_v20, %v609_v21 }
 0x2d7   :  { %v17054_v24 = vpop.eup %17053 }
 0x2d8   :  { %v657_v26 = vadd.f32 %v14156_v22, %v656_v23  ;;  %v623_v27 = vmul.f32 %v17054_v24, %v615_v1 }
 0x2da   :  { %660 = vst.msk [vmem:[#allocation2] sm:$0x1] %vm659_vm5, %v657_v26  ;;  %v647_v29 = vmul.f32 %v14155_v20, %v623_v27  ;;  %v631_v30 = vmul.f32 %v14153_v25, %v623_v27 }
 0x2dc   :  { %v655_v31 = vadd.f32 %v14156_v22, %v647_v29  ;;  %v17823_v32 = vadd.f32 %v14154_v28, %v631_v30  ;;  %v17954_v30 = vld [vmem:[%s20250_s19 + $0x8] sm:$0xff] }
 0x2de   :  { %662 = vst.msk [vmem:[#allocation2 + $0x1] sm:$0xf] %vm661_vm6, %v655_v31  ;;  %15538 = vmatmul.mubr.msk.f32.vlgmr.msra.gmra.mxu1 %vm610_vm4, %v17823_v32 }
 0x2df   :  { %15552 = vmatpush3.msra.mxu1 %v17826_v33  ;;  %15559 = vmatprep.mubr.msk.f32.mxu1 %vm17367_vm0, %v17366_v0 }
 0x2e0   :  { %15553 = vmatprep.subr.mxu1 %v17366_v0 }
 0x2e1   :  { %15554 = vmatpush3.msra.mxu1 %v17832_v34 }
 0x2e2   :  { %15555 = vmatprep.subr.mxu1 %v17366_v0 }
 0x2e3   :  { %15556 = vmatpush3.msra.mxu1 %v17839_v35 }
 0x2e4   :  { %15557 = vmatprep.subr.mxu1 %v17366_v0 }
 0x2e5   :  { %15558 = vmatpush3.msra.mxu1 %v17844_v36  ;;  %v17849_v37 = vld [vmem:[#allocation2] sm:$0x1f] }
 0x2e6   :  { %15549 = vmatmul.mubr.msk.f32.vlgmr.msra.gmra.mxu0 %vm610_vm4, %v17849_v37  ;;  %15560 = vmatmul.mubr.msk.f32.vlgmr.msra.gmra.mxu1 %vm610_vm4, %v17849_v37  ;;  %2533 = vst.msk [vmem:[#allocation2 - $0x1] sm:$0x2] %vm2532_vm7, %v657_v26 }
 0x2e7   :  { %2535 = vst.msk [vmem:[#allocation2 - $0x3] sm:$0xf0] %vm2534_vm8, %v655_v31  ;;  %15567 = vmatprep.subr.mxu1 %v17366_v0  ;;  %15564 = vmatprep.mubr.msk.f32.mxu0 %vm17367_vm0, %v17366_v0 }
 0x2e8   :  { %15569 = vmatprep.mubr.msk.f32.mxu1 %vm17367_vm0, %v17366_v0 }
 0x39e   :  { %v737_v38 = vpop.f32.mrf.mxu1 }
 0x3a0   :  { %v15539_v39 = vpop.f32.mrf.mxu1 }
 0x3a6   :  { %v814_v40 = vpop.f32.mrf.mxu0  ;;  %v888_v41 = vpop.f32.mrf.mxu1 }
 0x3a7   :  { %15563 = vmatpush3.xpose.msk.msra.mxu0 %vm892_vm9, %v814_v40  ;;  %15568 = vmatpush3.msk.msra.mxu1 %vm985_vm10, %v888_v41  ;;  %v17959_v40 = vld [vmem:[%s20250_s19] sm:$0xff]  ;;  %v17967_v41 = vld [vmem:[%s20244_s21 + $0x58] sm:$0xff] }
 0x3a8   :  { %v15550_v42 = vpop.f32.mrf.mxu0  ;;  %v15561_v43 = vpop.f32.mrf.mxu1  ;;  %15572 = vmatprep.subr.mxu0 %v17366_v0  ;;  %15583 = vmatprep.subr.mxu1 %v17366_v0 }
 0x3a9   :  { %v17971_v42 = vld [vmem:[%s20244_s21 + $0x50] sm:$0xff]  ;;  %v17978_v43 = vld [vmem:[%s20244_s21 + $0x48] sm:$0xff] }
 0x3aa   :  { %15565 = vmatmul.mubr.msk.f32.vlgmr.msra.gmra.mxu0 %vm892_vm9, %v737_v38 }
 0x3ab   :  { %15573 = vmatpush3.msra.mxu0 %v17864_v45  ;;  %15580 = vmatprep.mubr.msk.f32.mxu0 %vm17367_vm0, %v17366_v0 }
 0x3ac   :  { %15574 = vmatprep.subr.mxu0 %v17366_v0 }
 0x3ad   :  { %15575 = vmatpush3.msra.mxu0 %v17869_v46 }
 0x3ae   :  { %15576 = vmatprep.subr.mxu0 %v17366_v0 }
 0x3af   :  { %15577 = vmatpush3.msra.mxu0 %v17876_v47 }
 0x3b0   :  { %15578 = vmatprep.subr.mxu0 %v17366_v0 }
 0x3b1   :  { %15579 = vmatpush3.msra.mxu0 %v17881_v48 }
 0x3b2   :  { %15581 = vmatmul.mubr.msk.f32.vlgmr.msra.gmra.mxu0 %vm610_vm4, %v17823_v32  ;;  %15594 = vmatprep.subr.mxu0 %v17366_v0 }
 0x3b3   :  { %15595 = vmatpush3.msra.mxu0 %v17886_v49  ;;  %15602 = vmatprep.mubr.msk.f32.mxu0 %vm17367_vm0, %v17366_v0 }
 0x3b4   :  { %15596 = vmatprep.subr.mxu0 %v17366_v0 }
 0x3b5   :  { %15597 = vmatpush3.msra.mxu0 %v17893_v50 }
 0x3b6   :  { %15598 = vmatprep.subr.mxu0 %v17366_v0 }
 0x3b7   :  { %15599 = vmatpush3.msra.mxu0 %v17900_v51 }
 0x3b8   :  { %15600 = vmatprep.subr.mxu0 %v17366_v0 }
 0x3b9   :  { %15601 = vmatpush3.msra.mxu0 %v17905_v52 }
 0x3ba   :  { %15603 = vmatmul.mubr.msk.f32.vlgmr.msra.gmra.mxu0 %vm610_vm4, %v17849_v37  ;;  %15615 = vmatprep.subr.mxu0 %v17366_v0 }
 0x3bb   :  { %15617 = vmatprep.mubr.msk.f32.mxu0 %vm17367_vm0, %v17366_v0  ;;  %15616 = vmatpush3.msra.mxu0 %v17954_v30 }
 0x3bc   :  { %15625 = vmatprep.subr.mxu0 %v17366_v0 }
 0x46a   :  { %v965_v53 = vpop.f32.mrf.mxu0 }
 0x46b   :  { %v970_v55 = vsel %vm969_vm11, %v965_v53, -inf }
 0x46c   :  { %971 = vmax.xlane.f32.xlu0 %v970_v55  ;;  %v15566_v56 = vpop.f32.mrf.mxu0  ;;  %v17994_v55 = vld [vmem:[%s20243_s13 + $0x58] sm:$0xff] }
 0x472   :  { %v1131_v57 = vpop.f32.mrf.mxu0 }
 0x474   :  { %v15582_v58 = vpop.f32.mrf.mxu0 }
 0x47a   :  { %v1281_v59 = vpop.f32.mrf.mxu0 }
 0x47c   :  { %v15604_v60 = vpop.f32.mrf.mxu0 }
 0x4f5   :  { %v972_v61 = vpop.xlane.xlu0 %971 }
 0x4f6   :  { %v973_v62 = vsub.f32 %v965_v53, %v972_v61  ;;  %v17983_v53 = vld [vmem:[%s20244_s21 + $0x40] sm:$0xff] }
 0x4f7   :  { %v18012_v61 = vld [vmem:[%s20243_s13 + $0x40] sm:$0xff] }
 0x4f8   :  { %v974_v63 = vmul.f32 1.442695, %v973_v62 }
 0x4fa   :  { %17055 = vpow2.f32 %v974_v63  ;;  %v18017_v63 = vld [vmem:[%s20249_s14 + $0x58] sm:$0xff] }
 0x507   :  { %v17056_v1 = vpop.eup %17055 }
 0x508   :  { %v976_v2 = vsel %vm969_vm11, %v17056_v1, 0.0 }
 0x509   :  { %977 = vadd.xlane.f32.xlu1 %v976_v2  ;;  %v18031_v2 = vld [vmem:[%s20249_s14 + $0x48] sm:$0xff] }
 0x592   :  { %v978_v3 = vpop.xlane.xlu1 %977 }
 0x593   :  { %17057 = vrcp.f32 %v978_v3 }
 0x5a0   :  { %v17058_v4 = vpop.eup %17057 }
 0x5a1   :  { %v980_v13 = vmul.f32 %v17058_v4, %v17056_v1  ;;  %v18024_v1 = vld [vmem:[%s20249_s14 + $0x50] sm:$0xff]  ;;  %v18037_v4 = vld [vmem:[%s20249_s14 + $0x40] sm:$0xff] }
 0x5a3   :  { %15570 = vmatmul.mubr.msk.f32.vlgmr.msra.gmra.mxu1 %vm981_vm12, %v980_v13 }
 0x5a4   :  { %15584 = vmatpush3.msra.mxu1 %v17918_v14  ;;  %15591 = vmatprep.mubr.msk.f32.mxu1 %vm17367_vm0, %v17366_v0 }
 0x5a5   :  { %15585 = vmatprep.subr.mxu1 %v17366_v0 }
 0x5a6   :  { %15586 = vmatpush3.msra.mxu1 %v17922_v15 }
 0x5a7   :  { %15587 = vmatprep.subr.mxu1 %v17366_v0 }
 0x5a8   :  { %15588 = vmatpush3.msra.mxu1 %v17929_v16 }
 0x5a9   :  { %15589 = vmatprep.subr.mxu1 %v17366_v0 }
 0x5aa   :  { %15590 = vmatpush3.msra.mxu1 %v17934_v17 }
 0x5ab   :  { %15592 = vmatmul.mubr.msk.f32.vlgmr.msra.gmra.mxu1 %vm610_vm4, %v17849_v37  ;;  %15605 = vmatprep.subr.mxu1 %v17366_v0 }
 0x5ac   :  { %15607 = vmatprep.mubr.msk.f32.mxu1 %vm17367_vm0, %v17366_v0 }
 0x663   :  { %v1055_v18 = vpop.f32.mrf.mxu1 }
 0x665   :  { %v15571_v19 = vpop.f32.mrf.mxu1 }
 0x66b   :  { %v1206_v20 = vpop.f32.mrf.mxu1 }
 0x66c   :  { %15606 = vmatpush3.xpose.msk.msra.mxu1 %vm892_vm9, %v1206_v20 }
 0x66d   :  { %v15593_v21 = vpop.f32.mrf.mxu1  ;;  %15610 = vmatprep.subr.mxu1 %v17366_v0 }
 0x66f   :  { %15608 = vmatmul.mubr.msk.f32.vlgmr.msra.gmra.mxu1 %vm892_vm9, %v1131_v57  ;;  %v17998_v57 = vld [vmem:[%s20243_s13 + $0x50] sm:$0xff] }
 0x670   :  { %15611 = vmatpush3.msk.msra.mxu1 %vm985_vm10, %v1281_v59  ;;  %15612 = vmatprep.mubr.msk.f32.mxu1 %vm17367_vm0, %v17366_v0  ;;  %v18005_v59 = vld [vmem:[%s20243_s13 + $0x48] sm:$0xff] }
 0x671   :  { %15620 = vmatprep.subr.mxu1 %v17366_v0 }
 0x72f   :  { %v1357_v22 = vpop.f32.mrf.mxu1 }
 0x730   :  { %v1361_v23 = vsel %vm969_vm11, %v1357_v22, -inf }
 0x731   :  { %1362 = vmax.xlane.f32.xlu0 %v1361_v23  ;;  %v15609_v24 = vpop.f32.mrf.mxu1 }
 0x7ba   :  { %v1363_v25 = vpop.xlane.xlu0 %1362 }
 0x7bb   :  { %v1364_v26 = vsub.f32 %v1357_v22, %v1363_v25 }
 0x7bd   :  { %v1365_v27 = vmul.f32 1.442695, %v1364_v26 }
 0x7bf   :  { %17059 = vpow2.f32 %v1365_v27 }
 0x7cc   :  { %v17060_v28 = vpop.eup %17059 }
 0x7cd   :  { %v1367_v29 = vsel %vm969_vm11, %v17060_v28, 0.0 }
 0x7ce   :  { %1368 = vadd.xlane.f32.xlu1 %v1367_v29 }
 0x857   :  { %v1369_v31 = vpop.xlane.xlu1 %1368 }
 0x858   :  { %17061 = vrcp.f32 %v1369_v31 }
 0x865   :  { %v17062_v38 = vpop.eup %17061 }
 0x866   :  { %v1371_v39 = vmul.f32 %v17062_v38, %v17060_v28 }
 0x868   :  { %15613 = vmatmul.mubr.msk.f32.vlgmr.msra.gmra.mxu1 %vm981_vm12, %v1371_v39  ;;  %v18058_v39 = vld [vmem:[%s20250_s19 + $0x10] sm:$0xff] }
 0x869   :  { %15621 = vmatpush3.msra.mxu1 %v17959_v40  ;;  %15622 = vmatprep.mubr.msk.f32.mxu1 %vm17367_vm0, %v17366_v0 }
 0x86a   :  { %15636 = vmatprep.subr.mxu1 %v17366_v0 }
 0x86c   :  { %15623 = vmatmul.mubr.msk.f32.vlgmr.msra.gmra.mxu1 %vm892_vm9, %v1055_v18 }
 0x86d   :  { %15637 = vmatpush3.msra.mxu1 %v17967_v41  ;;  %15644 = vmatprep.mubr.msk.f32.mxu1 %vm17367_vm0, %v17366_v0 }
 0x86e   :  { %15638 = vmatprep.subr.mxu1 %v17366_v0 }
 0x86f   :  { %15639 = vmatpush3.msra.mxu1 %v17971_v42 }
 0x870   :  { %15640 = vmatprep.subr.mxu1 %v17366_v0 }
 0x871   :  { %15641 = vmatpush3.msra.mxu1 %v17978_v43 }
 0x872   :  { %15642 = vmatprep.subr.mxu1 %v17366_v0 }
 0x873   :  { %15643 = vmatpush3.msra.mxu1 %v17983_v53 }
 0x874   :  { %15645 = vmatmul.mubr.msk.f32.vlgmr.msra.gmra.mxu1 %vm610_vm4, %v17849_v37  ;;  %15658 = vmatprep.subr.mxu1 %v17366_v0 }
 0x875   :  { %15660 = vmatprep.mubr.msk.f32.mxu1 %vm17367_vm0, %v17366_v0 }
 0x928   :  { %v1444_v56 = vpop.f32.mrf.mxu1 }
 0x929   :  { %15618 = vmatmul.mubr.msk.f32.vlgmr.msra.gmra.mxu0 %vm892_vm9, %v1444_v56 }
 0x92a   :  { %15626 = vmatpush3.msra.mxu0 %v17994_v55  ;;  %v15614_v58 = vpop.f32.mrf.mxu1  ;;  %15633 = vmatprep.mubr.msk.f32.mxu0 %vm17367_vm0, %v17366_v0 }
 0x92b   :  { %15627 = vmatprep.subr.mxu0 %v17366_v0 }
 0x92c   :  { %15628 = vmatpush3.msra.mxu0 %v17998_v57  ;;  %v18008_v60 = vpop.f32.mrf.mxu1 }
 0x92d   :  { %15629 = vmatprep.subr.mxu0 %v17366_v0 }
 0x92e   :  { %15630 = vmatpush3.msra.mxu0 %v18005_v59  ;;  %v15624_v62 = vpop.f32.mrf.mxu1 }
 0x92f   :  { %15631 = vmatprep.subr.mxu0 %v17366_v0 }
 0x930   :  { %15632 = vmatpush3.msra.mxu0 %v18012_v61 }
 0x931   :  { %15634 = vmatmul.mubr.msk.f32.vlgmr.msra.gmra.mxu0 %vm610_vm4, %v17823_v32  ;;  %15647 = vmatprep.subr.mxu0 %v17366_v0 }
 0x932   :  { %15648 = vmatpush3.msra.mxu0 %v18017_v63  ;;  %15655 = vmatprep.mubr.msk.f32.mxu0 %vm17367_vm0, %v17366_v0 }
 0x933   :  { %15649 = vmatprep.subr.mxu0 %v17366_v0 }
 0x934   :  { %v1742_v3 = vpop.f32.mrf.mxu1  ;;  %15650 = vmatpush3.msra.mxu0 %v18024_v1 }
 0x935   :  { %15651 = vmatprep.subr.mxu0 %v17366_v0  ;;  %15659 = vmatpush3.xpose.msk.msra.mxu1 %vm892_vm9, %v1742_v3  ;;  %v18063_v3 = vld [vmem:[%s20243_s13 + $0x78] sm:$0xff] }
 0x936   :  { %v15646_v13 = vpop.f32.mrf.mxu1  ;;  %15652 = vmatpush3.msra.mxu0 %v18031_v2  ;;  %15663 = vmatprep.subr.mxu1 %v17366_v0 }
 0x937   :  { %15653 = vmatprep.subr.mxu0 %v17366_v0  ;;  %v18067_v13 = vld [vmem:[%s20243_s13 + $0x70] sm:$0xff] }
 0x938   :  { %15654 = vmatpush3.msra.mxu0 %v18037_v4 }
 0x939   :  { %15656 = vmatmul.mubr.msk.f32.vlgmr.msra.gmra.mxu0 %vm610_vm4, %v17849_v37  ;;  %15668 = vmatprep.subr.mxu0 %v17366_v0 }
 0x93a   :  { %15670 = vmatprep.mubr.msk.f32.mxu0 %vm17367_vm0, %v17366_v0  ;;  %15669 = vmatpush3.msra.mxu0 %v18058_v39 }
 0x93b   :  { %15684 = vmatprep.subr.mxu0 %v17366_v0 }
 0x9e9   :  { %v18048_v18 = vpop.f32.mrf.mxu0 }
 0x9eb   :  { %v15619_v19 = vpop.f32.mrf.mxu0 }
 0x9ec   :  { %v18074_v19 = vld [vmem:[%s20243_s13 + $0x68] sm:$0xff] }
 0x9f1   :  { %v1667_v20 = vpop.f32.mrf.mxu0 }
 0x9f2   :  { %15661 = vmatmul.mubr.msk.f32.vlgmr.msra.gmra.mxu1 %vm892_vm9, %v1667_v20  ;;  %v18079_v20 = vld [vmem:[%s20243_s13 + $0x60] sm:$0xff]  ;;  %s20312_s13 = sld [smem:[#allocation48_spill]] }
 0x9f3   :  { %v15635_v21 = vpop.f32.mrf.mxu0  ;;  %15665 = vmatprep.mubr.msk.f32.mxu1 %vm17367_vm0, %v17366_v0 }
 0x9f4   :  { %v18084_v21 = vld [vmem:[%s20249_s14 + $0x78] sm:$0xff] }
 0x9f9   :  { %v1817_v22 = vpop.f32.mrf.mxu0 }
 0x9fa   :  { %15664 = vmatpush3.msk.msra.mxu1 %vm985_vm10, %v1817_v22  ;;  %v18091_v22 = vld [vmem:[%s20249_s14 + $0x70] sm:$0xff] }
 0x9fb   :  { %v15657_v23 = vpop.f32.mrf.mxu0  ;;  %15673 = vmatprep.subr.mxu1 %v17366_v0 }
 0x9fc   :  { %v18098_v23 = vld [vmem:[%s20249_s14 + $0x68] sm:$0xff] }
 0xab2   :  { %v1893_v24 = vpop.f32.mrf.mxu1 }
 0xab3   :  { %v1897_v25 = vsel %vm969_vm11, %v1893_v24, -inf }
 0xab4   :  { %1898 = vmax.xlane.f32.xlu0 %v1897_v25  ;;  %v15662_v26 = vpop.f32.mrf.mxu1  ;;  %v18114_v25 = vld [vmem:[%s20244_s21 + $0x78] sm:$0xff] }
 0xb3d   :  { %v1899_v27 = vpop.xlane.xlu0 %1898 }
 0xb3e   :  { %v1900_v28 = vsub.f32 %v1893_v24, %v1899_v27  ;;  %v18103_v24 = vld [vmem:[%s20249_s14 + $0x60] sm:$0xff]  ;;  %v18118_v27 = vld [vmem:[%s20244_s21 + $0x70] sm:$0xff]  ;;  %s20327_s14 = sld [smem:[#allocation53_spill]] }
 0xb40   :  { %v1901_v29 = vmul.f32 1.442695, %v1900_v28 }
 0xb42   :  { %17063 = vpow2.f32 %v1901_v29  ;;  %v18125_v29 = vld [vmem:[%s20244_s21 + $0x68] sm:$0xff] }
 0xb43   :  { %20251 = vst [vmem:[#allocation62_spill] sm:$0xff] %v18125_v29 }
 0xb4f   :  { %v17064_v31 = vpop.eup %17063 }
 0xb50   :  { %v1903_v38 = vsel %vm969_vm11, %v17064_v31, 0.0 }
 0xb51   :  { %1904 = vadd.xlane.f32.xlu1 %v1903_v38 }
 0xbda   :  { %v1905_v56 = vpop.xlane.xlu1 %1904 }
 0xbdb   :  { %17065 = vrcp.f32 %v1905_v56 }
 0xbe8   :  { %v17066_v58 = vpop.eup %17065 }
 0xbe9   :  { %v1907_v62 = vmul.f32 %v17066_v58, %v17064_v31  ;;  %v18130_v31 = vld [vmem:[%s20244_s21 + $0x60] sm:$0xff]  ;;  %s20320_s21 = sld [smem:[#allocation50_spill]] }
 0xbea   :  { %20252 = vst [vmem:[#allocation63_spill] sm:$0xff] %v18130_v31 }
 0xbeb   :  { %15666 = vmatmul.mubr.msk.f32.vlgmr.msra.gmra.mxu1 %vm981_vm12, %v1907_v62 }
 0xbec   :  { %15674 = vmatpush3.msra.mxu1 %v18063_v3  ;;  %15681 = vmatprep.mubr.msk.f32.mxu1 %vm17367_vm0, %v17366_v0 }
 0xbed   :  { %15675 = vmatprep.subr.mxu1 %v17366_v0 }
 0xbee   :  { %15676 = vmatpush3.msra.mxu1 %v18067_v13 }
 0xbef   :  { %15677 = vmatprep.subr.mxu1 %v17366_v0 }
 0xbf0   :  { %15678 = vmatpush3.msra.mxu1 %v18074_v19 }
 0xbf1   :  { %15679 = vmatprep.subr.mxu1 %v17366_v0 }
 0xbf2   :  { %15680 = vmatpush3.msra.mxu1 %v18079_v20 }
 0xbf3   :  { %15682 = vmatmul.mubr.msk.f32.vlgmr.msra.gmra.mxu1 %vm610_vm4, %v17823_v32  ;;  %15695 = vmatprep.subr.mxu1 %v17366_v0 }
 0xbf4   :  { %15696 = vmatpush3.msra.mxu1 %v18084_v21  ;;  %15703 = vmatprep.mubr.msk.f32.mxu1 %vm17367_vm0, %v17366_v0 }
 0xbf5   :  { %15697 = vmatprep.subr.mxu1 %v17366_v0 }
 0xbf6   :  { %15698 = vmatpush3.msra.mxu1 %v18091_v22 }
 0xbf7   :  { %15699 = vmatprep.subr.mxu1 %v17366_v0 }
 0xbf8   :  { %15700 = vmatpush3.msra.mxu1 %v18098_v23 }
 0xbf9   :  { %15701 = vmatprep.subr.mxu1 %v17366_v0 }
 0xbfa   :  { %15702 = vmatpush3.msra.mxu1 %v18103_v24 }
 0xbfb   :  { %15704 = vmatmul.mubr.msk.f32.vlgmr.msra.gmra.mxu1 %vm610_vm4, %v17849_v37  ;;  %15716 = vmatprep.subr.mxu1 %v17366_v0 }
 0xbfc   :  { %15718 = vmatprep.mubr.msk.f32.mxu1 %vm17367_vm0, %v17366_v0 }
 0xcab   :  { %v1980_v26 = vpop.f32.mrf.mxu1 }
 0xcac   :  { %15671 = vmatmul.mubr.msk.f32.vlgmr.msra.gmra.mxu0 %vm892_vm9, %v1980_v26  ;;  %v1593_v26 = vadd.f32 %v18008_v60, %v18048_v18 }
 0xcad   :  { %15685 = vmatpush3.msra.mxu0 %v18114_v25  ;;  %v15667_v28 = vpop.f32.mrf.mxu1  ;;  %15692 = vmatprep.mubr.msk.f32.mxu0 %vm17367_vm0, %v17366_v0 }
 0xcae   :  { %15686 = vmatprep.subr.mxu0 %v17366_v0 }
 0xcaf   :  { %15687 = vmatpush3.msra.mxu0 %v18118_v27 }
 0xcb0   :  { %15688 = vmatprep.subr.mxu0 %v17366_v0 }
 0xcb1   :  { %15689 = vmatpush3.msra.mxu0 %v18125_v29 }
 0xcb2   :  { %15690 = vmatprep.subr.mxu0 %v17366_v0 }
 0xcb3   :  { %v2131_v38 = vpop.f32.mrf.mxu1  ;;  %15691 = vmatpush3.msra.mxu0 %v18130_v31 }
 0xcb4   :  { %15693 = vmatmul.mubr.msk.f32.vlgmr.msra.gmra.mxu0 %vm610_vm4, %v17849_v37  ;;  %15706 = vmatprep.subr.mxu0 %v17366_v0 }
 0xcb5   :  { %v15683_v56 = vpop.f32.mrf.mxu1  ;;  %15708 = vmatprep.mubr.msk.f32.mxu0 %vm17367_vm0, %v17366_v0 }
 0xcbb   :  { %v2281_v58 = vpop.f32.mrf.mxu1 }
 0xcbd   :  { %v15705_v62 = vpop.f32.mrf.mxu1 }
 0xd6c   :  { %v2055_v28 = vpop.f32.mrf.mxu0 }
 0xd6d   :  { %v18142_v44 = vadd.f32 %v2055_v28, %v1593_v26 }
 0xd6e   :  { %v15672_v54 = vpop.f32.mrf.mxu0 }
 0xd74   :  { %v2206_v29 = vpop.f32.mrf.mxu0 }
 0xd75   :  { %15707 = vmatpush3.xpose.msk.msra.mxu0 %vm892_vm9, %v2206_v29 }
 0xd76   :  { %v15694_v31 = vpop.f32.mrf.mxu0  ;;  %15711 = vmatprep.subr.mxu0 %v17366_v0 }
 0xd78   :  { %15709 = vmatmul.mubr.msk.f32.vlgmr.msra.gmra.mxu0 %vm892_vm9, %v2131_v38  ;;  %v18154_v38 = vld [vmem:[%s20250_s19 + $0x18] sm:$0xff]  ;;  %s20328_s19 = sld [smem:[#allocation55_spill]] }
 0xd79   :  { %15712 = vmatpush3.msk.msra.mxu0 %vm985_vm10, %v2281_v58  ;;  %15713 = vmatprep.mubr.msk.f32.mxu0 %vm17367_vm0, %v17366_v0 }
 0xd7a   :  { %15721 = vmatprep.subr.mxu0 %v17366_v0  ;;  %15717 = vmatpush3.msra.mxu1 %v18154_v38 }
 0xd7b   :  { %15732 = vmatprep.subr.mxu1 %v17366_v0 }
 0xe38   :  { %v2357_v37 = vpop.f32.mrf.mxu0 }
 0xe39   :  { %v2361_v60 = vsel %vm969_vm11, %v2357_v37, -inf }
 0xe3a   :  { %2362 = vmax.xlane.f32.xlu0 %v2361_v60  ;;  %v15710_v54 = vpop.f32.mrf.mxu0 }
 0xec3   :  { %v2363_v18 = vpop.xlane.xlu0 %2362 }
 0xec4   :  { %v2364_v29 = vsub.f32 %v2357_v37, %v2363_v18  ;;  %v18168_v37 = vrot.slane %v17823_v32, 4 }
 0xec6   :  { %v2365_v31 = vmul.f32 1.442695, %v2364_v29 }
 0xec8   :  { %17067 = vpow2.f32 %v2365_v31 }
 0xed5   :  { %v17068_v56 = vpop.eup %17067 }
 0xed6   :  { %v2367_v62 = vsel %vm969_vm11, %v17068_v56, 0.0 }
 0xed7   :  { %2368 = vadd.xlane.f32.xlu1 %v2367_v62 }
 0xf60   :  { %v2369_v58 = vpop.xlane.xlu1 %2368 }
 0xf61   :  { %17069 = vrcp.f32 %v2369_v58 }
 0xf6e   :  { %v17070_v26 = vpop.eup %17069 }
 0xf6f   :  { %v2371_v28 = vmul.f32 %v17070_v26, %v17068_v56 }
 0xf71   :  { %15714 = vmatmul.mubr.msk.f32.vlgmr.msra.gmra.mxu0 %vm981_vm12, %v2371_v28 }
 0xf72   :  { %15722 = vmatpush3.msra.mxu0 %v17780_v5  ;;  %15729 = vmatprep.mubr.msk.f32.mxu0 %vm17367_vm0, %v17366_v0  ;;  %v18183_v5 = vld [vmem:[#allocation2] sm:$0x1f] }
 0xf73   :  { %15723 = vmatprep.subr.mxu0 %v17366_v0 }
 0xf74   :  { %15724 = vmatpush3.msra.mxu0 %v17785_v6 }
 0xf75   :  { %15725 = vmatprep.subr.mxu0 %v17366_v0 }
 0xf76   :  { %15726 = vmatpush3.msra.mxu0 %v17790_v7 }
 0xf77   :  { %15727 = vmatprep.subr.mxu0 %v17366_v0 }
 0xf78   :  { %15728 = vmatpush3.msra.mxu0 %v17795_v8 }
 0xf79   :  { %15730 = vmatmul.mubr.msk.f32.vlgmr.msra.gmra.mxu0 %vm610_vm4, %v18168_v37  ;;  %15743 = vmatprep.subr.mxu0 %v17366_v0 }
 0xf7a   :  { %15744 = vmatpush3.msra.mxu0 %v17826_v33  ;;  %15751 = vmatprep.mubr.msk.f32.mxu0 %vm17367_vm0, %v17366_v0 }
 0xf7b   :  { %15745 = vmatprep.subr.mxu0 %v17366_v0 }
 0xf7c   :  { %15746 = vmatpush3.msra.mxu0 %v17832_v34 }
 0xf7d   :  { %15747 = vmatprep.subr.mxu0 %v17366_v0 }
 0xf7e   :  { %15748 = vmatpush3.msra.mxu0 %v17839_v35 }
 0xf7f   :  { %15749 = vmatprep.subr.mxu0 %v17366_v0 }
 0xf80   :  { %15750 = vmatpush3.msra.mxu0 %v17844_v36  ;;  %v18232_v36 = vld [vmem:[%s20253_s12] ss:$0 sm:$0xff]  ;;  %s20329_s12 = sld [smem:[#allocation56_spill]] }
 0xf81   :  { %15752 = vmatmul.mubr.msk.f32.vlgmr.msra.gmra.mxu0 %vm610_vm4, %v18183_v5  ;;  %15764 = vmatprep.subr.mxu0 %v17366_v0 }
 0xf82   :  { %15765 = vmatpush3.msra.mxu0 %v17864_v45  ;;  %15772 = vmatprep.mubr.msk.f32.mxu0 %vm17367_vm0, %v17366_v0 }
 0xf83   :  { %15766 = vmatprep.subr.mxu0 %v17366_v0 }
 0xf84   :  { %15767 = vmatpush3.msra.mxu0 %v17869_v46 }
 0xf85   :  { %15768 = vmatprep.subr.mxu0 %v17366_v0 }
 0xf86   :  { %15769 = vmatpush3.msra.mxu0 %v17876_v47 }
 0xf87   :  { %15770 = vmatprep.subr.mxu0 %v17366_v0 }
 0xf88   :  { %15771 = vmatpush3.msra.mxu0 %v17881_v48 }
 0xf89   :  { %15773 = vmatmul.mubr.msk.f32.vlgmr.msra.gmra.mxu0 %vm610_vm4, %v18168_v37  ;;  %15786 = vmatprep.subr.mxu0 %v17366_v0 }
 0xf8a   :  { %15787 = vmatpush3.msra.mxu0 %v17886_v49  ;;  %15794 = vmatprep.mubr.msk.f32.mxu0 %vm17367_vm0, %v17366_v0 }
 0xf8b   :  { %15788 = vmatprep.subr.mxu0 %v17366_v0 }
 0xf8c   :  { %15789 = vmatpush3.msra.mxu0 %v17893_v50 }
 0xf8d   :  { %15790 = vmatprep.subr.mxu0 %v17366_v0 }
 0xf8e   :  { %15791 = vmatpush3.msra.mxu0 %v17900_v51 }
 0xf8f   :  { %15792 = vmatprep.subr.mxu0 %v17366_v0 }
 0xf90   :  { %15793 = vmatpush3.msra.mxu0 %v17905_v52 }
 0xf91   :  { %15795 = vmatmul.mubr.msk.f32.vlgmr.msra.gmra.mxu0 %vm610_vm4, %v18183_v5  ;;  %15807 = vmatprep.subr.mxu0 %v17366_v0 }
 0xf92   :  { %15808 = vmatpush3.msra.mxu0 %v17954_v30  ;;  %15809 = vmatprep.mubr.msk.f32.mxu0 %vm17367_vm0, %v17366_v0 }
 0xf93   :  { %15817 = vmatprep.subr.mxu0 %v17366_v0 }
0x1031   :  { %v2444_v6 = vpop.f32.mrf.mxu0 }
0x1032   :  { %15719 = vmatmul.mubr.msk.f32.vlgmr.msra.gmra.mxu1 %vm892_vm9, %v2444_v6 }
0x1033   :  { %15733 = vmatpush3.msra.mxu1 %v17800_v9  ;;  %v15715_v7 = vpop.f32.mrf.mxu0  ;;  %15740 = vmatprep.mubr.msk.f32.mxu1 %vm17367_vm0, %v17366_v0 }
0x1034   :  { %15734 = vmatprep.subr.mxu1 %v17366_v0 }
0x1035   :  { %15735 = vmatpush3.msra.mxu1 %v17805_v10 }
0x1036   :  { %15736 = vmatprep.subr.mxu1 %v17366_v0 }
0x1037   :  { %15737 = vmatpush3.msra.mxu1 %v17810_v11 }
0x1038   :  { %15738 = vmatprep.subr.mxu1 %v17366_v0 }
0x1039   :  { %v2610_v8 = vpop.f32.mrf.mxu0  ;;  %15739 = vmatpush3.msra.mxu1 %v17815_v12 }
0x103a   :  { %15741 = vmatmul.mubr.msk.f32.vlgmr.msra.gmra.mxu1 %vm610_vm4, %v18183_v5  ;;  %15754 = vmatprep.subr.mxu1 %v17366_v0 }
0x103b   :  { %v15731_v9 = vpop.f32.mrf.mxu0  ;;  %15756 = vmatprep.mubr.msk.f32.mxu1 %vm17367_vm0, %v17366_v0 }
0x1041   :  { %v2761_v10 = vpop.f32.mrf.mxu0 }
0x1043   :  { %v15753_v32 = vpop.f32.mrf.mxu0 }
0x1049   :  { %v2999_v33 = vpop.f32.mrf.mxu0 }
0x104b   :  { %v15774_v34 = vpop.f32.mrf.mxu0 }
0x1051   :  { %v3147_v35 = vpop.f32.mrf.mxu0 }
0x1053   :  { %v15796_v11 = vpop.f32.mrf.mxu0 }
0x10f2   :  { %v2519_v45 = vpop.f32.mrf.mxu1 }
0x10f3   :  { %v2523_v12 = vadd.f32 %v2519_v45, %v18142_v44 }
0x10f4   :  { %v15720_v46 = vpop.f32.mrf.mxu1 }
0x10f5   :  { %v2530_v47 = vadd.f32 %v18232_v36, %v2523_v12 }
0x10f7   :  { %2531 = vst.msk [vmem:[#allocation3] sm:$0xf] %vm661_vm6, %v2530_v47 }
0x10fa   :  { %v2687_v48 = vpop.f32.mrf.mxu1 }
0x10fb   :  { %15755 = vmatpush3.xpose.msk.msra.mxu1 %vm892_vm9, %v2687_v48 }
0x10fc   :  { %v15742_v49 = vpop.f32.mrf.mxu1  ;;  %15759 = vmatprep.subr.mxu1 %v17366_v0 }
0x10fe   :  { %15757 = vmatmul.mubr.msk.f32.vlgmr.msra.gmra.mxu1 %vm892_vm9, %v2610_v8 }
0x10ff   :  { %15760 = vmatpush3.msk.msra.mxu1 %vm985_vm10, %v2761_v10  ;;  %15761 = vmatprep.mubr.msk.f32.mxu1 %vm17367_vm0, %v17366_v0 }
0x1100   :  { %15775 = vmatprep.subr.mxu1 %v17366_v0 }
0x11be   :  { %v2837_v44 = vpop.f32.mrf.mxu1 }
0x11bf   :  { %v2841_v50 = vsel %vm969_vm11, %v2837_v44, -inf }
0x11c0   :  { %2842 = vmax.xlane.f32.xlu0 %v2841_v50  ;;  %v15758_v51 = vpop.f32.mrf.mxu1 }
0x1249   :  { %v2843_v52 = vpop.xlane.xlu0 %2842 }
0x124a   :  { %v2844_v30 = vsub.f32 %v2837_v44, %v2843_v52 }
0x124c   :  { %v2845_v60 = vmul.f32 1.442695, %v2844_v30 }
0x124e   :  { %17071 = vpow2.f32 %v2845_v60 }
0x125b   :  { %v17072_v54 = vpop.eup %17071 }
0x125c   :  { %v2847_v18 = vsel %vm969_vm11, %v17072_v54, 0.0 }
0x125d   :  { %2848 = vadd.xlane.f32.xlu1 %v2847_v18 }
0x12e6   :  { %v2849_v29 = vpop.xlane.xlu1 %2848 }
0x12e7   :  { %17073 = vrcp.f32 %v2849_v29 }
0x12f4   :  { %v17074_v31 = vpop.eup %17073 }
0x12f5   :  { %v2851_v56 = vmul.f32 %v17074_v31, %v17072_v54 }
0x12f7   :  { %15762 = vmatmul.mubr.msk.f32.vlgmr.msra.gmra.mxu1 %vm981_vm12, %v2851_v56 }
0x12f8   :  { %15776 = vmatpush3.msra.mxu1 %v17918_v14  ;;  %15783 = vmatprep.mubr.msk.f32.mxu1 %vm17367_vm0, %v17366_v0 }
0x12f9   :  { %15777 = vmatprep.subr.mxu1 %v17366_v0 }
0x12fa   :  { %15778 = vmatpush3.msra.mxu1 %v17922_v15 }
0x12fb   :  { %15779 = vmatprep.subr.mxu1 %v17366_v0 }
0x12fc   :  { %15780 = vmatpush3.msra.mxu1 %v17929_v16 }
0x12fd   :  { %15781 = vmatprep.subr.mxu1 %v17366_v0 }
0x12fe   :  { %15782 = vmatpush3.msra.mxu1 %v17934_v17 }
0x12ff   :  { %15784 = vmatmul.mubr.msk.f32.vlgmr.msra.gmra.mxu1 %vm610_vm4, %v18183_v5  ;;  %15797 = vmatprep.subr.mxu1 %v17366_v0 }
0x1300   :  { %15799 = vmatprep.mubr.msk.f32.mxu1 %vm17367_vm0, %v17366_v0 }
0x13b7   :  { %v2924_v14 = vpop.f32.mrf.mxu1 }
0x13b9   :  { %v15763_v62 = vpop.f32.mrf.mxu1 }
0x13bf   :  { %v3073_v58 = vpop.f32.mrf.mxu1 }
0x13c0   :  { %15798 = vmatpush3.xpose.msk.msra.mxu1 %vm892_vm9, %v3073_v58 }
0x13c1   :  { %v15785_v15 = vpop.f32.mrf.mxu1  ;;  %15802 = vmatprep.subr.mxu1 %v17366_v0 }
0x13c3   :  { %15800 = vmatmul.mubr.msk.f32.vlgmr.msra.gmra.mxu1 %vm892_vm9, %v2999_v33 }
0x13c4   :  { %15803 = vmatpush3.msk.msra.mxu1 %vm985_vm10, %v3147_v35  ;;  %15804 = vmatprep.mubr.msk.f32.mxu1 %vm17367_vm0, %v17366_v0 }
0x13c5   :  { %15812 = vmatprep.subr.mxu1 %v17366_v0 }
0x1483   :  { %v3223_v16 = vpop.f32.mrf.mxu1 }
0x1484   :  { %v3227_v17 = vsel %vm969_vm11, %v3223_v16, -inf }
0x1485   :  { %3228 = vmax.xlane.f32.xlu0 %v3227_v17  ;;  %v15801_v26 = vpop.f32.mrf.mxu1 }
0x150e   :  { %v3229_v28 = vpop.xlane.xlu0 %3228 }
0x150f   :  { %v3230_v6 = vsub.f32 %v3223_v16, %v3229_v28 }
0x1511   :  { %v3231_v7 = vmul.f32 1.442695, %v3230_v6  ;;  %v20256_v6 = vld [vmem:[#allocation61_spill] sm:$0xff] }
0x1513   :  { %17075 = vpow2.f32 %v3231_v7 }
0x1520   :  { %v17076_v8 = vpop.eup %17075 }
0x1521   :  { %v3233_v9 = vsel %vm969_vm11, %v17076_v8, 0.0 }
0x1522   :  { %3234 = vadd.xlane.f32.xlu1 %v3233_v9  ;;  %v20258_v9 = vld [vmem:[#allocation60_spill] sm:$0xff] }
0x15ab   :  { %v3235_v10 = vpop.xlane.xlu1 %3234 }
0x15ac   :  { %17077 = vrcp.f32 %v3235_v10  ;;  %v5108_v10 = vsel %vm610_vm4, %v20258_v9, 0.0 }
0x15b9   :  { %v17078_v32 = vpop.eup %17077 }
0x15ba   :  { %v3237_v33 = vmul.f32 %v17078_v32, %v17076_v8 }
0x15bc   :  { %15805 = vmatmul.mubr.msk.f32.vlgmr.msra.gmra.mxu1 %vm981_vm12, %v3237_v33 }
0x15bd   :  { %15813 = vmatpush3.msra.mxu1 %v17959_v40  ;;  %15814 = vmatprep.mubr.msk.f32.mxu1 %vm17367_vm0, %v17366_v0 }
0x15be   :  { %15828 = vmatprep.subr.mxu1 %v17366_v0 }
0x15c0   :  { %15815 = vmatmul.mubr.msk.f32.vlgmr.msra.gmra.mxu1 %vm892_vm9, %v2924_v14 }
0x15c1   :  { %15829 = vmatpush3.msra.mxu1 %v17967_v41  ;;  %15836 = vmatprep.mubr.msk.f32.mxu1 %vm17367_vm0, %v17366_v0 }
0x15c2   :  { %15830 = vmatprep.subr.mxu1 %v17366_v0 }
0x15c3   :  { %15831 = vmatpush3.msra.mxu1 %v17971_v42 }
0x15c4   :  { %15832 = vmatprep.subr.mxu1 %v17366_v0 }
0x15c5   :  { %15833 = vmatpush3.msra.mxu1 %v17978_v43 }
0x15c6   :  { %15834 = vmatprep.subr.mxu1 %v17366_v0 }
0x15c7   :  { %15835 = vmatpush3.msra.mxu1 %v17983_v53 }
0x15c8   :  { %15837 = vmatmul.mubr.msk.f32.vlgmr.msra.gmra.mxu1 %vm610_vm4, %v18183_v5  ;;  %15850 = vmatprep.subr.mxu1 %v17366_v0 }
0x15c9   :  { %15852 = vmatprep.mubr.msk.f32.mxu1 %vm17367_vm0, %v17366_v0 }
0x167c   :  { %v3310_v40 = vpop.f32.mrf.mxu1 }
0x167d   :  { %15810 = vmatmul.mubr.msk.f32.vlgmr.msra.gmra.mxu0 %vm892_vm9, %v3310_v40 }
0x167e   :  { %15818 = vmatpush3.msra.mxu0 %v17994_v55  ;;  %v15806_v41 = vpop.f32.mrf.mxu1  ;;  %15825 = vmatprep.mubr.msk.f32.mxu0 %vm17367_vm0, %v17366_v0 }
0x167f   :  { %15819 = vmatprep.subr.mxu0 %v17366_v0 }
0x1680   :  { %15820 = vmatpush3.msra.mxu0 %v17998_v57  ;;  %v18296_v42 = vpop.f32.mrf.mxu1 }
0x1681   :  { %15821 = vmatprep.subr.mxu0 %v17366_v0 }
0x1682   :  { %15822 = vmatpush3.msra.mxu0 %v18005_v59  ;;  %v15816_v43 = vpop.f32.mrf.mxu1 }
0x1683   :  { %15823 = vmatprep.subr.mxu0 %v17366_v0 }
0x1684   :  { %15824 = vmatpush3.msra.mxu0 %v18012_v61 }
0x1685   :  { %15826 = vmatmul.mubr.msk.f32.vlgmr.msra.gmra.mxu0 %vm610_vm4, %v18168_v37  ;;  %15839 = vmatprep.subr.mxu0 %v17366_v0 }
0x1686   :  { %15840 = vmatpush3.msra.mxu0 %v18017_v63  ;;  %15847 = vmatprep.mubr.msk.f32.mxu0 %vm17367_vm0, %v17366_v0 }
0x1687   :  { %15841 = vmatprep.subr.mxu0 %v17366_v0 }
0x1688   :  { %v3605_v53 = vpop.f32.mrf.mxu1  ;;  %15842 = vmatpush3.msra.mxu0 %v18024_v1 }
0x1689   :  { %15843 = vmatprep.subr.mxu0 %v17366_v0  ;;  %15851 = vmatpush3.xpose.msk.msra.mxu1 %vm892_vm9, %v3605_v53 }
0x168a   :  { %v15838_v55 = vpop.f32.mrf.mxu1  ;;  %15844 = vmatpush3.msra.mxu0 %v18031_v2  ;;  %15855 = vmatprep.subr.mxu1 %v17366_v0 }
0x168b   :  { %15845 = vmatprep.subr.mxu0 %v17366_v0 }
0x168c   :  { %15846 = vmatpush3.msra.mxu0 %v18037_v4 }
0x168d   :  { %15848 = vmatmul.mubr.msk.f32.vlgmr.msra.gmra.mxu0 %vm610_vm4, %v18183_v5  ;;  %15860 = vmatprep.subr.mxu0 %v17366_v0 }
0x168e   :  { %15861 = vmatpush3.msra.mxu0 %v18058_v39  ;;  %15862 = vmatprep.mubr.msk.f32.mxu0 %vm17367_vm0, %v17366_v0 }
0x168f   :  { %15876 = vmatprep.subr.mxu0 %v17366_v0 }
0x173d   :  { %v18323_v57 = vpop.f32.mrf.mxu0 }
0x173f   :  { %v15811_v59 = vpop.f32.mrf.mxu0 }
0x1740   :  { %v4417_v59 = vld [vmem:[%s20257_s27 + $0x18] sm:$0xff] }
0x1745   :  { %v3531_v61 = vpop.f32.mrf.mxu0 }
0x1746   :  { %15853 = vmatmul.mubr.msk.f32.vlgmr.msra.gmra.mxu1 %vm892_vm9, %v3531_v61  ;;  %v4416_v61 = vld [vmem:[%s20257_s27 + $0x10] sm:$0xff] }
0x1747   :  { %v15827_v63 = vpop.f32.mrf.mxu0  ;;  %15857 = vmatprep.mubr.msk.f32.mxu1 %vm17367_vm0, %v17366_v0 }
0x1748   :  { %v4415_v63 = vld [vmem:[%s20257_s27 + $0x8] sm:$0xff] }
0x174d   :  { %v3679_v1 = vpop.f32.mrf.mxu0 }
0x174e   :  { %15856 = vmatpush3.msk.msra.mxu1 %vm985_vm10, %v3679_v1  ;;  %v4414_v1 = vld [vmem:[%s20257_s27] sm:$0xff]  ;;  %s20358_s27 = sld [smem:[#allocation57_spill]] }
0x174f   :  { %v15849_v2 = vpop.f32.mrf.mxu0  ;;  %15865 = vmatprep.subr.mxu1 %v17366_v0 }
0x1806   :  { %v3755_v4 = vpop.f32.mrf.mxu1 }
0x1807   :  { %v3759_v39 = vsel %vm969_vm11, %v3755_v4, -inf }
0x1808   :  { %3760 = vmax.xlane.f32.xlu0 %v3759_v39  ;;  %v15854_v34 = vpop.f32.mrf.mxu1 }
0x1891   :  { %v3761_v35 = vpop.xlane.xlu0 %3760 }
0x1892   :  { %v3762_v11 = vsub.f32 %v3755_v4, %v3761_v35  ;;  %v14300_v35 = vld [vmem:[%s20259_s10] ss:$0 sm:$0xff]  ;;  %s20361_s10 = sld [smem:[#allocation59_spill]] }
0x1894   :  { %v3763_v45 = vmul.f32 1.442695, %v3762_v11 }
0x1896   :  { %17079 = vpow2.f32 %v3763_v45  ;;  %v14301_v45 = vld [vmem:[%s20260_s11] ss:$0 sm:$0xff]  ;;  %s20365_s11 = sld [smem:[#allocation58_spill]] }
0x18a3   :  { %v17080_v12 = vpop.eup %17079 }
0x18a4   :  { %v3765_v46 = vsel %vm969_vm11, %v17080_v12, 0.0 }
0x18a5   :  { %3766 = vadd.xlane.f32.xlu1 %v3765_v46 }
0x192e   :  { %v3767_v47 = vpop.xlane.xlu1 %3766 }
0x192f   :  { %17081 = vrcp.f32 %v3767_v47  ;;  %v4522_v47 = vld [vmem:[%s20261_s15 + $0x78] sm:$0xff] }
0x193c   :  { %v17082_v48 = vpop.eup %17081 }
0x193d   :  { %v3769_v49 = vmul.f32 %v17082_v48, %v17080_v12  ;;  %v4521_v48 = vld [vmem:[%s20261_s15 + $0x70] sm:$0xff] }
0x193f   :  { %15858 = vmatmul.mubr.msk.f32.vlgmr.msra.gmra.mxu1 %vm981_vm12, %v3769_v49  ;;  %v4520_v49 = vld [vmem:[%s20261_s15 + $0x68] sm:$0xff] }
0x1940   :  { %15866 = vmatpush3.msra.mxu1 %v18063_v3  ;;  %15873 = vmatprep.mubr.msk.f32.mxu1 %vm17367_vm0, %v17366_v0 }
0x1941   :  { %15867 = vmatprep.subr.mxu1 %v17366_v0 }
0x1942   :  { %15868 = vmatpush3.msra.mxu1 %v18067_v13 }
0x1943   :  { %15869 = vmatprep.subr.mxu1 %v17366_v0 }
0x1944   :  { %15870 = vmatpush3.msra.mxu1 %v18074_v19  ;;  %v20254_v19 = vld [vmem:[#allocation62_spill] sm:$0xff] }
0x1945   :  { %15871 = vmatprep.subr.mxu1 %v17366_v0 }
0x1946   :  { %15872 = vmatpush3.msra.mxu1 %v18079_v20 }
0x1947   :  { %15874 = vmatmul.mubr.msk.f32.vlgmr.msra.gmra.mxu1 %vm610_vm4, %v18168_v37  ;;  %15887 = vmatprep.subr.mxu1 %v17366_v0 }
0x1948   :  { %15888 = vmatpush3.msra.mxu1 %v18084_v21  ;;  %15895 = vmatprep.mubr.msk.f32.mxu1 %vm17367_vm0, %v17366_v0  ;;  %v20255_v21 = vld [vmem:[#allocation63_spill] sm:$0xff] }
0x1949   :  { %15889 = vmatprep.subr.mxu1 %v17366_v0 }
0x194a   :  { %15890 = vmatpush3.msra.mxu1 %v18091_v22 }
0x194b   :  { %15891 = vmatprep.subr.mxu1 %v17366_v0 }
0x194c   :  { %15892 = vmatpush3.msra.mxu1 %v18098_v23 }
0x194d   :  { %15893 = vmatprep.subr.mxu1 %v17366_v0 }
0x194e   :  { %15894 = vmatpush3.msra.mxu1 %v18103_v24 }
0x194f   :  { %15896 = vmatmul.mubr.msk.f32.vlgmr.msra.gmra.mxu1 %vm610_vm4, %v18183_v5  ;;  %15908 = vmatprep.subr.mxu1 %v17366_v0 }
0x1950   :  { %15909 = vmatpush3.msra.mxu1 %v18154_v38  ;;  %15910 = vmatprep.mubr.msk.f32.mxu1 %vm17367_vm0, %v17366_v0 }
0x1951   :  { %15924 = vmatprep.subr.mxu1 %v17366_v0 }
0x19ff   :  { %v3842_v3 = vpop.f32.mrf.mxu1 }
0x1a00   :  { %15863 = vmatmul.mubr.msk.f32.vlgmr.msra.gmra.mxu0 %vm892_vm9, %v3842_v3  ;;  %v4519_v3 = vld [vmem:[%s20261_s15 + $0x60] sm:$0xff] }
0x1a01   :  { %15877 = vmatpush3.msra.mxu0 %v18114_v25  ;;  %v15859_v13 = vpop.f32.mrf.mxu1  ;;  %15884 = vmatprep.mubr.msk.f32.mxu0 %vm17367_vm0, %v17366_v0  ;;  %v3458_v25 = vadd.f32 %v18296_v42, %v18323_v57 }
0x1a02   :  { %15878 = vmatprep.subr.mxu0 %v17366_v0  ;;  %v4518_v13 = vld [vmem:[%s20261_s15 + $0x58] sm:$0xff] }
0x1a03   :  { %15879 = vmatpush3.msra.mxu0 %v18118_v27 }
0x1a04   :  { %15880 = vmatprep.subr.mxu0 %v17366_v0 }
0x1a05   :  { %15881 = vmatpush3.msra.mxu0 %v20254_v19  ;;  %v4517_v19 = vld [vmem:[%s20261_s15 + $0x50] sm:$0xff] }
0x1a06   :  { %15882 = vmatprep.subr.mxu0 %v17366_v0 }
0x1a07   :  { %v3991_v20 = vpop.f32.mrf.mxu1  ;;  %15883 = vmatpush3.msra.mxu0 %v20255_v21  ;;  %v4515_v21 = vld [vmem:[%s20261_s15 + $0x40] sm:$0xff] }
0x1a08   :  { %15885 = vmatmul.mubr.msk.f32.vlgmr.msra.gmra.mxu0 %vm610_vm4, %v18183_v5  ;;  %15898 = vmatprep.subr.mxu0 %v17366_v0 }
0x1a09   :  { %v15875_v22 = vpop.f32.mrf.mxu1  ;;  %15900 = vmatprep.mubr.msk.f32.mxu0 %vm17367_vm0, %v17366_v0 }
0x1a0a   :  { %v4514_v22 = vld [vmem:[%s20261_s15 + $0x38] sm:$0xff] }
0x1a0f   :  { %v4139_v23 = vpop.f32.mrf.mxu1 }
0x1a11   :  { %v15897_v24 = vpop.f32.mrf.mxu1 }
0x1a12   :  { %v4512_v24 = vld [vmem:[%s20261_s15 + $0x28] sm:$0xff] }
0x1ac0   :  { %v3916_v27 = vpop.f32.mrf.mxu0 }
0x1ac1   :  { %v3920_v38 = vadd.f32 %v3916_v27, %v3458_v25  ;;  %v4511_v25 = vld [vmem:[%s20261_s15 + $0x20] sm:$0xff]  ;;  %v4510_v27 = vld [vmem:[%s20261_s15 + $0x18] sm:$0xff] }
0x1ac2   :  { %v15864_v37 = vpop.f32.mrf.mxu0 }
0x1ac3   :  { %v4508_v37 = vld [vmem:[%s20261_s15 + $0x8] sm:$0xff] }
0x1ac8   :  { %v4065_v44 = vpop.f32.mrf.mxu0 }
0x1ac9   :  { %15899 = vmatpush3.xpose.msk.msra.mxu0 %vm892_vm9, %v4065_v44  ;;  %v4507_v44 = vld [vmem:[%s20261_s15] sm:$0xff] }
0x1aca   :  { %v15886_v50 = vpop.f32.mrf.mxu0  ;;  %15903 = vmatprep.subr.mxu0 %v17366_v0 }
0x1acb   :  { %v14302_v50 = vld [vmem:[%s20262_s16] ss:$0 sm:$0xff] }
0x1acc   :  { %15901 = vmatmul.mubr.msk.f32.vlgmr.msra.gmra.mxu0 %vm892_vm9, %v3991_v20  ;;  %v4516_v20 = vld [vmem:[%s20261_s15 + $0x48] sm:$0xff] }
0x1acd   :  { %15904 = vmatpush3.msk.msra.mxu0 %vm985_vm10, %v4139_v23  ;;  %15905 = vmatprep.mubr.msk.f32.mxu0 %vm17367_vm0, %v17366_v0  ;;  %v4513_v23 = vld [vmem:[%s20261_s15 + $0x30] sm:$0xff] }
0x1ace   :  { %15913 = vmatprep.subr.mxu0 %v17366_v0 }
0x1b8c   :  { %v4215_v5 = vpop.f32.mrf.mxu0 }
0x1b8d   :  { %v4219_v51 = vsel %vm969_vm11, %v4215_v5, -inf }
0x1b8e   :  { %4220 = vmax.xlane.f32.xlu0 %v4219_v51  ;;  %v15902_v52 = vpop.f32.mrf.mxu0 }
0x1c17   :  { %v4221_v30 = vpop.xlane.xlu0 %4220 }
0x1c18   :  { %v4222_v60 = vsub.f32 %v4215_v5, %v4221_v30 }
0x1c1a   :  { %v4223_v54 = vmul.f32 1.442695, %v4222_v60 }
0x1c1c   :  { %17083 = vpow2.f32 %v4223_v54 }
0x1c29   :  { %v17084_v18 = vpop.eup %17083 }
0x1c2a   :  { %v4225_v29 = vsel %vm969_vm11, %v17084_v18, 0.0 }
0x1c2b   :  { %4226 = vadd.xlane.f32.xlu1 %v4225_v29 }
0x1cb4   :  { %v4227_v31 = vpop.xlane.xlu1 %4226 }
0x1cb5   :  { %17085 = vrcp.f32 %v4227_v31 }
0x1cc2   :  { %v17086_v56 = vpop.eup %17085 }
0x1cc3   :  { %v4229_v14 = vmul.f32 %v17086_v56, %v17084_v18 }
0x1cc5   :  { %15906 = vmatmul.mubr.msk.f32.vlgmr.msra.gmra.mxu0 %vm981_vm12, %v4229_v14 }
0x1cc6   :  { %15921 = vmatprep.mubr.msk.f32.mxu0 %vm17367_vm0, %v17366_v0  ;;  %15914 = vmatpush3.msra.mxu0 %v4417_v59 }
0x1cc7   :  { %15915 = vmatprep.subr.mxu0 %v17366_v0 }
0x1cc8   :  { %15916 = vmatpush3.msra.mxu0 %v4416_v61 }
0x1cc9   :  { %15917 = vmatprep.subr.mxu0 %v17366_v0 }
0x1cca   :  { %15918 = vmatpush3.msra.mxu0 %v4415_v63  ;;  %v14311_v63 = vld [vmem:[%s20263_s18 + $0x38] sm:$0xff] }
0x1ccb   :  { %15919 = vmatprep.subr.mxu0 %v17366_v0 }
0x1ccc   :  { %15920 = vmatpush3.msra.mxu0 %v4414_v1  ;;  %v14309_v1 = vld [vmem:[%s20263_s18 + $0x28] sm:$0xff] }
0x1ccd   :  { %15959 = vmatprep.subr.mxu0 %v17366_v0 }
0x1d85   :  { %v4302_v62 = vpop.f32.mrf.mxu0 }
0x1d86   :  { %15911 = vmatmul.mubr.msk.f32.vlgmr.msra.gmra.mxu1 %vm892_vm9, %v4302_v62 }
0x1d87   :  { %v15907_v58 = vpop.f32.mrf.mxu0  ;;  %15956 = vmatprep.mubr.msk.f32.mxu1 %vm17367_vm0, %v17366_v0  ;;  %15925 = vmatpush3.msra.mxu1 %v4522_v47  ;;  %v14339_v47 = vld [vmem:[%s20263_s18 + $0xb8] sm:$0xff] }
0x1d88   :  { %15926 = vmatprep.subr.mxu1 %v17366_v0  ;;  %v4612_v58 = vld [vmem:[%s20263_s18 + $0x18] sm:$0xff] }
0x1d89   :  { %15927 = vmatpush3.msra.mxu1 %v4521_v48  ;;  %v14338_v48 = vld [vmem:[%s20263_s18 + $0xb0] sm:$0xff] }
0x1d8a   :  { %15928 = vmatprep.subr.mxu1 %v17366_v0 }
0x1d8b   :  { %15929 = vmatpush3.msra.mxu1 %v4520_v49  ;;  %v14337_v49 = vld [vmem:[%s20263_s18 + $0xa8] sm:$0xff] }
0x1d8c   :  { %15930 = vmatprep.subr.mxu1 %v17366_v0 }
0x1d8d   :  { %15931 = vmatpush3.msra.mxu1 %v4519_v3  ;;  %v14336_v3 = vld [vmem:[%s20263_s18 + $0xa0] sm:$0xff] }
0x1d8e   :  { %15932 = vmatprep.subr.mxu1 %v17366_v0 }
0x1d8f   :  { %15933 = vmatpush3.msra.mxu1 %v4518_v13  ;;  %v18536_v13 = vld [vmem:[%s20267_s23 + $0x18] sm:$0xff] }
0x1d90   :  { %15934 = vmatprep.subr.mxu1 %v17366_v0 }
0x1d91   :  { %15935 = vmatpush3.msra.mxu1 %v4517_v19  ;;  %v18540_v19 = vld [vmem:[%s20268_s4 + $0x18] sm:$0xff] }
0x1d92   :  { %15936 = vmatprep.subr.mxu1 %v17366_v0 }
0x1d93   :  { %15937 = vmatpush3.msra.mxu1 %v4516_v20  ;;  %v18545_v20 = vld [vmem:[%s20267_s23 + $0x10] sm:$0xff] }
0x1d94   :  { %15938 = vmatprep.subr.mxu1 %v17366_v0 }
0x1d95   :  { %15939 = vmatpush3.msra.mxu1 %v4515_v21  ;;  %v18550_v21 = vld [vmem:[%s20268_s4 + $0x10] sm:$0xff] }
0x1d96   :  { %15940 = vmatprep.subr.mxu1 %v17366_v0 }
0x1d97   :  { %15941 = vmatpush3.msra.mxu1 %v4514_v22  ;;  %v18555_v22 = vld [vmem:[%s20267_s23 + $0x8] sm:$0xff] }
0x1d98   :  { %15942 = vmatprep.subr.mxu1 %v17366_v0 }
0x1d99   :  { %15943 = vmatpush3.msra.mxu1 %v4513_v23  ;;  %v18560_v23 = vld [vmem:[%s20268_s4 + $0x8] sm:$0xff] }
0x1d9a   :  { %15944 = vmatprep.subr.mxu1 %v17366_v0 }
0x1d9b   :  { %15945 = vmatpush3.msra.mxu1 %v4512_v24  ;;  %v18565_v24 = vld [vmem:[%s20267_s23] sm:$0xff] }
0x1d9c   :  { %15946 = vmatprep.subr.mxu1 %v17366_v0 }
0x1d9d   :  { %15947 = vmatpush3.msra.mxu1 %v4511_v25  ;;  %v18570_v25 = vld [vmem:[%s20268_s4] sm:$0xff] }
0x1d9e   :  { %15948 = vmatprep.subr.mxu1 %v17366_v0 }
0x1d9f   :  { %15949 = vmatpush3.msra.mxu1 %v4510_v27 }
0x1da0   :  { %15950 = vmatprep.subr.mxu1 %v17366_v0 }
0x1e46   :  { %v4376_v15 = vpop.f32.mrf.mxu1 }
0x1e47   :  { %v4380_v16 = vadd.f32 %v4376_v15, %v3920_v38  ;;  %v4509_v38 = vld [vmem:[%s20261_s15 + $0x10] sm:$0xff]  ;;  %v14332_v15 = vld [vmem:[%s20263_s18 + $0x98] sm:$0xff] }
0x1e48   :  { %v15912_v17 = vpop.f32.mrf.mxu1  ;;  %15951 = vmatpush3.msra.mxu1 %v4509_v38 }
0x1e49   :  { %v4381_v26 = vadd.f32 %v18232_v36, %v4380_v16  ;;  %15952 = vmatprep.subr.mxu1 %v17366_v0  ;;  %v4611_v16 = vld [vmem:[%s20263_s18 + $0x10] sm:$0xff] }
0x1e4a   :  { %15953 = vmatpush3.msra.mxu1 %v4508_v37  ;;  %v14331_v17 = vld [vmem:[%s20263_s18 + $0x90] sm:$0xff] }
0x1e4b   :  { %4382 = vst.msk [vmem:[#allocation3 + $0x4] sm:$0xf] %vm661_vm6, %v4381_v26  ;;  %15954 = vmatprep.subr.mxu1 %v17366_v0  ;;  %v4610_v26 = vld [vmem:[%s20263_s18 + $0x8] sm:$0xff] }
0x1e4c   :  { %15955 = vmatpush3.msra.mxu1 %v4507_v44 }
0x1e4d   :  { %16003 = vmatprep.subr.mxu1 %v17366_v0 }
0x1e52   :  { %v4383_v28 = vld [vmem:[#allocation3] sm:$0xff] }
0x1e53   :  { %v18396_v7 = vadd.f32 %v4383_v28, %v20256_v6  ;;  %v14330_v28 = vld [vmem:[%s20263_s18 + $0x88] sm:$0xff]  ;;  %v4609_v6 = vld [vmem:[%s20263_s18] sm:$0xff] }
0x1e55   :  { %v4385_v8 = vsel %vm610_vm4, %v18396_v7, 0.0 }
0x1e56   :  { %4386 = vadd.xlane.f32.xlu0 %v4385_v8  ;;  %v14329_v8 = vld [vmem:[%s20263_s18 + $0x80] sm:$0xff] }
0x1e5a   :  { %5109 = vadd.xlane.f32.xlu0 %v5108_v10  ;;  %v14304_v10 = vld [vmem:[%s20264_s22] ss:$0 sm:$0xff] }
0x1edf   :  { %v4387_v32 = vpop.xlane.xlu0 %4386 }
0x1ee0   :  { %v4388_v33 = vmul.f32 0.03125, %v4387_v32 }
0x1ee2   :  { %v4389_v36 = vsub.f32 %v18396_v7, %v4388_v33 }
0x1ee3   :  { %v5110_v40 = vpop.xlane.xlu0 %5109 }
0x1ee4   :  { %v5111_v41 = vmul.f32 0.03125, %v5110_v40  ;;  %v4390_v42 = vmul.f32 %v4389_v36, %v4389_v36 }
0x1ee6   :  { %v18404_v43 = vsub.f32 %v20258_v9, %v5111_v41  ;;  %v4391_v53 = vsel %vm610_vm4, %v4390_v42, 0.0  ;;  %v18914_v9 = vld [vmem:[%s20268_s4 + $0x70] sm:$0xff] }
0x1ee7   :  { %4392 = vadd.xlane.f32.xlu1 %v4391_v53  ;;  %20289 = vst [vmem:[#allocation76_spill] sm:$0xff] %v18914_v9 }
0x1ee8   :  { %v5113_v55 = vmul.f32 %v18404_v43, %v18404_v43 }
0x1eea   :  { %v5114_v57 = vsel %vm610_vm4, %v5113_v55, 0.0 }
0x1eeb   :  { %5115 = vadd.xlane.f32.xlu1 %v5114_v57 }
0x1f70   :  { %v4393_v2 = vpop.xlane.xlu1 %4392 }
0x1f71   :  { %v4394_v4 = vmul.f32 0.03125, %v4393_v2  ;;  %v14308_v2 = vld [vmem:[%s20263_s18 + $0x20] sm:$0xff] }
0x1f73   :  { %v4395_v39 = vadd.f32 1e-05, %v4394_v4  ;;  %v14318_v4 = vld [vmem:[%s20263_s18 + $0x58] sm:$0xff] }
0x1f74   :  { %v5116_v27 = vpop.xlane.xlu1 %5115 }
0x1f75   :  { %17087 = vrsqrt.f32 %v4395_v39  ;;  %v14317_v39 = vld [vmem:[%s20263_s18 + $0x50] sm:$0xff]  ;;  %v5117_v38 = vmul.f32 0.03125, %v5116_v27 }
0x1f77   :  { %v5118_v37 = vadd.f32 1e-06, %v5117_v38 }
0x1f82   :  { %v17088_v34 = vpop.eup %17087 }
0x1f83   :  { %v4397_v11 = vmul.f32 %v17088_v34, %v4389_v36  ;;  %v594_v36 = vld [vmem:[%s20265_s30] sm:$0xff]  ;;  %v14316_v34 = vld [vmem:[%s20263_s18 + $0x48] sm:$0xff] }
0x1f85   :  { %v4405_v12 = vmul.f32 %v14300_v35, %v4397_v11  ;;  %v14315_v35 = vld [vmem:[%s20263_s18 + $0x40] sm:$0xff]  ;;  %v14325_v11 = vld [vmem:[%s20263_s18 + $0x78] sm:$0xff] }
0x1f87   :  { %v4413_v46 = vadd.f32 %v14301_v45, %v4405_v12  ;;  %v14324_v45 = vld [vmem:[%s20263_s18 + $0x70] sm:$0xff]  ;;  %v14323_v12 = vld [vmem:[%s20263_s18 + $0x68] sm:$0xff] }
0x1f89   :  { %15922 = vmatmul.mubr.msk.f32.vlgmr.msra.gmra.mxu0 %vm610_vm4, %v4413_v46  ;;  %v14322_v46 = vld [vmem:[%s20263_s18 + $0x60] sm:$0xff] }
0x1f8a   :  { %15967 = vmatprep.mubr.msk.f32.mxu0 %vm17367_vm0, %v17366_v0  ;;  %15960 = vmatpush3.msra.mxu0 %v4612_v58 }
0x1f8b   :  { %15961 = vmatprep.subr.mxu0 %v17366_v0 }
0x1f8c   :  { %15962 = vmatpush3.msra.mxu0 %v4611_v16 }
0x1f8d   :  { %15963 = vmatprep.subr.mxu0 %v17366_v0 }
0x1f8e   :  { %15964 = vmatpush3.msra.mxu0 %v4610_v26  ;;  %v18599_v26 = vld [vmem:[%s20270_s28 + $0x8] sm:$0xff] }
0x1f8f   :  { %15965 = vmatprep.subr.mxu0 %v17366_v0 }
0x1f90   :  { %15966 = vmatpush3.msra.mxu0 %v4609_v6 }
0x1f91   :  { %15970 = vmatprep.subr.mxu0 %v17366_v0 }
0x2049   :  { %v4494_v5 = vpop.f32.mrf.mxu0 }
0x204a   :  { %v4495_v51 = vadd.f32 %v14302_v50, %v4494_v5 }
0x204b   :  { %v15923_v52 = vpop.f32.mrf.mxu0 }
0x204c   :  { %v4499_v30 = vmul.f32 0.044715, %v4495_v51  ;;  %v4498_v56 = vmul.f32 0.5, %v4495_v51  ;;  %v14313_v52 = vld [vmem:[%s20269_s26 + $0x1] ss:$0 sm:$0xff] }
0x204e   :  { %v4500_v60 = vmul.f32 %v4499_v30, %v4495_v51 }
0x2050   :  { %v4501_v54 = vmul.f32 %v4500_v60, %v4495_v51 }
0x2052   :  { %v4502_v18 = vadd.f32 %v4501_v54, %v4495_v51 }
0x2054   :  { %v4503_v29 = vmul.f32 0.7978846, %v4502_v18  ;;  %v14306_v18 = vld [vmem:[%s20269_s26] ss:$0 sm:$0xff] }
0x2056   :  { %17089 = vtanh.f32 %v4503_v29 }
0x2063   :  { %v17090_v31 = vpop.eup %17089 }
0x2064   :  { %v4505_v14 = vadd.f32 1.0, %v17090_v31 }
0x2066   :  { %v4506_v62 = vmul.f32 %v4505_v14, %v4498_v56 }
0x2068   :  { %15957 = vmatmul.mubr.f32.vlgmr.msra.gmra.mxu1 %v4506_v62 }
0x2069   :  { %16011 = vmatprep.mubr.msk.f32.mxu1 %vm17367_vm0, %v17366_v0  ;;  %16004 = vmatpush3.msra.mxu1 %v14332_v15  ;;  %v18583_v15 = vld [vmem:[%s20270_s28 + $0x18] sm:$0xff] }
0x206a   :  { %16005 = vmatprep.subr.mxu1 %v17366_v0 }
0x206b   :  { %16006 = vmatpush3.msra.mxu1 %v14331_v17  ;;  %v18592_v17 = vld [vmem:[%s20270_s28 + $0x10] sm:$0xff] }
0x206c   :  { %16007 = vmatprep.subr.mxu1 %v17366_v0 }
0x206d   :  { %16008 = vmatpush3.msra.mxu1 %v14330_v28  ;;  %v18606_v28 = vld [vmem:[%s20270_s28] sm:$0xff] }
0x206e   :  { %16009 = vmatprep.subr.mxu1 %v17366_v0 }
0x206f   :  { %16010 = vmatpush3.msra.mxu1 %v14329_v8 }
0x2070   :  { %16025 = vmatprep.subr.mxu1 %v17366_v0 }
0x2128   :  { %v4596_v32 = vpop.f32.mrf.mxu1 }
0x2129   :  { %v4597_v33 = vadd.f32 %v14304_v10, %v4596_v32 }
0x212a   :  { %v15958_v40 = vpop.f32.mrf.mxu1 }
0x212b   :  { %v4600_v41 = vadd.f32 %v4597_v33, %v18396_v7  ;;  %v14310_v7 = vld [vmem:[%s20263_s18 + $0x30] sm:$0xff]  ;;  %v18621_v33 = vld [vmem:[%s20273_s1] ss:$0 sm:$0xff] }
0x212d   :  { %v4601_v42 = vadd.f32 %v4600_v41, %v594_v36  ;;  %v18624_v41 = vld [vmem:[%s20274_s2] ss:$0 sm:$0xff] }
0x212f   :  { %v14305_v53 = vmul.f32 -1.442695, %v4601_v42 }
0x2131   :  { %17091 = vpow2.f32 %v14305_v53 }
0x213e   :  { %v17092_v55 = vpop.eup %17091 }
0x213f   :  { %v4605_v57 = vadd.f32 1.0, %v17092_v55 }
0x2141   :  { %17093 = vrcp.f32 %v4605_v57 }
0x2142   :  { %17095 = vrsqrt.f32 %v5118_v37 }
0x214e   :  { %v17094_v59 = vpop.eup %17093 }
0x214f   :  { %v18477_v61 = vmul.f32 %v17094_v59, %v4601_v42  ;;  %v17096_v30 = vpop.eup %17095  ;;  %v18631_v59 = vld [vmem:[%s20267_s23 + $0x38] sm:$0xff] }
0x2150   :  { %v5120_v31 = vmul.f32 %v17096_v30, %v18404_v43 }
0x2151   :  { %20266 = vst [vmem:[#allocation62_spill] sm:$0xff] %v18477_v61  ;;  %15968 = vmatmul.mubr.msk.f32.vlgmr.msra.gmra.mxu0 %vm610_vm4, %v18477_v61  ;;  %16012 = vmatmul.mubr.msk.f32.vlgmr.msra.gmra.mxu1 %vm610_vm4, %v18477_v61 }
0x2152   :  { %15971 = vmatpush3.msra.mxu0 %v14311_v63  ;;  %15978 = vmatprep.mubr.msk.f32.mxu0 %vm17367_vm0, %v17366_v0  ;;  %v18635_v63 = vld [vmem:[%s20276_s0] ss:$0 sm:$0xff] }
0x2153   :  { %15972 = vmatprep.subr.mxu0 %v17366_v0  ;;  %16033 = vmatprep.mubr.msk.f32.mxu1 %vm17367_vm0, %v17366_v0 }
0x2154   :  { %15973 = vmatpush3.msra.mxu0 %v14310_v7  ;;  %16026 = vmatpush3.msra.mxu1 %v18536_v13  ;;  %v18638_v7 = vld [vmem:[%s20267_s23 + $0x30] sm:$0xff] }
0x2155   :  { %15974 = vmatprep.subr.mxu0 %v17366_v0  ;;  %16027 = vmatprep.subr.mxu1 %v17366_v0 }
0x2156   :  { %15975 = vmatpush3.msra.mxu0 %v14309_v1  ;;  %16028 = vmatpush3.msra.mxu1 %v18545_v20 }
0x2157   :  { %15976 = vmatprep.subr.mxu0 %v17366_v0  ;;  %16029 = vmatprep.subr.mxu1 %v17366_v0 }
0x2158   :  { %15977 = vmatpush3.msra.mxu0 %v14308_v2  ;;  %16030 = vmatpush3.msra.mxu1 %v18555_v22  ;;  %v18645_v2 = vld [vmem:[%s20267_s23 + $0x28] sm:$0xff] }
0x2159   :  { %15979 = vmatmul.mubr.msk.f32.vlgmr.msra.gmra.mxu0 %vm610_vm4, %v18477_v61  ;;  %15981 = vmatprep.subr.mxu0 %v17366_v0 }
0x215a   :  { %15982 = vmatpush3.msra.mxu0 %v14318_v4  ;;  %15989 = vmatprep.mubr.msk.f32.mxu0 %vm17367_vm0, %v17366_v0 }
0x215b   :  { %15983 = vmatprep.subr.mxu0 %v17366_v0  ;;  %16031 = vmatprep.subr.mxu1 %v17366_v0 }
0x215c   :  { %15984 = vmatpush3.msra.mxu0 %v14317_v39  ;;  %16032 = vmatpush3.msra.mxu1 %v18565_v24 }
0x215d   :  { %15985 = vmatprep.subr.mxu0 %v17366_v0  ;;  %16047 = vmatprep.subr.mxu1 %v17366_v0 }
0x215e   :  { %15986 = vmatpush3.msra.mxu0 %v14316_v34  ;;  %v18651_v34 = vld [vmem:[%s20267_s23 + $0x20] sm:$0xff] }
0x215f   :  { %15987 = vmatprep.subr.mxu0 %v17366_v0 }
0x2160   :  { %15988 = vmatpush3.msra.mxu0 %v14315_v35  ;;  %v18657_v35 = vld [vmem:[%s20270_s28 + $0x38] sm:$0xff] }
0x2161   :  { %15990 = vmatmul.mubr.msk.f32.vlgmr.msra.gmra.mxu0 %vm610_vm4, %v18477_v61  ;;  %15992 = vmatprep.subr.mxu0 %v17366_v0 }
0x2162   :  { %15993 = vmatpush3.msra.mxu0 %v14325_v11  ;;  %16000 = vmatprep.mubr.msk.f32.mxu0 %vm17367_vm0, %v17366_v0  ;;  %v18665_v11 = vld [vmem:[%s20270_s28 + $0x30] sm:$0xff] }
0x2163   :  { %15994 = vmatprep.subr.mxu0 %v17366_v0 }
0x2164   :  { %15995 = vmatpush3.msra.mxu0 %v14324_v45  ;;  %v18672_v45 = vld [vmem:[%s20270_s28 + $0x28] sm:$0xff] }
0x2165   :  { %15996 = vmatprep.subr.mxu0 %v17366_v0 }
0x2166   :  { %15997 = vmatpush3.msra.mxu0 %v14323_v12  ;;  %v18677_v12 = vld [vmem:[%s20270_s28 + $0x20] sm:$0xff] }
0x2167   :  { %15998 = vmatprep.subr.mxu0 %v17366_v0 }
0x2168   :  { %15999 = vmatpush3.msra.mxu0 %v14322_v46 }
0x2169   :  { %16001 = vmatmul.mubr.msk.f32.vlgmr.msra.gmra.mxu0 %vm610_vm4, %v18477_v61  ;;  %16014 = vmatprep.subr.mxu0 %v17366_v0 }
0x216a   :  { %16015 = vmatpush3.msra.mxu0 %v14339_v47  ;;  %16022 = vmatprep.mubr.msk.f32.mxu0 %vm17367_vm0, %v17366_v0 }
0x216b   :  { %16016 = vmatprep.subr.mxu0 %v17366_v0 }
0x216c   :  { %16017 = vmatpush3.msra.mxu0 %v14338_v48 }
0x216d   :  { %16018 = vmatprep.subr.mxu0 %v17366_v0 }
0x216e   :  { %16019 = vmatpush3.msra.mxu0 %v14337_v49 }
0x216f   :  { %16020 = vmatprep.subr.mxu0 %v17366_v0 }
0x2170   :  { %16021 = vmatpush3.msra.mxu0 %v14336_v3 }
0x2171   :  { %16023 = vmatmul.mubr.msk.f32.vlgmr.msra.gmra.mxu0 %vm610_vm4, %v18477_v61  ;;  %16036 = vmatprep.subr.mxu0 %v17366_v0 }
0x2172   :  { %16044 = vmatprep.mubr.msk.f32.mxu0 %vm17367_vm0, %v17366_v0  ;;  %16037 = vmatpush3.msra.mxu0 %v18540_v19 }
0x2173   :  { %16038 = vmatprep.subr.mxu0 %v17366_v0 }
0x2174   :  { %16039 = vmatpush3.msra.mxu0 %v18550_v21 }
0x2175   :  { %16040 = vmatprep.subr.mxu0 %v17366_v0 }
0x2176   :  { %16041 = vmatpush3.msra.mxu0 %v18560_v23 }
0x2177   :  { %16042 = vmatprep.subr.mxu0 %v17366_v0 }
0x2178   :  { %16043 = vmatpush3.msra.mxu0 %v18570_v25 }
0x2179   :  { %16058 = vmatprep.subr.mxu0 %v17366_v0 }
0x2211   :  { %v4689_v44 = vpop.f32.mrf.mxu0  ;;  %v18575_v50 = vpop.f32.mrf.mxu1 }
0x2212   :  { %20271 = vst [vmem:[#allocation63_spill] sm:$0xff] %v18575_v50  ;;  %v4690_v14 = vadd.f32 %v14306_v18, %v4689_v44  ;;  %v18690_v18 = vld [vmem:[%s20268_s4 + $0x38] sm:$0xff] }
0x2213   :  { %v15969_v5 = vpop.f32.mrf.mxu0  ;;  %v16013_v51 = vpop.f32.mrf.mxu1 }
0x2219   :  { %v4772_v60 = vpop.f32.mrf.mxu0 }
0x221a   :  { %v4773_v54 = vadd.f32 %v14313_v52, %v4772_v60 }
0x221b   :  { %v15980_v29 = vpop.f32.mrf.mxu0 }
0x221c   :  { %v5121_v56 = vadd.f32 1.0, %v4773_v54  ;;  %v18694_v29 = vld [vmem:[%s20268_s4 + $0x30] sm:$0xff] }
0x221e   :  { %v5122_v62 = vmul.f32 %v5121_v56, %v5120_v31  ;;  %v18701_v31 = vld [vmem:[%s20268_s4 + $0x28] sm:$0xff]  ;;  %v18706_v56 = vld [vmem:[%s20268_s4 + $0x20] sm:$0xff] }
0x2220   :  { %v18580_v58 = vadd.f32 %v5122_v62, %v4690_v14 }
0x2221   :  { %v18585_v16 = vpop.f32.mrf.mxu0 }
0x2222   :  { %20272 = vst [vmem:[#allocation61_spill] sm:$0xff] %v18585_v16  ;;  %16034 = vmatmul.mubr.msk.f32.vlgmr.msra.gmra.mxu1 %vm610_vm4, %v18580_v58  ;;  %16045 = vmatmul.mubr.msk.f32.vlgmr.msra.gmra.mxu0 %vm610_vm4, %v18580_v58 }
0x2223   :  { %16048 = vmatpush3.msra.mxu1 %v18583_v15  ;;  %v15991_v43 = vpop.f32.mrf.mxu0  ;;  %16055 = vmatprep.mubr.msk.f32.mxu1 %vm17367_vm0, %v17366_v0 }
0x2224   :  { %16049 = vmatprep.subr.mxu1 %v17366_v0  ;;  %16060 = vmatprep.mubr.msk.f32.mxu0 %vm17367_vm0, %v17366_v0  ;;  %v18717_v43 = vld [vmem:[%s20273_s1 + $0x1] ss:$0 sm:$0xff] }
0x2225   :  { %16050 = vmatpush3.msra.mxu1 %v18592_v17 }
0x2226   :  { %16051 = vmatprep.subr.mxu1 %v17366_v0 }
0x2227   :  { %16052 = vmatpush3.msra.mxu1 %v18599_v26 }
0x2228   :  { %16053 = vmatprep.subr.mxu1 %v17366_v0 }
0x2229   :  { %16054 = vmatpush3.msra.mxu1 %v18606_v28  ;;  %v18611_v6 = vpop.f32.mrf.mxu0 }
0x222a   :  { %20275 = vst [vmem:[#allocation64_spill] sm:$0xff] %v18611_v6  ;;  %16056 = vmatmul.mubr.msk.f32.vlgmr.msra.gmra.mxu1 %vm610_vm4, %v18580_v58  ;;  %16063 = vmatprep.subr.mxu1 %v17366_v0 }
0x222b   :  { %v16002_v8 = vpop.f32.mrf.mxu0  ;;  %16065 = vmatprep.mubr.msk.f32.mxu1 %vm17367_vm0, %v17366_v0 }
0x2231   :  { %v18618_v10 = vpop.f32.mrf.mxu0 }
0x2232   :  { %20277 = vst [vmem:[#allocation65_spill] sm:$0xff] %v18618_v10 }
0x2233   :  { %v16024_v32 = vpop.f32.mrf.mxu0 }
0x2234   :  { %v18720_v32 = vld [vmem:[%s20274_s2 + $0x1] ss:$0 sm:$0xff] }
0x22e2   :  { %v5205_v36 = vpop.f32.mrf.mxu1  ;;  %v5286_v40 = vpop.f32.mrf.mxu0 }
0x22e3   :  { %v5287_v42 = vadd.f32 %v18621_v33, %v5286_v40  ;;  %v5206_v57 = vadd.f32 %v18624_v41, %v5205_v36  ;;  %v18724_v40 = vld [vmem:[%s20276_s0 + $0x1] ss:$0 sm:$0xff] }
0x22e4   :  { %v16035_v53 = vpop.f32.mrf.mxu1  ;;  %v16046_v55 = vpop.f32.mrf.mxu0 }
0x22e5   :  { %16059 = vmatpush3.xpose.msk.msra.mxu0 %vm892_vm9, %v5287_v42 }
0x22e6   :  { %16068 = vmatprep.subr.mxu0 %v17366_v0 }
0x22e8   :  { %16061 = vmatmul.mubr.msk.f32.vlgmr.msra.gmra.mxu0 %vm892_vm9, %v5206_v57 }
0x22e9   :  { %16069 = vmatpush3.msra.mxu0 %v18631_v59  ;;  %16076 = vmatprep.mubr.msk.f32.mxu0 %vm17367_vm0, %v17366_v0 }
0x22ea   :  { %v5367_v1 = vpop.f32.mrf.mxu1  ;;  %16070 = vmatprep.subr.mxu0 %v17366_v0 }
0x22eb   :  { %v5368_v4 = vadd.f32 %v18635_v63, %v5367_v1  ;;  %16071 = vmatpush3.msra.mxu0 %v18638_v7 }
0x22ec   :  { %v16057_v39 = vpop.f32.mrf.mxu1  ;;  %16072 = vmatprep.subr.mxu0 %v17366_v0 }
0x22ed   :  { %16064 = vmatpush3.msk.msra.mxu1 %vm327_vm1, %v5368_v4  ;;  %16073 = vmatpush3.msra.mxu0 %v18645_v2 }
0x22ee   :  { %16074 = vmatprep.subr.mxu0 %v17366_v0  ;;  %16079 = vmatprep.subr.mxu1 %v17366_v0 }
0x22ef   :  { %16075 = vmatpush3.msra.mxu0 %v18651_v34 }
0x22f0   :  { %16077 = vmatmul.mubr.msk.f32.vlgmr.msra.gmra.mxu0 %vm610_vm4, %v18580_v58  ;;  %16090 = vmatprep.subr.mxu0 %v17366_v0 }
0x22f1   :  { %16091 = vmatpush3.msra.mxu0 %v18657_v35  ;;  %16098 = vmatprep.mubr.msk.f32.mxu0 %vm17367_vm0, %v17366_v0 }
0x22f2   :  { %16092 = vmatprep.subr.mxu0 %v17366_v0 }
0x22f3   :  { %16093 = vmatpush3.msra.mxu0 %v18665_v11 }
0x22f4   :  { %16094 = vmatprep.subr.mxu0 %v17366_v0 }
0x22f5   :  { %16095 = vmatpush3.msra.mxu0 %v18672_v45 }
0x22f6   :  { %16096 = vmatprep.subr.mxu0 %v17366_v0 }
0x22f7   :  { %16097 = vmatpush3.msra.mxu0 %v18677_v12 }
0x22f8   :  { %16099 = vmatmul.mubr.msk.f32.vlgmr.msra.gmra.mxu0 %vm610_vm4, %v18580_v58  ;;  %16111 = vmatprep.subr.mxu0 %v17366_v0 }
0x22f9   :  { %16113 = vmatprep.mubr.msk.f32.mxu0 %vm17367_vm0, %v17366_v0 }
0x23a8   :  { %v5443_v46 = vpop.f32.mrf.mxu0 }
0x23a9   :  { %v5448_v47 = vsel %vm5447_vm13, %v5443_v46, -inf }
0x23aa   :  { %5449 = vmax.xlane.f32.xlu0 %v5448_v47  ;;  %v16062_v48 = vpop.f32.mrf.mxu0 }
0x23b0   :  { %v5616_v49 = vpop.f32.mrf.mxu0 }
0x23b1   :  { %v5617_v53 = vadd.f32 %v18720_v32, %v5616_v49 }
0x23b2   :  { %v16078_v3 = vpop.f32.mrf.mxu0 }
0x23b3   :  { %v18738_v3 = vld [vmem:[%s20278_s17 + $0x8] sm:$0xff] }
0x23b4   :  { %16112 = vmatpush3.msra.mxu0 %v18738_v3 }
0x23b5   :  { %16121 = vmatprep.subr.mxu0 %v17366_v0 }
0x23b8   :  { %v5782_v27 = vpop.f32.mrf.mxu0 }
0x23b9   :  { %v5783_v55 = vadd.f32 %v18724_v40, %v5782_v27 }
0x23ba   :  { %v16100_v38 = vpop.f32.mrf.mxu0 }
0x2433   :  { %v5450_v37 = vpop.xlane.xlu0 %5449 }
0x2434   :  { %v5451_v44 = vsub.f32 %v5443_v46, %v5450_v37 }
0x2436   :  { %v5452_v5 = vmul.f32 1.442695, %v5451_v44  ;;  %v18743_v44 = vld [vmem:[%s20278_s17] sm:$0xff] }
0x2438   :  { %17097 = vpow2.f32 %v5452_v5  ;;  %v18751_v5 = vld [vmem:[%s20268_s4 + $0x58] sm:$0xff] }
0x2445   :  { %v17098_v51 = vpop.eup %17097 }
0x2446   :  { %v5454_v52 = vsel %vm5447_vm13, %v17098_v51, 0.0 }
0x2447   :  { %5455 = vadd.xlane.f32.xlu1 %v5454_v52  ;;  %v18762_v52 = vld [vmem:[%s20268_s4 + $0x48] sm:$0xff] }
0x24d0   :  { %v5456_v30 = vpop.xlane.xlu1 %5455 }
0x24d1   :  { %17099 = vrcp.f32 %v5456_v30  ;;  %v18767_v30 = vld [vmem:[%s20268_s4 + $0x40] sm:$0xff] }
0x24de   :  { %v17100_v60 = vpop.eup %17099 }
0x24df   :  { %v5458_v54 = vmul.f32 %v17100_v60, %v17098_v51  ;;  %v18755_v51 = vld [vmem:[%s20268_s4 + $0x50] sm:$0xff]  ;;  %v18778_v60 = vld [vmem:[%s20267_s23 + $0x58] sm:$0xff] }
0x24e1   :  { %16066 = vmatmul.mubr.msk.f32.vlgmr.msra.gmra.mxu1 %vm5459_vm14, %v5458_v54 }
0x24e2   :  { %16080 = vmatpush3.msra.mxu1 %v18690_v18  ;;  %16087 = vmatprep.mubr.msk.f32.mxu1 %vm17367_vm0, %v17366_v0 }
0x24e3   :  { %16081 = vmatprep.subr.mxu1 %v17366_v0 }
0x24e4   :  { %16082 = vmatpush3.msra.mxu1 %v18694_v29 }
0x24e5   :  { %16083 = vmatprep.subr.mxu1 %v17366_v0 }
0x24e6   :  { %16084 = vmatpush3.msra.mxu1 %v18701_v31 }
0x24e7   :  { %16085 = vmatprep.subr.mxu1 %v17366_v0 }
0x24e8   :  { %16086 = vmatpush3.msra.mxu1 %v18706_v56 }
0x24e9   :  { %16088 = vmatmul.mubr.msk.f32.vlgmr.msra.gmra.mxu1 %vm610_vm4, %v18580_v58  ;;  %16101 = vmatprep.subr.mxu1 %v17366_v0 }
0x24ea   :  { %16103 = vmatprep.mubr.msk.f32.mxu1 %vm17367_vm0, %v17366_v0 }
0x25a1   :  { %v5532_v14 = vpop.f32.mrf.mxu1 }
0x25a3   :  { %v16067_v62 = vpop.f32.mrf.mxu1 }
0x25a9   :  { %v5699_v8 = vpop.f32.mrf.mxu1 }
0x25aa   :  { %v5700_v36 = vadd.f32 %v18717_v43, %v5699_v8  ;;  %v18789_v8 = vld [vmem:[%s20267_s23 + $0x48] sm:$0xff] }
0x25ab   :  { %v16089_v42 = vpop.f32.mrf.mxu1 }
0x25ac   :  { %16102 = vmatpush3.xpose.msk.msra.mxu1 %vm892_vm9, %v5700_v36  ;;  %v18796_v42 = vld [vmem:[%s20267_s23 + $0x40] sm:$0xff] }
0x25ad   :  { %16106 = vmatprep.subr.mxu1 %v17366_v0 }
0x25af   :  { %16104 = vmatmul.mubr.msk.f32.vlgmr.msra.gmra.mxu1 %vm892_vm9, %v5617_v53 }
0x25b0   :  { %16107 = vmatpush3.msk.msra.mxu1 %vm327_vm1, %v5783_v55  ;;  %16108 = vmatprep.mubr.msk.f32.mxu1 %vm17367_vm0, %v17366_v0  ;;  %v18801_v55 = vld [vmem:[%s20270_s28 + $0x58] sm:$0xff] }
0x25b1   :  { %16116 = vmatprep.subr.mxu1 %v17366_v0 }
0x266f   :  { %v5858_v57 = vpop.f32.mrf.mxu1 }
0x2670   :  { %v5862_v1 = vsel %vm5447_vm13, %v5858_v57, -inf }
0x2671   :  { %5863 = vmax.xlane.f32.xlu0 %v5862_v1  ;;  %v16105_v4 = vpop.f32.mrf.mxu1  ;;  %v18812_v1 = vld [vmem:[%s20273_s1 + $0x2] ss:$0 sm:$0xff] }
0x2672   :  { %v18818_v4 = vld [vmem:[%s20270_s28 + $0x48] sm:$0xff] }
0x26fa   :  { %v5864_v39 = vpop.xlane.xlu0 %5863 }
0x26fb   :  { %v5865_v46 = vsub.f32 %v5858_v57, %v5864_v39  ;;  %v18808_v57 = vld [vmem:[%s20270_s28 + $0x50] sm:$0xff] }
0x26fd   :  { %v5866_v47 = vmul.f32 1.442695, %v5865_v46 }
0x26ff   :  { %17101 = vpow2.f32 %v5866_v47  ;;  %v18824_v47 = vld [vmem:[%s20270_s28 + $0x40] sm:$0xff] }
0x270c   :  { %v17102_v48 = vpop.eup %17101 }
0x270d   :  { %v5868_v49 = vsel %vm5447_vm13, %v17102_v48, 0.0 }
0x270e   :  { %5869 = vadd.xlane.f32.xlu1 %v5868_v49 }
0x2797   :  { %v5870_v27 = vpop.xlane.xlu1 %5869 }
0x2798   :  { %17103 = vrcp.f32 %v5870_v27 }
0x27a5   :  { %v17104_v38 = vpop.eup %17103 }
0x27a6   :  { %v5872_v37 = vmul.f32 %v17104_v38, %v17102_v48  ;;  %v18839_v38 = vld [vmem:[%s20274_s2 + $0x2] ss:$0 sm:$0xff] }
0x27a8   :  { %16109 = vmatmul.mubr.msk.f32.vlgmr.msra.gmra.mxu1 %vm5459_vm14, %v5872_v37 }
0x27a9   :  { %16117 = vmatpush3.msra.mxu1 %v18743_v44  ;;  %16118 = vmatprep.mubr.msk.f32.mxu1 %vm17367_vm0, %v17366_v0 }
0x27aa   :  { %16132 = vmatprep.subr.mxu1 %v17366_v0 }
0x27ac   :  { %16119 = vmatmul.mubr.msk.f32.vlgmr.msra.gmra.mxu1 %vm892_vm9, %v5532_v14  ;;  %v18782_v14 = vld [vmem:[%s20267_s23 + $0x50] sm:$0xff] }
0x27ad   :  { %16133 = vmatpush3.msra.mxu1 %v18751_v5  ;;  %16140 = vmatprep.mubr.msk.f32.mxu1 %vm17367_vm0, %v17366_v0 }
0x27ae   :  { %16134 = vmatprep.subr.mxu1 %v17366_v0 }
0x27af   :  { %16135 = vmatpush3.msra.mxu1 %v18755_v51 }
0x27b0   :  { %16136 = vmatprep.subr.mxu1 %v17366_v0 }
0x27b1   :  { %16137 = vmatpush3.msra.mxu1 %v18762_v52 }
0x27b2   :  { %16138 = vmatprep.subr.mxu1 %v17366_v0 }
0x27b3   :  { %16139 = vmatpush3.msra.mxu1 %v18767_v30 }
0x27b4   :  { %16141 = vmatmul.mubr.msk.f32.vlgmr.msra.gmra.mxu1 %vm610_vm4, %v18580_v58  ;;  %16154 = vmatprep.subr.mxu1 %v17366_v0 }
0x27b5   :  { %16156 = vmatprep.mubr.msk.f32.mxu1 %vm17367_vm0, %v17366_v0 }
0x2868   :  { %v5945_v54 = vpop.f32.mrf.mxu1 }
0x2869   :  { %16114 = vmatmul.mubr.msk.f32.vlgmr.msra.gmra.mxu0 %vm892_vm9, %v5945_v54 }
0x286a   :  { %16122 = vmatpush3.msra.mxu0 %v18778_v60  ;;  %v16110_v62 = vpop.f32.mrf.mxu1  ;;  %16129 = vmatprep.mubr.msk.f32.mxu0 %vm17367_vm0, %v17366_v0 }
0x286b   :  { %16123 = vmatprep.subr.mxu0 %v17366_v0 }
0x286c   :  { %16124 = vmatpush3.msra.mxu0 %v18782_v14  ;;  %v18792_v36 = vpop.f32.mrf.mxu1 }
0x286d   :  { %16125 = vmatprep.subr.mxu0 %v17366_v0 }
0x286e   :  { %16126 = vmatpush3.msra.mxu0 %v18789_v8  ;;  %v16120_v53 = vpop.f32.mrf.mxu1 }
0x286f   :  { %16127 = vmatprep.subr.mxu0 %v17366_v0  ;;  %v18846_v53 = vld [vmem:[%s20276_s0 + $0x2] ss:$0 sm:$0xff] }
0x2870   :  { %16128 = vmatpush3.msra.mxu0 %v18796_v42  ;;  %20279 = vst [vmem:[#allocation66_spill] sm:$0xff] %v18846_v53 }
0x2871   :  { %16130 = vmatmul.mubr.msk.f32.vlgmr.msra.gmra.mxu0 %vm610_vm4, %v18580_v58  ;;  %16143 = vmatprep.subr.mxu0 %v17366_v0 }
0x2872   :  { %16144 = vmatpush3.msra.mxu0 %v18801_v55  ;;  %16151 = vmatprep.mubr.msk.f32.mxu0 %vm17367_vm0, %v17366_v0 }
0x2873   :  { %16145 = vmatprep.subr.mxu0 %v17366_v0 }
0x2874   :  { %v6259_v39 = vpop.f32.mrf.mxu1  ;;  %16146 = vmatpush3.msra.mxu0 %v18808_v57 }
0x2875   :  { %v6260_v46 = vadd.f32 %v18812_v1, %v6259_v39  ;;  %16147 = vmatprep.subr.mxu0 %v17366_v0 }
0x2876   :  { %v16142_v48 = vpop.f32.mrf.mxu1  ;;  %16148 = vmatpush3.msra.mxu0 %v18818_v4 }
0x2877   :  { %16149 = vmatprep.subr.mxu0 %v17366_v0  ;;  %16155 = vmatpush3.xpose.msk.msra.mxu1 %vm892_vm9, %v6260_v46 }
0x2878   :  { %16150 = vmatpush3.msra.mxu0 %v18824_v47  ;;  %16159 = vmatprep.subr.mxu1 %v17366_v0 }
0x2879   :  { %16152 = vmatmul.mubr.msk.f32.vlgmr.msra.gmra.mxu0 %vm610_vm4, %v18580_v58  ;;  %16164 = vmatprep.subr.mxu0 %v17366_v0 }
0x287a   :  { %16166 = vmatprep.mubr.msk.f32.mxu0 %vm17367_vm0, %v17366_v0 }
0x2929   :  { %v18836_v49 = vpop.f32.mrf.mxu0 }
0x292b   :  { %v16115_v27 = vpop.f32.mrf.mxu0 }
0x2931   :  { %v6176_v37 = vpop.f32.mrf.mxu0 }
0x2932   :  { %v6177_v54 = vadd.f32 %v18839_v38, %v6176_v37 }
0x2933   :  { %v16131_v62 = vpop.f32.mrf.mxu0 }
0x2934   :  { %16157 = vmatmul.mubr.msk.f32.vlgmr.msra.gmra.mxu1 %vm892_vm9, %v6177_v54 }
0x2935   :  { %16161 = vmatprep.mubr.msk.f32.mxu1 %vm17367_vm0, %v17366_v0 }
0x2939   :  { %v6342_v39 = vpop.f32.mrf.mxu0 }
0x293a   :  { %v6343_v46 = vadd.f32 %v18846_v53, %v6342_v39 }
0x293b   :  { %v16153_v48 = vpop.f32.mrf.mxu0 }
0x293c   :  { %16160 = vmatpush3.msk.msra.mxu1 %vm327_vm1, %v6343_v46  ;;  %v18854_v48 = vld [vmem:[%s20278_s17 + $0x10] sm:$0xff] }
0x293d   :  { %16169 = vmatprep.subr.mxu1 %v17366_v0  ;;  %16165 = vmatpush3.msra.mxu0 %v18854_v48 }
0x293e   :  { %16180 = vmatprep.subr.mxu0 %v17366_v0 }
0x29f4   :  { %v6418_v27 = vpop.f32.mrf.mxu1 }
0x29f5   :  { %v6422_v37 = vsel %vm5447_vm13, %v6418_v27, -inf }
0x29f6   :  { %6423 = vmax.xlane.f32.xlu0 %v6422_v37  ;;  %v16158_v54 = vpop.f32.mrf.mxu1 }
0x2a7f   :  { %v6424_v62 = vpop.xlane.xlu0 %6423 }
0x2a80   :  { %v6425_v10 = vsub.f32 %v6418_v27, %v6424_v62  ;;  %v18859_v27 = vld [vmem:[%s20267_s23 + $0x78] sm:$0xff] }
0x2a81   :  { %20280 = vst [vmem:[#allocation67_spill] sm:$0xff] %v18859_v27  ;;  %v18880_v62 = vld [vmem:[%s20270_s28 + $0x78] sm:$0xff] }
0x2a82   :  { %v6426_v61 = vmul.f32 1.442695, %v6425_v10  ;;  %v18870_v10 = vld [vmem:[%s20267_s23 + $0x68] sm:$0xff]  ;;  %20284 = vst [vmem:[#allocation71_spill] sm:$0xff] %v18880_v62 }
0x2a83   :  { %20282 = vst [vmem:[#allocation69_spill] sm:$0xff] %v18870_v10 }
0x2a84   :  { %17105 = vpow2.f32 %v6426_v61  ;;  %v18863_v61 = vld [vmem:[%s20267_s23 + $0x70] sm:$0xff] }
0x2a85   :  { %20281 = vst [vmem:[#allocation68_spill] sm:$0xff] %v18863_v61 }
0x2a91   :  { %v17106_v6 = vpop.eup %17105 }
0x2a92   :  { %v6428_v39 = vsel %vm5447_vm13, %v17106_v6, 0.0 }
0x2a93   :  { %6429 = vadd.xlane.f32.xlu1 %v6428_v39  ;;  %v18887_v39 = vld [vmem:[%s20270_s28 + $0x70] sm:$0xff] }
0x2a94   :  { %20285 = vst [vmem:[#allocation72_spill] sm:$0xff] %v18887_v39 }
0x2b1c   :  { %v6430_v46 = vpop.xlane.xlu1 %6429 }
0x2b1d   :  { %17107 = vrcp.f32 %v6430_v46  ;;  %v18894_v46 = vld [vmem:[%s20270_s28 + $0x68] sm:$0xff] }
0x2b1e   :  { %20286 = vst [vmem:[#allocation73_spill] sm:$0xff] %v18894_v46 }
0x2b2a   :  { %v17108_v37 = vpop.eup %17107 }
0x2b2b   :  { %v6432_v54 = vmul.f32 %v17108_v37, %v17106_v6  ;;  %v18875_v6 = vld [vmem:[%s20267_s23 + $0x60] sm:$0xff] }
0x2b2c   :  { %20283 = vst [vmem:[#allocation70_spill] sm:$0xff] %v18875_v6  ;;  %v18899_v37 = vld [vmem:[%s20270_s28 + $0x60] sm:$0xff] }
0x2b2d   :  { %16162 = vmatmul.mubr.msk.f32.vlgmr.msra.gmra.mxu1 %vm5459_vm14, %v6432_v54  ;;  %20287 = vst [vmem:[#allocation74_spill] sm:$0xff] %v18899_v37  ;;  %v18910_v54 = vld [vmem:[%s20268_s4 + $0x78] sm:$0xff] }
0x2b2e   :  { %16170 = vmatpush3.msra.mxu1 %v18859_v27  ;;  %16177 = vmatprep.mubr.msk.f32.mxu1 %vm17367_vm0, %v17366_v0  ;;  %20288 = vst [vmem:[#allocation75_spill] sm:$0xff] %v18910_v54 }
0x2b2f   :  { %16171 = vmatprep.subr.mxu1 %v17366_v0 }
0x2b30   :  { %16172 = vmatpush3.msra.mxu1 %v18863_v61  ;;  %v18944_v61 = vld [vmem:[%s20274_s2 + $0x3] ss:$0 sm:$0xff] }
0x2b31   :  { %16173 = vmatprep.subr.mxu1 %v17366_v0 }
0x2b32   :  { %16174 = vmatpush3.msra.mxu1 %v18870_v10  ;;  %v18941_v10 = vld [vmem:[%s20273_s1 + $0x3] ss:$0 sm:$0xff] }
0x2b33   :  { %16175 = vmatprep.subr.mxu1 %v17366_v0 }
0x2b34   :  { %16176 = vmatpush3.msra.mxu1 %v18875_v6 }
0x2b35   :  { %16178 = vmatmul.mubr.msk.f32.vlgmr.msra.gmra.mxu1 %vm610_vm4, %v18580_v58  ;;  %16191 = vmatprep.subr.mxu1 %v17366_v0 }
0x2b36   :  { %16192 = vmatpush3.msra.mxu1 %v18880_v62  ;;  %16199 = vmatprep.mubr.msk.f32.mxu1 %vm17367_vm0, %v17366_v0 }
0x2b37   :  { %16193 = vmatprep.subr.mxu1 %v17366_v0 }
0x2b38   :  { %16194 = vmatpush3.msra.mxu1 %v18887_v39 }
0x2b39   :  { %16195 = vmatprep.subr.mxu1 %v17366_v0 }
0x2b3a   :  { %16196 = vmatpush3.msra.mxu1 %v18894_v46  ;;  %v18926_v46 = vld [vmem:[%s20268_s4 + $0x60] sm:$0xff] }
0x2b3b   :  { %16197 = vmatprep.subr.mxu1 %v17366_v0  ;;  %20291 = vst [vmem:[#allocation78_spill] sm:$0xff] %v18926_v46 }
0x2b3c   :  { %16198 = vmatpush3.msra.mxu1 %v18899_v37  ;;  %v18921_v37 = vld [vmem:[%s20268_s4 + $0x68] sm:$0xff] }
0x2b3d   :  { %16200 = vmatmul.mubr.msk.f32.vlgmr.msra.gmra.mxu1 %vm610_vm4, %v18580_v58  ;;  %16212 = vmatprep.subr.mxu1 %v17366_v0  ;;  %20290 = vst [vmem:[#allocation77_spill] sm:$0xff] %v18921_v37 }
0x2b3e   :  { %16214 = vmatprep.mubr.msk.f32.mxu1 %vm17367_vm0, %v17366_v0 }
0x2bed   :  { %v6505_v50 = vpop.f32.mrf.mxu1 }
0x2bee   :  { %16167 = vmatmul.mubr.msk.f32.vlgmr.msra.gmra.mxu0 %vm892_vm9, %v6505_v50 }
0x2bef   :  { %16181 = vmatpush3.msra.mxu0 %v18910_v54  ;;  %v16163_v16 = vpop.f32.mrf.mxu1  ;;  %16188 = vmatprep.mubr.msk.f32.mxu0 %vm17367_vm0, %v17366_v0 }
0x2bf0   :  { %16182 = vmatprep.subr.mxu0 %v17366_v0 }
0x2bf1   :  { %16183 = vmatpush3.msra.mxu0 %v18914_v9 }
0x2bf2   :  { %16184 = vmatprep.subr.mxu0 %v17366_v0 }
0x2bf3   :  { %16185 = vmatpush3.msra.mxu0 %v18921_v37  ;;  %v6094_v37 = vadd.f32 %v18792_v36, %v18836_v49 }
0x2bf4   :  { %16186 = vmatprep.subr.mxu0 %v17366_v0 }
0x2bf5   :  { %v6664_v50 = vpop.f32.mrf.mxu1  ;;  %16187 = vmatpush3.msra.mxu0 %v18926_v46 }
0x2bf6   :  { %16189 = vmatmul.mubr.msk.f32.vlgmr.msra.gmra.mxu0 %vm610_vm4, %v18580_v58  ;;  %16202 = vmatprep.subr.mxu0 %v17366_v0 }
0x2bf7   :  { %v16179_v16 = vpop.f32.mrf.mxu1  ;;  %16204 = vmatprep.mubr.msk.f32.mxu0 %vm17367_vm0, %v17366_v0 }
0x2bf8   :  { %v18948_v16 = vld [vmem:[%s20276_s0 + $0x3] ss:$0 sm:$0xff] }
0x2bf9   :  { %20292 = vst [vmem:[#allocation79_spill] sm:$0xff] %v18948_v16 }
0x2bfd   :  { %v6830_v9 = vpop.f32.mrf.mxu1 }
0x2bfe   :  { %v6831_v36 = vadd.f32 %v18948_v16, %v6830_v9 }
0x2bff   :  { %v16201_v54 = vpop.f32.mrf.mxu1 }
0x2c00   :  { %v6665_v54 = vadd.f32 %v18944_v61, %v6664_v50  ;;  %v18962_v50 = vld [vmem:[%s20278_s17 + $0x18] sm:$0xff] }
0x2c01   :  { %16213 = vmatpush3.msra.mxu1 %v18962_v50 }
0x2c02   :  { %16228 = vmatprep.subr.mxu1 %v17366_v0 }
0x2cae   :  { %v6580_v39 = vpop.f32.mrf.mxu0 }
0x2caf   :  { %v18938_v62 = vadd.f32 %v6580_v39, %v6094_v37 }
0x2cb0   :  { %v16168_v6 = vpop.f32.mrf.mxu0 }
0x2cb6   :  { %v6747_v46 = vpop.f32.mrf.mxu0 }
0x2cb7   :  { %v6748_v27 = vadd.f32 %v18941_v10, %v6747_v46 }
0x2cb8   :  { %v16190_v53 = vpop.f32.mrf.mxu0 }
0x2cb9   :  { %16203 = vmatpush3.xpose.msk.msra.mxu0 %vm892_vm9, %v6748_v27 }
0x2cba   :  { %16207 = vmatprep.subr.mxu0 %v17366_v0 }
0x2cbc   :  { %16205 = vmatmul.mubr.msk.f32.vlgmr.msra.gmra.mxu0 %vm892_vm9, %v6665_v54 }
0x2cbd   :  { %16208 = vmatpush3.msk.msra.mxu0 %vm327_vm1, %v6831_v36  ;;  %16209 = vmatprep.mubr.msk.f32.mxu0 %vm17367_vm0, %v17366_v0 }
0x2cbe   :  { %16217 = vmatprep.subr.mxu0 %v17366_v0 }
0x2d7c   :  { %v6906_v49 = vpop.f32.mrf.mxu0 }
0x2d7d   :  { %v6910_v53 = vsel %vm5447_vm13, %v6906_v49, -inf }
0x2d7e   :  { %6911 = vmax.xlane.f32.xlu0 %v6910_v53  ;;  %v16206_v27 = vpop.f32.mrf.mxu0 }
0x2e07   :  { %v6912_v6 = vpop.xlane.xlu0 %6911 }
0x2e08   :  { %v6913_v39 = vsub.f32 %v6906_v49, %v6912_v6  ;;  %v18976_v49 = vrot.slane %v18580_v58, 4 }
0x2e0a   :  { %v6914_v46 = vmul.f32 1.442695, %v6913_v39 }
0x2e0c   :  { %17109 = vpow2.f32 %v6914_v46 }
0x2e19   :  { %v17110_v9 = vpop.eup %17109 }
0x2e1a   :  { %v6916_v37 = vsel %vm5447_vm13, %v17110_v9, 0.0 }
0x2e1b   :  { %6917 = vadd.xlane.f32.xlu1 %v6916_v37 }
0x2ea4   :  { %v6918_v54 = vpop.xlane.xlu1 %6917 }
0x2ea5   :  { %17111 = vrcp.f32 %v6918_v54 }
0x2eb2   :  { %v17112_v36 = vpop.eup %17111 }
0x2eb3   :  { %v6920_v16 = vmul.f32 %v17112_v36, %v17110_v9 }
0x2eb5   :  { %16210 = vmatmul.mubr.msk.f32.vlgmr.msra.gmra.mxu0 %vm5459_vm14, %v6920_v16 }
0x2eb6   :  { %16218 = vmatpush3.msra.mxu0 %v18536_v13  ;;  %16225 = vmatprep.mubr.msk.f32.mxu0 %vm17367_vm0, %v17366_v0 }
0x2eb7   :  { %16219 = vmatprep.subr.mxu0 %v17366_v0 }
0x2eb8   :  { %16220 = vmatpush3.msra.mxu0 %v18545_v20 }
0x2eb9   :  { %16221 = vmatprep.subr.mxu0 %v17366_v0 }
0x2eba   :  { %16222 = vmatpush3.msra.mxu0 %v18555_v22 }
0x2ebb   :  { %16223 = vmatprep.subr.mxu0 %v17366_v0 }
0x2ebc   :  { %16224 = vmatpush3.msra.mxu0 %v18565_v24 }
0x2ebd   :  { %16226 = vmatmul.mubr.msk.f32.vlgmr.msra.gmra.mxu0 %vm610_vm4, %v18976_v49  ;;  %16239 = vmatprep.subr.mxu0 %v17366_v0 }
0x2ebe   :  { %16240 = vmatpush3.msra.mxu0 %v18583_v15  ;;  %16247 = vmatprep.mubr.msk.f32.mxu0 %vm17367_vm0, %v17366_v0 }
0x2ebf   :  { %16241 = vmatprep.subr.mxu0 %v17366_v0 }
0x2ec0   :  { %16242 = vmatpush3.msra.mxu0 %v18592_v17 }
0x2ec1   :  { %16243 = vmatprep.subr.mxu0 %v17366_v0 }
0x2ec2   :  { %16244 = vmatpush3.msra.mxu0 %v18599_v26  ;;  %v19038_v26 = vld [vmem:[%s20293_s7] ss:$0 sm:$0xff] }
0x2ec3   :  { %16245 = vmatprep.subr.mxu0 %v17366_v0 }
0x2ec4   :  { %16246 = vmatpush3.msra.mxu0 %v18606_v28 }
0x2ec5   :  { %16248 = vmatmul.mubr.msk.f32.vlgmr.msra.gmra.mxu0 %vm610_vm4, %v18976_v49  ;;  %16260 = vmatprep.subr.mxu0 %v17366_v0 }
0x2ec6   :  { %16261 = vmatpush3.msra.mxu0 %v18631_v59  ;;  %16268 = vmatprep.mubr.msk.f32.mxu0 %vm17367_vm0, %v17366_v0 }
0x2ec7   :  { %16262 = vmatprep.subr.mxu0 %v17366_v0 }
0x2ec8   :  { %16263 = vmatpush3.msra.mxu0 %v18638_v7 }
0x2ec9   :  { %16264 = vmatprep.subr.mxu0 %v17366_v0 }
0x2eca   :  { %16265 = vmatpush3.msra.mxu0 %v18645_v2 }
0x2ecb   :  { %16266 = vmatprep.subr.mxu0 %v17366_v0 }
0x2ecc   :  { %16267 = vmatpush3.msra.mxu0 %v18651_v34 }
0x2ecd   :  { %16269 = vmatmul.mubr.msk.f32.vlgmr.msra.gmra.mxu0 %vm610_vm4, %v18976_v49  ;;  %16282 = vmatprep.subr.mxu0 %v17366_v0 }
0x2ece   :  { %16283 = vmatpush3.msra.mxu0 %v18657_v35  ;;  %16290 = vmatprep.mubr.msk.f32.mxu0 %vm17367_vm0, %v17366_v0 }
0x2ecf   :  { %16284 = vmatprep.subr.mxu0 %v17366_v0 }
0x2ed0   :  { %16285 = vmatpush3.msra.mxu0 %v18665_v11 }
0x2ed1   :  { %16286 = vmatprep.subr.mxu0 %v17366_v0 }
0x2ed2   :  { %16287 = vmatpush3.msra.mxu0 %v18672_v45 }
0x2ed3   :  { %16288 = vmatprep.subr.mxu0 %v17366_v0 }
0x2ed4   :  { %16289 = vmatpush3.msra.mxu0 %v18677_v12 }
0x2ed5   :  { %16291 = vmatmul.mubr.msk.f32.vlgmr.msra.gmra.mxu0 %vm610_vm4, %v18976_v49  ;;  %16303 = vmatprep.subr.mxu0 %v17366_v0 }
0x2ed6   :  { %16304 = vmatpush3.msra.mxu0 %v18738_v3  ;;  %16305 = vmatprep.mubr.msk.f32.mxu0 %vm17367_vm0, %v17366_v0 }
0x2ed7   :  { %16313 = vmatprep.subr.mxu0 %v17366_v0 }
0x2f75   :  { %v6993_v13 = vpop.f32.mrf.mxu0 }
0x2f76   :  { %16215 = vmatmul.mubr.msk.f32.vlgmr.msra.gmra.mxu1 %vm892_vm9, %v6993_v13 }
0x2f77   :  { %16229 = vmatpush3.msra.mxu1 %v18540_v19  ;;  %v16211_v20 = vpop.f32.mrf.mxu0  ;;  %16236 = vmatprep.mubr.msk.f32.mxu1 %vm17367_vm0, %v17366_v0 }
0x2f78   :  { %16230 = vmatprep.subr.mxu1 %v17366_v0 }
0x2f79   :  { %16231 = vmatpush3.msra.mxu1 %v18550_v21 }
0x2f7a   :  { %16232 = vmatprep.subr.mxu1 %v17366_v0 }
0x2f7b   :  { %16233 = vmatpush3.msra.mxu1 %v18560_v23 }
0x2f7c   :  { %16234 = vmatprep.subr.mxu1 %v17366_v0 }
0x2f7d   :  { %v7161_v22 = vpop.f32.mrf.mxu0  ;;  %16235 = vmatpush3.msra.mxu1 %v18570_v25 }
0x2f7e   :  { %16237 = vmatmul.mubr.msk.f32.vlgmr.msra.gmra.mxu1 %vm610_vm4, %v18976_v49  ;;  %16250 = vmatprep.subr.mxu1 %v17366_v0  ;;  %v7162_v11 = vadd.f32 %v18624_v41, %v7161_v22 }
0x2f7f   :  { %v16227_v19 = vpop.f32.mrf.mxu0  ;;  %16252 = vmatprep.mubr.msk.f32.mxu1 %vm17367_vm0, %v17366_v0 }
0x2f85   :  { %v7323_v21 = vpop.f32.mrf.mxu0 }
0x2f86   :  { %v7324_v45 = vadd.f32 %v18635_v63, %v7323_v21 }
0x2f87   :  { %v16249_v24 = vpop.f32.mrf.mxu0 }
0x2f8d   :  { %v7568_v58 = vpop.f32.mrf.mxu0 }
0x2f8f   :  { %v16270_v15 = vpop.f32.mrf.mxu0 }
0x2f95   :  { %v7730_v17 = vpop.f32.mrf.mxu0 }
0x2f97   :  { %v16292_v23 = vpop.f32.mrf.mxu0 }
0x3036   :  { %v7068_v28 = vpop.f32.mrf.mxu1 }
0x3037   :  { %v7072_v25 = vadd.f32 %v7068_v28, %v18938_v62 }
0x3038   :  { %v16216_v59 = vpop.f32.mrf.mxu1 }
0x3039   :  { %v7079_v7 = vadd.f32 %v19038_v26, %v7072_v25 }
0x303b   :  { %7080 = vst.msk [vmem:[#allocation3] sm:$0xf] %vm661_vm6, %v7079_v7 }
0x303e   :  { %v7242_v2 = vpop.f32.mrf.mxu1 }
0x303f   :  { %v7243_v34 = vadd.f32 %v18621_v33, %v7242_v2 }
0x3040   :  { %v16238_v35 = vpop.f32.mrf.mxu1 }
0x3041   :  { %16251 = vmatpush3.xpose.msk.msra.mxu1 %vm892_vm9, %v7243_v34 }
0x3042   :  { %16255 = vmatprep.subr.mxu1 %v17366_v0 }
0x3044   :  { %16253 = vmatmul.mubr.msk.f32.vlgmr.msra.gmra.mxu1 %vm892_vm9, %v7162_v11  ;;  %v20295_v11 = vld [vmem:[#allocation67_spill] sm:$0xff] }
0x3045   :  { %16256 = vmatpush3.msk.msra.mxu1 %vm327_vm1, %v7324_v45  ;;  %16257 = vmatprep.mubr.msk.f32.mxu1 %vm17367_vm0, %v17366_v0  ;;  %v20296_v45 = vld [vmem:[#allocation68_spill] sm:$0xff] }
0x3046   :  { %16271 = vmatprep.subr.mxu1 %v17366_v0 }
0x3104   :  { %v7399_v12 = vpop.f32.mrf.mxu1 }
0x3105   :  { %v7403_v33 = vsel %vm5447_vm13, %v7399_v12, -inf }
0x3106   :  { %7404 = vmax.xlane.f32.xlu0 %v7403_v33  ;;  %v16254_v3 = vpop.f32.mrf.mxu1  ;;  %v20298_v33 = vld [vmem:[#allocation70_spill] sm:$0xff] }
0x3107   :  { %v20299_v3 = vld [vmem:[#allocation71_spill] sm:$0xff] }
0x318f   :  { %v7405_v62 = vpop.xlane.xlu0 %7404 }
0x3190   :  { %v7406_v41 = vsub.f32 %v7399_v12, %v7405_v62  ;;  %v20297_v12 = vld [vmem:[#allocation69_spill] sm:$0xff]  ;;  %v20300_v62 = vld [vmem:[#allocation72_spill] sm:$0xff] }
0x3192   :  { %v7407_v16 = vmul.f32 1.442695, %v7406_v41  ;;  %v20301_v41 = vld [vmem:[#allocation73_spill] sm:$0xff] }
0x3194   :  { %17113 = vpow2.f32 %v7407_v16  ;;  %v20302_v16 = vld [vmem:[#allocation74_spill] sm:$0xff] }
0x31a1   :  { %v17114_v53 = vpop.eup %17113 }
0x31a2   :  { %v7409_v63 = vsel %vm5447_vm13, %v17114_v53, 0.0 }
0x31a3   :  { %7410 = vadd.xlane.f32.xlu1 %v7409_v63  ;;  %v20303_v63 = vld [vmem:[#allocation75_spill] sm:$0xff] }
0x322c   :  { %v7411_v27 = vpop.xlane.xlu1 %7410 }
0x322d   :  { %17115 = vrcp.f32 %v7411_v27 }
0x323a   :  { %v17116_v6 = vpop.eup %17115 }
0x323b   :  { %v7413_v39 = vmul.f32 %v17116_v6, %v17114_v53  ;;  %v20304_v6 = vld [vmem:[#allocation76_spill] sm:$0xff] }
0x323d   :  { %16258 = vmatmul.mubr.msk.f32.vlgmr.msra.gmra.mxu1 %vm5459_vm14, %v7413_v39 }
0x323e   :  { %16272 = vmatpush3.msra.mxu1 %v18690_v18  ;;  %16279 = vmatprep.mubr.msk.f32.mxu1 %vm17367_vm0, %v17366_v0 }
0x323f   :  { %16273 = vmatprep.subr.mxu1 %v17366_v0 }
0x3240   :  { %16274 = vmatpush3.msra.mxu1 %v18694_v29 }
0x3241   :  { %16275 = vmatprep.subr.mxu1 %v17366_v0 }
0x3242   :  { %16276 = vmatpush3.msra.mxu1 %v18701_v31  ;;  %v7569_v31 = vadd.f32 %v18720_v32, %v7568_v58 }
0x3243   :  { %16277 = vmatprep.subr.mxu1 %v17366_v0 }
0x3244   :  { %16278 = vmatpush3.msra.mxu1 %v18706_v56  ;;  %v7731_v56 = vadd.f32 %v18724_v40, %v7730_v17 }
0x3245   :  { %16280 = vmatmul.mubr.msk.f32.vlgmr.msra.gmra.mxu1 %vm610_vm4, %v18976_v49  ;;  %16293 = vmatprep.subr.mxu1 %v17366_v0 }
0x3246   :  { %16295 = vmatprep.mubr.msk.f32.mxu1 %vm17367_vm0, %v17366_v0 }
0x32fd   :  { %v7486_v18 = vpop.f32.mrf.mxu1 }
0x32ff   :  { %v16259_v46 = vpop.f32.mrf.mxu1 }
0x3305   :  { %v7649_v9 = vpop.f32.mrf.mxu1 }
0x3306   :  { %v7650_v29 = vadd.f32 %v18717_v43, %v7649_v9 }
0x3307   :  { %v16281_v37 = vpop.f32.mrf.mxu1 }
0x3308   :  { %16294 = vmatpush3.xpose.msk.msra.mxu1 %vm892_vm9, %v7650_v29 }
0x3309   :  { %16298 = vmatprep.subr.mxu1 %v17366_v0 }
0x330b   :  { %16296 = vmatmul.mubr.msk.f32.vlgmr.msra.gmra.mxu1 %vm892_vm9, %v7569_v31 }
0x330c   :  { %16299 = vmatpush3.msk.msra.mxu1 %vm327_vm1, %v7731_v56  ;;  %16300 = vmatprep.mubr.msk.f32.mxu1 %vm17367_vm0, %v17366_v0 }
0x330d   :  { %16308 = vmatprep.subr.mxu1 %v17366_v0 }
0x33cb   :  { %v7806_v54 = vpop.f32.mrf.mxu1 }
0x33cc   :  { %v7810_v43 = vsel %vm5447_vm13, %v7806_v54, -inf }
0x33cd   :  { %7811 = vmax.xlane.f32.xlu0 %v7810_v43  ;;  %v16297_v36 = vpop.f32.mrf.mxu1 }
0x3456   :  { %v7812_v13 = vpop.xlane.xlu0 %7811 }
0x3457   :  { %v7813_v32 = vsub.f32 %v7806_v54, %v7812_v13 }
0x3459   :  { %v7814_v20 = vmul.f32 1.442695, %v7813_v32  ;;  %v20307_v32 = vld [vmem:[#allocation79_spill] sm:$0xff] }
0x345b   :  { %17117 = vpow2.f32 %v7814_v20 }
0x3468   :  { %v17118_v22 = vpop.eup %17117 }
0x3469   :  { %v7816_v40 = vsel %vm5447_vm13, %v17118_v22, 0.0 }
0x346a   :  { %7817 = vadd.xlane.f32.xlu1 %v7816_v40 }
0x34f3   :  { %v7818_v19 = vpop.xlane.xlu1 %7817 }
0x34f4   :  { %17119 = vrcp.f32 %v7818_v19 }
0x3501   :  { %v17120_v21 = vpop.eup %17119 }
0x3502   :  { %v7820_v24 = vmul.f32 %v17120_v21, %v17118_v22 }
0x3504   :  { %16301 = vmatmul.mubr.msk.f32.vlgmr.msra.gmra.mxu1 %vm5459_vm14, %v7820_v24 }
0x3505   :  { %16309 = vmatpush3.msra.mxu1 %v18743_v44  ;;  %16310 = vmatprep.mubr.msk.f32.mxu1 %vm17367_vm0, %v17366_v0 }
0x3506   :  { %16324 = vmatprep.subr.mxu1 %v17366_v0 }
0x3508   :  { %16311 = vmatmul.mubr.msk.f32.vlgmr.msra.gmra.mxu1 %vm892_vm9, %v7486_v18  ;;  %v20306_v18 = vld [vmem:[#allocation78_spill] sm:$0xff] }
0x3509   :  { %16325 = vmatpush3.msra.mxu1 %v18751_v5  ;;  %16332 = vmatprep.mubr.msk.f32.mxu1 %vm17367_vm0, %v17366_v0 }
0x350a   :  { %16326 = vmatprep.subr.mxu1 %v17366_v0 }
0x350b   :  { %16327 = vmatpush3.msra.mxu1 %v18755_v51 }
0x350c   :  { %16328 = vmatprep.subr.mxu1 %v17366_v0 }
0x350d   :  { %16329 = vmatpush3.msra.mxu1 %v18762_v52 }
0x350e   :  { %16330 = vmatprep.subr.mxu1 %v17366_v0 }
0x350f   :  { %16331 = vmatpush3.msra.mxu1 %v18767_v30 }
0x3510   :  { %16333 = vmatmul.mubr.msk.f32.vlgmr.msra.gmra.mxu1 %vm610_vm4, %v18976_v49  ;;  %16346 = vmatprep.subr.mxu1 %v17366_v0 }
0x3511   :  { %16348 = vmatprep.mubr.msk.f32.mxu1 %vm17367_vm0, %v17366_v0 }
0x35c4   :  { %v7893_v44 = vpop.f32.mrf.mxu1 }
0x35c5   :  { %16306 = vmatmul.mubr.msk.f32.vlgmr.msra.gmra.mxu0 %vm892_vm9, %v7893_v44 }
0x35c6   :  { %16314 = vmatpush3.msra.mxu0 %v18778_v60  ;;  %v16302_v5 = vpop.f32.mrf.mxu1  ;;  %16321 = vmatprep.mubr.msk.f32.mxu0 %vm17367_vm0, %v17366_v0 }
0x35c7   :  { %16315 = vmatprep.subr.mxu0 %v17366_v0 }
0x35c8   :  { %16316 = vmatpush3.msra.mxu0 %v18782_v14  ;;  %v19108_v51 = vpop.f32.mrf.mxu1 }
0x35c9   :  { %16317 = vmatprep.subr.mxu0 %v17366_v0 }
0x35ca   :  { %16318 = vmatpush3.msra.mxu0 %v18789_v8  ;;  %v16312_v52 = vpop.f32.mrf.mxu1 }
0x35cb   :  { %16319 = vmatprep.subr.mxu0 %v17366_v0 }
0x35cc   :  { %16320 = vmatpush3.msra.mxu0 %v18796_v42 }
0x35cd   :  { %16322 = vmatmul.mubr.msk.f32.vlgmr.msra.gmra.mxu0 %vm610_vm4, %v18976_v49  ;;  %16335 = vmatprep.subr.mxu0 %v17366_v0 }
0x35ce   :  { %16336 = vmatpush3.msra.mxu0 %v18801_v55  ;;  %16343 = vmatprep.mubr.msk.f32.mxu0 %vm17367_vm0, %v17366_v0 }
0x35cf   :  { %16337 = vmatprep.subr.mxu0 %v17366_v0 }
0x35d0   :  { %v8202_v30 = vpop.f32.mrf.mxu1  ;;  %16338 = vmatpush3.msra.mxu0 %v18808_v57 }
0x35d1   :  { %v8203_v60 = vadd.f32 %v18812_v1, %v8202_v30  ;;  %16339 = vmatprep.subr.mxu0 %v17366_v0 }
0x35d2   :  { %v16334_v14 = vpop.f32.mrf.mxu1  ;;  %16340 = vmatpush3.msra.mxu0 %v18818_v4 }
0x35d3   :  { %16341 = vmatprep.subr.mxu0 %v17366_v0  ;;  %16347 = vmatpush3.xpose.msk.msra.mxu1 %vm892_vm9, %v8203_v60 }
0x35d4   :  { %16342 = vmatpush3.msra.mxu0 %v18824_v47  ;;  %16351 = vmatprep.subr.mxu1 %v17366_v0  ;;  %v20294_v47 = vld [vmem:[#allocation66_spill] sm:$0xff] }
0x35d5   :  { %16344 = vmatmul.mubr.msk.f32.vlgmr.msra.gmra.mxu0 %vm610_vm4, %v18976_v49  ;;  %16356 = vmatprep.subr.mxu0 %v17366_v0 }
0x35d6   :  { %16357 = vmatpush3.msra.mxu0 %v18854_v48  ;;  %16358 = vmatprep.mubr.msk.f32.mxu0 %vm17367_vm0, %v17366_v0 }
0x35d7   :  { %16372 = vmatprep.subr.mxu0 %v17366_v0 }
0x3685   :  { %v19136_v8 = vpop.f32.mrf.mxu0 }
0x3686   :  { %v8041_v37 = vadd.f32 %v19108_v51, %v19136_v8 }
0x3687   :  { %v16307_v42 = vpop.f32.mrf.mxu0 }
0x368d   :  { %v8121_v55 = vpop.f32.mrf.mxu0 }
0x368e   :  { %v8122_v57 = vadd.f32 %v18839_v38, %v8121_v55 }
0x368f   :  { %v16323_v1 = vpop.f32.mrf.mxu0 }
0x3690   :  { %16349 = vmatmul.mubr.msk.f32.vlgmr.msra.gmra.mxu1 %vm892_vm9, %v8122_v57  ;;  %v14320_v57 = vld [vmem:[%s20269_s26 + $0x2] ss:$0 sm:$0xff]  ;;  %v20309_v1 = vld [vmem:[#allocation61_spill] sm:$0xff] }
0x3691   :  { %16353 = vmatprep.mubr.msk.f32.mxu1 %vm17367_vm0, %v17366_v0 }
0x3695   :  { %v8283_v4 = vpop.f32.mrf.mxu0 }
0x3696   :  { %v8284_v48 = vadd.f32 %v20294_v47, %v8283_v4  ;;  %v4856_v4 = vadd.f32 %v14320_v57, %v20309_v1  ;;  %v9124_v57 = vld [vmem:[%s20311_s9 + $0x20] sm:$0xff]  ;;  %v9123_v1 = vld [vmem:[%s20311_s9 + $0x18] sm:$0xff] }
0x3697   :  { %v16345_v58 = vpop.f32.mrf.mxu0 }
0x3698   :  { %16352 = vmatpush3.msk.msra.mxu1 %vm327_vm1, %v8284_v48  ;;  %v20310_v58 = vld [vmem:[#allocation60_spill] sm:$0xff] }
0x3699   :  { %16361 = vmatprep.subr.mxu1 %v17366_v0 }
0x3750   :  { %v8359_v15 = vpop.f32.mrf.mxu1 }
0x3751   :  { %v8363_v17 = vsel %vm5447_vm13, %v8359_v15, -inf }
0x3752   :  { %8364 = vmax.xlane.f32.xlu0 %v8363_v17  ;;  %v16350_v23 = vpop.f32.mrf.mxu1 }
0x37db   :  { %v8365_v38 = vpop.xlane.xlu0 %8364 }
0x37dc   :  { %v8366_v28 = vsub.f32 %v8359_v15, %v8365_v38 }
0x37de   :  { %v8367_v25 = vmul.f32 1.442695, %v8366_v28 }
0x37e0   :  { %17121 = vpow2.f32 %v8367_v25 }
0x37ed   :  { %v17122_v59 = vpop.eup %17121 }
0x37ee   :  { %v8369_v7 = vsel %vm5447_vm13, %v17122_v59, 0.0 }
0x37ef   :  { %8370 = vadd.xlane.f32.xlu1 %v8369_v7  ;;  %v9029_v7 = vld [vmem:[%s20308_s5 + $0x10] sm:$0xff] }
0x3878   :  { %v8371_v2 = vpop.xlane.xlu1 %8370 }
0x3879   :  { %17123 = vrcp.f32 %v8371_v2  ;;  %v9028_v2 = vld [vmem:[%s20308_s5 + $0x8] sm:$0xff] }
0x3886   :  { %v17124_v34 = vpop.eup %17123 }
0x3887   :  { %v8373_v35 = vmul.f32 %v17124_v34, %v17122_v59  ;;  %v9030_v59 = vld [vmem:[%s20308_s5 + $0x18] sm:$0xff]  ;;  %v9027_v34 = vld [vmem:[%s20308_s5] sm:$0xff] }
0x3889   :  { %16354 = vmatmul.mubr.msk.f32.vlgmr.msra.gmra.mxu1 %vm5459_vm14, %v8373_v35  ;;  %v9135_v35 = vld [vmem:[%s20311_s9 + $0x78] sm:$0xff] }
0x388a   :  { %16362 = vmatpush3.msra.mxu1 %v20295_v11  ;;  %16369 = vmatprep.mubr.msk.f32.mxu1 %vm17367_vm0, %v17366_v0 }
0x388b   :  { %16363 = vmatprep.subr.mxu1 %v17366_v0 }
0x388c   :  { %16364 = vmatpush3.msra.mxu1 %v20296_v45 }
0x388d   :  { %16365 = vmatprep.subr.mxu1 %v17366_v0 }
0x388e   :  { %16366 = vmatpush3.msra.mxu1 %v20297_v12 }
0x388f   :  { %16367 = vmatprep.subr.mxu1 %v17366_v0 }
0x3890   :  { %16368 = vmatpush3.msra.mxu1 %v20298_v33  ;;  %v14334_v33 = vld [vmem:[%s20269_s26 + $0x4] ss:$0 sm:$0xff] }
0x3891   :  { %16370 = vmatmul.mubr.msk.f32.vlgmr.msra.gmra.mxu1 %vm610_vm4, %v18976_v49  ;;  %16383 = vmatprep.subr.mxu1 %v17366_v0 }
0x3892   :  { %16384 = vmatpush3.msra.mxu1 %v20299_v3  ;;  %16391 = vmatprep.mubr.msk.f32.mxu1 %vm17367_vm0, %v17366_v0  ;;  %v20313_v3 = vld [vmem:[#allocation63_spill] sm:$0xff] }
0x3893   :  { %16385 = vmatprep.subr.mxu1 %v17366_v0 }
0x3894   :  { %16386 = vmatpush3.msra.mxu1 %v20300_v62  ;;  %v5022_v62 = vadd.f32 %v14334_v33, %v20313_v3 }
0x3895   :  { %16387 = vmatprep.subr.mxu1 %v17366_v0 }
0x3896   :  { %16388 = vmatpush3.msra.mxu1 %v20301_v41 }
0x3897   :  { %16389 = vmatprep.subr.mxu1 %v17366_v0 }
0x3898   :  { %16390 = vmatpush3.msra.mxu1 %v20302_v16  ;;  %v14327_v16 = vld [vmem:[%s20269_s26 + $0x3] ss:$0 sm:$0xff] }
0x3899   :  { %16392 = vmatmul.mubr.msk.f32.vlgmr.msra.gmra.mxu1 %vm610_vm4, %v18976_v49  ;;  %16404 = vmatprep.subr.mxu1 %v17366_v0 }
0x389a   :  { %16405 = vmatpush3.msra.mxu1 %v18962_v50  ;;  %16406 = vmatprep.mubr.msk.f32.mxu1 %vm17367_vm0, %v17366_v0  ;;  %v20305_v50 = vld [vmem:[#allocation77_spill] sm:$0xff] }
0x389b   :  { %16420 = vmatprep.subr.mxu1 %v17366_v0 }
0x3949   :  { %v8446_v53 = vpop.f32.mrf.mxu1 }
0x394a   :  { %16359 = vmatmul.mubr.msk.f32.vlgmr.msra.gmra.mxu0 %vm892_vm9, %v8446_v53  ;;  %v9024_v53 = vadd.f32 1.0, %v5022_v62 }
0x394b   :  { %16373 = vmatpush3.msra.mxu0 %v20303_v63  ;;  %v16355_v27 = vpop.f32.mrf.mxu1  ;;  %16380 = vmatprep.mubr.msk.f32.mxu0 %vm17367_vm0, %v17366_v0 }
0x394c   :  { %16374 = vmatprep.subr.mxu0 %v17366_v0  ;;  %v20314_v27 = vld [vmem:[#allocation64_spill] sm:$0xff] }
0x394d   :  { %16375 = vmatpush3.msra.mxu0 %v20304_v6  ;;  %v4939_v6 = vadd.f32 %v14327_v16, %v20314_v27  ;;  %v14557_v16 = vld [vmem:[%s20312_s13 + $0x98] sm:$0xff]  ;;  %v14555_v27 = vld [vmem:[%s20312_s13 + $0x88] sm:$0xff] }
0x394e   :  { %16376 = vmatprep.subr.mxu0 %v17366_v0 }
0x394f   :  { %16377 = vmatpush3.msra.mxu0 %v20305_v50 }
0x3950   :  { %16378 = vmatprep.subr.mxu0 %v17366_v0 }
0x3951   :  { %v8602_v39 = vpop.f32.mrf.mxu1  ;;  %16379 = vmatpush3.msra.mxu0 %v20306_v18  ;;  %v9218_v18 = vld [vmem:[%s20312_s13 + $0x18] sm:$0xff] }
0x3952   :  { %16381 = vmatmul.mubr.msk.f32.vlgmr.msra.gmra.mxu0 %vm610_vm4, %v18976_v49  ;;  %16394 = vmatprep.subr.mxu0 %v17366_v0  ;;  %v8603_v49 = vadd.f32 %v18944_v61, %v8602_v39 }
0x3953   :  { %v16371_v46 = vpop.f32.mrf.mxu1  ;;  %16396 = vmatprep.mubr.msk.f32.mxu0 %vm17367_vm0, %v17366_v0 }
0x3954   :  { %v9217_v46 = vld [vmem:[%s20312_s13 + $0x10] sm:$0xff] }
0x3959   :  { %v8764_v9 = vpop.f32.mrf.mxu1 }
0x395a   :  { %v8765_v20 = vadd.f32 %v20307_v32, %v8764_v9  ;;  %v9216_v9 = vld [vmem:[%s20312_s13 + $0x8] sm:$0xff]  ;;  %v14540_v32 = vld [vmem:[%s20312_s13 + $0x40] sm:$0xff] }
0x395b   :  { %v16393_v29 = vpop.f32.mrf.mxu1 }
0x395c   :  { %v9215_v29 = vld [vmem:[%s20312_s13] sm:$0xff] }
0x3a0a   :  { %v8520_v31 = vpop.f32.mrf.mxu0 }
0x3a0b   :  { %v8524_v56 = vadd.f32 %v8520_v31, %v8041_v37  ;;  %v14536_v37 = vld [vmem:[%s20312_s13 + $0x38] sm:$0xff]  ;;  %v20315_v31 = vld [vmem:[#allocation62_spill] sm:$0xff] }
0x3a0c   :  { %v16360_v54 = vpop.f32.mrf.mxu0 }
0x3a0d   :  { %v14534_v54 = vld [vmem:[%s20312_s13 + $0x28] sm:$0xff] }
0x3a12   :  { %v8683_v43 = vpop.f32.mrf.mxu0 }
0x3a13   :  { %v8684_v36 = vadd.f32 %v18941_v10, %v8683_v43  ;;  %v14533_v43 = vld [vmem:[%s20312_s13 + $0x20] sm:$0xff] }
0x3a14   :  { %v16382_v13 = vpop.f32.mrf.mxu0 }
0x3a15   :  { %16395 = vmatpush3.xpose.msk.msra.mxu0 %vm892_vm9, %v8684_v36  ;;  %v14543_v36 = vld [vmem:[%s20312_s13 + $0x58] sm:$0xff]  ;;  %v14542_v13 = vld [vmem:[%s20312_s13 + $0x50] sm:$0xff] }
0x3a16   :  { %16399 = vmatprep.subr.mxu0 %v17366_v0 }
0x3a18   :  { %16397 = vmatmul.mubr.msk.f32.vlgmr.msra.gmra.mxu0 %vm892_vm9, %v8603_v49  ;;  %v14541_v49 = vld [vmem:[%s20312_s13 + $0x48] sm:$0xff] }
0x3a19   :  { %16400 = vmatpush3.msk.msra.mxu0 %vm327_vm1, %v8765_v20  ;;  %16401 = vmatprep.mubr.msk.f32.mxu0 %vm17367_vm0, %v17366_v0  ;;  %v14550_v20 = vld [vmem:[%s20312_s13 + $0x78] sm:$0xff] }
0x3a1a   :  { %16409 = vmatprep.subr.mxu0 %v17366_v0 }
0x3ad8   :  { %v8840_v22 = vpop.f32.mrf.mxu0 }
0x3ad9   :  { %v8844_v10 = vsel %vm5447_vm13, %v8840_v22, -inf }
0x3ada   :  { %8845 = vmax.xlane.f32.xlu0 %v8844_v10  ;;  %v16398_v40 = vpop.f32.mrf.mxu0  ;;  %v14548_v10 = vld [vmem:[%s20312_s13 + $0x68] sm:$0xff] }
0x3adb   :  { %v14547_v40 = vld [vmem:[%s20312_s13 + $0x60] sm:$0xff] }
0x3b63   :  { %v8846_v19 = vpop.xlane.xlu0 %8845 }
0x3b64   :  { %v8847_v61 = vsub.f32 %v8840_v22, %v8846_v19  ;;  %v14549_v22 = vld [vmem:[%s20312_s13 + $0x70] sm:$0xff]  ;;  %v14564_v19 = vld [vmem:[%s20312_s13 + $0xb8] sm:$0xff] }
0x3b66   :  { %v8848_v21 = vmul.f32 1.442695, %v8847_v61  ;;  %v14563_v61 = vld [vmem:[%s20312_s13 + $0xb0] sm:$0xff] }
0x3b68   :  { %17125 = vpow2.f32 %v8848_v21  ;;  %v14562_v21 = vld [vmem:[%s20312_s13 + $0xa8] sm:$0xff] }
0x3b75   :  { %v17126_v24 = vpop.eup %17125 }
0x3b76   :  { %v8850_v44 = vsel %vm5447_vm13, %v17126_v24, 0.0 }
0x3b77   :  { %8851 = vadd.xlane.f32.xlu1 %v8850_v44  ;;  %v9134_v44 = vld [vmem:[%s20311_s9 + $0x70] sm:$0xff] }
0x3c00   :  { %v8852_v5 = vpop.xlane.xlu1 %8851 }
0x3c01   :  { %17127 = vrcp.f32 %v8852_v5  ;;  %v9133_v5 = vld [vmem:[%s20311_s9 + $0x68] sm:$0xff] }
0x3c0e   :  { %v17128_v51 = vpop.eup %17127 }
0x3c0f   :  { %v8854_v52 = vmul.f32 %v17128_v51, %v17126_v24  ;;  %v14561_v24 = vld [vmem:[%s20312_s13 + $0xa0] sm:$0xff] }
0x3c10   :  { %v9132_v51 = vld [vmem:[%s20311_s9 + $0x60] sm:$0xff] }
0x3c11   :  { %16402 = vmatmul.mubr.msk.f32.vlgmr.msra.gmra.mxu0 %vm5459_vm14, %v8854_v52  ;;  %v9131_v52 = vld [vmem:[%s20311_s9 + $0x58] sm:$0xff] }
0x3c12   :  { %16417 = vmatprep.mubr.msk.f32.mxu0 %vm17367_vm0, %v17366_v0  ;;  %16410 = vmatpush3.msra.mxu0 %v9030_v59 }
0x3c13   :  { %16411 = vmatprep.subr.mxu0 %v17366_v0 }
0x3c14   :  { %16412 = vmatpush3.msra.mxu0 %v9029_v7 }
0x3c15   :  { %16413 = vmatprep.subr.mxu0 %v17366_v0 }
0x3c16   :  { %16414 = vmatpush3.msra.mxu0 %v9028_v2 }
0x3c17   :  { %16415 = vmatprep.subr.mxu0 %v17366_v0 }
0x3c18   :  { %16416 = vmatpush3.msra.mxu0 %v9027_v34 }
0x3c19   :  { %16455 = vmatprep.subr.mxu0 %v17366_v0 }
0x3cd1   :  { %v8927_v30 = vpop.f32.mrf.mxu0 }
0x3cd2   :  { %16407 = vmatmul.mubr.msk.f32.vlgmr.msra.gmra.mxu1 %vm892_vm9, %v8927_v30  ;;  %v9130_v30 = vld [vmem:[%s20311_s9 + $0x50] sm:$0xff] }
0x3cd3   :  { %v16403_v60 = vpop.f32.mrf.mxu0  ;;  %16452 = vmatprep.mubr.msk.f32.mxu1 %vm17367_vm0, %v17366_v0  ;;  %16421 = vmatpush3.msra.mxu1 %v9135_v35 }
0x3cd4   :  { %16422 = vmatprep.subr.mxu1 %v17366_v0  ;;  %v9129_v60 = vld [vmem:[%s20311_s9 + $0x48] sm:$0xff] }
0x3cd5   :  { %16423 = vmatpush3.msra.mxu1 %v9134_v44  ;;  %v19379_v44 = vld [vmem:[%s20321_s25 + $0x10] sm:$0xff] }
0x3cd6   :  { %16424 = vmatprep.subr.mxu1 %v17366_v0 }
0x3cd7   :  { %16425 = vmatpush3.msra.mxu1 %v9133_v5  ;;  %v19384_v5 = vld [vmem:[%s20320_s21 + $0x8] sm:$0xff] }
0x3cd8   :  { %16426 = vmatprep.subr.mxu1 %v17366_v0 }
0x3cd9   :  { %16427 = vmatpush3.msra.mxu1 %v9132_v51  ;;  %v19389_v51 = vld [vmem:[%s20321_s25 + $0x8] sm:$0xff] }
0x3cda   :  { %16428 = vmatprep.subr.mxu1 %v17366_v0 }
0x3cdb   :  { %16429 = vmatpush3.msra.mxu1 %v9131_v52  ;;  %v19394_v52 = vld [vmem:[%s20320_s21] sm:$0xff] }
0x3cdc   :  { %16430 = vmatprep.subr.mxu1 %v17366_v0 }
0x3cdd   :  { %16431 = vmatpush3.msra.mxu1 %v9130_v30  ;;  %v19397_v30 = vld [vmem:[%s20321_s25] sm:$0xff] }
0x3cde   :  { %16432 = vmatprep.subr.mxu1 %v17366_v0 }
0x3cdf   :  { %16433 = vmatpush3.msra.mxu1 %v9129_v60 }
0x3ce0   :  { %16434 = vmatprep.subr.mxu1 %v17366_v0 }
0x3d92   :  { %v9001_v14 = vpop.f32.mrf.mxu1 }
0x3d93   :  { %v9005_v8 = vadd.f32 %v9001_v14, %v8524_v56  ;;  %v14535_v56 = vld [vmem:[%s20312_s13 + $0x30] sm:$0xff]  ;;  %v9128_v14 = vld [vmem:[%s20311_s9 + $0x40] sm:$0xff] }
0x3d94   :  { %v16408_v42 = vpop.f32.mrf.mxu1  ;;  %16435 = vmatpush3.msra.mxu1 %v9128_v14 }
0x3d95   :  { %v9006_v55 = vadd.f32 %v19038_v26, %v9005_v8  ;;  %v9127_v8 = vld [vmem:[%s20311_s9 + $0x38] sm:$0xff]  ;;  %16436 = vmatprep.subr.mxu1 %v17366_v0  ;;  %v9126_v42 = vld [vmem:[%s20311_s9 + $0x30] sm:$0xff] }
0x3d96   :  { %16437 = vmatpush3.msra.mxu1 %v9127_v8 }
0x3d97   :  { %9007 = vst.msk [vmem:[#allocation3 + $0x4] sm:$0xf] %vm661_vm6, %v9006_v55  ;;  %16438 = vmatprep.subr.mxu1 %v17366_v0  ;;  %v9125_v55 = vld [vmem:[%s20311_s9 + $0x28] sm:$0xff] }
0x3d98   :  { %16439 = vmatpush3.msra.mxu1 %v9126_v42  ;;  %v14538_v42 = vld [vmem:[%s20324_s29 + $0x1] ss:$0 sm:$0xff] }
0x3d99   :  { %16440 = vmatprep.subr.mxu1 %v17366_v0 }
0x3d9a   :  { %16441 = vmatpush3.msra.mxu1 %v9125_v55 }
0x3d9b   :  { %16442 = vmatprep.subr.mxu1 %v17366_v0 }
0x3d9c   :  { %16443 = vmatpush3.msra.mxu1 %v9124_v57 }
0x3d9d   :  { %16444 = vmatprep.subr.mxu1 %v17366_v0 }
0x3d9e   :  { %v9008_v47 = vld [vmem:[#allocation3] sm:$0xff]  ;;  %16445 = vmatpush3.msra.mxu1 %v9123_v1  ;;  %v14531_v1 = vld [vmem:[%s20324_s29] ss:$0 sm:$0xff] }
0x3d9f   :  { %v9009_v48 = vmul.f32 %v9008_v47, %v4856_v4  ;;  %16446 = vmatprep.subr.mxu1 %v17366_v0  ;;  %v9122_v4 = vld [vmem:[%s20311_s9 + $0x10] sm:$0xff]  ;;  %v9121_v47 = vld [vmem:[%s20311_s9 + $0x8] sm:$0xff] }
0x3da0   :  { %16447 = vmatpush3.msra.mxu1 %v9122_v4 }
0x3da1   :  { %v19216_v15 = vadd.f32 %v9009_v48, %v20310_v58  ;;  %16448 = vmatprep.subr.mxu1 %v17366_v0  ;;  %v9120_v48 = vld [vmem:[%s20311_s9] sm:$0xff]  ;;  %v14528_v58 = vld [vmem:[#allocation4] ss:$0 sm:$0xff] }
0x3da2   :  { %16449 = vmatpush3.msra.mxu1 %v9121_v47 }
0x3da3   :  { %v9011_v17 = vsel %vm610_vm4, %v19216_v15, 0.0  ;;  %16450 = vmatprep.subr.mxu1 %v17366_v0 }
0x3da4   :  { %9012 = vadd.xlane.f32.xlu0 %v9011_v17  ;;  %16451 = vmatpush3.msra.mxu1 %v9120_v48 }
0x3da5   :  { %16499 = vmatprep.subr.mxu1 %v17366_v0 }
0x3e2d   :  { %v9013_v23 = vpop.xlane.xlu0 %9012 }
0x3e2e   :  { %v9014_v38 = vmul.f32 0.03125, %v9013_v23 }
0x3e30   :  { %v9015_v26 = vsub.f32 %v19216_v15, %v9014_v38 }
0x3e32   :  { %v9016_v28 = vmul.f32 %v9015_v26, %v9015_v26 }
0x3e34   :  { %v9017_v25 = vsel %vm610_vm4, %v9016_v28, 0.0 }
0x3e35   :  { %9018 = vadd.xlane.f32.xlu1 %v9017_v25 }
0x3ebe   :  { %v9019_v11 = vpop.xlane.xlu1 %9018 }
0x3ebf   :  { %v9020_v45 = vmul.f32 0.03125, %v9019_v11 }
0x3ec1   :  { %v9021_v12 = vadd.f32 1e-06, %v9020_v45 }
0x3ec3   :  { %17129 = vrsqrt.f32 %v9021_v12 }
0x3ed0   :  { %v17130_v41 = vpop.eup %17129 }
0x3ed1   :  { %v9023_v63 = vmul.f32 %v17130_v41, %v9015_v26 }
0x3ed3   :  { %v9025_v50 = vmul.f32 %v9024_v53, %v9023_v63  ;;  %v14556_v53 = vld [vmem:[%s20312_s13 + $0x90] sm:$0xff] }
0x3ed5   :  { %v9026_v39 = vadd.f32 %v9025_v50, %v4939_v6  ;;  %v14554_v50 = vld [vmem:[%s20312_s13 + $0x80] sm:$0xff] }
0x3ed7   :  { %16418 = vmatmul.mubr.msk.f32.vlgmr.msra.gmra.mxu0 %vm610_vm4, %v9026_v39 }
0x3ed8   :  { %16456 = vmatpush3.msra.mxu0 %v9218_v18  ;;  %16463 = vmatprep.mubr.msk.f32.mxu0 %vm17367_vm0, %v17366_v0 }
0x3ed9   :  { %16457 = vmatprep.subr.mxu0 %v17366_v0 }
0x3eda   :  { %16458 = vmatpush3.msra.mxu0 %v9217_v46  ;;  %v14341_v46 = vld [vmem:[%s20269_s26 + $0x5] ss:$0 sm:$0xff] }
0x3edb   :  { %16459 = vmatprep.subr.mxu0 %v17366_v0 }
0x3edc   :  { %16460 = vmatpush3.msra.mxu0 %v9216_v9  ;;  %v14530_v9 = vld [vmem:[#allocation6] ss:$0 sm:$0xff] }
0x3edd   :  { %16461 = vmatprep.subr.mxu0 %v17366_v0 }
0x3ede   :  { %16462 = vmatpush3.msra.mxu0 %v9215_v29 }
0x3edf   :  { %16464 = vmatmul.mubr.msk.f32.vlgmr.msra.gmra.mxu0 %vm610_vm4, %v20315_v31  ;;  %16466 = vmatprep.subr.mxu0 %v17366_v0 }
0x3ee0   :  { %16467 = vmatpush3.msra.mxu0 %v14536_v37  ;;  %16474 = vmatprep.mubr.msk.f32.mxu0 %vm17367_vm0, %v17366_v0  ;;  %v20319_v37 = vld [vmem:[#allocation65_spill] sm:$0xff] }
0x3ee1   :  { %16468 = vmatprep.subr.mxu0 %v17366_v0 }
0x3ee2   :  { %16469 = vmatpush3.msra.mxu0 %v14535_v56  ;;  %v5105_v56 = vadd.f32 %v14341_v46, %v20319_v37  ;;  %v19494_v46 = vld [vmem:[%s20325_s3 + $0x28] sm:$0xff] }
0x3ee3   :  { %16470 = vmatprep.subr.mxu0 %v17366_v0 }
0x3ee4   :  { %16471 = vmatpush3.msra.mxu0 %v14534_v54 }
0x3ee5   :  { %16472 = vmatprep.subr.mxu0 %v17366_v0 }
0x3ee6   :  { %16473 = vmatpush3.msra.mxu0 %v14533_v43 }
0x3ee7   :  { %16475 = vmatmul.mubr.msk.f32.vlgmr.msra.gmra.mxu0 %vm610_vm4, %v20315_v31  ;;  %16477 = vmatprep.subr.mxu0 %v17366_v0 }
0x3ee8   :  { %16478 = vmatpush3.msra.mxu0 %v14543_v36  ;;  %16485 = vmatprep.mubr.msk.f32.mxu0 %vm17367_vm0, %v17366_v0 }
0x3ee9   :  { %16479 = vmatprep.subr.mxu0 %v17366_v0 }
0x3eea   :  { %16480 = vmatpush3.msra.mxu0 %v14542_v13 }
0x3eeb   :  { %16481 = vmatprep.subr.mxu0 %v17366_v0 }
0x3eec   :  { %16482 = vmatpush3.msra.mxu0 %v14541_v49 }
0x3eed   :  { %16483 = vmatprep.subr.mxu0 %v17366_v0 }
0x3eee   :  { %16484 = vmatpush3.msra.mxu0 %v14540_v32 }
0x3eef   :  { %16486 = vmatmul.mubr.msk.f32.vlgmr.msra.gmra.mxu0 %vm610_vm4, %v20315_v31  ;;  %16488 = vmatprep.subr.mxu0 %v17366_v0 }
0x3ef0   :  { %16489 = vmatpush3.msra.mxu0 %v14550_v20  ;;  %16496 = vmatprep.mubr.msk.f32.mxu0 %vm17367_vm0, %v17366_v0 }
0x3ef1   :  { %16490 = vmatprep.subr.mxu0 %v17366_v0 }
0x3ef2   :  { %16491 = vmatpush3.msra.mxu0 %v14549_v22 }
0x3ef3   :  { %16492 = vmatprep.subr.mxu0 %v17366_v0 }
0x3ef4   :  { %16493 = vmatpush3.msra.mxu0 %v14548_v10 }
0x3ef5   :  { %16494 = vmatprep.subr.mxu0 %v17366_v0 }
0x3ef6   :  { %16495 = vmatpush3.msra.mxu0 %v14547_v40 }
0x3ef7   :  { %16497 = vmatmul.mubr.msk.f32.vlgmr.msra.gmra.mxu0 %vm610_vm4, %v20315_v31  ;;  %16510 = vmatprep.subr.mxu0 %v17366_v0 }
0x3ef8   :  { %16511 = vmatpush3.msra.mxu0 %v14564_v19  ;;  %16518 = vmatprep.mubr.msk.f32.mxu0 %vm17367_vm0, %v17366_v0 }
0x3ef9   :  { %16512 = vmatprep.subr.mxu0 %v17366_v0 }
0x3efa   :  { %16513 = vmatpush3.msra.mxu0 %v14563_v61 }
0x3efb   :  { %16514 = vmatprep.subr.mxu0 %v17366_v0 }
0x3efc   :  { %16515 = vmatpush3.msra.mxu0 %v14562_v21  ;;  %v19369_v21 = vld [vmem:[%s20321_s25 + $0x18] sm:$0xff] }
0x3efd   :  { %16516 = vmatprep.subr.mxu0 %v17366_v0 }
0x3efe   :  { %16517 = vmatpush3.msra.mxu0 %v14561_v24  ;;  %v19374_v24 = vld [vmem:[%s20320_s21 + $0x10] sm:$0xff] }
0x3eff   :  { %16519 = vmatmul.mubr.msk.f32.vlgmr.msra.gmra.mxu0 %vm610_vm4, %v20315_v31  ;;  %16532 = vmatprep.subr.mxu0 %v17366_v0 }
0x3f00   :  { %16540 = vmatprep.mubr.msk.f32.mxu0 %vm17367_vm0, %v17366_v0  ;;  %16533 = vmatpush3.msra.mxu0 %v19369_v21 }
0x3f01   :  { %16534 = vmatprep.subr.mxu0 %v17366_v0 }
0x3f02   :  { %16535 = vmatpush3.msra.mxu0 %v19379_v44 }
0x3f03   :  { %16536 = vmatprep.subr.mxu0 %v17366_v0 }
0x3f04   :  { %16537 = vmatpush3.msra.mxu0 %v19389_v51 }
0x3f05   :  { %16538 = vmatprep.subr.mxu0 %v17366_v0 }
0x3f06   :  { %16539 = vmatpush3.msra.mxu0 %v19397_v30 }
0x3f07   :  { %16554 = vmatprep.subr.mxu0 %v17366_v0 }
0x3f97   :  { %v9107_v17 = vpop.f32.mrf.mxu0 }
0x3f98   :  { %v9108_v23 = vadd.f32 %v14528_v58, %v9107_v17 }
0x3f99   :  { %v16419_v38 = vpop.f32.mrf.mxu0 }
0x3f9a   :  { %v9112_v26 = vmul.f32 0.044715, %v9108_v23  ;;  %v9111_v3 = vmul.f32 0.5, %v9108_v23  ;;  %v19418_v38 = vld [vmem:[%s20325_s3 + $0x10] sm:$0xff] }
0x3f9c   :  { %v9113_v28 = vmul.f32 %v9112_v26, %v9108_v23  ;;  %v19425_v26 = vld [vmem:[%s20325_s3 + $0x8] sm:$0xff] }
0x3f9e   :  { %v9114_v25 = vmul.f32 %v9113_v28, %v9108_v23  ;;  %v19432_v28 = vld [vmem:[%s20325_s3] sm:$0xff] }
0x3f9f   :  { %v19329_v59 = vpop.f32.mrf.mxu0 }
0x3fa0   :  { %v9115_v7 = vadd.f32 %v9114_v25, %v9108_v23  ;;  %v9293_v48 = vadd.f32 %v14531_v1, %v19329_v59  ;;  %v19411_v23 = vld [vmem:[%s20325_s3 + $0x18] sm:$0xff]  ;;  %v19443_v25 = vld [vmem:[%s20326_s8] ss:$0 sm:$0xff] }
0x3fa1   :  { %v16465_v2 = vpop.f32.mrf.mxu0 }
0x3fa2   :  { %v9116_v34 = vmul.f32 0.7978846, %v9115_v7  ;;  %v19446_v2 = vld [vmem:[%s20327_s14] ss:$0 sm:$0xff] }
0x3fa4   :  { %17131 = vtanh.f32 %v9116_v34 }
0x3fa7   :  { %v19331_v35 = vpop.f32.mrf.mxu0 }
0x3fa8   :  { %v9376_v55 = vadd.f32 %v14538_v42, %v19331_v35  ;;  %v19516_v42 = vld [vmem:[%s20321_s25 + $0x30] sm:$0xff] }
0x3fa9   :  { %v16476_v11 = vpop.f32.mrf.mxu0 }
0x3faa   :  { %v9724_v4 = vadd.f32 1.0, %v9376_v55  ;;  %v19523_v55 = vld [vmem:[%s20321_s25 + $0x28] sm:$0xff] }
0x3faf   :  { %v19333_v45 = vpop.f32.mrf.mxu0 }
0x3fb0   :  { %20316 = vst [vmem:[#allocation66_spill] sm:$0xff] %v19333_v45 }
0x3fb1   :  { %v17132_v12 = vpop.eup %17131  ;;  %v16487_v33 = vpop.f32.mrf.mxu0 }
0x3fb2   :  { %v9118_v62 = vadd.f32 1.0, %v17132_v12  ;;  %v19453_v33 = vld [vmem:[%s20320_s21 + $0x38] sm:$0xff] }
0x3fb4   :  { %v9119_v41 = vmul.f32 %v9118_v62, %v9111_v3  ;;  %v19457_v3 = vld [vmem:[%s20328_s19] ss:$0 sm:$0xff]  ;;  %v19460_v62 = vld [vmem:[%s20320_s21 + $0x30] sm:$0xff] }
0x3fb6   :  { %16453 = vmatmul.mubr.f32.vlgmr.msra.gmra.mxu1 %v9119_v41 }
0x3fb7   :  { %v19337_v63 = vpop.f32.mrf.mxu0  ;;  %16500 = vmatpush3.msra.mxu1 %v14557_v16  ;;  %16507 = vmatprep.mubr.msk.f32.mxu1 %vm17367_vm0, %v17366_v0  ;;  %v19467_v16 = vld [vmem:[%s20320_s21 + $0x28] sm:$0xff] }
0x3fb8   :  { %20317 = vst [vmem:[#allocation67_spill] sm:$0xff] %v19337_v63  ;;  %16501 = vmatprep.subr.mxu1 %v17366_v0 }
0x3fb9   :  { %v16498_v6 = vpop.f32.mrf.mxu0  ;;  %16502 = vmatpush3.msra.mxu1 %v14556_v53 }
0x3fba   :  { %16503 = vmatprep.subr.mxu1 %v17366_v0  ;;  %v19473_v6 = vld [vmem:[%s20320_s21 + $0x20] sm:$0xff] }
0x3fbb   :  { %16504 = vmatpush3.msra.mxu1 %v14555_v27 }
0x3fbc   :  { %16505 = vmatprep.subr.mxu1 %v17366_v0 }
0x3fbd   :  { %16506 = vmatpush3.msra.mxu1 %v14554_v50  ;;  %v19479_v50 = vld [vmem:[%s20325_s3 + $0x38] sm:$0xff] }
0x3fbe   :  { %16508 = vmatmul.mubr.msk.f32.vlgmr.msra.gmra.mxu1 %vm610_vm4, %v20315_v31  ;;  %16521 = vmatprep.subr.mxu1 %v17366_v0 }
0x3fbf   :  { %v19349_v39 = vpop.f32.mrf.mxu0  ;;  %16529 = vmatprep.mubr.msk.f32.mxu1 %vm17367_vm0, %v17366_v0 }
0x3fc0   :  { %20318 = vst [vmem:[#allocation68_spill] sm:$0xff] %v19349_v39 }
0x3fc1   :  { %v16520_v18 = vpop.f32.mrf.mxu0 }
0x3fc2   :  { %v19487_v18 = vld [vmem:[%s20325_s3 + $0x30] sm:$0xff] }
0x4076   :  { %v9209_v29 = vpop.f32.mrf.mxu1 }
0x4077   :  { %v9210_v54 = vadd.f32 %v14530_v9, %v9209_v29  ;;  %v19499_v9 = vld [vmem:[%s20325_s3 + $0x20] sm:$0xff] }
0x4078   :  { %v16454_v43 = vpop.f32.mrf.mxu1 }
0x4079   :  { %v9213_v36 = vmul.f32 %v9210_v54, %v5105_v56 }
0x407b   :  { %v19356_v13 = vadd.f32 %v9213_v36, %v19216_v15  ;;  %v19365_v15 = vld [vmem:[%s20320_s21 + $0x18] sm:$0xff] }
0x407c   :  { %16522 = vmatpush3.msra.mxu1 %v19365_v15 }
0x407d   :  { %20322 = vst [vmem:[#allocation69_spill] sm:$0xff] %v19356_v13  ;;  %v9711_v49 = vsel %vm610_vm4, %v19356_v13, 0.0  ;;  %16523 = vmatprep.subr.mxu1 %v17366_v0 }
0x407e   :  { %v19360_v32 = vpop.f32.mrf.mxu1  ;;  %9712 = vadd.xlane.f32.xlu0 %v9711_v49  ;;  %16524 = vmatpush3.msra.mxu1 %v19374_v24 }
0x407f   :  { %20323 = vst [vmem:[#allocation70_spill] sm:$0xff] %v19360_v32  ;;  %16525 = vmatprep.subr.mxu1 %v17366_v0 }
0x4080   :  { %v16509_v20 = vpop.f32.mrf.mxu1  ;;  %16526 = vmatpush3.msra.mxu1 %v19384_v5 }
0x4081   :  { %16527 = vmatprep.subr.mxu1 %v17366_v0 }
0x4082   :  { %16528 = vmatpush3.msra.mxu1 %v19394_v52 }
0x4083   :  { %16543 = vmatprep.subr.mxu1 %v17366_v0 }
0x4107   :  { %v9713_v22 = vpop.xlane.xlu0 %9712 }
0x4108   :  { %v9714_v10 = vmul.f32 0.03125, %v9713_v22 }
0x410a   :  { %v9715_v40 = vsub.f32 %v19356_v13, %v9714_v10  ;;  %v19736_v13 = vld [vmem:[%s20321_s25 + $0x70] sm:$0xff] }
0x410b   :  { %20340 = vst [vmem:[#allocation60_spill] sm:$0xff] %v19736_v13 }
0x410c   :  { %v9716_v19 = vmul.f32 %v9715_v40, %v9715_v40 }
0x410e   :  { %v9717_v61 = vsel %vm610_vm4, %v9716_v19, 0.0 }
0x410f   :  { %9718 = vadd.xlane.f32.xlu1 %v9717_v61 }
0x4198   :  { %v9719_v60 = vpop.xlane.xlu1 %9718 }
0x4199   :  { %v9720_v14 = vmul.f32 0.03125, %v9719_v60 }
0x419b   :  { %v9721_v8 = vadd.f32 1e-06, %v9720_v14 }
0x419d   :  { %17133 = vrsqrt.f32 %v9721_v8  ;;  %v19512_v8 = vld [vmem:[%s20321_s25 + $0x38] sm:$0xff] }
0x41aa   :  { %v17134_v57 = vpop.eup %17133 }
0x41ab   :  { %v9723_v47 = vmul.f32 %v17134_v57, %v9715_v40  ;;  %v19528_v57 = vld [vmem:[%s20321_s25 + $0x20] sm:$0xff] }
0x41ad   :  { %v9725_v58 = vmul.f32 %v9724_v4, %v9723_v47  ;;  %v19539_v47 = vld [vmem:[%s20326_s8 + $0x1] ss:$0 sm:$0xff] }
0x41af   :  { %v19408_v17 = vadd.f32 %v9725_v58, %v9293_v48  ;;  %v19542_v58 = vld [vmem:[%s20327_s14 + $0x1] ss:$0 sm:$0xff] }
0x41b1   :  { %16530 = vmatmul.mubr.msk.f32.vlgmr.msra.gmra.mxu1 %vm610_vm4, %v19408_v17  ;;  %16541 = vmatmul.mubr.msk.f32.vlgmr.msra.gmra.mxu0 %vm610_vm4, %v19408_v17 }
0x41b2   :  { %16544 = vmatpush3.msra.mxu1 %v19411_v23  ;;  %16551 = vmatprep.mubr.msk.f32.mxu1 %vm17367_vm0, %v17366_v0 }
0x41b3   :  { %16545 = vmatprep.subr.mxu1 %v17366_v0  ;;  %16556 = vmatprep.mubr.msk.f32.mxu0 %vm17367_vm0, %v17366_v0 }
0x41b4   :  { %16546 = vmatpush3.msra.mxu1 %v19418_v38 }
0x41b5   :  { %16547 = vmatprep.subr.mxu1 %v17366_v0 }
0x41b6   :  { %16548 = vmatpush3.msra.mxu1 %v19425_v26 }
0x41b7   :  { %16549 = vmatprep.subr.mxu1 %v17366_v0 }
0x41b8   :  { %16550 = vmatpush3.msra.mxu1 %v19432_v28 }
0x41b9   :  { %16552 = vmatmul.mubr.msk.f32.vlgmr.msra.gmra.mxu1 %vm610_vm4, %v19408_v17  ;;  %16559 = vmatprep.subr.mxu1 %v17366_v0 }
0x41ba   :  { %16561 = vmatprep.mubr.msk.f32.mxu1 %vm17367_vm0, %v17366_v0 }
0x4271   :  { %v9808_v59 = vpop.f32.mrf.mxu1  ;;  %v9889_v7 = vpop.f32.mrf.mxu0 }
0x4272   :  { %v9890_v34 = vadd.f32 %v19443_v25, %v9889_v7  ;;  %v9809_v12 = vadd.f32 %v19446_v2, %v9808_v59  ;;  %v19546_v7 = vld [vmem:[%s20328_s19 + $0x1] ss:$0 sm:$0xff] }
0x4273   :  { %v16531_v35 = vpop.f32.mrf.mxu1  ;;  %v16542_v11 = vpop.f32.mrf.mxu0 }
0x4274   :  { %16555 = vmatpush3.xpose.msk.msra.mxu0 %vm892_vm9, %v9890_v34 }
0x4275   :  { %16564 = vmatprep.subr.mxu0 %v17366_v0 }
0x4277   :  { %16557 = vmatmul.mubr.msk.f32.vlgmr.msra.gmra.mxu0 %vm892_vm9, %v9809_v12 }
0x4278   :  { %16565 = vmatpush3.msra.mxu0 %v19453_v33  ;;  %16572 = vmatprep.mubr.msk.f32.mxu0 %vm17367_vm0, %v17366_v0 }
0x4279   :  { %v9970_v41 = vpop.f32.mrf.mxu1  ;;  %16566 = vmatprep.subr.mxu0 %v17366_v0 }
0x427a   :  { %v9971_v53 = vadd.f32 %v19457_v3, %v9970_v41  ;;  %16567 = vmatpush3.msra.mxu0 %v19460_v62 }
0x427b   :  { %v16553_v27 = vpop.f32.mrf.mxu1  ;;  %16568 = vmatprep.subr.mxu0 %v17366_v0 }
0x427c   :  { %16560 = vmatpush3.msk.msra.mxu1 %vm327_vm1, %v9971_v53  ;;  %16569 = vmatpush3.msra.mxu0 %v19467_v16 }
0x427d   :  { %16570 = vmatprep.subr.mxu0 %v17366_v0  ;;  %16575 = vmatprep.subr.mxu1 %v17366_v0 }
0x427e   :  { %16571 = vmatpush3.msra.mxu0 %v19473_v6 }
0x427f   :  { %16573 = vmatmul.mubr.msk.f32.vlgmr.msra.gmra.mxu0 %vm610_vm4, %v19408_v17  ;;  %16586 = vmatprep.subr.mxu0 %v17366_v0 }
0x4280   :  { %16587 = vmatpush3.msra.mxu0 %v19479_v50  ;;  %16594 = vmatprep.mubr.msk.f32.mxu0 %vm17367_vm0, %v17366_v0 }
0x4281   :  { %16588 = vmatprep.subr.mxu0 %v17366_v0 }
0x4282   :  { %16589 = vmatpush3.msra.mxu0 %v19487_v18 }
0x4283   :  { %16590 = vmatprep.subr.mxu0 %v17366_v0 }
0x4284   :  { %16591 = vmatpush3.msra.mxu0 %v19494_v46 }
0x4285   :  { %16592 = vmatprep.subr.mxu0 %v17366_v0 }
0x4286   :  { %16593 = vmatpush3.msra.mxu0 %v19499_v9 }
0x4287   :  { %16595 = vmatmul.mubr.msk.f32.vlgmr.msra.gmra.mxu0 %vm610_vm4, %v19408_v17  ;;  %16607 = vmatprep.subr.mxu0 %v17366_v0 }
0x4288   :  { %16609 = vmatprep.mubr.msk.f32.mxu0 %vm17367_vm0, %v17366_v0 }
0x4337   :  { %v10046_v29 = vpop.f32.mrf.mxu0 }
0x4338   :  { %v10050_v37 = vsel %vm5447_vm13, %v10046_v29, -inf }
0x4339   :  { %10051 = vmax.xlane.f32.xlu0 %v10050_v37  ;;  %v16558_v56 = vpop.f32.mrf.mxu0 }
0x433f   :  { %v10217_v54 = vpop.f32.mrf.mxu0 }
0x4340   :  { %v10218_v35 = vadd.f32 %v19542_v58, %v10217_v54 }
0x4341   :  { %v16574_v43 = vpop.f32.mrf.mxu0 }
0x4342   :  { %v19560_v43 = vld [vmem:[%s20329_s12 + $0x8] sm:$0xff] }
0x4343   :  { %16608 = vmatpush3.msra.mxu0 %v19560_v43 }
0x4344   :  { %16617 = vmatprep.subr.mxu0 %v17366_v0 }
0x4347   :  { %v10383_v36 = vpop.f32.mrf.mxu0 }
0x4348   :  { %v10384_v11 = vadd.f32 %v19546_v7, %v10383_v36 }
0x4349   :  { %v16596_v49 = vpop.f32.mrf.mxu0 }
0x43c2   :  { %v10052_v20 = vpop.xlane.xlu0 %10051 }
0x43c3   :  { %v10053_v22 = vsub.f32 %v10046_v29, %v10052_v20 }
0x43c5   :  { %v10054_v10 = vmul.f32 1.442695, %v10053_v22  ;;  %v19565_v22 = vld [vmem:[%s20329_s12] sm:$0xff] }
0x43c7   :  { %17135 = vpow2.f32 %v10054_v10  ;;  %v19573_v10 = vld [vmem:[%s20321_s25 + $0x58] sm:$0xff] }
0x43d4   :  { %v17136_v40 = vpop.eup %17135 }
0x43d5   :  { %v10056_v19 = vsel %vm5447_vm13, %v17136_v40, 0.0 }
0x43d6   :  { %10057 = vadd.xlane.f32.xlu1 %v10056_v19  ;;  %v19584_v19 = vld [vmem:[%s20321_s25 + $0x48] sm:$0xff] }
0x445f   :  { %v10058_v61 = vpop.xlane.xlu1 %10057 }
0x4460   :  { %17137 = vrcp.f32 %v10058_v61  ;;  %v19589_v61 = vld [vmem:[%s20321_s25 + $0x40] sm:$0xff] }
0x446d   :  { %v17138_v60 = vpop.eup %17137 }
0x446e   :  { %v10060_v14 = vmul.f32 %v17138_v60, %v17136_v40  ;;  %v19577_v40 = vld [vmem:[%s20321_s25 + $0x50] sm:$0xff]  ;;  %v19600_v60 = vld [vmem:[%s20320_s21 + $0x58] sm:$0xff] }
0x4470   :  { %16562 = vmatmul.mubr.msk.f32.vlgmr.msra.gmra.mxu1 %vm5459_vm14, %v10060_v14 }
0x4471   :  { %16576 = vmatpush3.msra.mxu1 %v19512_v8  ;;  %16583 = vmatprep.mubr.msk.f32.mxu1 %vm17367_vm0, %v17366_v0 }
0x4472   :  { %16577 = vmatprep.subr.mxu1 %v17366_v0 }
0x4473   :  { %16578 = vmatpush3.msra.mxu1 %v19516_v42 }
0x4474   :  { %16579 = vmatprep.subr.mxu1 %v17366_v0 }
0x4475   :  { %16580 = vmatpush3.msra.mxu1 %v19523_v55 }
0x4476   :  { %16581 = vmatprep.subr.mxu1 %v17366_v0 }
0x4477   :  { %16582 = vmatpush3.msra.mxu1 %v19528_v57 }
0x4478   :  { %16584 = vmatmul.mubr.msk.f32.vlgmr.msra.gmra.mxu1 %vm610_vm4, %v19408_v17  ;;  %16597 = vmatprep.subr.mxu1 %v17366_v0 }
0x4479   :  { %16599 = vmatprep.mubr.msk.f32.mxu1 %vm17367_vm0, %v17366_v0 }
0x4530   :  { %v10133_v1 = vpop.f32.mrf.mxu1 }
0x4532   :  { %v16563_v4 = vpop.f32.mrf.mxu1 }
0x4538   :  { %v10300_v48 = vpop.f32.mrf.mxu1 }
0x4539   :  { %v10301_v59 = vadd.f32 %v19539_v47, %v10300_v48  ;;  %v19611_v48 = vld [vmem:[%s20320_s21 + $0x48] sm:$0xff] }
0x453a   :  { %v16585_v34 = vpop.f32.mrf.mxu1 }
0x453b   :  { %16598 = vmatpush3.xpose.msk.msra.mxu1 %vm892_vm9, %v10301_v59  ;;  %v19618_v34 = vld [vmem:[%s20320_s21 + $0x40] sm:$0xff] }
0x453c   :  { %16602 = vmatprep.subr.mxu1 %v17366_v0 }
0x453e   :  { %16600 = vmatmul.mubr.msk.f32.vlgmr.msra.gmra.mxu1 %vm892_vm9, %v10218_v35 }
0x453f   :  { %16603 = vmatpush3.msk.msra.mxu1 %vm327_vm1, %v10384_v11  ;;  %16604 = vmatprep.mubr.msk.f32.mxu1 %vm17367_vm0, %v17366_v0  ;;  %v19623_v11 = vld [vmem:[%s20325_s3 + $0x58] sm:$0xff] }
0x4540   :  { %16612 = vmatprep.subr.mxu1 %v17366_v0 }
0x45fe   :  { %v10459_v12 = vpop.f32.mrf.mxu1 }
0x45ff   :  { %v10463_v41 = vsel %vm5447_vm13, %v10459_v12, -inf }
0x4600   :  { %10464 = vmax.xlane.f32.xlu0 %v10463_v41  ;;  %v16601_v53 = vpop.f32.mrf.mxu1  ;;  %v19634_v41 = vld [vmem:[%s20326_s8 + $0x2] ss:$0 sm:$0xff] }
0x4601   :  { %v19640_v53 = vld [vmem:[%s20325_s3 + $0x48] sm:$0xff] }
0x4689   :  { %v10465_v27 = vpop.xlane.xlu0 %10464 }
0x468a   :  { %v10466_v29 = vsub.f32 %v10459_v12, %v10465_v27  ;;  %v19630_v12 = vld [vmem:[%s20325_s3 + $0x50] sm:$0xff] }
0x468c   :  { %v10467_v37 = vmul.f32 1.442695, %v10466_v29 }
0x468e   :  { %17139 = vpow2.f32 %v10467_v37  ;;  %v19646_v37 = vld [vmem:[%s20325_s3 + $0x40] sm:$0xff] }
0x469b   :  { %v17140_v56 = vpop.eup %17139 }
0x469c   :  { %v10469_v54 = vsel %vm5447_vm13, %v17140_v56, 0.0 }
0x469d   :  { %10470 = vadd.xlane.f32.xlu1 %v10469_v54 }
0x4726   :  { %v10471_v36 = vpop.xlane.xlu1 %10470 }
0x4727   :  { %17141 = vrcp.f32 %v10471_v36 }
0x4734   :  { %v17142_v49 = vpop.eup %17141 }
0x4735   :  { %v10473_v20 = vmul.f32 %v17142_v49, %v17140_v56  ;;  %v19661_v49 = vld [vmem:[%s20327_s14 + $0x2] ss:$0 sm:$0xff] }
0x4737   :  { %16605 = vmatmul.mubr.msk.f32.vlgmr.msra.gmra.mxu1 %vm5459_vm14, %v10473_v20 }
0x4738   :  { %16613 = vmatpush3.msra.mxu1 %v19565_v22  ;;  %16614 = vmatprep.mubr.msk.f32.mxu1 %vm17367_vm0, %v17366_v0 }
0x4739   :  { %16628 = vmatprep.subr.mxu1 %v17366_v0 }
0x473b   :  { %16615 = vmatmul.mubr.msk.f32.vlgmr.msra.gmra.mxu1 %vm892_vm9, %v10133_v1  ;;  %v19604_v1 = vld [vmem:[%s20320_s21 + $0x50] sm:$0xff] }
0x473c   :  { %16629 = vmatpush3.msra.mxu1 %v19573_v10  ;;  %16636 = vmatprep.mubr.msk.f32.mxu1 %vm17367_vm0, %v17366_v0 }
0x473d   :  { %16630 = vmatprep.subr.mxu1 %v17366_v0 }
0x473e   :  { %16631 = vmatpush3.msra.mxu1 %v19577_v40 }
0x473f   :  { %16632 = vmatprep.subr.mxu1 %v17366_v0 }
0x4740   :  { %16633 = vmatpush3.msra.mxu1 %v19584_v19 }
0x4741   :  { %16634 = vmatprep.subr.mxu1 %v17366_v0 }
0x4742   :  { %16635 = vmatpush3.msra.mxu1 %v19589_v61 }
0x4743   :  { %16637 = vmatmul.mubr.msk.f32.vlgmr.msra.gmra.mxu1 %vm610_vm4, %v19408_v17  ;;  %16650 = vmatprep.subr.mxu1 %v17366_v0 }
0x4744   :  { %16652 = vmatprep.mubr.msk.f32.mxu1 %vm17367_vm0, %v17366_v0 }
0x47f7   :  { %v10546_v14 = vpop.f32.mrf.mxu1 }
0x47f8   :  { %16610 = vmatmul.mubr.msk.f32.vlgmr.msra.gmra.mxu0 %vm892_vm9, %v10546_v14 }
0x47f9   :  { %16618 = vmatpush3.msra.mxu0 %v19600_v60  ;;  %v16606_v4 = vpop.f32.mrf.mxu1  ;;  %16625 = vmatprep.mubr.msk.f32.mxu0 %vm17367_vm0, %v17366_v0 }
0x47fa   :  { %16619 = vmatprep.subr.mxu0 %v17366_v0 }
0x47fb   :  { %16620 = vmatpush3.msra.mxu0 %v19604_v1  ;;  %v19614_v59 = vpop.f32.mrf.mxu1 }
0x47fc   :  { %16621 = vmatprep.subr.mxu0 %v17366_v0 }
0x47fd   :  { %16622 = vmatpush3.msra.mxu0 %v19611_v48  ;;  %v16616_v35 = vpop.f32.mrf.mxu1 }
0x47fe   :  { %16623 = vmatprep.subr.mxu0 %v17366_v0  ;;  %v19668_v35 = vld [vmem:[%s20328_s19 + $0x2] ss:$0 sm:$0xff] }
0x47ff   :  { %16624 = vmatpush3.msra.mxu0 %v19618_v34  ;;  %20330 = vst [vmem:[#allocation71_spill] sm:$0xff] %v19668_v35 }
0x4800   :  { %16626 = vmatmul.mubr.msk.f32.vlgmr.msra.gmra.mxu0 %vm610_vm4, %v19408_v17  ;;  %16639 = vmatprep.subr.mxu0 %v17366_v0 }
0x4801   :  { %16640 = vmatpush3.msra.mxu0 %v19623_v11  ;;  %16647 = vmatprep.mubr.msk.f32.mxu0 %vm17367_vm0, %v17366_v0 }
0x4802   :  { %16641 = vmatprep.subr.mxu0 %v17366_v0 }
0x4803   :  { %v10860_v27 = vpop.f32.mrf.mxu1  ;;  %16642 = vmatpush3.msra.mxu0 %v19630_v12 }
0x4804   :  { %v10861_v29 = vadd.f32 %v19634_v41, %v10860_v27  ;;  %16643 = vmatprep.subr.mxu0 %v17366_v0 }
0x4805   :  { %v16638_v56 = vpop.f32.mrf.mxu1  ;;  %16644 = vmatpush3.msra.mxu0 %v19640_v53 }
0x4806   :  { %16645 = vmatprep.subr.mxu0 %v17366_v0  ;;  %16651 = vmatpush3.xpose.msk.msra.mxu1 %vm892_vm9, %v10861_v29 }
0x4807   :  { %16646 = vmatpush3.msra.mxu0 %v19646_v37  ;;  %16655 = vmatprep.subr.mxu1 %v17366_v0 }
0x4808   :  { %16648 = vmatmul.mubr.msk.f32.vlgmr.msra.gmra.mxu0 %vm610_vm4, %v19408_v17  ;;  %16660 = vmatprep.subr.mxu0 %v17366_v0 }
0x4809   :  { %16662 = vmatprep.mubr.msk.f32.mxu0 %vm17367_vm0, %v17366_v0 }
0x48b8   :  { %v19658_v54 = vpop.f32.mrf.mxu0 }
0x48ba   :  { %v16611_v36 = vpop.f32.mrf.mxu0 }
0x48c0   :  { %v10777_v20 = vpop.f32.mrf.mxu0 }
0x48c1   :  { %v10778_v14 = vadd.f32 %v19661_v49, %v10777_v20 }
0x48c2   :  { %v16627_v4 = vpop.f32.mrf.mxu0 }
0x48c3   :  { %16653 = vmatmul.mubr.msk.f32.vlgmr.msra.gmra.mxu1 %vm892_vm9, %v10778_v14 }
0x48c4   :  { %16657 = vmatprep.mubr.msk.f32.mxu1 %vm17367_vm0, %v17366_v0 }
0x48c8   :  { %v10943_v27 = vpop.f32.mrf.mxu0 }
0x48c9   :  { %v10944_v29 = vadd.f32 %v19668_v35, %v10943_v27 }
0x48ca   :  { %v16649_v56 = vpop.f32.mrf.mxu0 }
0x48cb   :  { %16656 = vmatpush3.msk.msra.mxu1 %vm327_vm1, %v10944_v29  ;;  %v19676_v56 = vld [vmem:[%s20329_s12 + $0x10] sm:$0xff] }
0x48cc   :  { %16665 = vmatprep.subr.mxu1 %v17366_v0  ;;  %16661 = vmatpush3.msra.mxu0 %v19676_v56 }
0x48cd   :  { %16676 = vmatprep.subr.mxu0 %v17366_v0 }
0x4983   :  { %v11019_v36 = vpop.f32.mrf.mxu1 }
0x4984   :  { %v11023_v20 = vsel %vm5447_vm13, %v11019_v36, -inf }
0x4985   :  { %11024 = vmax.xlane.f32.xlu0 %v11023_v20  ;;  %v16654_v14 = vpop.f32.mrf.mxu1 }
0x4a0e   :  { %v11025_v4 = vpop.xlane.xlu0 %11024 }
0x4a0f   :  { %v11026_v39 = vsub.f32 %v11019_v36, %v11025_v4  ;;  %v19681_v36 = vld [vmem:[%s20320_s21 + $0x78] sm:$0xff] }
0x4a10   :  { %20331 = vst [vmem:[#allocation72_spill] sm:$0xff] %v19681_v36  ;;  %v19702_v4 = vld [vmem:[%s20325_s3 + $0x78] sm:$0xff] }
0x4a11   :  { %v11027_v31 = vmul.f32 1.442695, %v11026_v39  ;;  %v19692_v39 = vld [vmem:[%s20320_s21 + $0x68] sm:$0xff]  ;;  %20335 = vst [vmem:[#allocation76_spill] sm:$0xff] %v19702_v4 }
0x4a12   :  { %20333 = vst [vmem:[#allocation74_spill] sm:$0xff] %v19692_v39 }
0x4a13   :  { %17143 = vpow2.f32 %v11027_v31  ;;  %v19685_v31 = vld [vmem:[%s20320_s21 + $0x70] sm:$0xff] }
0x4a14   :  { %20332 = vst [vmem:[#allocation73_spill] sm:$0xff] %v19685_v31 }
0x4a20   :  { %v17144_v63 = vpop.eup %17143 }
0x4a21   :  { %v11029_v27 = vsel %vm5447_vm13, %v17144_v63, 0.0 }
0x4a22   :  { %11030 = vadd.xlane.f32.xlu1 %v11029_v27  ;;  %v19709_v27 = vld [vmem:[%s20325_s3 + $0x70] sm:$0xff] }
0x4a23   :  { %20336 = vst [vmem:[#allocation77_spill] sm:$0xff] %v19709_v27 }
0x4aab   :  { %v11031_v29 = vpop.xlane.xlu1 %11030 }
0x4aac   :  { %17145 = vrcp.f32 %v11031_v29  ;;  %v19716_v29 = vld [vmem:[%s20325_s3 + $0x68] sm:$0xff] }
0x4aad   :  { %20337 = vst [vmem:[#allocation78_spill] sm:$0xff] %v19716_v29 }
0x4ab9   :  { %v17146_v20 = vpop.eup %17145 }
0x4aba   :  { %v11033_v14 = vmul.f32 %v17146_v20, %v17144_v63  ;;  %v19697_v63 = vld [vmem:[%s20320_s21 + $0x60] sm:$0xff] }
0x4abb   :  { %20334 = vst [vmem:[#allocation75_spill] sm:$0xff] %v19697_v63  ;;  %v19721_v20 = vld [vmem:[%s20325_s3 + $0x60] sm:$0xff] }
0x4abc   :  { %16658 = vmatmul.mubr.msk.f32.vlgmr.msra.gmra.mxu1 %vm5459_vm14, %v11033_v14  ;;  %20338 = vst [vmem:[#allocation79_spill] sm:$0xff] %v19721_v20  ;;  %v19732_v14 = vld [vmem:[%s20321_s25 + $0x78] sm:$0xff] }
0x4abd   :  { %16666 = vmatpush3.msra.mxu1 %v19681_v36  ;;  %16673 = vmatprep.mubr.msk.f32.mxu1 %vm17367_vm0, %v17366_v0  ;;  %20339 = vst [vmem:[#allocation61_spill] sm:$0xff] %v19732_v14 }
0x4abe   :  { %16667 = vmatprep.subr.mxu1 %v17366_v0 }
0x4abf   :  { %16668 = vmatpush3.msra.mxu1 %v19685_v31  ;;  %v19766_v31 = vld [vmem:[%s20327_s14 + $0x3] ss:$0 sm:$0xff] }
0x4ac0   :  { %16669 = vmatprep.subr.mxu1 %v17366_v0 }
0x4ac1   :  { %16670 = vmatpush3.msra.mxu1 %v19692_v39  ;;  %v19763_v39 = vld [vmem:[%s20326_s8 + $0x3] ss:$0 sm:$0xff] }
0x4ac2   :  { %16671 = vmatprep.subr.mxu1 %v17366_v0 }
0x4ac3   :  { %16672 = vmatpush3.msra.mxu1 %v19697_v63 }
0x4ac4   :  { %16674 = vmatmul.mubr.msk.f32.vlgmr.msra.gmra.mxu1 %vm610_vm4, %v19408_v17  ;;  %16687 = vmatprep.subr.mxu1 %v17366_v0 }
0x4ac5   :  { %16688 = vmatpush3.msra.mxu1 %v19702_v4  ;;  %16695 = vmatprep.mubr.msk.f32.mxu1 %vm17367_vm0, %v17366_v0 }
0x4ac6   :  { %16689 = vmatprep.subr.mxu1 %v17366_v0 }
0x4ac7   :  { %16690 = vmatpush3.msra.mxu1 %v19709_v27 }
0x4ac8   :  { %16691 = vmatprep.subr.mxu1 %v17366_v0 }
0x4ac9   :  { %16692 = vmatpush3.msra.mxu1 %v19716_v29  ;;  %v19748_v29 = vld [vmem:[%s20321_s25 + $0x60] sm:$0xff] }
0x4aca   :  { %16693 = vmatprep.subr.mxu1 %v17366_v0  ;;  %20342 = vst [vmem:[#allocation64_spill] sm:$0xff] %v19748_v29 }
0x4acb   :  { %16694 = vmatpush3.msra.mxu1 %v19721_v20  ;;  %v19743_v20 = vld [vmem:[%s20321_s25 + $0x68] sm:$0xff] }
0x4acc   :  { %16696 = vmatmul.mubr.msk.f32.vlgmr.msra.gmra.mxu1 %vm610_vm4, %v19408_v17  ;;  %16708 = vmatprep.subr.mxu1 %v17366_v0  ;;  %20341 = vst [vmem:[#allocation63_spill] sm:$0xff] %v19743_v20 }
0x4acd   :  { %16710 = vmatprep.mubr.msk.f32.mxu1 %vm17367_vm0, %v17366_v0 }
0x4b7c   :  { %v11106_v32 = vpop.f32.mrf.mxu1 }
0x4b7d   :  { %16663 = vmatmul.mubr.msk.f32.vlgmr.msra.gmra.mxu0 %vm892_vm9, %v11106_v32 }
0x4b7e   :  { %16677 = vmatpush3.msra.mxu0 %v19732_v14  ;;  %v16659_v45 = vpop.f32.mrf.mxu1  ;;  %16684 = vmatprep.mubr.msk.f32.mxu0 %vm17367_vm0, %v17366_v0 }
0x4b7f   :  { %16678 = vmatprep.subr.mxu0 %v17366_v0 }
0x4b80   :  { %16679 = vmatpush3.msra.mxu0 %v19736_v13 }
0x4b81   :  { %16680 = vmatprep.subr.mxu0 %v17366_v0 }
0x4b82   :  { %16681 = vmatpush3.msra.mxu0 %v19743_v20  ;;  %v10695_v20 = vadd.f32 %v19614_v59, %v19658_v54 }
0x4b83   :  { %16682 = vmatprep.subr.mxu0 %v17366_v0 }
0x4b84   :  { %v11265_v45 = vpop.f32.mrf.mxu1  ;;  %16683 = vmatpush3.msra.mxu0 %v19748_v29 }
0x4b85   :  { %16685 = vmatmul.mubr.msk.f32.vlgmr.msra.gmra.mxu0 %vm610_vm4, %v19408_v17  ;;  %16698 = vmatprep.subr.mxu0 %v17366_v0 }
0x4b86   :  { %v16675_v32 = vpop.f32.mrf.mxu1  ;;  %16700 = vmatprep.mubr.msk.f32.mxu0 %vm17367_vm0, %v17366_v0 }
0x4b87   :  { %v19770_v32 = vld [vmem:[%s20328_s19 + $0x3] ss:$0 sm:$0xff] }
0x4b88   :  { %20343 = vst [vmem:[#allocation65_spill] sm:$0xff] %v19770_v32 }
0x4b8c   :  { %v11431_v13 = vpop.f32.mrf.mxu1 }
0x4b8d   :  { %v11432_v59 = vadd.f32 %v19770_v32, %v11431_v13 }
0x4b8e   :  { %v16697_v14 = vpop.f32.mrf.mxu1 }
0x4b8f   :  { %v11266_v14 = vadd.f32 %v19766_v31, %v11265_v45  ;;  %v19784_v45 = vld [vmem:[%s20329_s12 + $0x18] sm:$0xff] }
0x4b90   :  { %16709 = vmatpush3.msra.mxu1 %v19784_v45 }
0x4b91   :  { %16724 = vmatprep.subr.mxu1 %v17366_v0 }
0x4c3d   :  { %v11181_v27 = vpop.f32.mrf.mxu0 }
0x4c3e   :  { %v19760_v4 = vadd.f32 %v11181_v27, %v10695_v20 }
0x4c3f   :  { %v16664_v63 = vpop.f32.mrf.mxu0 }
0x4c45   :  { %v11348_v29 = vpop.f32.mrf.mxu0 }
0x4c46   :  { %v11349_v36 = vadd.f32 %v19763_v39, %v11348_v29 }
0x4c47   :  { %v16686_v35 = vpop.f32.mrf.mxu0 }
0x4c48   :  { %16699 = vmatpush3.xpose.msk.msra.mxu0 %vm892_vm9, %v11349_v36 }
0x4c49   :  { %16703 = vmatprep.subr.mxu0 %v17366_v0 }
0x4c4b   :  { %16701 = vmatmul.mubr.msk.f32.vlgmr.msra.gmra.mxu0 %vm892_vm9, %v11266_v14 }
0x4c4c   :  { %16704 = vmatpush3.msk.msra.mxu0 %vm327_vm1, %v11432_v59  ;;  %16705 = vmatprep.mubr.msk.f32.mxu0 %vm17367_vm0, %v17366_v0 }
0x4c4d   :  { %16713 = vmatprep.subr.mxu0 %v17366_v0 }
0x4d0b   :  { %v11507_v54 = vpop.f32.mrf.mxu0 }
0x4d0c   :  { %v11511_v35 = vsel %vm5447_vm13, %v11507_v54, -inf }
0x4d0d   :  { %11512 = vmax.xlane.f32.xlu0 %v11511_v35  ;;  %v16702_v36 = vpop.f32.mrf.mxu0 }
0x4d96   :  { %v11513_v63 = vpop.xlane.xlu0 %11512 }
0x4d97   :  { %v11514_v27 = vsub.f32 %v11507_v54, %v11513_v63  ;;  %v19798_v54 = vrot.slane %v19408_v17, 4 }
0x4d99   :  { %v11515_v29 = vmul.f32 1.442695, %v11514_v27 }
0x4d9b   :  { %17147 = vpow2.f32 %v11515_v29 }
0x4da8   :  { %v17148_v13 = vpop.eup %17147 }
0x4da9   :  { %v11517_v20 = vsel %vm5447_vm13, %v17148_v13, 0.0 }
0x4daa   :  { %11518 = vadd.xlane.f32.xlu1 %v11517_v20 }
0x4e33   :  { %v11519_v14 = vpop.xlane.xlu1 %11518 }
0x4e34   :  { %17149 = vrcp.f32 %v11519_v14 }
0x4e41   :  { %v17150_v59 = vpop.eup %17149 }
0x4e42   :  { %v11521_v32 = vmul.f32 %v17150_v59, %v17148_v13 }
0x4e44   :  { %16706 = vmatmul.mubr.msk.f32.vlgmr.msra.gmra.mxu0 %vm5459_vm14, %v11521_v32 }
0x4e45   :  { %16714 = vmatpush3.msra.mxu0 %v19365_v15  ;;  %16721 = vmatprep.mubr.msk.f32.mxu0 %vm17367_vm0, %v17366_v0 }
0x4e46   :  { %16715 = vmatprep.subr.mxu0 %v17366_v0 }
0x4e47   :  { %16716 = vmatpush3.msra.mxu0 %v19374_v24 }
0x4e48   :  { %16717 = vmatprep.subr.mxu0 %v17366_v0 }
0x4e49   :  { %16718 = vmatpush3.msra.mxu0 %v19384_v5 }
0x4e4a   :  { %16719 = vmatprep.subr.mxu0 %v17366_v0 }
0x4e4b   :  { %16720 = vmatpush3.msra.mxu0 %v19394_v52 }
0x4e4c   :  { %16722 = vmatmul.mubr.msk.f32.vlgmr.msra.gmra.mxu0 %vm610_vm4, %v19798_v54  ;;  %16735 = vmatprep.subr.mxu0 %v17366_v0 }
0x4e4d   :  { %16736 = vmatpush3.msra.mxu0 %v19411_v23  ;;  %16743 = vmatprep.mubr.msk.f32.mxu0 %vm17367_vm0, %v17366_v0 }
0x4e4e   :  { %16737 = vmatprep.subr.mxu0 %v17366_v0 }
0x4e4f   :  { %16738 = vmatpush3.msra.mxu0 %v19418_v38 }
0x4e50   :  { %16739 = vmatprep.subr.mxu0 %v17366_v0 }
0x4e51   :  { %16740 = vmatpush3.msra.mxu0 %v19425_v26  ;;  %v19859_v26 = vld [vmem:[#allocation8] ss:$0 sm:$0xff] }
0x4e52   :  { %16741 = vmatprep.subr.mxu0 %v17366_v0 }
0x4e53   :  { %16742 = vmatpush3.msra.mxu0 %v19432_v28 }
0x4e54   :  { %16744 = vmatmul.mubr.msk.f32.vlgmr.msra.gmra.mxu0 %vm610_vm4, %v19798_v54  ;;  %16756 = vmatprep.subr.mxu0 %v17366_v0 }
0x4e55   :  { %16757 = vmatpush3.msra.mxu0 %v19453_v33  ;;  %16764 = vmatprep.mubr.msk.f32.mxu0 %vm17367_vm0, %v17366_v0 }
0x4e56   :  { %16758 = vmatprep.subr.mxu0 %v17366_v0 }
0x4e57   :  { %16759 = vmatpush3.msra.mxu0 %v19460_v62 }
0x4e58   :  { %16760 = vmatprep.subr.mxu0 %v17366_v0 }
0x4e59   :  { %16761 = vmatpush3.msra.mxu0 %v19467_v16 }
0x4e5a   :  { %16762 = vmatprep.subr.mxu0 %v17366_v0 }
0x4e5b   :  { %16763 = vmatpush3.msra.mxu0 %v19473_v6 }
0x4e5c   :  { %16765 = vmatmul.mubr.msk.f32.vlgmr.msra.gmra.mxu0 %vm610_vm4, %v19798_v54  ;;  %16778 = vmatprep.subr.mxu0 %v17366_v0 }
0x4e5d   :  { %16779 = vmatpush3.msra.mxu0 %v19479_v50  ;;  %16786 = vmatprep.mubr.msk.f32.mxu0 %vm17367_vm0, %v17366_v0 }
0x4e5e   :  { %16780 = vmatprep.subr.mxu0 %v17366_v0 }
0x4e5f   :  { %16781 = vmatpush3.msra.mxu0 %v19487_v18 }
0x4e60   :  { %16782 = vmatprep.subr.mxu0 %v17366_v0 }
0x4e61   :  { %16783 = vmatpush3.msra.mxu0 %v19494_v46 }
0x4e62   :  { %16784 = vmatprep.subr.mxu0 %v17366_v0 }
0x4e63   :  { %16785 = vmatpush3.msra.mxu0 %v19499_v9 }
0x4e64   :  { %16787 = vmatmul.mubr.msk.f32.vlgmr.msra.gmra.mxu0 %vm610_vm4, %v19798_v54  ;;  %16799 = vmatprep.subr.mxu0 %v17366_v0 }
0x4e65   :  { %16800 = vmatpush3.msra.mxu0 %v19560_v43  ;;  %16801 = vmatprep.mubr.msk.f32.mxu0 %vm17367_vm0, %v17366_v0 }
0x4e66   :  { %16809 = vmatprep.subr.mxu0 %v17366_v0 }
0x4f04   :  { %v11594_v15 = vpop.f32.mrf.mxu0 }
0x4f05   :  { %16711 = vmatmul.mubr.msk.f32.vlgmr.msra.gmra.mxu1 %vm892_vm9, %v11594_v15 }
0x4f06   :  { %16725 = vmatpush3.msra.mxu1 %v19369_v21  ;;  %v16707_v24 = vpop.f32.mrf.mxu0  ;;  %16732 = vmatprep.mubr.msk.f32.mxu1 %vm17367_vm0, %v17366_v0 }
0x4f07   :  { %16726 = vmatprep.subr.mxu1 %v17366_v0 }
0x4f08   :  { %16727 = vmatpush3.msra.mxu1 %v19379_v44 }
0x4f09   :  { %16728 = vmatprep.subr.mxu1 %v17366_v0 }
0x4f0a   :  { %16729 = vmatpush3.msra.mxu1 %v19389_v51 }
0x4f0b   :  { %16730 = vmatprep.subr.mxu1 %v17366_v0 }
0x4f0c   :  { %v11762_v5 = vpop.f32.mrf.mxu0  ;;  %16731 = vmatpush3.msra.mxu1 %v19397_v30 }
0x4f0d   :  { %16733 = vmatmul.mubr.msk.f32.vlgmr.msra.gmra.mxu1 %vm610_vm4, %v19798_v54  ;;  %16746 = vmatprep.subr.mxu1 %v17366_v0  ;;  %v11763_v18 = vadd.f32 %v19446_v2, %v11762_v5 }
0x4f0e   :  { %v16723_v21 = vpop.f32.mrf.mxu0  ;;  %16748 = vmatprep.mubr.msk.f32.mxu1 %vm17367_vm0, %v17366_v0 }
0x4f14   :  { %v11924_v52 = vpop.f32.mrf.mxu0 }
0x4f15   :  { %v11925_v46 = vadd.f32 %v19457_v3, %v11924_v52 }
0x4f16   :  { %v16745_v44 = vpop.f32.mrf.mxu0 }
0x4f1c   :  { %v12169_v17 = vpop.f32.mrf.mxu0 }
0x4f1e   :  { %v16766_v23 = vpop.f32.mrf.mxu0 }
0x4f24   :  { %v12331_v38 = vpop.f32.mrf.mxu0 }
0x4f26   :  { %v16788_v51 = vpop.f32.mrf.mxu0 }
0x4fc5   :  { %v11669_v28 = vpop.f32.mrf.mxu1 }
0x4fc6   :  { %v11673_v30 = vadd.f32 %v11669_v28, %v19760_v4 }
0x4fc7   :  { %v16712_v33 = vpop.f32.mrf.mxu1 }
0x4fc8   :  { %v11680_v62 = vadd.f32 %v19859_v26, %v11673_v30 }
0x4fca   :  { %11681 = vst.msk [vmem:[#allocation3] sm:$0xf] %vm661_vm6, %v11680_v62 }
0x4fcd   :  { %v11843_v16 = vpop.f32.mrf.mxu1 }
0x4fce   :  { %v11844_v6 = vadd.f32 %v19443_v25, %v11843_v16 }
0x4fcf   :  { %v16734_v50 = vpop.f32.mrf.mxu1 }
0x4fd0   :  { %16747 = vmatpush3.xpose.msk.msra.mxu1 %vm892_vm9, %v11844_v6 }
0x4fd1   :  { %16751 = vmatprep.subr.mxu1 %v17366_v0 }
0x4fd3   :  { %16749 = vmatmul.mubr.msk.f32.vlgmr.msra.gmra.mxu1 %vm892_vm9, %v11763_v18  ;;  %v20345_v18 = vld [vmem:[#allocation72_spill] sm:$0xff] }
0x4fd4   :  { %16752 = vmatpush3.msk.msra.mxu1 %vm327_vm1, %v11925_v46  ;;  %16753 = vmatprep.mubr.msk.f32.mxu1 %vm17367_vm0, %v17366_v0  ;;  %v20346_v46 = vld [vmem:[#allocation73_spill] sm:$0xff] }
0x4fd5   :  { %16767 = vmatprep.subr.mxu1 %v17366_v0 }
0x5093   :  { %v12000_v9 = vpop.f32.mrf.mxu1 }
0x5094   :  { %v12004_v25 = vsel %vm5447_vm13, %v12000_v9, -inf }
0x5095   :  { %12005 = vmax.xlane.f32.xlu0 %v12004_v25  ;;  %v16750_v43 = vpop.f32.mrf.mxu1  ;;  %v20348_v25 = vld [vmem:[#allocation75_spill] sm:$0xff] }
0x5096   :  { %v20349_v43 = vld [vmem:[#allocation76_spill] sm:$0xff] }
0x511e   :  { %v12006_v4 = vpop.xlane.xlu0 %12005 }
0x511f   :  { %v12007_v2 = vsub.f32 %v12000_v9, %v12006_v4  ;;  %v20347_v9 = vld [vmem:[#allocation74_spill] sm:$0xff]  ;;  %v20350_v4 = vld [vmem:[#allocation77_spill] sm:$0xff] }
0x5121   :  { %v12008_v32 = vmul.f32 1.442695, %v12007_v2  ;;  %v20351_v2 = vld [vmem:[#allocation78_spill] sm:$0xff] }
0x5123   :  { %17151 = vpow2.f32 %v12008_v32  ;;  %v20352_v32 = vld [vmem:[#allocation79_spill] sm:$0xff] }
0x5130   :  { %v17152_v35 = vpop.eup %17151 }
0x5131   :  { %v12010_v3 = vsel %vm5447_vm13, %v17152_v35, 0.0 }
0x5132   :  { %12011 = vadd.xlane.f32.xlu1 %v12010_v3  ;;  %v20353_v3 = vld [vmem:[#allocation61_spill] sm:$0xff] }
0x51bb   :  { %v12012_v36 = vpop.xlane.xlu1 %12011 }
0x51bc   :  { %17153 = vrcp.f32 %v12012_v36 }
0x51c9   :  { %v17154_v63 = vpop.eup %17153 }
0x51ca   :  { %v12014_v27 = vmul.f32 %v17154_v63, %v17152_v35  ;;  %v20354_v63 = vld [vmem:[#allocation60_spill] sm:$0xff] }
0x51cc   :  { %16754 = vmatmul.mubr.msk.f32.vlgmr.msra.gmra.mxu1 %vm5459_vm14, %v12014_v27 }
0x51cd   :  { %16768 = vmatpush3.msra.mxu1 %v19512_v8  ;;  %16775 = vmatprep.mubr.msk.f32.mxu1 %vm17367_vm0, %v17366_v0 }
0x51ce   :  { %16769 = vmatprep.subr.mxu1 %v17366_v0 }
0x51cf   :  { %16770 = vmatpush3.msra.mxu1 %v19516_v42 }
0x51d0   :  { %16771 = vmatprep.subr.mxu1 %v17366_v0 }
0x51d1   :  { %16772 = vmatpush3.msra.mxu1 %v19523_v55  ;;  %v12170_v55 = vadd.f32 %v19542_v58, %v12169_v17 }
0x51d2   :  { %16773 = vmatprep.subr.mxu1 %v17366_v0 }
0x51d3   :  { %16774 = vmatpush3.msra.mxu1 %v19528_v57  ;;  %v12332_v57 = vadd.f32 %v19546_v7, %v12331_v38 }
0x51d4   :  { %16776 = vmatmul.mubr.msk.f32.vlgmr.msra.gmra.mxu1 %vm610_vm4, %v19798_v54  ;;  %16789 = vmatprep.subr.mxu1 %v17366_v0 }
0x51d5   :  { %16791 = vmatprep.mubr.msk.f32.mxu1 %vm17367_vm0, %v17366_v0 }
0x528c   :  { %v12087_v8 = vpop.f32.mrf.mxu1 }
0x528e   :  { %v16755_v29 = vpop.f32.mrf.mxu1 }
0x5294   :  { %v12250_v13 = vpop.f32.mrf.mxu1 }
0x5295   :  { %v12251_v42 = vadd.f32 %v19539_v47, %v12250_v13 }
0x5296   :  { %v16777_v20 = vpop.f32.mrf.mxu1 }
0x5297   :  { %16790 = vmatpush3.xpose.msk.msra.mxu1 %vm892_vm9, %v12251_v42 }
0x5298   :  { %16794 = vmatprep.subr.mxu1 %v17366_v0 }
0x529a   :  { %16792 = vmatmul.mubr.msk.f32.vlgmr.msra.gmra.mxu1 %vm892_vm9, %v12170_v55 }
0x529b   :  { %16795 = vmatpush3.msk.msra.mxu1 %vm327_vm1, %v12332_v57  ;;  %16796 = vmatprep.mubr.msk.f32.mxu1 %vm17367_vm0, %v17366_v0 }
0x529c   :  { %16804 = vmatprep.subr.mxu1 %v17366_v0 }
0x535a   :  { %v12407_v14 = vpop.f32.mrf.mxu1 }
0x535b   :  { %v12411_v47 = vsel %vm5447_vm13, %v12407_v14, -inf }
0x535c   :  { %12412 = vmax.xlane.f32.xlu0 %v12411_v47  ;;  %v16793_v59 = vpop.f32.mrf.mxu1 }
0x53e5   :  { %v12413_v15 = vpop.xlane.xlu0 %12412 }
0x53e6   :  { %v12414_v58 = vsub.f32 %v12407_v14, %v12413_v15 }
0x53e8   :  { %v12415_v24 = vmul.f32 1.442695, %v12414_v58  ;;  %v20357_v58 = vld [vmem:[#allocation65_spill] sm:$0xff] }
0x53ea   :  { %17155 = vpow2.f32 %v12415_v24 }
0x53f7   :  { %v17156_v5 = vpop.eup %17155 }
0x53f8   :  { %v12417_v7 = vsel %vm5447_vm13, %v17156_v5, 0.0 }
0x53f9   :  { %12418 = vadd.xlane.f32.xlu1 %v12417_v7 }
0x5482   :  { %v12419_v21 = vpop.xlane.xlu1 %12418 }
0x5483   :  { %17157 = vrcp.f32 %v12419_v21 }
0x5490   :  { %v17158_v52 = vpop.eup %17157 }
0x5491   :  { %v12421_v44 = vmul.f32 %v17158_v52, %v17156_v5 }
0x5493   :  { %16797 = vmatmul.mubr.msk.f32.vlgmr.msra.gmra.mxu1 %vm5459_vm14, %v12421_v44 }
0x5494   :  { %16805 = vmatpush3.msra.mxu1 %v19565_v22  ;;  %16806 = vmatprep.mubr.msk.f32.mxu1 %vm17367_vm0, %v17366_v0 }
0x5495   :  { %16820 = vmatprep.subr.mxu1 %v17366_v0 }
0x5497   :  { %16807 = vmatmul.mubr.msk.f32.vlgmr.msra.gmra.mxu1 %vm892_vm9, %v12087_v8  ;;  %v20356_v8 = vld [vmem:[#allocation64_spill] sm:$0xff] }
0x5498   :  { %16821 = vmatpush3.msra.mxu1 %v19573_v10  ;;  %16828 = vmatprep.mubr.msk.f32.mxu1 %vm17367_vm0, %v17366_v0 }
0x5499   :  { %16822 = vmatprep.subr.mxu1 %v17366_v0 }
0x549a   :  { %16823 = vmatpush3.msra.mxu1 %v19577_v40 }
0x549b   :  { %16824 = vmatprep.subr.mxu1 %v17366_v0 }
0x549c   :  { %16825 = vmatpush3.msra.mxu1 %v19584_v19 }
0x549d   :  { %16826 = vmatprep.subr.mxu1 %v17366_v0 }
0x549e   :  { %16827 = vmatpush3.msra.mxu1 %v19589_v61 }
0x549f   :  { %16829 = vmatmul.mubr.msk.f32.vlgmr.msra.gmra.mxu1 %vm610_vm4, %v19798_v54  ;;  %16842 = vmatprep.subr.mxu1 %v17366_v0 }
0x54a0   :  { %16844 = vmatprep.mubr.msk.f32.mxu1 %vm17367_vm0, %v17366_v0 }
0x5553   :  { %v12494_v22 = vpop.f32.mrf.mxu1 }
0x5554   :  { %16802 = vmatmul.mubr.msk.f32.vlgmr.msra.gmra.mxu0 %vm892_vm9, %v12494_v22 }
0x5555   :  { %16810 = vmatpush3.msra.mxu0 %v19600_v60  ;;  %v16798_v10 = vpop.f32.mrf.mxu1  ;;  %16817 = vmatprep.mubr.msk.f32.mxu0 %vm17367_vm0, %v17366_v0 }
0x5556   :  { %16811 = vmatprep.subr.mxu0 %v17366_v0 }
0x5557   :  { %16812 = vmatpush3.msra.mxu0 %v19604_v1  ;;  %v19929_v40 = vpop.f32.mrf.mxu1 }
0x5558   :  { %16813 = vmatprep.subr.mxu0 %v17366_v0 }
0x5559   :  { %16814 = vmatpush3.msra.mxu0 %v19611_v48  ;;  %v16808_v19 = vpop.f32.mrf.mxu1 }
0x555a   :  { %16815 = vmatprep.subr.mxu0 %v17366_v0 }
0x555b   :  { %16816 = vmatpush3.msra.mxu0 %v19618_v34 }
0x555c   :  { %16818 = vmatmul.mubr.msk.f32.vlgmr.msra.gmra.mxu0 %vm610_vm4, %v19798_v54  ;;  %16831 = vmatprep.subr.mxu0 %v17366_v0 }
0x555d   :  { %16832 = vmatpush3.msra.mxu0 %v19623_v11  ;;  %16839 = vmatprep.mubr.msk.f32.mxu0 %vm17367_vm0, %v17366_v0 }
0x555e   :  { %16833 = vmatprep.subr.mxu0 %v17366_v0 }
0x555f   :  { %v12803_v61 = vpop.f32.mrf.mxu1  ;;  %16834 = vmatpush3.msra.mxu0 %v19630_v12 }
0x5560   :  { %v12804_v60 = vadd.f32 %v19634_v41, %v12803_v61  ;;  %16835 = vmatprep.subr.mxu0 %v17366_v0 }
0x5561   :  { %v16830_v1 = vpop.f32.mrf.mxu1  ;;  %16836 = vmatpush3.msra.mxu0 %v19640_v53 }
0x5562   :  { %16837 = vmatprep.subr.mxu0 %v17366_v0  ;;  %16843 = vmatpush3.xpose.msk.msra.mxu1 %vm892_vm9, %v12804_v60 }
0x5563   :  { %16838 = vmatpush3.msra.mxu0 %v19646_v37  ;;  %16847 = vmatprep.subr.mxu1 %v17366_v0  ;;  %v20344_v37 = vld [vmem:[#allocation71_spill] sm:$0xff] }
0x5564   :  { %16840 = vmatmul.mubr.msk.f32.vlgmr.msra.gmra.mxu0 %vm610_vm4, %v19798_v54  ;;  %16852 = vmatprep.subr.mxu0 %v17366_v0 }
0x5565   :  { %16853 = vmatpush3.msra.mxu0 %v19676_v56  ;;  %16854 = vmatprep.mubr.msk.f32.mxu0 %vm17367_vm0, %v17366_v0 }
0x5566   :  { %16868 = vmatprep.subr.mxu0 %v17366_v0 }
0x5614   :  { %v19957_v48 = vpop.f32.mrf.mxu0 }
0x5615   :  { %v12642_v20 = vadd.f32 %v19929_v40, %v19957_v48 }
0x5616   :  { %v16803_v34 = vpop.f32.mrf.mxu0 }
0x561c   :  { %v12722_v11 = vpop.f32.mrf.mxu0 }
0x561d   :  { %v12723_v12 = vadd.f32 %v19661_v49, %v12722_v11 }
0x561e   :  { %v16819_v41 = vpop.f32.mrf.mxu0 }
0x561f   :  { %16845 = vmatmul.mubr.msk.f32.vlgmr.msra.gmra.mxu1 %vm892_vm9, %v12723_v12  ;;  %v14545_v12 = vld [vmem:[%s20324_s29 + $0x2] ss:$0 sm:$0xff]  ;;  %v20359_v41 = vld [vmem:[#allocation66_spill] sm:$0xff] }
0x5620   :  { %16849 = vmatprep.mubr.msk.f32.mxu1 %vm17367_vm0, %v17366_v0 }
0x5624   :  { %v12884_v53 = vpop.f32.mrf.mxu0 }
0x5625   :  { %v12885_v56 = vadd.f32 %v20344_v37, %v12884_v53  ;;  %v9459_v53 = vadd.f32 %v14545_v12, %v20359_v41 }
0x5626   :  { %v16841_v17 = vpop.f32.mrf.mxu0 }
0x5627   :  { %16848 = vmatpush3.msk.msra.mxu1 %vm327_vm1, %v12885_v56  ;;  %v20360_v17 = vld [vmem:[#allocation69_spill] sm:$0xff] }
0x5628   :  { %16857 = vmatprep.subr.mxu1 %v17366_v0 }
0x56df   :  { %v12960_v23 = vpop.f32.mrf.mxu1 }
0x56e0   :  { %v12964_v38 = vsel %vm5447_vm13, %v12960_v23, -inf }
0x56e1   :  { %12965 = vmax.xlane.f32.xlu0 %v12964_v38  ;;  %v16846_v51 = vpop.f32.mrf.mxu1 }
0x576a   :  { %v12966_v49 = vpop.xlane.xlu0 %12965 }
0x576b   :  { %v12967_v28 = vsub.f32 %v12960_v23, %v12966_v49 }
0x576d   :  { %v12968_v30 = vmul.f32 1.442695, %v12967_v28 }
0x576f   :  { %17159 = vpow2.f32 %v12968_v30 }
0x577c   :  { %v17160_v33 = vpop.eup %17159 }
0x577d   :  { %v12970_v62 = vsel %vm5447_vm13, %v17160_v33, 0.0 }
0x577e   :  { %12971 = vadd.xlane.f32.xlu1 %v12970_v62  ;;  %v13630_v62 = vld [vmem:[%s20358_s27 + $0x10] sm:$0xff] }
0x5807   :  { %v12972_v16 = vpop.xlane.xlu1 %12971 }
0x5808   :  { %17161 = vrcp.f32 %v12972_v16  ;;  %v13629_v16 = vld [vmem:[%s20358_s27 + $0x8] sm:$0xff] }
0x5815   :  { %v17162_v6 = vpop.eup %17161 }
0x5816   :  { %v12974_v50 = vmul.f32 %v17162_v6, %v17160_v33  ;;  %v13631_v33 = vld [vmem:[%s20358_s27 + $0x18] sm:$0xff]  ;;  %v13628_v6 = vld [vmem:[%s20358_s27] sm:$0xff] }
0x5818   :  { %16850 = vmatmul.mubr.msk.f32.vlgmr.msra.gmra.mxu1 %vm5459_vm14, %v12974_v50 }
0x5819   :  { %16858 = vmatpush3.msra.mxu1 %v20345_v18  ;;  %16865 = vmatprep.mubr.msk.f32.mxu1 %vm17367_vm0, %v17366_v0 }
0x581a   :  { %16859 = vmatprep.subr.mxu1 %v17366_v0 }
0x581b   :  { %16860 = vmatpush3.msra.mxu1 %v20346_v46 }
0x581c   :  { %16861 = vmatprep.subr.mxu1 %v17366_v0 }
0x581d   :  { %16862 = vmatpush3.msra.mxu1 %v20347_v9  ;;  %v14559_v9 = vld [vmem:[%s20324_s29 + $0x4] ss:$0 sm:$0xff] }
0x581e   :  { %16863 = vmatprep.subr.mxu1 %v17366_v0 }
0x581f   :  { %16864 = vmatpush3.msra.mxu1 %v20348_v25  ;;  %v20362_v25 = vld [vmem:[#allocation70_spill] sm:$0xff] }
0x5820   :  { %16866 = vmatmul.mubr.msk.f32.vlgmr.msra.gmra.mxu1 %vm610_vm4, %v19798_v54  ;;  %16879 = vmatprep.subr.mxu1 %v17366_v0 }
0x5821   :  { %16880 = vmatpush3.msra.mxu1 %v20349_v43  ;;  %16887 = vmatprep.mubr.msk.f32.mxu1 %vm17367_vm0, %v17366_v0  ;;  %v9625_v43 = vadd.f32 %v14559_v9, %v20362_v25 }
0x5822   :  { %16881 = vmatprep.subr.mxu1 %v17366_v0 }
0x5823   :  { %16882 = vmatpush3.msra.mxu1 %v20350_v4 }
0x5824   :  { %16883 = vmatprep.subr.mxu1 %v17366_v0 }
0x5825   :  { %16884 = vmatpush3.msra.mxu1 %v20351_v2  ;;  %v14552_v2 = vld [vmem:[%s20324_s29 + $0x3] ss:$0 sm:$0xff] }
0x5826   :  { %16885 = vmatprep.subr.mxu1 %v17366_v0 }
0x5827   :  { %16886 = vmatpush3.msra.mxu1 %v20352_v32  ;;  %v13625_v32 = vadd.f32 1.0, %v9625_v43 }
0x5828   :  { %16888 = vmatmul.mubr.msk.f32.vlgmr.msra.gmra.mxu1 %vm610_vm4, %v19798_v54  ;;  %16900 = vmatprep.subr.mxu1 %v17366_v0 }
0x5829   :  { %16901 = vmatpush3.msra.mxu1 %v19784_v45  ;;  %16902 = vmatprep.mubr.msk.f32.mxu1 %vm17367_vm0, %v17366_v0  ;;  %v20355_v45 = vld [vmem:[#allocation63_spill] sm:$0xff] }
0x582a   :  { %16916 = vmatprep.subr.mxu1 %v17366_v0 }
0x58d8   :  { %v13047_v35 = vpop.f32.mrf.mxu1 }
0x58d9   :  { %16855 = vmatmul.mubr.msk.f32.vlgmr.msra.gmra.mxu0 %vm892_vm9, %v13047_v35 }
0x58da   :  { %16869 = vmatpush3.msra.mxu0 %v20353_v3  ;;  %v16851_v36 = vpop.f32.mrf.mxu1  ;;  %16876 = vmatprep.mubr.msk.f32.mxu0 %vm17367_vm0, %v17366_v0  ;;  %v20363_v3 = vld [vmem:[#allocation67_spill] sm:$0xff] }
0x58db   :  { %16870 = vmatprep.subr.mxu0 %v17366_v0  ;;  %v9542_v36 = vadd.f32 %v14552_v2, %v20363_v3  ;;  %v13998_v3 = vld [vmem:[%s17661_s20 + $0x10] sm:$0xff] }
0x58dc   :  { %16871 = vmatpush3.msra.mxu0 %v20354_v63 }
0x58dd   :  { %16872 = vmatprep.subr.mxu0 %v17366_v0 }
0x58de   :  { %16873 = vmatpush3.msra.mxu0 %v20355_v45 }
0x58df   :  { %16874 = vmatprep.subr.mxu0 %v17366_v0 }
0x58e0   :  { %v13203_v27 = vpop.f32.mrf.mxu1  ;;  %16875 = vmatpush3.msra.mxu0 %v20356_v8  ;;  %v13818_v8 = vld [vmem:[%s20361_s10 + $0x10] sm:$0xff] }
0x58e1   :  { %16877 = vmatmul.mubr.msk.f32.vlgmr.msra.gmra.mxu0 %vm610_vm4, %v19798_v54  ;;  %16890 = vmatprep.subr.mxu0 %v17366_v0  ;;  %v13204_v54 = vadd.f32 %v19766_v31, %v13203_v27  ;;  %v13819_v27 = vld [vmem:[%s20361_s10 + $0x18] sm:$0xff] }
0x58e2   :  { %v16867_v29 = vpop.f32.mrf.mxu1  ;;  %16892 = vmatprep.mubr.msk.f32.mxu0 %vm17367_vm0, %v17366_v0 }
0x58e3   :  { %v13817_v29 = vld [vmem:[%s20361_s10 + $0x8] sm:$0xff] }
0x58e8   :  { %v13365_v13 = vpop.f32.mrf.mxu1 }
0x58e9   :  { %v13366_v24 = vadd.f32 %v20357_v58, %v13365_v13  ;;  %v13816_v13 = vld [vmem:[%s20361_s10] sm:$0xff]  ;;  %v13732_v58 = vld [vmem:[%s20365_s11 + $0x58] sm:$0xff] }
0x58ea   :  { %v16889_v42 = vpop.f32.mrf.mxu1 }
0x58eb   :  { %v14761_v42 = vld [vmem:[%s20361_s10 + $0x38] sm:$0xff] }
0x5999   :  { %v13121_v55 = vpop.f32.mrf.mxu0 }
0x599a   :  { %v13125_v57 = vadd.f32 %v13121_v55, %v12642_v20  ;;  %v20364_v20 = vld [vmem:[#allocation62_spill] sm:$0xff] }
0x599b   :  { %v16856_v14 = vpop.f32.mrf.mxu0  ;;  %v14760_v55 = vld [vmem:[%s20361_s10 + $0x30] sm:$0xff] }
0x599c   :  { %v14758_v14 = vld [vmem:[%s20361_s10 + $0x20] sm:$0xff] }
0x59a1   :  { %v13284_v47 = vpop.f32.mrf.mxu0 }
0x59a2   :  { %v13285_v59 = vadd.f32 %v19763_v39, %v13284_v47  ;;  %v13736_v47 = vld [vmem:[%s20365_s11 + $0x78] sm:$0xff] }
0x59a3   :  { %v16878_v15 = vpop.f32.mrf.mxu0 }
0x59a4   :  { %16891 = vmatpush3.xpose.msk.msra.mxu0 %vm892_vm9, %v13285_v59  ;;  %v13735_v59 = vld [vmem:[%s20365_s11 + $0x70] sm:$0xff]  ;;  %v13734_v15 = vld [vmem:[%s20365_s11 + $0x68] sm:$0xff] }
0x59a5   :  { %16895 = vmatprep.subr.mxu0 %v17366_v0 }
0x59a7   :  { %16893 = vmatmul.mubr.msk.f32.vlgmr.msra.gmra.mxu0 %vm892_vm9, %v13204_v54  ;;  %v13733_v54 = vld [vmem:[%s20365_s11 + $0x60] sm:$0xff] }
0x59a8   :  { %16896 = vmatpush3.msk.msra.mxu0 %vm327_vm1, %v13366_v24  ;;  %16897 = vmatprep.mubr.msk.f32.mxu0 %vm17367_vm0, %v17366_v0  ;;  %v13731_v24 = vld [vmem:[%s20365_s11 + $0x50] sm:$0xff] }
0x59a9   :  { %16905 = vmatprep.subr.mxu0 %v17366_v0 }
0x5a67   :  { %v13441_v5 = vpop.f32.mrf.mxu0 }
0x5a68   :  { %v13445_v39 = vsel %vm5447_vm13, %v13441_v5, -inf }
0x5a69   :  { %13446 = vmax.xlane.f32.xlu0 %v13445_v39  ;;  %v16894_v7 = vpop.f32.mrf.mxu0  ;;  %v13729_v39 = vld [vmem:[%s20365_s11 + $0x40] sm:$0xff] }
0x5a6a   :  { %v13728_v7 = vld [vmem:[%s20365_s11 + $0x38] sm:$0xff] }
0x5af2   :  { %v13447_v21 = vpop.xlane.xlu0 %13446 }
0x5af3   :  { %v13448_v31 = vsub.f32 %v13441_v5, %v13447_v21  ;;  %v13730_v5 = vld [vmem:[%s20365_s11 + $0x48] sm:$0xff]  ;;  %v13727_v21 = vld [vmem:[%s20365_s11 + $0x30] sm:$0xff] }
0x5af5   :  { %v13449_v52 = vmul.f32 1.442695, %v13448_v31  ;;  %v13726_v31 = vld [vmem:[%s20365_s11 + $0x28] sm:$0xff] }
0x5af7   :  { %17163 = vpow2.f32 %v13449_v52  ;;  %v13725_v52 = vld [vmem:[%s20365_s11 + $0x20] sm:$0xff] }
0x5b04   :  { %v17164_v44 = vpop.eup %17163 }
0x5b05   :  { %v13451_v22 = vsel %vm5447_vm13, %v17164_v44, 0.0 }
0x5b06   :  { %13452 = vadd.xlane.f32.xlu1 %v13451_v22  ;;  %v13723_v22 = vld [vmem:[%s20365_s11 + $0x10] sm:$0xff] }
0x5b8f   :  { %v13453_v10 = vpop.xlane.xlu1 %13452 }
0x5b90   :  { %17165 = vrcp.f32 %v13453_v10  ;;  %v13722_v10 = vld [vmem:[%s20365_s11 + $0x8] sm:$0xff] }
0x5b9d   :  { %v17166_v40 = vpop.eup %17165 }
0x5b9e   :  { %v13455_v19 = vmul.f32 %v17166_v40, %v17164_v44  ;;  %v13724_v44 = vld [vmem:[%s20365_s11 + $0x18] sm:$0xff]  ;;  %v13721_v40 = vld [vmem:[%s20365_s11] sm:$0xff] }
0x5ba0   :  { %16898 = vmatmul.mubr.msk.f32.vlgmr.msra.gmra.mxu0 %vm5459_vm14, %v13455_v19  ;;  %v14753_v19 = vld [vmem:[#allocation9] ss:$0 sm:$0xff] }
0x5ba1   :  { %16913 = vmatprep.mubr.msk.f32.mxu0 %vm17367_vm0, %v17366_v0  ;;  %16906 = vmatpush3.msra.mxu0 %v13631_v33 }
0x5ba2   :  { %16907 = vmatprep.subr.mxu0 %v17366_v0 }
0x5ba3   :  { %16908 = vmatpush3.msra.mxu0 %v13630_v62  ;;  %v20366_v62 = vld [vmem:[#allocation68_spill] sm:$0xff] }
0x5ba4   :  { %16909 = vmatprep.subr.mxu0 %v17366_v0 }
0x5ba5   :  { %16910 = vmatpush3.msra.mxu0 %v13629_v16 }
0x5ba6   :  { %16911 = vmatprep.subr.mxu0 %v17366_v0 }
0x5ba7   :  { %16912 = vmatpush3.msra.mxu0 %v13628_v6 }
0x5ba8   :  { %16951 = vmatprep.subr.mxu0 %v17366_v0 }
0x5c60   :  { %v13528_v61 = vpop.f32.mrf.mxu0 }
0x5c61   :  { %16903 = vmatmul.mubr.msk.f32.vlgmr.msra.gmra.mxu1 %vm892_vm9, %v13528_v61 }
0x5c62   :  { %v16899_v60 = vpop.f32.mrf.mxu0  ;;  %16948 = vmatprep.mubr.msk.f32.mxu1 %vm17367_vm0, %v17366_v0  ;;  %16917 = vmatpush3.msra.mxu1 %v13736_v47 }
0x5c63   :  { %16918 = vmatprep.subr.mxu1 %v17366_v0 }
0x5c64   :  { %16919 = vmatpush3.msra.mxu1 %v13735_v59  ;;  %v14765_v59 = vld [vmem:[#allocation12] ss:$0 sm:$0xff] }
0x5c65   :  { %16920 = vmatprep.subr.mxu1 %v17366_v0 }
0x5c66   :  { %16921 = vmatpush3.msra.mxu1 %v13734_v15 }
0x5c67   :  { %16922 = vmatprep.subr.mxu1 %v17366_v0 }
0x5c68   :  { %16923 = vmatpush3.msra.mxu1 %v13733_v54 }
0x5c69   :  { %16924 = vmatprep.subr.mxu1 %v17366_v0 }
0x5c6a   :  { %16925 = vmatpush3.msra.mxu1 %v13732_v58 }
0x5c6b   :  { %16926 = vmatprep.subr.mxu1 %v17366_v0 }
0x5c6c   :  { %16927 = vmatpush3.msra.mxu1 %v13731_v24 }
0x5c6d   :  { %16928 = vmatprep.subr.mxu1 %v17366_v0 }
0x5c6e   :  { %16929 = vmatpush3.msra.mxu1 %v13730_v5 }
0x5c6f   :  { %16930 = vmatprep.subr.mxu1 %v17366_v0 }
0x5c70   :  { %16931 = vmatpush3.msra.mxu1 %v13729_v39 }
0x5c71   :  { %16932 = vmatprep.subr.mxu1 %v17366_v0 }
0x5c72   :  { %16933 = vmatpush3.msra.mxu1 %v13728_v7 }
0x5c73   :  { %16934 = vmatprep.subr.mxu1 %v17366_v0 }
0x5c74   :  { %16935 = vmatpush3.msra.mxu1 %v13727_v21 }
0x5c75   :  { %16936 = vmatprep.subr.mxu1 %v17366_v0 }
0x5c76   :  { %16937 = vmatpush3.msra.mxu1 %v13726_v31 }
0x5c77   :  { %16938 = vmatprep.subr.mxu1 %v17366_v0 }
0x5c78   :  { %16939 = vmatpush3.msra.mxu1 %v13725_v52 }
0x5c79   :  { %16940 = vmatprep.subr.mxu1 %v17366_v0 }
0x5c7a   :  { %16941 = vmatpush3.msra.mxu1 %v13724_v44 }
0x5c7b   :  { %16942 = vmatprep.subr.mxu1 %v17366_v0 }
0x5c7c   :  { %16943 = vmatpush3.msra.mxu1 %v13723_v22 }
0x5c7d   :  { %16944 = vmatprep.subr.mxu1 %v17366_v0 }
0x5c7e   :  { %16945 = vmatpush3.msra.mxu1 %v13722_v10 }
0x5c7f   :  { %16946 = vmatprep.subr.mxu1 %v17366_v0 }
0x5c80   :  { %16947 = vmatpush3.msra.mxu1 %v13721_v40 }
0x5d21   :  { %v13602_v1 = vpop.f32.mrf.mxu1 }
0x5d22   :  { %v13606_v48 = vadd.f32 %v13602_v1, %v13125_v57  ;;  %v14759_v57 = vld [vmem:[%s20361_s10 + $0x28] sm:$0xff] }
0x5d23   :  { %v16904_v34 = vpop.f32.mrf.mxu1 }
0x5d24   :  { %v13607_v11 = vadd.f32 %v19859_v26, %v13606_v48 }
0x5d26   :  { %13608 = vst.msk [vmem:[#allocation3 + $0x4] sm:$0xf] %vm661_vm6, %v13607_v11 }
0x5d2d   :  { %v13609_v37 = vld [vmem:[#allocation3] sm:$0xff] }
0x5d2e   :  { %v13610_v56 = vmul.f32 %v13609_v37, %v9459_v53 }
0x5d30   :  { %v20037_v23 = vadd.f32 %v13610_v56, %v20360_v17 }
0x5d32   :  { %v13612_v38 = vsel %vm610_vm4, %v20037_v23, 0.0 }
0x5d33   :  { %13613 = vadd.xlane.f32.xlu0 %v13612_v38 }
0x5dbc   :  { %v13614_v51 = vpop.xlane.xlu0 %13613 }
0x5dbd   :  { %v13615_v49 = vmul.f32 0.03125, %v13614_v51 }
0x5dbf   :  { %v13616_v26 = vsub.f32 %v20037_v23, %v13615_v49 }
0x5dc1   :  { %v13617_v28 = vmul.f32 %v13616_v26, %v13616_v26 }
0x5dc3   :  { %v13618_v30 = vsel %vm610_vm4, %v13617_v28, 0.0  ;;  %v14566_v28 = vld [vmem:[%s20324_s29 + $0x5] ss:$0 sm:$0xff] }
0x5dc4   :  { %13619 = vadd.xlane.f32.xlu1 %v13618_v30  ;;  %v14755_v30 = vld [vmem:[#allocation11] ss:$0 sm:$0xff]  ;;  %v9708_v16 = vadd.f32 %v14566_v28, %v20366_v62 }
0x5e4d   :  { %v13620_v50 = vpop.xlane.xlu1 %13619 }
0x5e4e   :  { %v13621_v18 = vmul.f32 0.03125, %v13620_v50 }
0x5e50   :  { %v13622_v46 = vadd.f32 1e-06, %v13621_v18 }
0x5e52   :  { %17167 = vrsqrt.f32 %v13622_v46 }
0x5e5f   :  { %v17168_v4 = vpop.eup %17167 }
0x5e60   :  { %v13624_v35 = vmul.f32 %v17168_v4, %v13616_v26 }
0x5e62   :  { %v13626_v63 = vmul.f32 %v13625_v32, %v13624_v35  ;;  %v13999_v35 = vld [vmem:[%s17661_s20 + $0x18] sm:$0xff] }
0x5e64   :  { %v13627_v45 = vadd.f32 %v13626_v63, %v9542_v36  ;;  %v13996_v36 = vld [vmem:[%s17661_s20] sm:$0xff] }
0x5e66   :  { %16914 = vmatmul.mubr.msk.f32.vlgmr.msra.gmra.mxu0 %vm610_vm4, %v13627_v45 }
0x5e67   :  { %16952 = vmatpush3.msra.mxu0 %v13819_v27  ;;  %16959 = vmatprep.mubr.msk.f32.mxu0 %vm17367_vm0, %v17366_v0 }
0x5e68   :  { %16953 = vmatprep.subr.mxu0 %v17366_v0 }
0x5e69   :  { %16954 = vmatpush3.msra.mxu0 %v13818_v8  ;;  %v14763_v8 = vld [vmem:[%s17656_s24 + $0x1] ss:$0 sm:$0xff] }
0x5e6a   :  { %16955 = vmatprep.subr.mxu0 %v17366_v0 }
0x5e6b   :  { %16956 = vmatpush3.msra.mxu0 %v13817_v29 }
0x5e6c   :  { %16957 = vmatprep.subr.mxu0 %v17366_v0 }
0x5e6d   :  { %16958 = vmatpush3.msra.mxu0 %v13816_v13 }
0x5e6e   :  { %16960 = vmatmul.mubr.msk.f32.vlgmr.msra.gmra.mxu0 %vm610_vm4, %v20364_v20  ;;  %16962 = vmatprep.subr.mxu0 %v17366_v0 }
0x5e6f   :  { %16963 = vmatpush3.msra.mxu0 %v14761_v42  ;;  %16970 = vmatprep.mubr.msk.f32.mxu0 %vm17367_vm0, %v17366_v0  ;;  %v14756_v42 = vld [vmem:[%s17656_s24] ss:$0 sm:$0xff] }
0x5e70   :  { %16964 = vmatprep.subr.mxu0 %v17366_v0 }
0x5e71   :  { %16965 = vmatpush3.msra.mxu0 %v14760_v55 }
0x5e72   :  { %16966 = vmatprep.subr.mxu0 %v17366_v0 }
0x5e73   :  { %16967 = vmatpush3.msra.mxu0 %v14759_v57 }
0x5e74   :  { %16968 = vmatprep.subr.mxu0 %v17366_v0 }
0x5e75   :  { %16969 = vmatpush3.msra.mxu0 %v14758_v14 }
0x5e76   :  { %16971 = vmatmul.mubr.msk.f32.vlgmr.msra.gmra.mxu0 %vm610_vm4, %v20364_v20  ;;  %16973 = vmatprep.subr.mxu0 %v17366_v0 }
0x5e77   :  { %16981 = vmatprep.mubr.msk.f32.mxu0 %vm17367_vm0, %v17366_v0  ;;  %16974 = vmatpush3.msra.mxu0 %v13999_v35 }
0x5e78   :  { %16975 = vmatprep.subr.mxu0 %v17366_v0 }
0x5e79   :  { %16976 = vmatpush3.msra.mxu0 %v13998_v3 }
0x5e7a   :  { %16977 = vmatprep.subr.mxu0 %v17366_v0 }
0x5f26   :  { %v13708_v61 = vpop.f32.mrf.mxu0 }
0x5f27   :  { %v13709_v60 = vadd.f32 %v14753_v19, %v13708_v61 }
0x5f28   :  { %v16915_v1 = vpop.f32.mrf.mxu0 }
0x5f29   :  { %v13713_v48 = vmul.f32 0.044715, %v13709_v60  ;;  %v13712_v51 = vmul.f32 0.5, %v13709_v60 }
0x5f2b   :  { %v13714_v34 = vmul.f32 %v13713_v48, %v13709_v60 }
0x5f2d   :  { %v13715_v11 = vmul.f32 %v13714_v34, %v13709_v60 }
0x5f2e   :  { %v13893_v12 = vpop.f32.mrf.mxu0 }
0x5f2f   :  { %v13716_v41 = vadd.f32 %v13715_v11, %v13709_v60  ;;  %v13894_v57 = vadd.f32 %v14756_v42, %v13893_v12 }
0x5f30   :  { %v16961_v53 = vpop.f32.mrf.mxu0 }
0x5f31   :  { %v13717_v37 = vmul.f32 0.7978846, %v13716_v41 }
0x5f33   :  { %17169 = vtanh.f32 %v13717_v37 }
0x5f36   :  { %v13976_v56 = vpop.f32.mrf.mxu0 }
0x5f37   :  { %v13977_v29 = vadd.f32 %v14763_v8, %v13976_v56 }
0x5f38   :  { %v16972_v17 = vpop.f32.mrf.mxu0 }
0x5f39   :  { %v13993_v20 = vadd.f32 1.0, %v13977_v29 }
0x5f40   :  { %v17170_v38 = vpop.eup %17169 }
0x5f41   :  { %v13719_v49 = vadd.f32 1.0, %v17170_v38 }
0x5f43   :  { %v13720_v26 = vmul.f32 %v13719_v49, %v13712_v51 }
0x5f45   :  { %16949 = vmatmul.mubr.f32.vlgmr.msra.gmra.mxu1 %v13720_v26 }
0x6005   :  { %v13810_v33 = vpop.f32.mrf.mxu1 }
0x6006   :  { %v13811_v6 = vadd.f32 %v14755_v30, %v13810_v33 }
0x6007   :  { %v16950_v50 = vpop.f32.mrf.mxu1 }
0x6008   :  { %v13814_v18 = vmul.f32 %v13811_v6, %v9708_v16 }
0x600a   :  { %v13815_v46 = vadd.f32 %v13814_v18, %v20037_v23  ;;  %v13997_v23 = vld [vmem:[%s17661_s20 + $0x8] sm:$0xff] }
0x600b   :  { %16978 = vmatpush3.msra.mxu0 %v13997_v23 }
0x600c   :  { %v13980_v9 = vsel %vm610_vm4, %v13815_v46, 0.0  ;;  %16979 = vmatprep.subr.mxu0 %v17366_v0 }
0x600d   :  { %13981 = vadd.xlane.f32.xlu0 %v13980_v9  ;;  %16980 = vmatpush3.msra.mxu0 %v13996_v36 }
0x6096   :  { %v13982_v25 = vpop.xlane.xlu0 %13981 }
0x6097   :  { %v13983_v43 = vmul.f32 0.03125, %v13982_v25 }
0x6099   :  { %v13984_v4 = vsub.f32 %v13815_v46, %v13983_v43 }
0x609b   :  { %v13985_v2 = vmul.f32 %v13984_v4, %v13984_v4 }
0x609d   :  { %v13986_v32 = vsel %vm610_vm4, %v13985_v2, 0.0 }
0x609e   :  { %13987 = vadd.xlane.f32.xlu1 %v13986_v32 }
0x6127   :  { %v13988_v63 = vpop.xlane.xlu1 %13987 }
0x6128   :  { %v13989_v45 = vmul.f32 0.03125, %v13988_v63 }
0x612a   :  { %v13990_v27 = vadd.f32 1e-06, %v13989_v45 }
0x612c   :  { %17171 = vrsqrt.f32 %v13990_v27 }
0x6139   :  { %v17172_v13 = vpop.eup %17171 }
0x613a   :  { %v13992_v55 = vmul.f32 %v17172_v13, %v13984_v4 }
0x613c   :  { %v13994_v14 = vmul.f32 %v13993_v20, %v13992_v55 }
0x613e   :  { %v13995_v47 = vadd.f32 %v13994_v14, %v13894_v57 }
0x6140   :  { %16982 = vmatmul.mubr.msk.f32.vlgmr.msra.gmra.mxu0 %vm610_vm4, %v13995_v47 }
0x6200   :  { %v14076_v15 = vpop.f32.mrf.mxu0 }
0x6201   :  { %v14077_v0 = vadd.f32 %v14765_v59, %v14076_v15 }
0x6202   :  { %v16983_v54 = vpop.f32.mrf.mxu0 }
0x6203   :  { %14080 = vst.msk [vmem:[%s17671_s6] sm:$0xff] %vm323_vm2, %v14077_v0 }
0x6204   :  { %14085 = vsyncpa [#allocation5], 1 }
0x6205   :  { %14086 = vsyncpa [#allocation7], 1 }
0x6206   :  { %14087 = vsyncpa [#allocation10], 1 }
0x6207   :  { %14088 = vsyncpa [#allocation13], 1 }

</bundles_post_ra>
